<compile_context>
chip_gen: v7x
topology: tpu7x:2x2x1
jax: 0.10.0
libtpu: 0.0.40
codegen_flags: <defaults>
</compile_context>

<pallas_src>
import jax
import jax.numpy as jnp
from jax.experimental import pallas as pl
from jax.experimental.pallas import tpu as pltpu

D_IN, H1, H2, Z = 1845, 512, 128, 50
D_IN_P, Z_P = 1920, 128           # lane-padded sizes (multiples of 128)
HEAD_P = 2 * Z_P                  # fused mu||logvar head width


def _vae_kernel(x_ref, eps_ref,
                w1_ref, b1_ref, w2_ref, b2_ref,
                wh_ref, bh_ref,
                wd0_ref, bd0_ref, wd1_ref, bd1_ref,
                wo_ref, bo_ref,
                recon_ref, mu_ref, lv_ref):
    bf16 = jnp.bfloat16
    f32 = jnp.float32

    # ---- encoder ----
    x = x_ref[...]                       # already bf16 (cast done in wrapper)
    h1 = jnp.maximum(
        jnp.dot(x, w1_ref[...], preferred_element_type=f32) + b1_ref[...], 0.0)
    h2 = jnp.maximum(
        jnp.dot(h1.astype(bf16), w2_ref[...], preferred_element_type=f32) + b2_ref[...], 0.0)

    # fused mu || logvar head: one (TB,128)x(128,256) matmul, then lane-slice
    head = jnp.dot(h2.astype(bf16), wh_ref[...], preferred_element_type=f32) + bh_ref[...]
    mu = head[:, :Z_P]
    lv = head[:, Z_P:]
    mu_ref[...] = mu
    lv_ref[...] = lv

    # ---- reparameterize: z = eps * exp(0.5*logvar) + mu ----
    z = eps_ref[...] * jnp.exp(0.5 * lv) + mu

    # ---- decoder ----
    h3 = jnp.maximum(
        jnp.dot(z.astype(bf16), wd0_ref[...], preferred_element_type=f32) + bd0_ref[...], 0.0)
    h4 = jnp.maximum(
        jnp.dot(h3.astype(bf16), wd1_ref[...], preferred_element_type=f32) + bd1_ref[...], 0.0)
    logits = jnp.dot(h4.astype(bf16), wo_ref[...], preferred_element_type=f32) + bo_ref[...]
    recon_ref[...] = jax.nn.sigmoid(logits).astype(recon_ref.dtype)


def init_params(key):
    """PyTorch nn.Linear default init (U[-1/sqrt(fan_in), 1/sqrt(fan_in)]).
    Weights stored transposed as (in, out), zero-padded to lane-friendly sizes,
    and cast to bf16. Biases stay f32, shape (1, out_p). The mu/logvar heads
    are fused into a single (H2, 2*Z_P) weight. Zero padding is load-bearing
    (see module docstring)."""
    def linear(k, fan_in, fan_out):
        kw, kb = jax.random.split(k)
        bound = 1.0 / float(fan_in) ** 0.5
        w = jax.random.uniform(kw, (fan_in, fan_out), jnp.float32, -bound, bound)
        b = jax.random.uniform(kb, (fan_out,), jnp.float32, -bound, bound)
        return w, b

    def pad_w(w, pad_in, pad_out):
        out = jnp.zeros((pad_in, pad_out), jnp.float32)
        return out.at[:w.shape[0], :w.shape[1]].set(w).astype(jnp.bfloat16)

    def pad_b(b, pad_out):
        out = jnp.zeros((1, pad_out), jnp.float32)
        return out.at[0, :b.shape[0]].set(b)

    k = jax.random.split(key, 7)
    w1, b1 = linear(k[0], D_IN, H1)      # input_linear 1845->512
    w2, b2 = linear(k[1], H1, H2)        # enc_middle   512->128
    wmu, bmu = linear(k[2], H2, Z)       # enc_1        128->50
    wlv, blv = linear(k[3], H2, Z)       # enc_2        128->50
    wd0, bd0 = linear(k[4], Z, H2)       # dec_0        50->128
    wd1, bd1 = linear(k[5], H2, H1)      # dec_middle   128->512
    wo, bo = linear(k[6], H1, D_IN)      # output_linear 512->1845

    # fused mu||logvar head: (H2, 2*Z_P) bf16, (1, 2*Z_P) f32
    wh = jnp.concatenate(
        [pad_w(wmu, H2, Z_P), pad_w(wlv, H2, Z_P)], axis=1)
    bh = jnp.concatenate([pad_b(bmu, Z_P), pad_b(blv, Z_P)], axis=1)

    return (pad_w(w1, D_IN_P, H1), pad_b(b1, H1),
            pad_w(w2, H1, H2),     pad_b(b2, H2),
            wh,                    bh,
            pad_w(wd0, Z_P, H2),   pad_b(bd0, H2),
            pad_w(wd1, H2, H1),    pad_b(bd1, H1),
            pad_w(wo, H1, D_IN_P), pad_b(bo, D_IN_P))


def _tpu_vmem_capacity_bytes():
    """Best-effort VMEM capacity query; conservative 64 MiB (v7x-class) fallback."""
    try:
        info = pltpu.get_tpu_info()
        for name in ("vmem_capacity_bytes", "vmem_size_bytes", "vmem_bytes"):
            v = getattr(info, name, None)
            if v:
                return int(v)
    except Exception:
        pass
    return 64 * 1024 * 1024


_TPU_VMEM_BYTES = _tpu_vmem_capacity_bytes()


def _pick_tb(B, big_vmem):
    """Batch tile. Small batches: one small (sublane-multiple) tile — the kernel
    is weight-DMA bound there and splitting buys nothing. Large batches:
    MXU-aligned tiles; 512 on 128 MiB parts, <=256 on v7x, where we also force
    >=2 grid steps so both TensorCores are used."""
    if B <= 128:
        return max(8, ((B + 7) // 8) * 8)
    tb_cap = 512 if big_vmem else 256
    if not big_vmem:
        # v7x: ensure at least 2 grid steps (two TensorCores) when B > 128.
        half = max(128, ((B + 1) // 2 + 127) // 128 * 128)
        tb_cap = min(tb_cap, half)
    return min(tb_cap, ((B + 127) // 128) * 128)


def vae_forward(x, eps, params, *, tb=None):
    """x: (B, 1845) float, eps: (B, 50) float (the randn_like noise).
    Returns (recon bf16 (B,1845), mu f32 (B,50), logvar f32 (B,50))."""
    B = x.shape[0]
    big_vmem = _TPU_VMEM_BYTES >= 96 * 1024 * 1024   # v5e/v6e: 128 MiB; v7x: 64 MiB
    if tb is None:
        tb = _pick_tb(B, big_vmem)
    n_steps = pl.cdiv(B, tb)

    # Feature-only padding; bf16 cast fused into the same pass. No batch-row
    # padding: the partial last block's garbage rows stay row-local and their
    # output writes are masked by Pallas.
    x_p = jnp.pad(x.astype(jnp.bfloat16), ((0, 0), (0, D_IN_P - D_IN)))
    eps_p = jnp.pad(eps.astype(jnp.float32), ((0, 0), (0, Z_P - Z)))

    x_spec = pl.BlockSpec((tb, D_IN_P), lambda i: (i, 0))
    eps_spec = pl.BlockSpec((tb, Z_P), lambda i: (i, 0))
    out_specs = (pl.BlockSpec((tb, D_IN_P), lambda i: (i, 0)),
                 pl.BlockSpec((tb, Z_P), lambda i: (i, 0)),
                 pl.BlockSpec((tb, Z_P), lambda i: (i, 0)))
    out_shape = (jax.ShapeDtypeStruct((B, D_IN_P), jnp.bfloat16),   # recon (bf16 write)
                 jax.ShapeDtypeStruct((B, Z_P), jnp.float32),       # mu
                 jax.ShapeDtypeStruct((B, Z_P), jnp.float32))       # logvar

    vmem_limit = (96 if big_vmem else 48) * 1024 * 1024
    # Single grid step: "arbitrary" so v7x does not duplicate the resident
    # weight DMA across both TensorCores. Multi-step: "parallel" (megacore).
    dims = ("parallel",) if n_steps > 1 else ("arbitrary",)

    def run(single_buffer_weights):
        if single_buffer_weights:
            # Weights/biases have constant index_maps -> fetched once; a second
            # pipeline buffer is pure VMEM waste, so request single-buffering.
            wspecs = [pl.BlockSpec(p.shape, lambda i: (0, 0),
                                   pipeline_mode=pl.Buffered(1)) for p in params]
        else:
            wspecs = [pl.BlockSpec(p.shape, lambda i: (0, 0)) for p in params]
        return pl.pallas_call(
            _vae_kernel,
            grid=(n_steps,),
            out_shape=out_shape,
            in_specs=[x_spec, eps_spec, *wspecs],
            out_specs=out_specs,
            compiler_params=pltpu.CompilerParams(
                dimension_semantics=dims,
                vmem_limit_bytes=vmem_limit),
        )(x_p, eps_p, *params)

    try:
        recon_p, mu_p, lv_p = run(True)
    except Exception:
        # pipeline_mode=pl.Buffered(1) not accepted by this JAX version on a
        # top-level BlockSpec -> fall back to default double-buffered weights.
        recon_p, mu_p, lv_p = run(False)

    return recon_p[:, :D_IN], mu_p[:, :Z], lv_p[:, :Z]


def _reference(x, eps, params):
    """Pure-JAX reference with the same bf16-weight / f32-accumulate math."""
    (w1, b1, w2, b2, wh, bh, wd0, bd0, wd1, bd1, wo, bo) = params
    bf16 = jnp.bfloat16

    def lin(a, w, b):
        return jnp.dot(a.astype(bf16), w, preferred_element_type=jnp.float32) + b

    h1 = jnp.maximum(lin(x, w1[:D_IN, :], b1[0]), 0.0)
    h2 = jnp.maximum(lin(h1, w2, b2[0]), 0.0)
    head = lin(h2, wh, bh[0])
    mu = head[:, :Z]
    lv = head[:, Z_P:Z_P + Z]
    z = eps * jnp.exp(0.5 * lv) + mu
    h3 = jnp.maximum(lin(z, wd0[:Z, :], bd0[0]), 0.0)
    h4 = jnp.maximum(lin(h3, wd1, bd1[0]), 0.0)
    recon = jax.nn.sigmoid(lin(h4, wo[:, :D_IN], bo[0, :D_IN]))
    return recon, mu, lv


if __name__ == "__main__":
    key = jax.random.PRNGKey(0)
    k_param, k_x, k_eps = jax.random.split(key, 3)

    params = init_params(k_param)
    B = 2
    x = jax.random.uniform(k_x, (B, D_IN), jnp.float32)    # flattened input (view(-1, 1845))
    eps = jax.random.normal(k_eps, (B, Z), jnp.float32)    # reparameterization noise

    recon, mu, logvar = vae_forward(x, eps, params)
    jax.block_until_ready((recon, mu, logvar))

    # sanity check vs pure-JAX reference (same bf16/f32 precision path;
    # recon is bf16 on purpose -> slightly looser tolerance)
    r_ref, mu_ref, lv_ref = _reference(x, eps, params)
    assert recon.shape == (B, D_IN) and mu.shape == (B, Z) and logvar.shape == (B, Z)
    assert jnp.allclose(recon.astype(jnp.float32), r_ref, rtol=2e-2, atol=2e-2)
    assert jnp.allclose(mu, mu_ref, rtol=1e-2, atol=1e-2)
    assert jnp.allclose(logvar, lv_ref, rtol=1e-2, atol=1e-2)

    print("KERNEL_OK")
</pallas_src>

<mosaic_0001>
module attributes {stable_mosaic.version = 11 : i64} {
  func.func @_vae_kernel(%arg0: i32, %arg1: memref<8x1920xbf16, #tpu.memory_space<vmem>>, %arg2: memref<8x128xf32, #tpu.memory_space<vmem>>, %arg3: memref<1920x512xbf16, #tpu.memory_space<vmem>>, %arg4: memref<1x512xf32, #tpu.memory_space<vmem>>, %arg5: memref<512x128xbf16, #tpu.memory_space<vmem>>, %arg6: memref<1x128xf32, #tpu.memory_space<vmem>>, %arg7: memref<128x256xbf16, #tpu.memory_space<vmem>>, %arg8: memref<1x256xf32, #tpu.memory_space<vmem>>, %arg9: memref<128x128xbf16, #tpu.memory_space<vmem>>, %arg10: memref<1x128xf32, #tpu.memory_space<vmem>>, %arg11: memref<128x512xbf16, #tpu.memory_space<vmem>>, %arg12: memref<1x512xf32, #tpu.memory_space<vmem>>, %arg13: memref<512x1920xbf16, #tpu.memory_space<vmem>>, %arg14: memref<1x1920xf32, #tpu.memory_space<vmem>>, %arg15: memref<8x1920xbf16, #tpu.memory_space<vmem>>, %arg16: memref<8x128xf32, #tpu.memory_space<vmem>>, %arg17: memref<8x128xf32, #tpu.memory_space<vmem>>) attributes {dimension_semantics = [#tpu.dimension_semantics<arbitrary>], iteration_bounds = array<i64: 1>, scalar_prefetch = 0 : i64, scratch_operands = 0 : i64, tpu.core_type = #tpu.core_type<tc>, window_params = [{transform_indices = @transform_0, window_bounds = array<i64: 8, 1920>}, {transform_indices = @transform_1, window_bounds = array<i64: 8, 128>}, {pipeline_mode = #tpu.pipeline_mode<synchronous>, transform_indices = @transform_2, window_bounds = array<i64: 1920, 512>}, {pipeline_mode = #tpu.pipeline_mode<synchronous>, transform_indices = @transform_3, window_bounds = array<i64: 1, 512>}, {pipeline_mode = #tpu.pipeline_mode<synchronous>, transform_indices = @transform_4, window_bounds = array<i64: 512, 128>}, {pipeline_mode = #tpu.pipeline_mode<synchronous>, transform_indices = @transform_5, window_bounds = array<i64: 1, 128>}, {pipeline_mode = #tpu.pipeline_mode<synchronous>, transform_indices = @transform_6, window_bounds = array<i64: 128, 256>}, {pipeline_mode = #tpu.pipeline_mode<synchronous>, transform_indices = @transform_7, window_bounds = array<i64: 1, 256>}, {pipeline_mode = #tpu.pipeline_mode<synchronous>, transform_indices = @transform_8, window_bounds = array<i64: 128, 128>}, {pipeline_mode = #tpu.pipeline_mode<synchronous>, transform_indices = @transform_9, window_bounds = array<i64: 1, 128>}, {pipeline_mode = #tpu.pipeline_mode<synchronous>, transform_indices = @transform_10, window_bounds = array<i64: 128, 512>}, {pipeline_mode = #tpu.pipeline_mode<synchronous>, transform_indices = @transform_11, window_bounds = array<i64: 1, 512>}, {pipeline_mode = #tpu.pipeline_mode<synchronous>, transform_indices = @transform_12, window_bounds = array<i64: 512, 1920>}, {pipeline_mode = #tpu.pipeline_mode<synchronous>, transform_indices = @transform_13, window_bounds = array<i64: 1, 1920>}, {transform_indices = @transform_14, window_bounds = array<i64: 8, 1920>}, {transform_indices = @transform_15, window_bounds = array<i64: 8, 128>}, {transform_indices = @transform_16, window_bounds = array<i64: 8, 128>}]} {
    %c0 = arith.constant 0 : index
    %c0_0 = arith.constant 0 : index
    %0 = vector.load %arg1[%c0, %c0_0] : memref<8x1920xbf16, #tpu.memory_space<vmem>>, vector<8x1920xbf16>
    %c0_1 = arith.constant 0 : index
    %c0_2 = arith.constant 0 : index
    %1 = vector.load %arg3[%c0_1, %c0_2] : memref<1920x512xbf16, #tpu.memory_space<vmem>>, vector<1920x512xbf16>
    %cst = arith.constant dense<0.000000e+00> : vector<8x512xf32>
    %2 = tpu.matmul %0, %1, %cst {dimension_numbers = #tpu.dot_dimension_numbers<[1], [0], [0], [1], [0, 0, 1, 1], [], []>} : vector<8x1920xbf16>, vector<1920x512xbf16>, vector<8x512xf32> -> vector<8x512xf32>
    %c0_3 = arith.constant 0 : index
    %c0_4 = arith.constant 0 : index
    %3 = vector.load %arg4[%c0_3, %c0_4] : memref<1x512xf32, #tpu.memory_space<vmem>>, vector<1x512xf32>
    %4 = vector.broadcast %3 : vector<1x512xf32> to vector<8x512xf32>
    %5 = arith.addf %2, %4 : vector<8x512xf32>
    %cst_5 = arith.constant 0.000000e+00 : f32
    %6 = vector.broadcast %cst_5 : f32 to vector<8x512xf32>
    %7 = arith.maximumf %5, %6 : vector<8x512xf32>
    %8 = arith.truncf %7 : vector<8x512xf32> to vector<8x512xbf16>
    %c0_6 = arith.constant 0 : index
    %c0_7 = arith.constant 0 : index
    %9 = vector.load %arg5[%c0_6, %c0_7] : memref<512x128xbf16, #tpu.memory_space<vmem>>, vector<512x128xbf16>
    %cst_8 = arith.constant dense<0.000000e+00> : vector<8x128xf32>
    %10 = tpu.matmul %8, %9, %cst_8 {dimension_numbers = #tpu.dot_dimension_numbers<[1], [0], [0], [1], [0, 0, 1, 1], [], []>} : vector<8x512xbf16>, vector<512x128xbf16>, vector<8x128xf32> -> vector<8x128xf32>
    %c0_9 = arith.constant 0 : index
    %c0_10 = arith.constant 0 : index
    %11 = vector.load %arg6[%c0_9, %c0_10] : memref<1x128xf32, #tpu.memory_space<vmem>>, vector<1x128xf32>
    %12 = vector.broadcast %11 : vector<1x128xf32> to vector<8x128xf32>
    %13 = arith.addf %10, %12 : vector<8x128xf32>
    %cst_11 = arith.constant 0.000000e+00 : f32
    %14 = vector.broadcast %cst_11 : f32 to vector<8x128xf32>
    %15 = arith.maximumf %13, %14 : vector<8x128xf32>
    %16 = arith.truncf %15 : vector<8x128xf32> to vector<8x128xbf16>
    %c0_12 = arith.constant 0 : index
    %c0_13 = arith.constant 0 : index
    %17 = vector.load %arg7[%c0_12, %c0_13] : memref<128x256xbf16, #tpu.memory_space<vmem>>, vector<128x256xbf16>
    %cst_14 = arith.constant dense<0.000000e+00> : vector<8x256xf32>
    %18 = tpu.matmul %16, %17, %cst_14 {dimension_numbers = #tpu.dot_dimension_numbers<[1], [0], [0], [1], [0, 0, 1, 1], [], []>} : vector<8x128xbf16>, vector<128x256xbf16>, vector<8x256xf32> -> vector<8x256xf32>
    %c0_15 = arith.constant 0 : index
    %c0_16 = arith.constant 0 : index
    %19 = vector.load %arg8[%c0_15, %c0_16] : memref<1x256xf32, #tpu.memory_space<vmem>>, vector<1x256xf32>
    %20 = vector.broadcast %19 : vector<1x256xf32> to vector<8x256xf32>
    %21 = arith.addf %18, %20 : vector<8x256xf32>
    %22 = vector.extract_strided_slice %21 {offsets = [0, 0], sizes = [8, 128], strides = [1, 1]} : vector<8x256xf32> to vector<8x128xf32>
    %23 = vector.extract_strided_slice %21 {offsets = [0, 128], sizes = [8, 128], strides = [1, 1]} : vector<8x256xf32> to vector<8x128xf32>
    %c0_17 = arith.constant 0 : index
    %c0_18 = arith.constant 0 : index
    %24 = vector.load %arg16[%c0_17, %c0_18] : memref<8x128xf32, #tpu.memory_space<vmem>>, vector<8x128xf32>
    tpu.vector_store %arg16[%c0_17, %c0_18], %22 {strides = array<i32>} : memref<8x128xf32, #tpu.memory_space<vmem>>, vector<8x128xf32>,
    %c0_19 = arith.constant 0 : index
    %c0_20 = arith.constant 0 : index
    %25 = vector.load %arg17[%c0_19, %c0_20] : memref<8x128xf32, #tpu.memory_space<vmem>>, vector<8x128xf32>
    tpu.vector_store %arg17[%c0_19, %c0_20], %23 {strides = array<i32>} : memref<8x128xf32, #tpu.memory_space<vmem>>, vector<8x128xf32>,
    %c0_21 = arith.constant 0 : index
    %c0_22 = arith.constant 0 : index
    %26 = vector.load %arg2[%c0_21, %c0_22] : memref<8x128xf32, #tpu.memory_space<vmem>>, vector<8x128xf32>
    %cst_23 = arith.constant 5.000000e-01 : f32
    %27 = vector.broadcast %cst_23 : f32 to vector<8x128xf32>
    %28 = arith.mulf %27, %23 : vector<8x128xf32>
    %29 = math.exp %28 : vector<8x128xf32>
    %30 = arith.mulf %26, %29 : vector<8x128xf32>
    %31 = arith.addf %30, %22 : vector<8x128xf32>
    %32 = arith.truncf %31 : vector<8x128xf32> to vector<8x128xbf16>
    %c0_24 = arith.constant 0 : index
    %c0_25 = arith.constant 0 : index
    %33 = vector.load %arg9[%c0_24, %c0_25] : memref<128x128xbf16, #tpu.memory_space<vmem>>, vector<128x128xbf16>
    %cst_26 = arith.constant dense<0.000000e+00> : vector<8x128xf32>
    %34 = tpu.matmul %32, %33, %cst_26 {dimension_numbers = #tpu.dot_dimension_numbers<[1], [0], [0], [1], [0, 0, 1, 1], [], []>} : vector<8x128xbf16>, vector<128x128xbf16>, vector<8x128xf32> -> vector<8x128xf32>
    %c0_27 = arith.constant 0 : index
    %c0_28 = arith.constant 0 : index
    %35 = vector.load %arg10[%c0_27, %c0_28] : memref<1x128xf32, #tpu.memory_space<vmem>>, vector<1x128xf32>
    %36 = vector.broadcast %35 : vector<1x128xf32> to vector<8x128xf32>
    %37 = arith.addf %34, %36 : vector<8x128xf32>
    %cst_29 = arith.constant 0.000000e+00 : f32
    %38 = vector.broadcast %cst_29 : f32 to vector<8x128xf32>
    %39 = arith.maximumf %37, %38 : vector<8x128xf32>
    %40 = arith.truncf %39 : vector<8x128xf32> to vector<8x128xbf16>
    %c0_30 = arith.constant 0 : index
    %c0_31 = arith.constant 0 : index
    %41 = vector.load %arg11[%c0_30, %c0_31] : memref<128x512xbf16, #tpu.memory_space<vmem>>, vector<128x512xbf16>
    %cst_32 = arith.constant dense<0.000000e+00> : vector<8x512xf32>
    %42 = tpu.matmul %40, %41, %cst_32 {dimension_numbers = #tpu.dot_dimension_numbers<[1], [0], [0], [1], [0, 0, 1, 1], [], []>} : vector<8x128xbf16>, vector<128x512xbf16>, vector<8x512xf32> -> vector<8x512xf32>
    %c0_33 = arith.constant 0 : index
    %c0_34 = arith.constant 0 : index
    %43 = vector.load %arg12[%c0_33, %c0_34] : memref<1x512xf32, #tpu.memory_space<vmem>>, vector<1x512xf32>
    %44 = vector.broadcast %43 : vector<1x512xf32> to vector<8x512xf32>
    %45 = arith.addf %42, %44 : vector<8x512xf32>
    %cst_35 = arith.constant 0.000000e+00 : f32
    %46 = vector.broadcast %cst_35 : f32 to vector<8x512xf32>
    %47 = arith.maximumf %45, %46 : vector<8x512xf32>
    %48 = arith.truncf %47 : vector<8x512xf32> to vector<8x512xbf16>
    %c0_36 = arith.constant 0 : index
    %c0_37 = arith.constant 0 : index
    %49 = vector.load %arg13[%c0_36, %c0_37] : memref<512x1920xbf16, #tpu.memory_space<vmem>>, vector<512x1920xbf16>
    %cst_38 = arith.constant dense<0.000000e+00> : vector<8x1920xf32>
    %50 = tpu.matmul %48, %49, %cst_38 {dimension_numbers = #tpu.dot_dimension_numbers<[1], [0], [0], [1], [0, 0, 1, 1], [], []>} : vector<8x512xbf16>, vector<512x1920xbf16>, vector<8x1920xf32> -> vector<8x1920xf32>
    %c0_39 = arith.constant 0 : index
    %c0_40 = arith.constant 0 : index
    %51 = vector.load %arg14[%c0_39, %c0_40] : memref<1x1920xf32, #tpu.memory_space<vmem>>, vector<1x1920xf32>
    %52 = vector.broadcast %51 : vector<1x1920xf32> to vector<8x1920xf32>
    %53 = arith.addf %50, %52 : vector<8x1920xf32>
    %54 = arith.negf %53 : vector<8x1920xf32>
    %55 = math.exp %54 : vector<8x1920xf32>
    %cst_41 = arith.constant 1.000000e+00 : f32
    %56 = vector.broadcast %cst_41 : f32 to vector<8x1920xf32>
    %57 = arith.addf %56, %55 : vector<8x1920xf32>
    %58 = arith.divf %56, %57 : vector<8x1920xf32>
    %59 = arith.truncf %58 : vector<8x1920xf32> to vector<8x1920xbf16>
    %c0_42 = arith.constant 0 : index
    %c0_43 = arith.constant 0 : index
    %60 = vector.load %arg15[%c0_42, %c0_43] : memref<8x1920xbf16, #tpu.memory_space<vmem>>, vector<8x1920xbf16>
    tpu.vector_store %arg15[%c0_42, %c0_43], %59 {strides = array<i32>} : memref<8x1920xbf16, #tpu.memory_space<vmem>>, vector<8x1920xbf16>,
    return
  }
  func.func @transform_0(%arg0: i32) -> (i32, i32) {
    %c0_i32 = arith.constant 0 : i32
    %c0_i32_0 = arith.constant 0 : i32
    return %arg0, %c0_i32 : i32, i32
  }
  func.func @transform_1(%arg0: i32) -> (i32, i32) {
    %c0_i32 = arith.constant 0 : i32
    %c0_i32_0 = arith.constant 0 : i32
    return %arg0, %c0_i32 : i32, i32
  }
  func.func @transform_2(%arg0: i32) -> (i32, i32) {
    %c0_i32 = arith.constant 0 : i32
    %c0_i32_0 = arith.constant 0 : i32
    %c0_i32_1 = arith.constant 0 : i32
    return %c0_i32, %c0_i32_0 : i32, i32
  }
  func.func @transform_3(%arg0: i32) -> (i32, i32) {
    %c0_i32 = arith.constant 0 : i32
    %c0_i32_0 = arith.constant 0 : i32
    %c0_i32_1 = arith.constant 0 : i32
    return %c0_i32, %c0_i32_0 : i32, i32
  }
  func.func @transform_4(%arg0: i32) -> (i32, i32) {
    %c0_i32 = arith.constant 0 : i32
    %c0_i32_0 = arith.constant 0 : i32
    %c0_i32_1 = arith.constant 0 : i32
    return %c0_i32, %c0_i32_0 : i32, i32
  }
  func.func @transform_5(%arg0: i32) -> (i32, i32) {
    %c0_i32 = arith.constant 0 : i32
    %c0_i32_0 = arith.constant 0 : i32
    %c0_i32_1 = arith.constant 0 : i32
    return %c0_i32, %c0_i32_0 : i32, i32
  }
  func.func @transform_6(%arg0: i32) -> (i32, i32) {
    %c0_i32 = arith.constant 0 : i32
    %c0_i32_0 = arith.constant 0 : i32
    %c0_i32_1 = arith.constant 0 : i32
    return %c0_i32, %c0_i32_0 : i32, i32
  }
  func.func @transform_7(%arg0: i32) -> (i32, i32) {
    %c0_i32 = arith.constant 0 : i32
    %c0_i32_0 = arith.constant 0 : i32
    %c0_i32_1 = arith.constant 0 : i32
    return %c0_i32, %c0_i32_0 : i32, i32
  }
  func.func @transform_8(%arg0: i32) -> (i32, i32) {
    %c0_i32 = arith.constant 0 : i32
    %c0_i32_0 = arith.constant 0 : i32
    %c0_i32_1 = arith.constant 0 : i32
    return %c0_i32, %c0_i32_0 : i32, i32
  }
  func.func @transform_9(%arg0: i32) -> (i32, i32) {
    %c0_i32 = arith.constant 0 : i32
    %c0_i32_0 = arith.constant 0 : i32
    %c0_i32_1 = arith.constant 0 : i32
    return %c0_i32, %c0_i32_0 : i32, i32
  }
  func.func @transform_10(%arg0: i32) -> (i32, i32) {
    %c0_i32 = arith.constant 0 : i32
    %c0_i32_0 = arith.constant 0 : i32
    %c0_i32_1 = arith.constant 0 : i32
    return %c0_i32, %c0_i32_0 : i32, i32
  }
  func.func @transform_11(%arg0: i32) -> (i32, i32) {
    %c0_i32 = arith.constant 0 : i32
    %c0_i32_0 = arith.constant 0 : i32
    %c0_i32_1 = arith.constant 0 : i32
    return %c0_i32, %c0_i32_0 : i32, i32
  }
  func.func @transform_12(%arg0: i32) -> (i32, i32) {
    %c0_i32 = arith.constant 0 : i32
    %c0_i32_0 = arith.constant 0 : i32
    %c0_i32_1 = arith.constant 0 : i32
    return %c0_i32, %c0_i32_0 : i32, i32
  }
  func.func @transform_13(%arg0: i32) -> (i32, i32) {
    %c0_i32 = arith.constant 0 : i32
    %c0_i32_0 = arith.constant 0 : i32
    %c0_i32_1 = arith.constant 0 : i32
    return %c0_i32, %c0_i32_0 : i32, i32
  }
  func.func @transform_14(%arg0: i32) -> (i32, i32) {
    %c0_i32 = arith.constant 0 : i32
    %c0_i32_0 = arith.constant 0 : i32
    return %arg0, %c0_i32 : i32, i32
  }
  func.func @transform_15(%arg0: i32) -> (i32, i32) {
    %c0_i32 = arith.constant 0 : i32
    %c0_i32_0 = arith.constant 0 : i32
    return %arg0, %c0_i32 : i32, i32
  }
  func.func @transform_16(%arg0: i32) -> (i32, i32) {
    %c0_i32 = arith.constant 0 : i32
    %c0_i32_0 = arith.constant 0 : i32
    return %arg0, %c0_i32 : i32, i32
  }
}

module attributes {stable_mosaic.version = 11 : i64} {
  func.func @_vae_kernel(%arg0: i32, %arg1: memref<8x1920xbf16, #tpu.memory_space<vmem>>, %arg2: memref<8x128xf32, #tpu.memory_space<vmem>>, %arg3: memref<1920x512xbf16, #tpu.memory_space<vmem>>, %arg4: memref<1x512xf32, #tpu.memory_space<vmem>>, %arg5: memref<512x128xbf16, #tpu.memory_space<vmem>>, %arg6: memref<1x128xf32, #tpu.memory_space<vmem>>, %arg7: memref<128x256xbf16, #tpu.memory_space<vmem>>, %arg8: memref<1x256xf32, #tpu.memory_space<vmem>>, %arg9: memref<128x128xbf16, #tpu.memory_space<vmem>>, %arg10: memref<1x128xf32, #tpu.memory_space<vmem>>, %arg11: memref<128x512xbf16, #tpu.memory_space<vmem>>, %arg12: memref<1x512xf32, #tpu.memory_space<vmem>>, %arg13: memref<512x1920xbf16, #tpu.memory_space<vmem>>, %arg14: memref<1x1920xf32, #tpu.memory_space<vmem>>, %arg15: memref<8x1920xbf16, #tpu.memory_space<vmem>>, %arg16: memref<8x128xf32, #tpu.memory_space<vmem>>, %arg17: memref<8x128xf32, #tpu.memory_space<vmem>>) attributes {dimension_semantics = [#tpu.dimension_semantics<arbitrary>], iteration_bounds = array<i64: 1>, scalar_prefetch = 0 : i64, scratch_operands = 0 : i64, tpu.core_type = #tpu.core_type<tc>, window_params = [{transform_indices = @transform_0, window_bounds = array<i64: 8, 1920>}, {transform_indices = @transform_1, window_bounds = array<i64: 8, 128>}, {pipeline_mode = #tpu.pipeline_mode<synchronous>, transform_indices = @transform_2, window_bounds = array<i64: 1920, 512>}, {pipeline_mode = #tpu.pipeline_mode<synchronous>, transform_indices = @transform_3, window_bounds = array<i64: 1, 512>}, {pipeline_mode = #tpu.pipeline_mode<synchronous>, transform_indices = @transform_4, window_bounds = array<i64: 512, 128>}, {pipeline_mode = #tpu.pipeline_mode<synchronous>, transform_indices = @transform_5, window_bounds = array<i64: 1, 128>}, {pipeline_mode = #tpu.pipeline_mode<synchronous>, transform_indices = @transform_6, window_bounds = array<i64: 128, 256>}, {pipeline_mode = #tpu.pipeline_mode<synchronous>, transform_indices = @transform_7, window_bounds = array<i64: 1, 256>}, {pipeline_mode = #tpu.pipeline_mode<synchronous>, transform_indices = @transform_8, window_bounds = array<i64: 128, 128>}, {pipeline_mode = #tpu.pipeline_mode<synchronous>, transform_indices = @transform_9, window_bounds = array<i64: 1, 128>}, {pipeline_mode = #tpu.pipeline_mode<synchronous>, transform_indices = @transform_10, window_bounds = array<i64: 128, 512>}, {pipeline_mode = #tpu.pipeline_mode<synchronous>, transform_indices = @transform_11, window_bounds = array<i64: 1, 512>}, {pipeline_mode = #tpu.pipeline_mode<synchronous>, transform_indices = @transform_12, window_bounds = array<i64: 512, 1920>}, {pipeline_mode = #tpu.pipeline_mode<synchronous>, transform_indices = @transform_13, window_bounds = array<i64: 1, 1920>}, {transform_indices = @transform_14, window_bounds = array<i64: 8, 1920>}, {transform_indices = @transform_15, window_bounds = array<i64: 8, 128>}, {transform_indices = @transform_16, window_bounds = array<i64: 8, 128>}]} {
    %c0 = arith.constant 0 : index
    %c0_0 = arith.constant 0 : index
    %0 = vector.load %arg1[%c0, %c0_0] : memref<8x1920xbf16, #tpu.memory_space<vmem>>, vector<8x1920xbf16>
    %c0_1 = arith.constant 0 : index
    %c0_2 = arith.constant 0 : index
    %1 = vector.load %arg3[%c0_1, %c0_2] : memref<1920x512xbf16, #tpu.memory_space<vmem>>, vector<1920x512xbf16>
    %cst = arith.constant dense<0.000000e+00> : vector<8x512xf32>
    %2 = tpu.matmul %0, %1, %cst {dimension_numbers = #tpu.dot_dimension_numbers<[1], [0], [0], [1], [0, 0, 1, 1], [], []>} : vector<8x1920xbf16>, vector<1920x512xbf16>, vector<8x512xf32> -> vector<8x512xf32>
    %c0_3 = arith.constant 0 : index
    %c0_4 = arith.constant 0 : index
    %3 = vector.load %arg4[%c0_3, %c0_4] : memref<1x512xf32, #tpu.memory_space<vmem>>, vector<1x512xf32>
    %4 = vector.broadcast %3 : vector<1x512xf32> to vector<8x512xf32>
    %5 = arith.addf %2, %4 : vector<8x512xf32>
    %cst_5 = arith.constant 0.000000e+00 : f32
    %6 = vector.broadcast %cst_5 : f32 to vector<8x512xf32>
    %7 = arith.maximumf %5, %6 : vector<8x512xf32>
    %8 = arith.truncf %7 : vector<8x512xf32> to vector<8x512xbf16>
    %c0_6 = arith.constant 0 : index
    %c0_7 = arith.constant 0 : index
    %9 = vector.load %arg5[%c0_6, %c0_7] : memref<512x128xbf16, #tpu.memory_space<vmem>>, vector<512x128xbf16>
    %cst_8 = arith.constant dense<0.000000e+00> : vector<8x128xf32>
    %10 = tpu.matmul %8, %9, %cst_8 {dimension_numbers = #tpu.dot_dimension_numbers<[1], [0], [0], [1], [0, 0, 1, 1], [], []>} : vector<8x512xbf16>, vector<512x128xbf16>, vector<8x128xf32> -> vector<8x128xf32>
    %c0_9 = arith.constant 0 : index
    %c0_10 = arith.constant 0 : index
    %11 = vector.load %arg6[%c0_9, %c0_10] : memref<1x128xf32, #tpu.memory_space<vmem>>, vector<1x128xf32>
    %12 = vector.broadcast %11 : vector<1x128xf32> to vector<8x128xf32>
    %13 = arith.addf %10, %12 : vector<8x128xf32>
    %cst_11 = arith.constant 0.000000e+00 : f32
    %14 = vector.broadcast %cst_11 : f32 to vector<8x128xf32>
    %15 = arith.maximumf %13, %14 : vector<8x128xf32>
    %16 = arith.truncf %15 : vector<8x128xf32> to vector<8x128xbf16>
    %c0_12 = arith.constant 0 : index
    %c0_13 = arith.constant 0 : index
    %17 = vector.load %arg7[%c0_12, %c0_13] : memref<128x256xbf16, #tpu.memory_space<vmem>>, vector<128x256xbf16>
    %cst_14 = arith.constant dense<0.000000e+00> : vector<8x256xf32>
    %18 = tpu.matmul %16, %17, %cst_14 {dimension_numbers = #tpu.dot_dimension_numbers<[1], [0], [0], [1], [0, 0, 1, 1], [], []>} : vector<8x128xbf16>, vector<128x256xbf16>, vector<8x256xf32> -> vector<8x256xf32>
    %c0_15 = arith.constant 0 : index
    %c0_16 = arith.constant 0 : index
    %19 = vector.load %arg8[%c0_15, %c0_16] : memref<1x256xf32, #tpu.memory_space<vmem>>, vector<1x256xf32>
    %20 = vector.broadcast %19 : vector<1x256xf32> to vector<8x256xf32>
    %21 = arith.addf %18, %20 : vector<8x256xf32>
    %22 = vector.extract_strided_slice %21 {offsets = [0, 0], sizes = [8, 128], strides = [1, 1]} : vector<8x256xf32> to vector<8x128xf32>
    %23 = vector.extract_strided_slice %21 {offsets = [0, 128], sizes = [8, 128], strides = [1, 1]} : vector<8x256xf32> to vector<8x128xf32>
    %c0_17 = arith.constant 0 : index
    %c0_18 = arith.constant 0 : index
    %24 = vector.load %arg16[%c0_17, %c0_18] : memref<8x128xf32, #tpu.memory_space<vmem>>, vector<8x128xf32>
    tpu.vector_store %arg16[%c0_17, %c0_18], %22 {strides = array<i32>} : memref<8x128xf32, #tpu.memory_space<vmem>>, vector<8x128xf32>,
    %c0_19 = arith.constant 0 : index
    %c0_20 = arith.constant 0 : index
    %25 = vector.load %arg17[%c0_19, %c0_20] : memref<8x128xf32, #tpu.memory_space<vmem>>, vector<8x128xf32>
    tpu.vector_store %arg17[%c0_19, %c0_20], %23 {strides = array<i32>} : memref<8x128xf32, #tpu.memory_space<vmem>>, vector<8x128xf32>,
    %c0_21 = arith.constant 0 : index
    %c0_22 = arith.constant 0 : index
    %26 = vector.load %arg2[%c0_21, %c0_22] : memref<8x128xf32, #tpu.memory_space<vmem>>, vector<8x128xf32>
    %cst_23 = arith.constant 5.000000e-01 : f32
    %27 = vector.broadcast %cst_23 : f32 to vector<8x128xf32>
    %28 = arith.mulf %27, %23 : vector<8x128xf32>
    %29 = math.exp %28 : vector<8x128xf32>
    %30 = arith.mulf %26, %29 : vector<8x128xf32>
    %31 = arith.addf %30, %22 : vector<8x128xf32>
    %32 = arith.truncf %31 : vector<8x128xf32> to vector<8x128xbf16>
    %c0_24 = arith.constant 0 : index
    %c0_25 = arith.constant 0 : index
    %33 = vector.load %arg9[%c0_24, %c0_25] : memref<128x128xbf16, #tpu.memory_space<vmem>>, vector<128x128xbf16>
    %cst_26 = arith.constant dense<0.000000e+00> : vector<8x128xf32>
    %34 = tpu.matmul %32, %33, %cst_26 {dimension_numbers = #tpu.dot_dimension_numbers<[1], [0], [0], [1], [0, 0, 1, 1], [], []>} : vector<8x128xbf16>, vector<128x128xbf16>, vector<8x128xf32> -> vector<8x128xf32>
    %c0_27 = arith.constant 0 : index
    %c0_28 = arith.constant 0 : index
    %35 = vector.load %arg10[%c0_27, %c0_28] : memref<1x128xf32, #tpu.memory_space<vmem>>, vector<1x128xf32>
    %36 = vector.broadcast %35 : vector<1x128xf32> to vector<8x128xf32>
    %37 = arith.addf %34, %36 : vector<8x128xf32>
    %cst_29 = arith.constant 0.000000e+00 : f32
    %38 = vector.broadcast %cst_29 : f32 to vector<8x128xf32>
    %39 = arith.maximumf %37, %38 : vector<8x128xf32>
    %40 = arith.truncf %39 : vector<8x128xf32> to vector<8x128xbf16>
    %c0_30 = arith.constant 0 : index
    %c0_31 = arith.constant 0 : index
    %41 = vector.load %arg11[%c0_30, %c0_31] : memref<128x512xbf16, #tpu.memory_space<vmem>>, vector<128x512xbf16>
    %cst_32 = arith.constant dense<0.000000e+00> : vector<8x512xf32>
    %42 = tpu.matmul %40, %41, %cst_32 {dimension_numbers = #tpu.dot_dimension_numbers<[1], [0], [0], [1], [0, 0, 1, 1], [], []>} : vector<8x128xbf16>, vector<128x512xbf16>, vector<8x512xf32> -> vector<8x512xf32>
    %c0_33 = arith.constant 0 : index
    %c0_34 = arith.constant 0 : index
    %43 = vector.load %arg12[%c0_33, %c0_34] : memref<1x512xf32, #tpu.memory_space<vmem>>, vector<1x512xf32>
    %44 = vector.broadcast %43 : vector<1x512xf32> to vector<8x512xf32>
    %45 = arith.addf %42, %44 : vector<8x512xf32>
    %cst_35 = arith.constant 0.000000e+00 : f32
    %46 = vector.broadcast %cst_35 : f32 to vector<8x512xf32>
    %47 = arith.maximumf %45, %46 : vector<8x512xf32>
    %48 = arith.truncf %47 : vector<8x512xf32> to vector<8x512xbf16>
    %c0_36 = arith.constant 0 : index
    %c0_37 = arith.constant 0 : index
    %49 = vector.load %arg13[%c0_36, %c0_37] : memref<512x1920xbf16, #tpu.memory_space<vmem>>, vector<512x1920xbf16>
    %cst_38 = arith.constant dense<0.000000e+00> : vector<8x1920xf32>
    %50 = tpu.matmul %48, %49, %cst_38 {dimension_numbers = #tpu.dot_dimension_numbers<[1], [0], [0], [1], [0, 0, 1, 1], [], []>} : vector<8x512xbf16>, vector<512x1920xbf16>, vector<8x1920xf32> -> vector<8x1920xf32>
    %c0_39 = arith.constant 0 : index
    %c0_40 = arith.constant 0 : index
    %51 = vector.load %arg14[%c0_39, %c0_40] : memref<1x1920xf32, #tpu.memory_space<vmem>>, vector<1x1920xf32>
    %52 = vector.broadcast %51 : vector<1x1920xf32> to vector<8x1920xf32>
    %53 = arith.addf %50, %52 : vector<8x1920xf32>
    %54 = arith.negf %53 : vector<8x1920xf32>
    %55 = math.exp %54 : vector<8x1920xf32>
    %cst_41 = arith.constant 1.000000e+00 : f32
    %56 = vector.broadcast %cst_41 : f32 to vector<8x1920xf32>
    %57 = arith.addf %56, %55 : vector<8x1920xf32>
    %58 = arith.divf %56, %57 : vector<8x1920xf32>
    %59 = arith.truncf %58 : vector<8x1920xf32> to vector<8x1920xbf16>
    %c0_42 = arith.constant 0 : index
    %c0_43 = arith.constant 0 : index
    %60 = vector.load %arg15[%c0_42, %c0_43] : memref<8x1920xbf16, #tpu.memory_space<vmem>>, vector<8x1920xbf16>
    tpu.vector_store %arg15[%c0_42, %c0_43], %59 {strides = array<i32>} : memref<8x1920xbf16, #tpu.memory_space<vmem>>, vector<8x1920xbf16>,
    return
  }
  func.func @transform_0(%arg0: i32) -> (i32, i32) {
    %c0_i32 = arith.constant 0 : i32
    %c0_i32_0 = arith.constant 0 : i32
    return %arg0, %c0_i32 : i32, i32
  }
  func.func @transform_1(%arg0: i32) -> (i32, i32) {
    %c0_i32 = arith.constant 0 : i32
    %c0_i32_0 = arith.constant 0 : i32
    return %arg0, %c0_i32 : i32, i32
  }
  func.func @transform_2(%arg0: i32) -> (i32, i32) {
    %c0_i32 = arith.constant 0 : i32
    %c0_i32_0 = arith.constant 0 : i32
    %c0_i32_1 = arith.constant 0 : i32
    return %c0_i32, %c0_i32_0 : i32, i32
  }
  func.func @transform_3(%arg0: i32) -> (i32, i32) {
    %c0_i32 = arith.constant 0 : i32
    %c0_i32_0 = arith.constant 0 : i32
    %c0_i32_1 = arith.constant 0 : i32
    return %c0_i32, %c0_i32_0 : i32, i32
  }
  func.func @transform_4(%arg0: i32) -> (i32, i32) {
    %c0_i32 = arith.constant 0 : i32
    %c0_i32_0 = arith.constant 0 : i32
    %c0_i32_1 = arith.constant 0 : i32
    return %c0_i32, %c0_i32_0 : i32, i32
  }
  func.func @transform_5(%arg0: i32) -> (i32, i32) {
    %c0_i32 = arith.constant 0 : i32
    %c0_i32_0 = arith.constant 0 : i32
    %c0_i32_1 = arith.constant 0 : i32
    return %c0_i32, %c0_i32_0 : i32, i32
  }
  func.func @transform_6(%arg0: i32) -> (i32, i32) {
    %c0_i32 = arith.constant 0 : i32
    %c0_i32_0 = arith.constant 0 : i32
    %c0_i32_1 = arith.constant 0 : i32
    return %c0_i32, %c0_i32_0 : i32, i32
  }
  func.func @transform_7(%arg0: i32) -> (i32, i32) {
    %c0_i32 = arith.constant 0 : i32
    %c0_i32_0 = arith.constant 0 : i32
    %c0_i32_1 = arith.constant 0 : i32
    return %c0_i32, %c0_i32_0 : i32, i32
  }
  func.func @transform_8(%arg0: i32) -> (i32, i32) {
    %c0_i32 = arith.constant 0 : i32
    %c0_i32_0 = arith.constant 0 : i32
    %c0_i32_1 = arith.constant 0 : i32
    return %c0_i32, %c0_i32_0 : i32, i32
  }
  func.func @transform_9(%arg0: i32) -> (i32, i32) {
    %c0_i32 = arith.constant 0 : i32
    %c0_i32_0 = arith.constant 0 : i32
    %c0_i32_1 = arith.constant 0 : i32
    return %c0_i32, %c0_i32_0 : i32, i32
  }
  func.func @transform_10(%arg0: i32) -> (i32, i32) {
    %c0_i32 = arith.constant 0 : i32
    %c0_i32_0 = arith.constant 0 : i32
    %c0_i32_1 = arith.constant 0 : i32
    return %c0_i32, %c0_i32_0 : i32, i32
  }
  func.func @transform_11(%arg0: i32) -> (i32, i32) {
    %c0_i32 = arith.constant 0 : i32
    %c0_i32_0 = arith.constant 0 : i32
    %c0_i32_1 = arith.constant 0 : i32
    return %c0_i32, %c0_i32_0 : i32, i32
  }
  func.func @transform_12(%arg0: i32) -> (i32, i32) {
    %c0_i32 = arith.constant 0 : i32
    %c0_i32_0 = arith.constant 0 : i32
    %c0_i32_1 = arith.constant 0 : i32
    return %c0_i32, %c0_i32_0 : i32, i32
  }
  func.func @transform_13(%arg0: i32) -> (i32, i32) {
    %c0_i32 = arith.constant 0 : i32
    %c0_i32_0 = arith.constant 0 : i32
    %c0_i32_1 = arith.constant 0 : i32
    return %c0_i32, %c0_i32_0 : i32, i32
  }
  func.func @transform_14(%arg0: i32) -> (i32, i32) {
    %c0_i32 = arith.constant 0 : i32
    %c0_i32_0 = arith.constant 0 : i32
    return %arg0, %c0_i32 : i32, i32
  }
  func.func @transform_15(%arg0: i32) -> (i32, i32) {
    %c0_i32 = arith.constant 0 : i32
    %c0_i32_0 = arith.constant 0 : i32
    return %arg0, %c0_i32 : i32, i32
  }
  func.func @transform_16(%arg0: i32) -> (i32, i32) {
    %c0_i32 = arith.constant 0 : i32
    %c0_i32_0 = arith.constant 0 : i32
    return %arg0, %c0_i32 : i32, i32
  }
}

</mosaic_0001>

<bundles_post_ra>
// kernel: tpu_custom_call.1
= control target key start
LH: loop header
LB: loop body
LE: loop exit
PB: predicated region body
PF: predicated region fallthrough
CT: control target
= control target key end

     0   :  { %s12829_s0 = inlined_call_operand.hbm [shape: bf16[2,1920], index: 0, kind: input, shape index: {}]   ;;  %s12830_s1 = inlined_call_operand.hbm [shape: f32[2,128], index: 1, kind: input, shape index: {}]   ;;  %s12831_s2 = inlined_call_operand.hbm [shape: bf16[1920,512], index: 2, kind: input, shape index: {}]   ;;  %s12832_s3 = inlined_call_operand.hbm [shape: f32[1,512], index: 3, kind: input, shape index: {}]   ;;  %s12833_s4 = inlined_call_operand.hbm [shape: bf16[512,128], index: 4, kind: input, shape index: {}]   ;;  %s12834_s5 = inlined_call_operand.hbm [shape: f32[1,128], index: 5, kind: input, shape index: {}]   ;;  %s12835_s6 = inlined_call_operand.hbm [shape: bf16[128,256], index: 6, kind: input, shape index: {}]   ;;  %s12836_s7 = inlined_call_operand.hbm [shape: f32[1,256], index: 7, kind: input, shape index: {}]   ;;  %s12837_s8 = inlined_call_operand.hbm [shape: bf16[128,128], index: 8, kind: input, shape index: {}]   ;;  %s12838_s9 = inlined_call_operand.hbm [shape: f32[1,128], index: 9, kind: input, shape index: {}]   ;;  %s12839_s10 = inlined_call_operand.hbm [shape: bf16[128,512], index: 10, kind: input, shape index: {}]   ;;  %s12840_s11 = inlined_call_operand.hbm [shape: f32[1,512], index: 11, kind: input, shape index: {}]   ;;  %s12841_s12 = inlined_call_operand.hbm [shape: bf16[512,1920], index: 12, kind: input, shape index: {}]   ;;  %s12842_s13 = inlined_call_operand.hbm [shape: f32[1,1920], index: 13, kind: input, shape index: {}]   ;;  %s12843_s14 = inlined_call_operand.hbm [shape: bf16[2,1920], index: 14, kind: output, shape index: {0}]   ;;  %s12844_s15 = inlined_call_operand.hbm [shape: f32[2,128], index: 15, kind: output, shape index: {1}]   ;;  %s12845_s16 = inlined_call_operand.hbm [shape: f32[2,128], index: 16, kind: output, shape index: {2}]  }
   0x1   :  { %12850 = sst [smem:[#allocation39_spill]] %s12829_s0 }
   0x2   :  { %12851 = sst [smem:[#allocation40_spill]] %s12845_s16 }
   0x3   :  { %22 = vsyncpa [#allocation3], 0 }
   0x4   :  { %23 = vsyncpa [#allocation6], 0 }
   0x5   :  { %24 = vsyncpa [#allocation9], 0 }
   0x6   :  { %25 = vsyncpa [#allocation12], 0 }
   0x7   :  { %26 = vsyncpa [#allocation15], 0 }
   0x8   :  { %27 = vsyncpa [#allocation18], 0 }
   0x9   :  { %28 = vsyncpa [#allocation21], 0 }
   0xa   :  { %29 = vsyncpa [#allocation24], 0 }
   0xb   :  { %30 = vsyncpa [#allocation4], 0 }
   0xc   :  { %31 = vsyncpa [#allocation27], 0 }
   0xd   :  { %36 = vsyncadd [#allocation3], 720  ;;  %s12212_s21 = smov [#allocation2]   ;;  %s12852_s25 = sld [smem:[#allocation39_spill]] }
   0xe   :  { %s37_s22 = sshll.u32 %s12212_s21, 4  ;;  %s38_s22 = int_to_ptr.vmem [resolvable:$true] %s37_s22 }
  0x13   :  { %s11818_s26 = scalar_lea.hbm %s12852_s25, 240 }
  0x14   :  { %p11819_p0 = scmp.ne.s32.totalorder %s12852_s25, %s11818_s26  ;;  %p11822_p1 = scmp.lt.u32.totalorder %s11818_s26, %s12852_s25 }
  0x16   :  { %p11824_p2 = pnand %p11822_p1, %p11819_p0 }
  0x18   :  { %11827 = shalt.err (!%p11824_p2)
}
  0x19   :  { %s11828_s0 = scalar_lea.vmem %s38_s22, 240  ;;  %s11832_s17 = scalar_lea.vmem %s38_s22, 960 }
  0x1a   :  { %p11829_p3 = scmp.ne.s32.totalorder %s38_s22, %s11828_s0  ;;  %p11833_p4 = scmp.lt.s32.totalorder %s38_s22, %s38_s22 }
  0x1b   :  { %p11834_p5 = scmp.lt.s32.totalorder %s11832_s17, %s11828_s0 }
  0x1d   :  { %p11835_p6 = por %p11834_p5, %p11833_p4 }
  0x1f   :  { %p11836_p7 = pnand %p11835_p6, %p11829_p3 }
  0x21   :  { %11839 = shalt.err (!%p11836_p7)
}
  0x22   :  { %s12847_s18 = smov 240   ;;  %s12848_s19 = smov 15  }
  0x23   :  { %43 = dma.hbm_to_vmem [thread:$0]  %s12852_s25, 240, %s38_s22, [#allocation3], %s12847_s18, %s12847_s18, %s12848_s19  }
  0x24   :  { %48 = vsyncadd [#allocation6], 96  ;;  %s12215_s23 = smov [#allocation5]   ;;  %s11840_s28 = scalar_lea.hbm %s12830_s1, 32 }
  0x25   :  { %s49_s24 = sshll.u32 %s12215_s23, 4  ;;  %p11841_p8 = scmp.ne.s32.totalorder %s12830_s1, %s11840_s28  ;;  %s50_s24 = int_to_ptr.vmem [resolvable:$true] %s49_s24 }
  0x26   :  { %p11844_p9 = scmp.lt.u32.totalorder %s11840_s28, %s12830_s1 }
  0x28   :  { %p11846_p10 = pnand %p11844_p9, %p11841_p8 }
  0x2a   :  { %11849 = shalt.err (!%p11846_p10)
}
  0x2b   :  { %s11850_s20 = scalar_lea.vmem %s50_s24, 32  ;;  %s11854_s22 = scalar_lea.vmem %s50_s24, 128 }
  0x2c   :  { %p11851_p11 = scmp.ne.s32.totalorder %s50_s24, %s11850_s20  ;;  %p11855_p12 = scmp.lt.s32.totalorder %s50_s24, %s50_s24 }
  0x2d   :  { %p11856_p13 = scmp.lt.s32.totalorder %s11854_s22, %s11850_s20 }
  0x2f   :  { %p11857_p0 = por %p11856_p13, %p11855_p12 }
  0x31   :  { %p11858_p1 = pnand %p11857_p0, %p11851_p11 }
  0x33   :  { %11861 = shalt.err (!%p11858_p1)
}
  0x34   :  { %s12216_s25 = smov 32   ;;  %s12217_s21 = smov 2  }
  0x35   :  { %55 = dma.hbm_to_vmem [thread:$0]  %s12830_s1, 32, %s50_s24, [#allocation6], %s12216_s25, %s12216_s25, %s12217_s21  }
  0x36   :  { %s12218_s27 = smov [#allocation8]   ;;  %s12219_s29 = smov [#allocation11]  }
  0x37   :  { %s74_s28 = sshll.u32 %s12218_s27, 4  ;;  %s96_s30 = sshll.u32 %s12219_s29, 4  ;;  %s75_s28 = int_to_ptr.vmem [resolvable:$true] %s74_s28  ;;  %s97_s30 = int_to_ptr.vmem [resolvable:$true] %s96_s30 }
  0x38   :  { %s11862_s20 = scalar_lea.hbm %s12832_s3, 64 }
  0x39   :  { %p11863_p2 = scmp.ne.s32.totalorder %s12832_s3, %s11862_s20  ;;  %p11866_p3 = scmp.lt.u32.totalorder %s11862_s20, %s12832_s3 }
  0x3b   :  { %p11868_p4 = pnand %p11866_p3, %p11863_p2 }
  0x3d   :  { %11871 = shalt.err (!%p11868_p4)
}
  0x3e   :  { %s11872_s1 = scalar_lea.vmem %s75_s28, 64  ;;  %p11877_p6 = scmp.lt.s32.totalorder %s75_s28, %s75_s28 }
  0x3f   :  { %p11873_p5 = scmp.ne.s32.totalorder %s75_s28, %s11872_s1  ;;  %p11878_p7 = scmp.lt.s32.totalorder %s11872_s1, %s11872_s1 }
  0x41   :  { %p11879_p8 = por %p11878_p7, %p11877_p6 }
  0x43   :  { %p11880_p9 = pnand %p11879_p8, %p11873_p5 }
  0x45   :  { %11883 = shalt.err (!%p11880_p9)
}
  0x46   :  { %77 = dma.hbm_to_vmem [thread:$0]  %s12832_s3, 64, %s75_s28, [#allocation9]  }
  0x47   :  { %s11884_s27 = scalar_lea.hbm %s12834_s5, 16 }
  0x48   :  { %p11885_p10 = scmp.ne.s32.totalorder %s12834_s5, %s11884_s27  ;;  %p11888_p11 = scmp.lt.u32.totalorder %s11884_s27, %s12834_s5 }
  0x4a   :  { %p11890_p12 = pnand %p11888_p11, %p11885_p10 }
  0x4c   :  { %11893 = shalt.err (!%p11890_p12)
}
  0x4d   :  { %s11894_s17 = scalar_lea.vmem %s97_s30, 16  ;;  %s11898_s20 = scalar_lea.vmem %s97_s30, 32 }
  0x4e   :  { %p11895_p13 = scmp.ne.s32.totalorder %s97_s30, %s11894_s17  ;;  %p11899_p0 = scmp.lt.s32.totalorder %s97_s30, %s97_s30 }
  0x4f   :  { %p11900_p1 = scmp.lt.s32.totalorder %s11898_s20, %s11894_s17 }
  0x51   :  { %p11901_p2 = por %p11900_p1, %p11899_p0 }
  0x53   :  { %p11902_p3 = pnand %p11901_p2, %p11895_p13 }
  0x55   :  { %11905 = shalt.err (!%p11902_p3)
}
  0x56   :  { %99 = dma.hbm_to_vmem [thread:$0]  %s12834_s5, 16, %s97_s30, [#allocation12]  }
  0x57   :  { %s12220_s22 = smov [#allocation14]   ;;  %s12221_s24 = smov [#allocation17]  }
  0x58   :  { %s118_s1 = sshll.u32 %s12220_s22, 4  ;;  %s140_s23 = sshll.u32 %s12221_s24, 4  ;;  %s119_s1 = int_to_ptr.vmem [resolvable:$true] %s118_s1  ;;  %s141_s23 = int_to_ptr.vmem [resolvable:$true] %s140_s23 }
  0x59   :  { %s11906_s27 = scalar_lea.hbm %s12836_s7, 32 }
  0x5a   :  { %p11907_p4 = scmp.ne.s32.totalorder %s12836_s7, %s11906_s27  ;;  %p11910_p5 = scmp.lt.u32.totalorder %s11906_s27, %s12836_s7 }
  0x5c   :  { %p11912_p6 = pnand %p11910_p5, %p11907_p4 }
  0x5e   :  { %11915 = shalt.err (!%p11912_p6)
}
  0x5f   :  { %s11916_s5 = scalar_lea.vmem %s119_s1, 32  ;;  %p11921_p8 = scmp.lt.s32.totalorder %s119_s1, %s119_s1 }
  0x60   :  { %p11917_p7 = scmp.ne.s32.totalorder %s119_s1, %s11916_s5  ;;  %p11922_p9 = scmp.lt.s32.totalorder %s11916_s5, %s11916_s5 }
  0x62   :  { %p11923_p10 = por %p11922_p9, %p11921_p8 }
  0x64   :  { %p11924_p11 = pnand %p11923_p10, %p11917_p7 }
  0x66   :  { %11927 = shalt.err (!%p11924_p11)
}
  0x67   :  { %121 = dma.hbm_to_vmem [thread:$0]  %s12836_s7, 32, %s119_s1, [#allocation15]  }
  0x68   :  { %s11928_s28 = scalar_lea.hbm %s12838_s9, 16 }
  0x69   :  { %p11929_p12 = scmp.ne.s32.totalorder %s12838_s9, %s11928_s28  ;;  %p11932_p13 = scmp.lt.u32.totalorder %s11928_s28, %s12838_s9 }
  0x6b   :  { %p11934_p0 = pnand %p11932_p13, %p11929_p12 }
  0x6d   :  { %11937 = shalt.err (!%p11934_p0)
}
  0x6e   :  { %s11938_s27 = scalar_lea.vmem %s141_s23, 16  ;;  %s11942_s16 = scalar_lea.vmem %s141_s23, 32 }
  0x6f   :  { %p11939_p1 = scmp.ne.s32.totalorder %s141_s23, %s11938_s27  ;;  %p11943_p2 = scmp.lt.s32.totalorder %s141_s23, %s141_s23 }
  0x70   :  { %p11944_p3 = scmp.lt.s32.totalorder %s11942_s16, %s11938_s27 }
  0x72   :  { %p11945_p4 = por %p11944_p3, %p11943_p2 }
  0x74   :  { %p11946_p5 = pnand %p11945_p4, %p11939_p1 }
  0x76   :  { %11949 = shalt.err (!%p11946_p5)
}
  0x77   :  { %143 = dma.hbm_to_vmem [thread:$0]  %s12838_s9, 16, %s141_s23, [#allocation18]  }
  0x78   :  { %s12222_s19 = smov [#allocation20]   ;;  %s12223_s0 = smov [#allocation7]  }
  0x79   :  { %s162_s29 = sshll.u32 %s12222_s19, 4  ;;  %s61_s5 = sshll.u32 %s12223_s0, 4  ;;  %s163_s29 = int_to_ptr.vmem [resolvable:$true] %s162_s29  ;;  %s62_s5 = int_to_ptr.vmem [resolvable:$true] %s61_s5 }
  0x7a   :  { %s11950_s20 = scalar_lea.hbm %s12840_s11, 64 }
  0x7b   :  { %p11951_p6 = scmp.ne.s32.totalorder %s12840_s11, %s11950_s20  ;;  %p11954_p7 = scmp.lt.u32.totalorder %s11950_s20, %s12840_s11 }
  0x7d   :  { %p11956_p8 = pnand %p11954_p7, %p11951_p6 }
  0x7f   :  { %11959 = shalt.err (!%p11956_p8)
}
  0x80   :  { %s11960_s9 = scalar_lea.vmem %s163_s29, 64  ;;  %p11965_p10 = scmp.lt.s32.totalorder %s163_s29, %s163_s29 }
  0x81   :  { %p11961_p9 = scmp.ne.s32.totalorder %s163_s29, %s11960_s9  ;;  %p11966_p11 = scmp.lt.s32.totalorder %s11960_s9, %s11960_s9 }
  0x83   :  { %p11967_p12 = por %p11966_p11, %p11965_p10 }
  0x85   :  { %p11968_p13 = pnand %p11967_p12, %p11961_p9 }
  0x87   :  { %11971 = shalt.err (!%p11968_p13)
}
  0x88   :  { %165 = dma.hbm_to_vmem [thread:$0]  %s12840_s11, 64, %s163_s29, [#allocation21]  }
  0x89   :  { %s11972_s16 = scalar_lea.hbm %s12831_s2, 61440 }
  0x8a   :  { %p11973_p0 = scmp.ne.s32.totalorder %s12831_s2, %s11972_s16  ;;  %p11976_p1 = scmp.lt.u32.totalorder %s11972_s16, %s12831_s2 }
  0x8c   :  { %p11978_p2 = pnand %p11976_p1, %p11973_p0 }
  0x8e   :  { %11981 = shalt.err (!%p11978_p2)
}
  0x8f   :  { %s11982_s30 = scalar_lea.vmem %s62_s5, 61440  ;;  %p11987_p4 = scmp.lt.s32.totalorder %s62_s5, %s62_s5 }
  0x90   :  { %p11983_p3 = scmp.ne.s32.totalorder %s62_s5, %s11982_s30  ;;  %p11988_p5 = scmp.lt.s32.totalorder %s11982_s30, %s11982_s30 }
  0x92   :  { %p11989_p6 = por %p11988_p5, %p11987_p4 }
  0x94   :  { %p11990_p7 = pnand %p11989_p6, %p11983_p3 }
  0x96   :  { %11993 = shalt.err (!%p11990_p7)
}
  0x97   :  { %s12224_s11 = smov 256   ;;  %s12225_s29 = smov 16  }
  0x98   :  { %67 = dma.hbm_to_vmem [thread:$0]  %s12831_s2, 61440, %s62_s5, [#allocation6], %s12224_s11, %s12224_s11, %s12225_s29  }
  0x99   :  { %s12226_s3 = smov [#allocation10]   ;;  %s11994_s9 = scalar_lea.hbm %s12833_s4, 4096 }
  0x9a   :  { %s83_s28 = sshll.u32 %s12226_s3, 4  ;;  %p11995_p8 = scmp.ne.s32.totalorder %s12833_s4, %s11994_s9  ;;  %s84_s28 = int_to_ptr.vmem [resolvable:$true] %s83_s28 }
  0x9b   :  { %p11998_p9 = scmp.lt.u32.totalorder %s11994_s9, %s12833_s4 }
  0x9d   :  { %p12000_p10 = pnand %p11998_p9, %p11995_p8 }
  0x9f   :  { %12003 = shalt.err (!%p12000_p10)
}
  0xa0   :  { %s12004_s16 = scalar_lea.vmem %s84_s28, 4096  ;;  %p12009_p12 = scmp.lt.s32.totalorder %s84_s28, %s84_s28 }
  0xa1   :  { %p12005_p11 = scmp.ne.s32.totalorder %s84_s28, %s12004_s16  ;;  %p12010_p13 = scmp.lt.s32.totalorder %s12004_s16, %s12004_s16 }
  0xa3   :  { %p12011_p0 = por %p12010_p13, %p12009_p12 }
  0xa5   :  { %p12012_p1 = pnand %p12011_p0, %p12005_p11 }
  0xa7   :  { %12015 = shalt.err (!%p12012_p1)
}
  0xa8   :  { %s12227_s2 = smov 64   ;;  %s12228_s5 = smov 4  }
  0xa9   :  { %89 = dma.hbm_to_vmem [thread:$0]  %s12833_s4, 4096, %s84_s28, [#allocation9], %s12227_s2, %s12227_s2, %s12228_s5  }
  0xaa   :  { %s12229_s19 = smov [#allocation13]   ;;  %s12016_s20 = scalar_lea.hbm %s12835_s6, 2048 }
  0xab   :  { %s105_s0 = sshll.u32 %s12229_s19, 4  ;;  %p12017_p2 = scmp.ne.s32.totalorder %s12835_s6, %s12016_s20  ;;  %s106_s0 = int_to_ptr.vmem [resolvable:$true] %s105_s0 }
  0xac   :  { %p12020_p3 = scmp.lt.u32.totalorder %s12016_s20, %s12835_s6 }
  0xae   :  { %p12022_p4 = pnand %p12020_p3, %p12017_p2 }
  0xb0   :  { %12025 = shalt.err (!%p12022_p4)
}
  0xb1   :  { %s12026_s23 = scalar_lea.vmem %s106_s0, 2048  ;;  %p12031_p6 = scmp.lt.s32.totalorder %s106_s0, %s106_s0 }
  0xb2   :  { %p12027_p5 = scmp.ne.s32.totalorder %s106_s0, %s12026_s23  ;;  %p12032_p7 = scmp.lt.s32.totalorder %s12026_s23, %s12026_s23 }
  0xb4   :  { %p12033_p8 = por %p12032_p7, %p12031_p6 }
  0xb6   :  { %p12034_p9 = pnand %p12033_p8, %p12027_p5 }
  0xb8   :  { %12037 = shalt.err (!%p12034_p9)
}
  0xb9   :  { %s12230_s4 = smov 128   ;;  %s12231_s28 = smov 8  }
  0xba   :  { %111 = dma.hbm_to_vmem [thread:$0]  %s12835_s6, 2048, %s106_s0, [#allocation12], %s12230_s4, %s12230_s4, %s12231_s28  }
  0xbb   :  { %s12232_s27 = smov [#allocation16]   ;;  %s12233_s7 = smov [#allocation19]  }
  0xbc   :  { %s127_s16 = sshll.u32 %s12232_s27, 4  ;;  %s149_s1 = sshll.u32 %s12233_s7, 4  ;;  %s128_s16 = int_to_ptr.vmem [resolvable:$true] %s127_s16  ;;  %s150_s1 = int_to_ptr.vmem [resolvable:$true] %s149_s1 }
  0xbd   :  { %s12038_s17 = scalar_lea.hbm %s12837_s8, 1024 }
  0xbe   :  { %p12039_p10 = scmp.ne.s32.totalorder %s12837_s8, %s12038_s17  ;;  %p12042_p11 = scmp.lt.u32.totalorder %s12038_s17, %s12837_s8 }
  0xc0   :  { %p12044_p12 = pnand %p12042_p11, %p12039_p10 }
  0xc2   :  { %12047 = shalt.err (!%p12044_p12)
}
  0xc3   :  { %s12048_s6 = scalar_lea.vmem %s128_s16, 1024  ;;  %p12053_p0 = scmp.lt.s32.totalorder %s128_s16, %s128_s16 }
  0xc4   :  { %p12049_p13 = scmp.ne.s32.totalorder %s128_s16, %s12048_s6  ;;  %p12054_p1 = scmp.lt.s32.totalorder %s12048_s6, %s12048_s6 }
  0xc6   :  { %p12055_p2 = por %p12054_p1, %p12053_p0 }
  0xc8   :  { %p12056_p3 = pnand %p12055_p2, %p12049_p13 }
  0xca   :  { %12059 = shalt.err (!%p12056_p3)
}
  0xcb   :  { %133 = dma.hbm_to_vmem [thread:$0]  %s12837_s8, 1024, %s128_s16, [#allocation15], %s12227_s2, %s12227_s2, %s12228_s5  }
  0xcc   :  { %s12060_s28 = scalar_lea.hbm %s12839_s10, 4096 }
  0xcd   :  { %p12061_p4 = scmp.ne.s32.totalorder %s12839_s10, %s12060_s28  ;;  %p12064_p5 = scmp.lt.u32.totalorder %s12060_s28, %s12839_s10 }
  0xcf   :  { %p12066_p6 = pnand %p12064_p5, %p12061_p4 }
  0xd1   :  { %12069 = shalt.err (!%p12066_p6)
}
  0xd2   :  { %s12070_s19 = scalar_lea.vmem %s150_s1, 4096  ;;  %p12075_p8 = scmp.lt.s32.totalorder %s150_s1, %s150_s1 }
  0xd3   :  { %p12071_p7 = scmp.ne.s32.totalorder %s150_s1, %s12070_s19  ;;  %p12076_p9 = scmp.lt.s32.totalorder %s12070_s19, %s12070_s19 }
  0xd5   :  { %p12077_p10 = por %p12076_p9, %p12075_p8 }
  0xd7   :  { %p12078_p11 = pnand %p12077_p10, %p12071_p7 }
  0xd9   :  { %12081 = shalt.err (!%p12078_p11)
}
  0xda   :  { %155 = dma.hbm_to_vmem [thread:$0]  %s12839_s10, 4096, %s150_s1, [#allocation18], %s12224_s11, %s12224_s11, %s12225_s29  }
  0xdb   :  { %s12234_s5 = smov [#allocation22]   ;;  %s12082_s20 = scalar_lea.hbm %s12841_s12, 61440 }
  0xdc   :  { %s171_s16 = sshll.u32 %s12234_s5, 4  ;;  %p12083_p12 = scmp.ne.s32.totalorder %s12841_s12, %s12082_s20  ;;  %s172_s16 = int_to_ptr.vmem [resolvable:$true] %s171_s16 }
  0xdd   :  { %p12086_p13 = scmp.lt.u32.totalorder %s12082_s20, %s12841_s12 }
  0xdf   :  { %p12088_p0 = pnand %p12086_p13, %p12083_p12 }
  0xe1   :  { %12091 = shalt.err (!%p12088_p0)
}
  0xe2   :  { %s12092_s0 = scalar_lea.vmem %s172_s16, 61440  ;;  %p12097_p2 = scmp.lt.s32.totalorder %s172_s16, %s172_s16 }
  0xe3   :  { %p12093_p1 = scmp.ne.s32.totalorder %s172_s16, %s12092_s0  ;;  %p12098_p3 = scmp.lt.s32.totalorder %s12092_s0, %s12092_s0 }
  0xe5   :  { %p12099_p4 = por %p12098_p3, %p12097_p2 }
  0xe7   :  { %p12100_p5 = pnand %p12099_p4, %p12093_p1 }
  0xe9   :  { %12103 = shalt.err (!%p12100_p5)
}
  0xea   :  { %s12235_s10 = smov 960   ;;  %s12236_s11 = smov 60  }
  0xeb   :  { %177 = dma.hbm_to_vmem [thread:$0]  %s12841_s12, 61440, %s172_s16, [#allocation21], %s12235_s10, %s12235_s10, %s12236_s11  }
  0xec   :  { %s12237_s9 = smov [#allocation23]   ;;  %s12104_s18 = scalar_lea.hbm %s12842_s13, 240 }
  0xed   :  { %s184_s23 = sshll.u32 %s12237_s9, 4  ;;  %p12105_p6 = scmp.ne.s32.totalorder %s12842_s13, %s12104_s18  ;;  %s185_s23 = int_to_ptr.vmem [resolvable:$true] %s184_s23 }
  0xee   :  { %p12108_p7 = scmp.lt.u32.totalorder %s12104_s18, %s12842_s13 }
  0xf0   :  { %p12110_p8 = pnand %p12108_p7, %p12105_p6 }
  0xf2   :  { %12113 = shalt.err (!%p12110_p8)
}
  0xf3   :  { %s12114_s8 = scalar_lea.vmem %s185_s23, 240  ;;  %s12118_s12 = scalar_lea.vmem %s185_s23, 256 }
  0xf4   :  { %p12115_p9 = scmp.ne.s32.totalorder %s185_s23, %s12114_s8  ;;  %p12119_p10 = scmp.lt.s32.totalorder %s185_s23, %s185_s23 }
  0xf5   :  { %p12120_p11 = scmp.lt.s32.totalorder %s12118_s12, %s12114_s8 }
  0xf7   :  { %p12121_p12 = por %p12120_p11, %p12119_p10 }
  0xf9   :  { %p12122_p13 = pnand %p12121_p12, %p12115_p9 }
  0xfb   :  { %12125 = shalt.err (!%p12122_p13)
}
  0xfc   :  { %187 = dma.hbm_to_vmem [thread:$0]  %s12842_s13, 240, %s185_s23, [#allocation24]  }
  0xfd   :  { %12192 = dma.done.wait [#allocation3], 960  }
  0xfe   :  { %12193 = vsyncadd [#allocation3], 4294966336 }
  0xff   :  { %12194 = dma.done.wait [#allocation6], 61568  }
 0x100   :  { %12195 = vsyncadd [#allocation6], 4294905728 }
 0x101   :  { %12196 = dma.done.wait [#allocation9], 4160  }
 0x102   :  { %12197 = vsyncadd [#allocation9], 4294963136 }
 0x103   :  { %12198 = dma.done.wait [#allocation12], 2064  }
 0x104   :  { %12199 = vsyncadd [#allocation12], 4294965232 }
 0x105   :  { %12200 = dma.done.wait [#allocation15], 1056  }
 0x106   :  { %12201 = vsyncadd [#allocation15], 4294966240 }
 0x107   :  { %12202 = dma.done.wait [#allocation18], 4112  }
 0x108   :  { %12203 = vsyncadd [#allocation18], 4294963184 }
 0x109   :  { %12204 = dma.done.wait [#allocation21], 61504  }
 0x10a   :  { %12205 = vsyncadd [#allocation21], 4294905792 }
 0x10b   :  { %12206 = dma.done.wait [#allocation24], 240  }
 0x10c   :  { %12207 = vsyncadd [#allocation24], 4294967056  ;;  %v12238_v0 = vmov 0   ;;  %v10208_v1 = vld [vmem:[#allocation7 + $0x4] ss:$16 sps:$4 sm:$0xff]   ;;  %v721_v19 = vlaneseq  ;;  %vm12241_vm0 = vmmov 0  }
 0x10d   :  { %3618 = vmatprep.mubr.bf16.mxu1 %v12238_v0  ;;  %v10210_v2 = vld [vmem:[#allocation7 + $0xe04] ss:$16 sps:$4 sm:$0xff]   ;;  %3299 = vmatprep.subr.bf16.mxu0 %v10208_v1  ;;  %v10212_v3 = vld [vmem:[#allocation7] ss:$16 sps:$4 sm:$0xff]   ;;  %v12239_v20 = vmov 1966171168  }
 0x10e   :  { %v10213_v4 = vld [vmem:[#allocation7 + $0xe00] ss:$16 sps:$4 sm:$0xff]   ;;  %3586 = vmatprep.subr.bf16.mxu1 %v10210_v2  ;;  %v10214_v5 = vld [vmem:[#allocation7 + $0x24] ss:$16 sps:$4 sm:$0xff]   ;;  %3300 = vmatpush1.bf16.msra.mxu0 %v10212_v3  ;;  %v754_v21 = vunpack.c.l.s4 %v12239_v20  ;;  %v12517_v26 = vshrl.u32 %v721_v19, 7 }
 0x10f   :  { %3587 = vmatpush1.bf16.msra.mxu1 %v10213_v4  ;;  %v10216_v6 = vld [vmem:[#allocation7 + $0xe24] ss:$16 sps:$4 sm:$0xff]   ;;  %v10218_v7 = vld [vmem:[#allocation7 + $0x20] ss:$16 sps:$4 sm:$0xff]   ;;  %3301 = vmatprep.subr.bf16.mxu0 %v10214_v5  ;;  %v10264_v45 = vld [vmem:[#allocation7 + $0xc] ss:$16 sps:$4 sm:$0xff]  }
 0x110   :  { %v10219_v8 = vld [vmem:[#allocation7 + $0xe20] ss:$16 sps:$4 sm:$0xff]   ;;  %3588 = vmatprep.subr.bf16.mxu1 %v10216_v6  ;;  %v10220_v9 = vld [vmem:[#allocation7 + $0x44] ss:$16 sps:$4 sm:$0xff]   ;;  %v755_v27 = vunpack.c.0.s8 %v754_v21  ;;  %v10262_v47 = vld [vmem:[#allocation7 + $0x8] ss:$16 sps:$4 sm:$0xff]  }
 0x111   :  { %v10222_v10 = vld [vmem:[#allocation7 + $0xe44] ss:$16 sps:$4 sm:$0xff]   ;;  %v10224_v11 = vld [vmem:[#allocation7 + $0x40] ss:$16 sps:$4 sm:$0xff]   ;;  %v10270_v51 = vld [vmem:[#allocation7 + $0x2c] ss:$16 sps:$4 sm:$0xff]  }
 0x112   :  { %v10225_v12 = vld [vmem:[#allocation7 + $0xe40] ss:$16 sps:$4 sm:$0xff]   ;;  %3302 = vmatpush1.bf16.msra.mxu0 %v10218_v7  ;;  %v10226_v13 = vld [vmem:[#allocation7 + $0x64] ss:$16 sps:$4 sm:$0xff]   ;;  %v12520_v34 = vsub.s32 %v755_v27, %v12517_v26  ;;  %v10268_v52 = vld [vmem:[#allocation7 + $0x28] ss:$16 sps:$4 sm:$0xff]  }
 0x113   :  { %3589 = vmatpush1.bf16.msra.mxu1 %v10219_v8  ;;  %3303 = vmatprep.subr.bf16.mxu0 %v10220_v9  ;;  %v10228_v14 = vld [vmem:[#allocation7 + $0xe64] ss:$16 sps:$4 sm:$0xff]   ;;  %v10230_v15 = vld [vmem:[#allocation7 + $0x60] ss:$16 sps:$4 sm:$0xff]   ;;  %v10276_v55 = vld [vmem:[#allocation7 + $0x4c] ss:$16 sps:$4 sm:$0xff]  }
 0x114   :  { %3590 = vmatprep.subr.bf16.mxu1 %v10222_v10  ;;  %v10231_v16 = vld [vmem:[#allocation7 + $0xe60] ss:$16 sps:$4 sm:$0xff]   ;;  %v10232_v17 = vld [vmem:[#allocation7 + $0x84] ss:$16 sps:$4 sm:$0xff]   ;;  %v10274_v56 = vld [vmem:[#allocation7 + $0x48] ss:$16 sps:$4 sm:$0xff]  }
 0x115   :  { %v10234_v18 = vld [vmem:[#allocation7 + $0xe84] ss:$16 sps:$4 sm:$0xff]   ;;  %v10236_v22 = vld [vmem:[#allocation7 + $0x80] ss:$16 sps:$4 sm:$0xff]   ;;  %v10282_v59 = vld [vmem:[#allocation7 + $0x6c] ss:$16 sps:$4 sm:$0xff]  }
 0x116   :  { %3304 = vmatpush1.bf16.msra.mxu0 %v10224_v11  ;;  %v10237_v23 = vld [vmem:[#allocation7 + $0xe80] ss:$16 sps:$4 sm:$0xff]   ;;  %v10238_v24 = vld [vmem:[#allocation7 + $0xa4] ss:$16 sps:$4 sm:$0xff]   ;;  %v10280_v60 = vld [vmem:[#allocation7 + $0x68] ss:$16 sps:$4 sm:$0xff]  }
 0x117   :  { %3591 = vmatpush1.bf16.msra.mxu1 %v10225_v12  ;;  %3305 = vmatprep.subr.bf16.mxu0 %v10226_v13  ;;  %v10240_v25 = vld [vmem:[#allocation7 + $0xea4] ss:$16 sps:$4 sm:$0xff]   ;;  %v10242_v28 = vld [vmem:[#allocation7 + $0xa0] ss:$16 sps:$4 sm:$0xff]   ;;  %v10288_v63 = vld [vmem:[#allocation7 + $0x8c] ss:$16 sps:$4 sm:$0xff]  }
 0x118   :  { %3592 = vmatprep.subr.bf16.mxu1 %v10228_v14  ;;  %v10243_v29 = vld [vmem:[#allocation7 + $0xea0] ss:$16 sps:$4 sm:$0xff]   ;;  %v10244_v30 = vld [vmem:[#allocation7 + $0xc4] ss:$16 sps:$4 sm:$0xff]   ;;  %v10308_v1 = vld [vmem:[#allocation2] ss:$15 sps:$4 sm:$0xff]  }
 0x119   :  { %v10246_v31 = vld [vmem:[#allocation7 + $0xec4] ss:$16 sps:$4 sm:$0xff]   ;;  %v10248_v32 = vld [vmem:[#allocation7 + $0xc0] ss:$16 sps:$4 sm:$0xff]   ;;  %v10310_v2 = vld [vmem:[#allocation2 + $0x1e] ss:$15 sps:$4 sm:$0xff]   ;;  %v759_v5 = vrot.slane %v10308_v1, %v12520_v34 }
 0x11a   :  { %3306 = vmatpush1.bf16.msra.mxu0 %v10230_v15  ;;  %v10249_v33 = vld [vmem:[#allocation7 + $0xec0] ss:$16 sps:$4 sm:$0xff]   ;;  %v10258_v35 = vld [vmem:[#allocation2 + $0xc] ss:$15 sps:$4 sm:$0x77]   ;;  %v773_v6 = vrot.slane %v10310_v2, %v12520_v34 }
 0x11b   :  { %3593 = vmatpush1.bf16.msra.mxu1 %v10231_v16  ;;  %3307 = vmatprep.subr.bf16.mxu0 %v10232_v17  ;;  %v10260_v36 = vld [vmem:[#allocation2 + $0x2a] ss:$15 sps:$4 sm:$0x77]   ;;  %v12523_v39 = vrot.slane %v10258_v35, %v12520_v34  ;;  %v10254_v41 = vld [vmem:[#allocation7 + $0xe0] ss:$16 sps:$4 sm:$0xff]  }
 0x11c   :  { %3594 = vmatprep.subr.bf16.mxu1 %v10234_v18  ;;  %v10250_v37 = vld [vmem:[#allocation7 + $0xe4] ss:$16 sps:$4 sm:$0xff]   ;;  %v12526_v40 = vrot.slane %v10260_v36, %v12520_v34  ;;  %v10255_v42 = vld [vmem:[#allocation7 + $0xee0] ss:$16 sps:$4 sm:$0xff]   ;;  %v10286_v3 = vld [vmem:[#allocation7 + $0x88] ss:$16 sps:$4 sm:$0xff]   ;;  %v782_v9 = vcombine.high %v759_v5, %v773_v6  ;;  %v781_v20 = vcombine.low %v759_v5, %v773_v6 }
 0x11d   :  { %v10252_v38 = vld [vmem:[#allocation7 + $0xee4] ss:$16 sps:$4 sm:$0xff]   ;;  %v10265_v49 = vld [vmem:[#allocation7 + $0x100] ss:$16 sps:$4 sm:$0xff]   ;;  %v10294_v8 = vld [vmem:[#allocation7 + $0xac] ss:$16 sps:$4 sm:$0xff]  }
 0x11e   :  { %3308 = vmatpush1.bf16.msra.mxu0 %v10236_v22  ;;  %v10256_v43 = vld [vmem:[#allocation7 + $0x104] ss:$16 sps:$4 sm:$0xff]   ;;  %v851_v44 = vcombine.low %v12523_v39, %v12526_v40  ;;  %v10271_v53 = vld [vmem:[#allocation7 + $0x120] ss:$16 sps:$4 sm:$0xff]   ;;  %v10292_v10 = vld [vmem:[#allocation7 + $0xa8] ss:$16 sps:$4 sm:$0xff]   ;;  %v805_v12 = vrot.slane %v782_v9, %v12520_v34 }
 0x11f   :  { %3595 = vmatpush1.bf16.msra.mxu1 %v10237_v23  ;;  %3309 = vmatprep.subr.bf16.mxu0 %v10238_v24  ;;  %v10266_v50 = vld [vmem:[#allocation7 + $0x124] ss:$16 sps:$4 sm:$0xff]   ;;  %v10277_v57 = vld [vmem:[#allocation7 + $0x140] ss:$16 sps:$4 sm:$0xff]   ;;  %v10300_v14 = vld [vmem:[#allocation7 + $0xcc] ss:$16 sps:$4 sm:$0xff]  }
 0x120   :  { %3596 = vmatprep.subr.bf16.mxu1 %v10240_v25  ;;  %v12531_v46 = vrot.slane %v851_v44, %v12520_v34  ;;  %v10272_v54 = vld [vmem:[#allocation7 + $0x144] ss:$16 sps:$4 sm:$0xff]   ;;  %v10283_v61 = vld [vmem:[#allocation7 + $0x160] ss:$16 sps:$4 sm:$0xff]   ;;  %3331 = vmatprep.mubr.bf16.mxu0 %v805_v12  ;;  %v10298_v15 = vld [vmem:[#allocation7 + $0xc8] ss:$16 sps:$4 sm:$0xff]   ;;  %v12542_v25 = vrot.slane %v781_v20, %v12520_v34 }
 0x121   :  { %v10278_v58 = vld [vmem:[#allocation7 + $0x164] ss:$16 sps:$4 sm:$0xff]   ;;  %v10289_v4 = vld [vmem:[#allocation7 + $0x180] ss:$16 sps:$4 sm:$0xff]   ;;  %v10306_v18 = vld [vmem:[#allocation7 + $0xec] ss:$16 sps:$4 sm:$0xff]  }
 0x122   :  { %3310 = vmatpush1.bf16.msra.mxu0 %v10242_v28  ;;  %v12535_v48 = vcombine.high %v12531_v46, %v12531_v46  ;;  %v10284_v62 = vld [vmem:[#allocation7 + $0x184] ss:$16 sps:$4 sm:$0xff]   ;;  %v10295_v11 = vld [vmem:[#allocation7 + $0x1a0] ss:$16 sps:$4 sm:$0xff]   ;;  %v10304_v19 = vld [vmem:[#allocation7 + $0xe8] ss:$16 sps:$4 sm:$0xff]  }
 0x123   :  { %3597 = vmatpush1.bf16.msra.mxu1 %v10243_v29  ;;  %3311 = vmatprep.subr.bf16.mxu0 %v10244_v30  ;;  %v10290_v7 = vld [vmem:[#allocation7 + $0x1a4] ss:$16 sps:$4 sm:$0xff]   ;;  %v10301_v16 = vld [vmem:[#allocation7 + $0x1c0] ss:$16 sps:$4 sm:$0xff]   ;;  %v10317_v23 = vld [vmem:[#allocation7 + $0x10c] ss:$16 sps:$4 sm:$0xff]   ;;  %v12544_v30 = vcombine.high %v805_v12, %v805_v12 }
 0x124   :  { %3598 = vmatprep.subr.bf16.mxu1 %v10246_v31  ;;  %v10296_v13 = vld [vmem:[#allocation7 + $0x1c4] ss:$16 sps:$4 sm:$0xff]   ;;  %v10307_v21 = vld [vmem:[#allocation7 + $0x1e0] ss:$16 sps:$4 sm:$0xff]   ;;  %v10315_v27 = vld [vmem:[#allocation7 + $0x108] ss:$16 sps:$4 sm:$0xff]  }
 0x125   :  { %v10302_v17 = vld [vmem:[#allocation7 + $0x1e4] ss:$16 sps:$4 sm:$0xff]   ;;  %v10312_v24 = vld [vmem:[#allocation7 + $0x200] ss:$16 sps:$4 sm:$0xff]   ;;  %v10323_v29 = vld [vmem:[#allocation7 + $0x12c] ss:$16 sps:$4 sm:$0xff]  }
 0x126   :  { %3312 = vmatpush1.bf16.msra.mxu0 %v10248_v32  ;;  %v10314_v22 = vld [vmem:[#allocation7 + $0x204] ss:$16 sps:$4 sm:$0xff]   ;;  %v10318_v31 = vld [vmem:[#allocation7 + $0x220] ss:$16 sps:$4 sm:$0xff]   ;;  %v10321_v32 = vld [vmem:[#allocation7 + $0x128] ss:$16 sps:$4 sm:$0xff]  }
 0x127   :  { %3599 = vmatpush1.bf16.msra.mxu1 %v10249_v33  ;;  %3313 = vmatprep.subr.bf16.mxu0 %v10250_v37  ;;  %v10320_v28 = vld [vmem:[#allocation7 + $0x224] ss:$16 sps:$4 sm:$0xff]   ;;  %v10329_v35 = vld [vmem:[#allocation7 + $0x14c] ss:$16 sps:$4 sm:$0xff]   ;;  %v10324_v36 = vld [vmem:[#allocation7 + $0x240] ss:$16 sps:$4 sm:$0xff]  }
 0x128   :  { %3600 = vmatprep.subr.bf16.mxu1 %v10252_v38  ;;  %v10326_v33 = vld [vmem:[#allocation7 + $0x244] ss:$16 sps:$4 sm:$0xff]   ;;  %v10327_v37 = vld [vmem:[#allocation7 + $0x148] ss:$16 sps:$4 sm:$0xff]   ;;  %v10360_v1 = vld [vmem:[#allocation7 + $0x300] ss:$16 sps:$4 sm:$0xff]  }
 0x129   :  { %v10332_v38 = vld [vmem:[#allocation7 + $0x264] ss:$16 sps:$4 sm:$0xff]   ;;  %v10363_v2 = vld [vmem:[#allocation7 + $0x208] ss:$16 sps:$4 sm:$0xff]   ;;  %v10366_v5 = vld [vmem:[#allocation7 + $0x320] ss:$16 sps:$4 sm:$0xff]  }
 0x12a   :  { %3314 = vmatpush1.bf16.msra.mxu0 %v10254_v41  ;;  %v10335_v41 = vld [vmem:[#allocation7 + $0x16c] ss:$16 sps:$4 sm:$0xff]   ;;  %v10338_v44 = vld [vmem:[#allocation7 + $0x284] ss:$16 sps:$4 sm:$0xff]   ;;  %v10369_v6 = vld [vmem:[#allocation7 + $0x228] ss:$16 sps:$4 sm:$0xff]  }
 0x12b   :  { %3601 = vmatpush1.bf16.msra.mxu1 %v10255_v42  ;;  %3315 = vmatprep.subr.bf16.mxu0 %v10256_v43  ;;  %v10330_v42 = vld [vmem:[#allocation7 + $0x260] ss:$16 sps:$4 sm:$0xff]   ;;  %v10333_v43 = vld [vmem:[#allocation7 + $0x168] ss:$16 sps:$4 sm:$0xff]   ;;  %v10395_v20 = vld [vmem:[#allocation7 + $0x2ac] ss:$16 sps:$4 sm:$0xff]  }
 0x12c   :  { %3627 = vmatprep.subr.bf16.mxu1 %v10264_v45  ;;  %v10341_v45 = vld [vmem:[#allocation7 + $0x18c] ss:$16 sps:$4 sm:$0xff]   ;;  %v10372_v9 = vld [vmem:[#allocation7 + $0x340] ss:$16 sps:$4 sm:$0xff]  }
 0x12e   :  { %3619 = vmatmul.mubr.bf16.vlgmr.msra.gmra.mrb[0].mxu1 %v12535_v48  ;;  %3316 = vmatpush1.bf16.msra.mxu0 %v10265_v49  ;;  %v10339_v49 = vld [vmem:[#allocation7 + $0x188] ss:$16 sps:$4 sm:$0xff]  }
 0x12f   :  { %3628 = vmatpush1.bf16.msra.mxu1 %v10262_v47  ;;  %3317 = vmatprep.subr.bf16.mxu0 %v10266_v50  ;;  %v10336_v47 = vld [vmem:[#allocation7 + $0x280] ss:$16 sps:$4 sm:$0xff]   ;;  %v10344_v50 = vld [vmem:[#allocation7 + $0x2a4] ss:$16 sps:$4 sm:$0xff]  }
 0x130   :  { %3629 = vmatprep.subr.bf16.mxu1 %v10270_v51  ;;  %3659 = vmatprep.mubr.bf16.mxu1 %v805_v12  ;;  %v10347_v51 = vld [vmem:[#allocation7 + $0x1ac] ss:$16 sps:$4 sm:$0xff]  }
 0x131   :  { %v10383_v12 = vld [vmem:[#allocation7 + $0x26c] ss:$16 sps:$4 sm:$0xff]  }
 0x132   :  { %3318 = vmatpush1.bf16.msra.mxu0 %v10271_v53  ;;  %v10345_v53 = vld [vmem:[#allocation7 + $0x1a8] ss:$16 sps:$4 sm:$0xff]  }
 0x133   :  { %3630 = vmatpush1.bf16.msra.mxu1 %v10268_v52  ;;  %3319 = vmatprep.subr.bf16.mxu0 %v10272_v54  ;;  %v10342_v52 = vld [vmem:[#allocation7 + $0x2a0] ss:$16 sps:$4 sm:$0xff]   ;;  %v10350_v54 = vld [vmem:[#allocation7 + $0x2c4] ss:$16 sps:$4 sm:$0xff]  }
 0x134   :  { %3631 = vmatprep.subr.bf16.mxu1 %v10276_v55  ;;  %v10353_v55 = vld [vmem:[#allocation7 + $0x1cc] ss:$16 sps:$4 sm:$0xff]  }
 0x136   :  { %3320 = vmatpush1.bf16.msra.mxu0 %v10277_v57  ;;  %v10351_v57 = vld [vmem:[#allocation7 + $0x1c8] ss:$16 sps:$4 sm:$0xff]  }
 0x137   :  { %3632 = vmatpush1.bf16.msra.mxu1 %v10274_v56  ;;  %3321 = vmatprep.subr.bf16.mxu0 %v10278_v58  ;;  %v10348_v56 = vld [vmem:[#allocation7 + $0x2c0] ss:$16 sps:$4 sm:$0xff]   ;;  %v10356_v58 = vld [vmem:[#allocation7 + $0x2e4] ss:$16 sps:$4 sm:$0xff]  }
 0x138   :  { %3633 = vmatprep.subr.bf16.mxu1 %v10282_v59  ;;  %v10359_v59 = vld [vmem:[#allocation7 + $0x1ec] ss:$16 sps:$4 sm:$0xff]  }
 0x13a   :  { %3322 = vmatpush1.bf16.msra.mxu0 %v10283_v61  ;;  %v10357_v61 = vld [vmem:[#allocation7 + $0x1e8] ss:$16 sps:$4 sm:$0xff]  }
 0x13b   :  { %3634 = vmatpush1.bf16.msra.mxu1 %v10280_v60  ;;  %3323 = vmatprep.subr.bf16.mxu0 %v10284_v62  ;;  %v10354_v60 = vld [vmem:[#allocation7 + $0x2e0] ss:$16 sps:$4 sm:$0xff]   ;;  %v10362_v62 = vld [vmem:[#allocation7 + $0x304] ss:$16 sps:$4 sm:$0xff]  }
 0x13c   :  { %3635 = vmatprep.subr.bf16.mxu1 %v10288_v63  ;;  %v10365_v63 = vld [vmem:[#allocation7 + $0x20c] ss:$16 sps:$4 sm:$0xff]  }
 0x13e   :  { %3324 = vmatpush1.bf16.msra.mxu0 %v10289_v4  ;;  %v10371_v4 = vld [vmem:[#allocation7 + $0x22c] ss:$16 sps:$4 sm:$0xff]  }
 0x13f   :  { %3636 = vmatpush1.bf16.msra.mxu1 %v10286_v3  ;;  %3325 = vmatprep.subr.bf16.mxu0 %v10290_v7  ;;  %v10368_v3 = vld [vmem:[#allocation7 + $0x324] ss:$16 sps:$4 sm:$0xff]  }
 0x140   :  { %3637 = vmatprep.subr.bf16.mxu1 %v10294_v8  ;;  %v10374_v7 = vld [vmem:[#allocation7 + $0x344] ss:$16 sps:$4 sm:$0xff]   ;;  %v10377_v8 = vld [vmem:[#allocation7 + $0x24c] ss:$16 sps:$4 sm:$0xff]  }
 0x142   :  { %3326 = vmatpush1.bf16.msra.mxu0 %v10295_v11  ;;  %v10380_v11 = vld [vmem:[#allocation7 + $0x364] ss:$16 sps:$4 sm:$0xff]  }
 0x143   :  { %3638 = vmatpush1.bf16.msra.mxu1 %v10292_v10  ;;  %3327 = vmatprep.subr.bf16.mxu0 %v10296_v13  ;;  %v10375_v10 = vld [vmem:[#allocation7 + $0x248] ss:$16 sps:$4 sm:$0xff]   ;;  %v10378_v13 = vld [vmem:[#allocation7 + $0x360] ss:$16 sps:$4 sm:$0xff]  }
 0x144   :  { %3639 = vmatprep.subr.bf16.mxu1 %v10300_v14  ;;  %v10381_v14 = vld [vmem:[#allocation7 + $0x268] ss:$16 sps:$4 sm:$0xff]  }
 0x146   :  { %3328 = vmatpush1.bf16.msra.mxu0 %v10301_v16  ;;  %v10389_v16 = vld [vmem:[#allocation7 + $0x28c] ss:$16 sps:$4 sm:$0xff]  }
 0x147   :  { %3640 = vmatpush1.bf16.msra.mxu1 %v10298_v15  ;;  %3329 = vmatprep.subr.bf16.mxu0 %v10302_v17  ;;  %v10386_v15 = vld [vmem:[#allocation7 + $0x384] ss:$16 sps:$4 sm:$0xff]   ;;  %v10384_v17 = vld [vmem:[#allocation7 + $0x380] ss:$16 sps:$4 sm:$0xff]  }
 0x148   :  { %3641 = vmatprep.subr.bf16.mxu1 %v10306_v18  ;;  %v10387_v18 = vld [vmem:[#allocation7 + $0x288] ss:$16 sps:$4 sm:$0xff]  }
 0x14a   :  { %3330 = vmatpush1.bf16.msra.mxu0 %v10307_v21  ;;  %v10390_v21 = vld [vmem:[#allocation7 + $0x3a0] ss:$16 sps:$4 sm:$0xff]  }
 0x14b   :  { %3642 = vmatpush1.bf16.msra.mxu1 %v10304_v19  ;;  %3340 = vmatprep.subr.bf16.mxu0 %v10314_v22  ;;  %v10392_v19 = vld [vmem:[#allocation7 + $0x3a4] ss:$16 sps:$4 sm:$0xff]   ;;  %v10393_v22 = vld [vmem:[#allocation7 + $0x2a8] ss:$16 sps:$4 sm:$0xff]  }
 0x14c   :  { %3643 = vmatprep.subr.bf16.mxu1 %v10317_v23  ;;  %v10398_v23 = vld [vmem:[#allocation7 + $0x3c4] ss:$16 sps:$4 sm:$0xff]  }
 0x14d   :  { %3332 = vmatmul.mubr.bf16.vlgmr.msra.gmra.mrb[0].mxu0 %v12542_v25 }
 0x14e   :  { %3341 = vmatpush1.bf16.msra.mxu0 %v10312_v24  ;;  %3372 = vmatprep.mubr.bf16.mxu0 %v12544_v30  ;;  %v10401_v24 = vld [vmem:[#allocation7 + $0x2cc] ss:$16 sps:$4 sm:$0xff]  }
 0x14f   :  { %3644 = vmatpush1.bf16.msra.mxu1 %v10315_v27  ;;  %3342 = vmatprep.subr.bf16.mxu0 %v10320_v28  ;;  %v10396_v27 = vld [vmem:[#allocation7 + $0x3c0] ss:$16 sps:$4 sm:$0xff]   ;;  %v10399_v28 = vld [vmem:[#allocation7 + $0x2c8] ss:$16 sps:$4 sm:$0xff]  }
 0x150   :  { %3645 = vmatprep.subr.bf16.mxu1 %v10323_v29  ;;  %v10404_v29 = vld [vmem:[#allocation7 + $0x3e4] ss:$16 sps:$4 sm:$0xff]  }
 0x152   :  { %3343 = vmatpush1.bf16.msra.mxu0 %v10318_v31  ;;  %v10402_v31 = vld [vmem:[#allocation7 + $0x3e0] ss:$16 sps:$4 sm:$0xff]  }
 0x153   :  { %3646 = vmatpush1.bf16.msra.mxu1 %v10321_v32  ;;  %3344 = vmatprep.subr.bf16.mxu0 %v10326_v33  ;;  %v10405_v32 = vld [vmem:[#allocation7 + $0x2e8] ss:$16 sps:$4 sm:$0xff]   ;;  %v10410_v33 = vld [vmem:[#allocation7 + $0x404] ss:$16 sps:$4 sm:$0xff]  }
 0x154   :  { %3647 = vmatprep.subr.bf16.mxu1 %v10329_v35  ;;  %v10413_v35 = vld [vmem:[#allocation7 + $0x30c] ss:$16 sps:$4 sm:$0xff]  }
 0x156   :  { %3345 = vmatpush1.bf16.msra.mxu0 %v10324_v36  ;;  %v10408_v36 = vld [vmem:[#allocation7 + $0x400] ss:$16 sps:$4 sm:$0xff]  }
 0x157   :  { %3648 = vmatpush1.bf16.msra.mxu1 %v10327_v37  ;;  %3346 = vmatprep.subr.bf16.mxu0 %v10332_v38  ;;  %v12552_v37 = vcombine.high %v12542_v25, %v12542_v25  ;;  %v10411_v38 = vld [vmem:[#allocation7 + $0x308] ss:$16 sps:$4 sm:$0xff]  }
 0x158   :  { %3649 = vmatprep.subr.bf16.mxu1 %v10335_v41  ;;  %v10416_v41 = vld [vmem:[#allocation7 + $0x424] ss:$16 sps:$4 sm:$0xff]  }
 0x15a   :  { %3347 = vmatpush1.bf16.msra.mxu0 %v10330_v42  ;;  %v10419_v42 = vld [vmem:[#allocation7 + $0x32c] ss:$16 sps:$4 sm:$0xff]  }
 0x15b   :  { %3650 = vmatpush1.bf16.msra.mxu1 %v10333_v43  ;;  %3348 = vmatprep.subr.bf16.mxu0 %v10338_v44  ;;  %v10414_v43 = vld [vmem:[#allocation7 + $0x420] ss:$16 sps:$4 sm:$0xff]   ;;  %v10417_v44 = vld [vmem:[#allocation7 + $0x328] ss:$16 sps:$4 sm:$0xff]  }
 0x15c   :  { %3651 = vmatprep.subr.bf16.mxu1 %v10341_v45  ;;  %v10422_v45 = vld [vmem:[#allocation7 + $0x444] ss:$16 sps:$4 sm:$0xff]  }
 0x15e   :  { %3349 = vmatpush1.bf16.msra.mxu0 %v10336_v47  ;;  %v10504_v47 = vld [vmem:[#allocation2 + $0x4] ss:$15 sps:$4 sm:$0xff]  }
 0x15f   :  { %3652 = vmatpush1.bf16.msra.mxu1 %v10339_v49  ;;  %3350 = vmatprep.subr.bf16.mxu0 %v10344_v50  ;;  %v10505_v49 = vld [vmem:[#allocation2 + $0x22] ss:$15 sps:$4 sm:$0xff]   ;;  %v12556_v50 = vrot.slane %v10504_v47, %v12520_v34  ;;  %v10500_v47 = vld [vmem:[#allocation7 + $0x5e4] ss:$16 sps:$4 sm:$0xff]  }
 0x160   :  { %3653 = vmatprep.subr.bf16.mxu1 %v10347_v51  ;;  %v12559_v51 = vrot.slane %v10505_v49, %v12520_v34  ;;  %v10503_v49 = vld [vmem:[#allocation7 + $0x4ec] ss:$16 sps:$4 sm:$0xff]  }
 0x162   :  { %3351 = vmatpush1.bf16.msra.mxu0 %v10342_v52  ;;  %v10420_v52 = vld [vmem:[#allocation7 + $0x440] ss:$16 sps:$4 sm:$0xff]  }
 0x163   :  { %3654 = vmatpush1.bf16.msra.mxu1 %v10345_v53  ;;  %3352 = vmatprep.subr.bf16.mxu0 %v10350_v54  ;;  %v10423_v53 = vld [vmem:[#allocation7 + $0x348] ss:$16 sps:$4 sm:$0xff]   ;;  %v10428_v54 = vld [vmem:[#allocation7 + $0x464] ss:$16 sps:$4 sm:$0xff]  }
 0x164   :  { %3655 = vmatprep.subr.bf16.mxu1 %v10353_v55  ;;  %v784_v55 = vcombine.high %v12556_v50, %v12559_v51 }
 0x166   :  { %3353 = vmatpush1.bf16.msra.mxu0 %v10348_v56  ;;  %v10431_v56 = vld [vmem:[#allocation7 + $0x36c] ss:$16 sps:$4 sm:$0xff]  }
 0x167   :  { %3656 = vmatpush1.bf16.msra.mxu1 %v10351_v57  ;;  %3354 = vmatprep.subr.bf16.mxu0 %v10356_v58  ;;  %v12564_v57 = vrot.slane %v784_v55, %v12520_v34  ;;  %v10426_v58 = vld [vmem:[#allocation7 + $0x460] ss:$16 sps:$4 sm:$0xff]   ;;  %v10511_v55 = vld [vmem:[#allocation7 + $0x50c] ss:$16 sps:$4 sm:$0xff]  }
 0x168   :  { %3657 = vmatprep.subr.bf16.mxu1 %v10359_v59  ;;  %v10429_v59 = vld [vmem:[#allocation7 + $0x368] ss:$16 sps:$4 sm:$0xff]  }
 0x16a   :  { %3355 = vmatpush1.bf16.msra.mxu0 %v10354_v60  ;;  %v10434_v60 = vld [vmem:[#allocation7 + $0x484] ss:$16 sps:$4 sm:$0xff]  }
 0x16b   :  { %3658 = vmatpush1.bf16.msra.mxu1 %v10357_v61  ;;  %3356 = vmatprep.subr.bf16.mxu0 %v10362_v62  ;;  %v10437_v61 = vld [vmem:[#allocation7 + $0x38c] ss:$16 sps:$4 sm:$0xff]   ;;  %v10432_v62 = vld [vmem:[#allocation7 + $0x480] ss:$16 sps:$4 sm:$0xff]  }
 0x16c   :  { %3668 = vmatprep.subr.bf16.mxu1 %v10365_v63  ;;  %v10435_v63 = vld [vmem:[#allocation7 + $0x388] ss:$16 sps:$4 sm:$0xff]  }
 0x16e   :  { %3660 = vmatmul.mubr.bf16.vlgmr.msra.gmra.mrb[4].mxu1 %v12542_v25  ;;  %3357 = vmatpush1.bf16.msra.mxu0 %v10360_v1  ;;  %v10425_v25 = vld [vmem:[#allocation7 + $0x34c] ss:$16 sps:$4 sm:$0xff]   ;;  %v10440_v1 = vld [vmem:[#allocation7 + $0x4a4] ss:$16 sps:$4 sm:$0xff]  }
 0x16f   :  { %3669 = vmatpush1.bf16.msra.mxu1 %v10363_v2  ;;  %3358 = vmatprep.subr.bf16.mxu0 %v10368_v3  ;;  %v10443_v2 = vld [vmem:[#allocation7 + $0x3ac] ss:$16 sps:$4 sm:$0xff]   ;;  %v10438_v3 = vld [vmem:[#allocation7 + $0x4a0] ss:$16 sps:$4 sm:$0xff]  }
 0x170   :  { %3670 = vmatprep.subr.bf16.mxu1 %v10371_v4  ;;  %3700 = vmatprep.mubr.bf16.mxu1 %v12544_v30  ;;  %v10407_v30 = vld [vmem:[#allocation7 + $0x2ec] ss:$16 sps:$4 sm:$0xff]   ;;  %v10441_v4 = vld [vmem:[#allocation7 + $0x3a8] ss:$16 sps:$4 sm:$0xff]  }
 0x172   :  { %3359 = vmatpush1.bf16.msra.mxu0 %v10366_v5  ;;  %v10446_v5 = vld [vmem:[#allocation7 + $0x4c4] ss:$16 sps:$4 sm:$0xff]  }
 0x173   :  { %3671 = vmatpush1.bf16.msra.mxu1 %v10369_v6  ;;  %3360 = vmatprep.subr.bf16.mxu0 %v10374_v7  ;;  %v10449_v6 = vld [vmem:[#allocation7 + $0x3cc] ss:$16 sps:$4 sm:$0xff]   ;;  %v10444_v7 = vld [vmem:[#allocation7 + $0x4c0] ss:$16 sps:$4 sm:$0xff]  }
 0x174   :  { %3672 = vmatprep.subr.bf16.mxu1 %v10377_v8  ;;  %v10447_v8 = vld [vmem:[#allocation7 + $0x3c8] ss:$16 sps:$4 sm:$0xff]  }
 0x176   :  { %3361 = vmatpush1.bf16.msra.mxu0 %v10372_v9  ;;  %v10452_v9 = vld [vmem:[#allocation7 + $0x4e4] ss:$16 sps:$4 sm:$0xff]  }
 0x177   :  { %3673 = vmatpush1.bf16.msra.mxu1 %v10375_v10  ;;  %3362 = vmatprep.subr.bf16.mxu0 %v10380_v11  ;;  %v10455_v10 = vld [vmem:[#allocation7 + $0x3ec] ss:$16 sps:$4 sm:$0xff]   ;;  %v10450_v11 = vld [vmem:[#allocation7 + $0x4e0] ss:$16 sps:$4 sm:$0xff]  }
 0x178   :  { %3674 = vmatprep.subr.bf16.mxu1 %v10383_v12  ;;  %v10453_v12 = vld [vmem:[#allocation7 + $0x3e8] ss:$16 sps:$4 sm:$0xff]  }
 0x17a   :  { %3363 = vmatpush1.bf16.msra.mxu0 %v10378_v13  ;;  %v10458_v13 = vld [vmem:[#allocation7 + $0x504] ss:$16 sps:$4 sm:$0xff]  }
 0x17b   :  { %3675 = vmatpush1.bf16.msra.mxu1 %v10381_v14  ;;  %3364 = vmatprep.subr.bf16.mxu0 %v10386_v15  ;;  %v10461_v14 = vld [vmem:[#allocation7 + $0x40c] ss:$16 sps:$4 sm:$0xff]   ;;  %v10456_v15 = vld [vmem:[#allocation7 + $0x500] ss:$16 sps:$4 sm:$0xff]  }
 0x17c   :  { %3676 = vmatprep.subr.bf16.mxu1 %v10389_v16  ;;  %v10459_v16 = vld [vmem:[#allocation7 + $0x408] ss:$16 sps:$4 sm:$0xff]  }
 0x17e   :  { %3365 = vmatpush1.bf16.msra.mxu0 %v10384_v17  ;;  %v10464_v17 = vld [vmem:[#allocation7 + $0x524] ss:$16 sps:$4 sm:$0xff]  }
 0x17f   :  { %3677 = vmatpush1.bf16.msra.mxu1 %v10387_v18  ;;  %3366 = vmatprep.subr.bf16.mxu0 %v10392_v19  ;;  %v10467_v18 = vld [vmem:[#allocation7 + $0x42c] ss:$16 sps:$4 sm:$0xff]   ;;  %v10462_v19 = vld [vmem:[#allocation7 + $0x520] ss:$16 sps:$4 sm:$0xff]  }
 0x180   :  { %3678 = vmatprep.subr.bf16.mxu1 %v10395_v20  ;;  %v10465_v20 = vld [vmem:[#allocation7 + $0x428] ss:$16 sps:$4 sm:$0xff]  }
 0x182   :  { %3367 = vmatpush1.bf16.msra.mxu0 %v10390_v21  ;;  %v10470_v21 = vld [vmem:[#allocation7 + $0x544] ss:$16 sps:$4 sm:$0xff]  }
 0x183   :  { %3679 = vmatpush1.bf16.msra.mxu1 %v10393_v22  ;;  %3368 = vmatprep.subr.bf16.mxu0 %v10398_v23  ;;  %v10473_v22 = vld [vmem:[#allocation7 + $0x44c] ss:$16 sps:$4 sm:$0xff]   ;;  %v10468_v23 = vld [vmem:[#allocation7 + $0x540] ss:$16 sps:$4 sm:$0xff]  }
 0x184   :  { %3680 = vmatprep.subr.bf16.mxu1 %v10401_v24  ;;  %v10471_v24 = vld [vmem:[#allocation7 + $0x448] ss:$16 sps:$4 sm:$0xff]  }
 0x186   :  { %3369 = vmatpush1.bf16.msra.mxu0 %v10396_v27  ;;  %v10476_v27 = vld [vmem:[#allocation7 + $0x564] ss:$16 sps:$4 sm:$0xff]  }
 0x187   :  { %3681 = vmatpush1.bf16.msra.mxu1 %v10399_v28  ;;  %3370 = vmatprep.subr.bf16.mxu0 %v10404_v29  ;;  %v10479_v28 = vld [vmem:[#allocation7 + $0x46c] ss:$16 sps:$4 sm:$0xff]   ;;  %v10474_v29 = vld [vmem:[#allocation7 + $0x560] ss:$16 sps:$4 sm:$0xff]  }
 0x188   :  { %3682 = vmatprep.subr.bf16.mxu1 %v10407_v30  ;;  %v10477_v30 = vld [vmem:[#allocation7 + $0x468] ss:$16 sps:$4 sm:$0xff]  }
 0x18a   :  { %3371 = vmatpush1.bf16.msra.mxu0 %v10402_v31  ;;  %v10482_v31 = vld [vmem:[#allocation7 + $0x584] ss:$16 sps:$4 sm:$0xff]  }
 0x18b   :  { %3683 = vmatpush1.bf16.msra.mxu1 %v10405_v32  ;;  %3381 = vmatprep.subr.bf16.mxu0 %v10410_v33  ;;  %v10485_v32 = vld [vmem:[#allocation7 + $0x48c] ss:$16 sps:$4 sm:$0xff]   ;;  %v10480_v33 = vld [vmem:[#allocation7 + $0x580] ss:$16 sps:$4 sm:$0xff]  }
 0x18c   :  { %3684 = vmatprep.subr.bf16.mxu1 %v10413_v35  ;;  %v10483_v35 = vld [vmem:[#allocation7 + $0x488] ss:$16 sps:$4 sm:$0xff]  }
 0x18d   :  { %3373 = vmatmul.mubr.bf16.vlgmr.msra.gmra.mrb[0].mxu0 %v12552_v37 }
 0x18e   :  { %3382 = vmatpush1.bf16.msra.mxu0 %v10408_v36  ;;  %3413 = vmatprep.mubr.bf16.mxu0 %v12564_v57  ;;  %v10488_v36 = vld [vmem:[#allocation7 + $0x5a4] ss:$16 sps:$4 sm:$0xff]  }
 0x18f   :  { %3685 = vmatpush1.bf16.msra.mxu1 %v10411_v38  ;;  %3383 = vmatprep.subr.bf16.mxu0 %v10416_v41  ;;  %v10486_v38 = vld [vmem:[#allocation7 + $0x5a0] ss:$16 sps:$4 sm:$0xff]   ;;  %v10489_v41 = vld [vmem:[#allocation7 + $0x4a8] ss:$16 sps:$4 sm:$0xff]  }
 0x190   :  { %3686 = vmatprep.subr.bf16.mxu1 %v10419_v42  ;;  %v10494_v42 = vld [vmem:[#allocation7 + $0x5c4] ss:$16 sps:$4 sm:$0xff]  }
 0x192   :  { %3384 = vmatpush1.bf16.msra.mxu0 %v10414_v43  ;;  %v10497_v43 = vld [vmem:[#allocation7 + $0x4cc] ss:$16 sps:$4 sm:$0xff]  }
 0x193   :  { %3687 = vmatpush1.bf16.msra.mxu1 %v10417_v44  ;;  %3385 = vmatprep.subr.bf16.mxu0 %v10422_v45  ;;  %v10492_v44 = vld [vmem:[#allocation7 + $0x5c0] ss:$16 sps:$4 sm:$0xff]   ;;  %v10495_v45 = vld [vmem:[#allocation7 + $0x4c8] ss:$16 sps:$4 sm:$0xff]  }
 0x194   :  { %3688 = vmatprep.subr.bf16.mxu1 %v10425_v25  ;;  %v10498_v25 = vld [vmem:[#allocation7 + $0x5e0] ss:$16 sps:$4 sm:$0xff]  }
 0x196   :  { %3386 = vmatpush1.bf16.msra.mxu0 %v10420_v52  ;;  %v783_v52 = vcombine.low %v12556_v50, %v12559_v51  ;;  %v12576_v50 = vcombine.high %v12564_v57, %v12564_v57  ;;  %v10512_v51 = vld [vmem:[#allocation7 + $0x620] ss:$16 sps:$4 sm:$0xff]  }
 0x197   :  { %3689 = vmatpush1.bf16.msra.mxu1 %v10423_v53  ;;  %3387 = vmatprep.subr.bf16.mxu0 %v10428_v54  ;;  %v10501_v53 = vld [vmem:[#allocation7 + $0x4e8] ss:$16 sps:$4 sm:$0xff]   ;;  %v10508_v54 = vld [vmem:[#allocation7 + $0x604] ss:$16 sps:$4 sm:$0xff]  }
 0x198   :  { %3690 = vmatprep.subr.bf16.mxu1 %v10431_v56  ;;  %v10506_v56 = vld [vmem:[#allocation7 + $0x600] ss:$16 sps:$4 sm:$0xff]  }
 0x19a   :  { %3388 = vmatpush1.bf16.msra.mxu0 %v10426_v58  ;;  %v12572_v58 = vrot.slane %v783_v52, %v12520_v34  ;;  %v10589_v52 = vld [vmem:[#allocation7 + $0x6ac] ss:$16 sps:$4 sm:$0xff]  }
 0x19b   :  { %3691 = vmatpush1.bf16.msra.mxu1 %v10429_v59  ;;  %3389 = vmatprep.subr.bf16.mxu0 %v10434_v60  ;;  %v10509_v59 = vld [vmem:[#allocation7 + $0x508] ss:$16 sps:$4 sm:$0xff]   ;;  %v10514_v60 = vld [vmem:[#allocation7 + $0x624] ss:$16 sps:$4 sm:$0xff]  }
 0x19c   :  { %3692 = vmatprep.subr.bf16.mxu1 %v10437_v61  ;;  %v10517_v61 = vld [vmem:[#allocation7 + $0x52c] ss:$16 sps:$4 sm:$0xff]  }
 0x19e   :  { %3390 = vmatpush1.bf16.msra.mxu0 %v10432_v62  ;;  %v10515_v62 = vld [vmem:[#allocation7 + $0x528] ss:$16 sps:$4 sm:$0xff]  }
 0x19f   :  { %3693 = vmatpush1.bf16.msra.mxu1 %v10435_v63  ;;  %3391 = vmatprep.subr.bf16.mxu0 %v10440_v1  ;;  %v10520_v63 = vld [vmem:[#allocation7 + $0x644] ss:$16 sps:$4 sm:$0xff]   ;;  %v10523_v1 = vld [vmem:[#allocation7 + $0x54c] ss:$16 sps:$4 sm:$0xff]  }
 0x1a0   :  { %3694 = vmatprep.subr.bf16.mxu1 %v10443_v2  ;;  %v10518_v2 = vld [vmem:[#allocation7 + $0x640] ss:$16 sps:$4 sm:$0xff]  }
 0x1a2   :  { %3392 = vmatpush1.bf16.msra.mxu0 %v10438_v3  ;;  %v10521_v3 = vld [vmem:[#allocation7 + $0x548] ss:$16 sps:$4 sm:$0xff]  }
 0x1a3   :  { %3695 = vmatpush1.bf16.msra.mxu1 %v10441_v4  ;;  %3393 = vmatprep.subr.bf16.mxu0 %v10446_v5  ;;  %v10526_v4 = vld [vmem:[#allocation7 + $0x664] ss:$16 sps:$4 sm:$0xff]   ;;  %v10524_v5 = vld [vmem:[#allocation7 + $0x660] ss:$16 sps:$4 sm:$0xff]  }
 0x1a4   :  { %3696 = vmatprep.subr.bf16.mxu1 %v10449_v6  ;;  %v10527_v6 = vld [vmem:[#allocation7 + $0x568] ss:$16 sps:$4 sm:$0xff]  }
 0x1a6   :  { %3394 = vmatpush1.bf16.msra.mxu0 %v10444_v7  ;;  %v10532_v7 = vld [vmem:[#allocation7 + $0x684] ss:$16 sps:$4 sm:$0xff]  }
 0x1a7   :  { %3697 = vmatpush1.bf16.msra.mxu1 %v10447_v8  ;;  %3395 = vmatprep.subr.bf16.mxu0 %v10452_v9  ;;  %v10535_v8 = vld [vmem:[#allocation7 + $0x58c] ss:$16 sps:$4 sm:$0xff]   ;;  %v10530_v9 = vld [vmem:[#allocation7 + $0x680] ss:$16 sps:$4 sm:$0xff]  }
 0x1a8   :  { %3698 = vmatprep.subr.bf16.mxu1 %v10455_v10  ;;  %v10533_v10 = vld [vmem:[#allocation7 + $0x588] ss:$16 sps:$4 sm:$0xff]  }
 0x1aa   :  { %3396 = vmatpush1.bf16.msra.mxu0 %v10450_v11  ;;  %v10538_v11 = vld [vmem:[#allocation7 + $0x6a4] ss:$16 sps:$4 sm:$0xff]  }
 0x1ab   :  { %3699 = vmatpush1.bf16.msra.mxu1 %v10453_v12  ;;  %3397 = vmatprep.subr.bf16.mxu0 %v10458_v13  ;;  %v10541_v12 = vld [vmem:[#allocation7 + $0x5ac] ss:$16 sps:$4 sm:$0xff]   ;;  %v10536_v13 = vld [vmem:[#allocation7 + $0x6a0] ss:$16 sps:$4 sm:$0xff]  }
 0x1ac   :  { %3709 = vmatprep.subr.bf16.mxu1 %v10461_v14  ;;  %v10539_v14 = vld [vmem:[#allocation7 + $0x5a8] ss:$16 sps:$4 sm:$0xff]  }
 0x1ae   :  { %3701 = vmatmul.mubr.bf16.vlgmr.msra.gmra.mrb[4].mxu1 %v12552_v37  ;;  %3398 = vmatpush1.bf16.msra.mxu0 %v10456_v15  ;;  %v10491_v37 = vld [vmem:[#allocation7 + $0x4ac] ss:$16 sps:$4 sm:$0xff]   ;;  %v10544_v15 = vld [vmem:[#allocation7 + $0x6c4] ss:$16 sps:$4 sm:$0xff]  }
 0x1af   :  { %3710 = vmatpush1.bf16.msra.mxu1 %v10459_v16  ;;  %3399 = vmatprep.subr.bf16.mxu0 %v10464_v17  ;;  %v10547_v16 = vld [vmem:[#allocation7 + $0x5cc] ss:$16 sps:$4 sm:$0xff]   ;;  %v10542_v17 = vld [vmem:[#allocation7 + $0x6c0] ss:$16 sps:$4 sm:$0xff]  }
 0x1b0   :  { %3711 = vmatprep.subr.bf16.mxu1 %v10467_v18  ;;  %3741 = vmatprep.mubr.bf16.mxu1 %v12564_v57  ;;  %v10529_v57 = vld [vmem:[#allocation7 + $0x56c] ss:$16 sps:$4 sm:$0xff]   ;;  %v10545_v18 = vld [vmem:[#allocation7 + $0x5c8] ss:$16 sps:$4 sm:$0xff]  }
 0x1b2   :  { %3400 = vmatpush1.bf16.msra.mxu0 %v10462_v19  ;;  %v10550_v19 = vld [vmem:[#allocation7 + $0x6e4] ss:$16 sps:$4 sm:$0xff]  }
 0x1b3   :  { %3712 = vmatpush1.bf16.msra.mxu1 %v10465_v20  ;;  %3401 = vmatprep.subr.bf16.mxu0 %v10470_v21  ;;  %v10553_v20 = vld [vmem:[#allocation7 + $0x5ec] ss:$16 sps:$4 sm:$0xff]   ;;  %v10548_v21 = vld [vmem:[#allocation7 + $0x6e0] ss:$16 sps:$4 sm:$0xff]  }
 0x1b4   :  { %3713 = vmatprep.subr.bf16.mxu1 %v10473_v22  ;;  %v10551_v22 = vld [vmem:[#allocation7 + $0x5e8] ss:$16 sps:$4 sm:$0xff]  }
 0x1b6   :  { %3402 = vmatpush1.bf16.msra.mxu0 %v10468_v23  ;;  %v10556_v23 = vld [vmem:[#allocation7 + $0x704] ss:$16 sps:$4 sm:$0xff]  }
 0x1b7   :  { %3714 = vmatpush1.bf16.msra.mxu1 %v10471_v24  ;;  %3403 = vmatprep.subr.bf16.mxu0 %v10476_v27  ;;  %v10559_v24 = vld [vmem:[#allocation7 + $0x60c] ss:$16 sps:$4 sm:$0xff]   ;;  %v10554_v27 = vld [vmem:[#allocation7 + $0x700] ss:$16 sps:$4 sm:$0xff]  }
 0x1b8   :  { %3715 = vmatprep.subr.bf16.mxu1 %v10479_v28  ;;  %v10557_v28 = vld [vmem:[#allocation7 + $0x608] ss:$16 sps:$4 sm:$0xff]  }
 0x1ba   :  { %3404 = vmatpush1.bf16.msra.mxu0 %v10474_v29  ;;  %v10562_v29 = vld [vmem:[#allocation7 + $0x724] ss:$16 sps:$4 sm:$0xff]  }
 0x1bb   :  { %3716 = vmatpush1.bf16.msra.mxu1 %v10477_v30  ;;  %3405 = vmatprep.subr.bf16.mxu0 %v10482_v31  ;;  %v10565_v30 = vld [vmem:[#allocation7 + $0x62c] ss:$16 sps:$4 sm:$0xff]   ;;  %v10560_v31 = vld [vmem:[#allocation7 + $0x720] ss:$16 sps:$4 sm:$0xff]  }
 0x1bc   :  { %3717 = vmatprep.subr.bf16.mxu1 %v10485_v32  ;;  %v10563_v32 = vld [vmem:[#allocation7 + $0x628] ss:$16 sps:$4 sm:$0xff]  }
 0x1be   :  { %3406 = vmatpush1.bf16.msra.mxu0 %v10480_v33  ;;  %v10568_v33 = vld [vmem:[#allocation7 + $0x744] ss:$16 sps:$4 sm:$0xff]  }
 0x1bf   :  { %3718 = vmatpush1.bf16.msra.mxu1 %v10483_v35  ;;  %3407 = vmatprep.subr.bf16.mxu0 %v10488_v36  ;;  %v10571_v35 = vld [vmem:[#allocation7 + $0x64c] ss:$16 sps:$4 sm:$0xff]   ;;  %v10566_v36 = vld [vmem:[#allocation7 + $0x740] ss:$16 sps:$4 sm:$0xff]  }
 0x1c0   :  { %3719 = vmatprep.subr.bf16.mxu1 %v10491_v37  ;;  %v10569_v37 = vld [vmem:[#allocation7 + $0x648] ss:$16 sps:$4 sm:$0xff]  }
 0x1c2   :  { %3408 = vmatpush1.bf16.msra.mxu0 %v10486_v38  ;;  %v10574_v38 = vld [vmem:[#allocation7 + $0x764] ss:$16 sps:$4 sm:$0xff]  }
 0x1c3   :  { %3720 = vmatpush1.bf16.msra.mxu1 %v10489_v41  ;;  %3409 = vmatprep.subr.bf16.mxu0 %v10494_v42  ;;  %v10577_v41 = vld [vmem:[#allocation7 + $0x66c] ss:$16 sps:$4 sm:$0xff]   ;;  %v10572_v42 = vld [vmem:[#allocation7 + $0x760] ss:$16 sps:$4 sm:$0xff]  }
 0x1c4   :  { %3721 = vmatprep.subr.bf16.mxu1 %v10497_v43  ;;  %v10575_v43 = vld [vmem:[#allocation7 + $0x668] ss:$16 sps:$4 sm:$0xff]  }
 0x1c6   :  { %3410 = vmatpush1.bf16.msra.mxu0 %v10492_v44  ;;  %v10580_v44 = vld [vmem:[#allocation7 + $0x784] ss:$16 sps:$4 sm:$0xff]  }
 0x1c7   :  { %3722 = vmatpush1.bf16.msra.mxu1 %v10495_v45  ;;  %3411 = vmatprep.subr.bf16.mxu0 %v10500_v47  ;;  %v10583_v45 = vld [vmem:[#allocation7 + $0x68c] ss:$16 sps:$4 sm:$0xff]   ;;  %v10578_v47 = vld [vmem:[#allocation7 + $0x780] ss:$16 sps:$4 sm:$0xff]  }
 0x1c8   :  { %3723 = vmatprep.subr.bf16.mxu1 %v10503_v49  ;;  %v10581_v49 = vld [vmem:[#allocation7 + $0x688] ss:$16 sps:$4 sm:$0xff]  }
 0x1ca   :  { %3412 = vmatpush1.bf16.msra.mxu0 %v10498_v25  ;;  %v10586_v25 = vld [vmem:[#allocation7 + $0x7a4] ss:$16 sps:$4 sm:$0xff]  }
 0x1cb   :  { %3724 = vmatpush1.bf16.msra.mxu1 %v10501_v53  ;;  %3422 = vmatprep.subr.bf16.mxu0 %v10508_v54  ;;  %v10584_v53 = vld [vmem:[#allocation7 + $0x7a0] ss:$16 sps:$4 sm:$0xff]   ;;  %v10587_v54 = vld [vmem:[#allocation7 + $0x6a8] ss:$16 sps:$4 sm:$0xff]  }
 0x1cc   :  { %3725 = vmatprep.subr.bf16.mxu1 %v10511_v55  ;;  %v10592_v55 = vld [vmem:[#allocation7 + $0x7c4] ss:$16 sps:$4 sm:$0xff]  }
 0x1cd   :  { %3414 = vmatmul.mubr.bf16.vlgmr.msra.gmra.mrb[0].mxu0 %v12572_v58 }
 0x1ce   :  { %3423 = vmatpush1.bf16.msra.mxu0 %v10506_v56  ;;  %3454 = vmatprep.mubr.bf16.mxu0 %v12576_v50  ;;  %v10595_v56 = vld [vmem:[#allocation7 + $0x6cc] ss:$16 sps:$4 sm:$0xff]  }
 0x1cf   :  { %3726 = vmatpush1.bf16.msra.mxu1 %v10509_v59  ;;  %3424 = vmatprep.subr.bf16.mxu0 %v10514_v60  ;;  %v10698_v60 = vld [vmem:[#allocation2 + $0x8] ss:$15 sps:$4 sm:$0xff]  }
 0x1d0   :  { %3727 = vmatprep.subr.bf16.mxu1 %v10517_v61  ;;  %v10699_v61 = vld [vmem:[#allocation2 + $0x26] ss:$15 sps:$4 sm:$0xff]  }
 0x1d2   :  { %3425 = vmatpush1.bf16.msra.mxu0 %v10512_v51  ;;  %v10590_v51 = vld [vmem:[#allocation7 + $0x7c0] ss:$16 sps:$4 sm:$0xff]  }
 0x1d3   :  { %3728 = vmatpush1.bf16.msra.mxu1 %v10515_v62  ;;  %3426 = vmatprep.subr.bf16.mxu0 %v10520_v63  ;;  %v10593_v63 = vld [vmem:[#allocation7 + $0x6c8] ss:$16 sps:$4 sm:$0xff]  }
 0x1d4   :  { %3729 = vmatprep.subr.bf16.mxu1 %v10523_v1 }
 0x1d6   :  { %3427 = vmatpush1.bf16.msra.mxu0 %v10518_v2  ;;  %v10598_v2 = vld [vmem:[#allocation7 + $0x7e4] ss:$16 sps:$4 sm:$0xff]  }
 0x1d7   :  { %3730 = vmatpush1.bf16.msra.mxu1 %v10521_v3  ;;  %3428 = vmatprep.subr.bf16.mxu0 %v10526_v4  ;;  %v10601_v3 = vld [vmem:[#allocation7 + $0x6ec] ss:$16 sps:$4 sm:$0xff]   ;;  %v12587_v4 = vrot.slane %v10698_v60, %v12520_v34  ;;  %v10664_v60 = vld [vmem:[#allocation7 + $0x944] ss:$16 sps:$4 sm:$0xff]  }
 0x1d8   :  { %3731 = vmatprep.subr.bf16.mxu1 %v10529_v57  ;;  %v12590_v57 = vrot.slane %v10699_v61, %v12520_v34  ;;  %v10667_v61 = vld [vmem:[#allocation7 + $0x84c] ss:$16 sps:$4 sm:$0xff]  }
 0x1da   :  { %3429 = vmatpush1.bf16.msra.mxu0 %v10524_v5  ;;  %v10596_v5 = vld [vmem:[#allocation7 + $0x7e0] ss:$16 sps:$4 sm:$0xff]  }
 0x1db   :  { %3732 = vmatpush1.bf16.msra.mxu1 %v10527_v6  ;;  %3430 = vmatprep.subr.bf16.mxu0 %v10532_v7  ;;  %v10599_v6 = vld [vmem:[#allocation7 + $0x6e8] ss:$16 sps:$4 sm:$0xff]   ;;  %v10604_v7 = vld [vmem:[#allocation7 + $0x804] ss:$16 sps:$4 sm:$0xff]  }
 0x1dc   :  { %3733 = vmatprep.subr.bf16.mxu1 %v10535_v8  ;;  %v10607_v8 = vld [vmem:[#allocation7 + $0x70c] ss:$16 sps:$4 sm:$0xff]  }
 0x1de   :  { %3431 = vmatpush1.bf16.msra.mxu0 %v10530_v9  ;;  %v850_v9 = vcombine.high %v12587_v4, %v12590_v57 }
 0x1df   :  { %3734 = vmatpush1.bf16.msra.mxu1 %v10533_v10  ;;  %3432 = vmatprep.subr.bf16.mxu0 %v10538_v11  ;;  %v10602_v10 = vld [vmem:[#allocation7 + $0x800] ss:$16 sps:$4 sm:$0xff]   ;;  %v12596_v11 = vcombine.high %v12572_v58, %v12572_v58 }
 0x1e0   :  { %3735 = vmatprep.subr.bf16.mxu1 %v10541_v12  ;;  %v10605_v12 = vld [vmem:[#allocation7 + $0x708] ss:$16 sps:$4 sm:$0xff]  }
 0x1e2   :  { %3433 = vmatpush1.bf16.msra.mxu0 %v10536_v13  ;;  %v10610_v13 = vld [vmem:[#allocation7 + $0x824] ss:$16 sps:$4 sm:$0xff]  }
 0x1e3   :  { %3736 = vmatpush1.bf16.msra.mxu1 %v10539_v14  ;;  %3434 = vmatprep.subr.bf16.mxu0 %v10544_v15  ;;  %v10613_v14 = vld [vmem:[#allocation7 + $0x72c] ss:$16 sps:$4 sm:$0xff]   ;;  %v12599_v15 = vrot.slane %v850_v9, %v12520_v34  ;;  %v10682_v9 = vld [vmem:[#allocation7 + $0x9a4] ss:$16 sps:$4 sm:$0xff]  }
 0x1e4   :  { %3737 = vmatprep.subr.bf16.mxu1 %v10547_v16  ;;  %v10608_v16 = vld [vmem:[#allocation7 + $0x820] ss:$16 sps:$4 sm:$0xff]  }
 0x1e6   :  { %3435 = vmatpush1.bf16.msra.mxu0 %v10542_v17  ;;  %v10611_v17 = vld [vmem:[#allocation7 + $0x728] ss:$16 sps:$4 sm:$0xff]  }
 0x1e7   :  { %3738 = vmatpush1.bf16.msra.mxu1 %v10545_v18  ;;  %3436 = vmatprep.subr.bf16.mxu0 %v10550_v19  ;;  %v10619_v18 = vld [vmem:[#allocation7 + $0x74c] ss:$16 sps:$4 sm:$0xff]   ;;  %v10614_v19 = vld [vmem:[#allocation7 + $0x840] ss:$16 sps:$4 sm:$0xff]  }
 0x1e8   :  { %3739 = vmatprep.subr.bf16.mxu1 %v10553_v20  ;;  %v10617_v20 = vld [vmem:[#allocation7 + $0x748] ss:$16 sps:$4 sm:$0xff]  }
 0x1ea   :  { %3437 = vmatpush1.bf16.msra.mxu0 %v10548_v21  ;;  %v10622_v21 = vld [vmem:[#allocation7 + $0x864] ss:$16 sps:$4 sm:$0xff]  }
 0x1eb   :  { %3740 = vmatpush1.bf16.msra.mxu1 %v10551_v22  ;;  %3438 = vmatprep.subr.bf16.mxu0 %v10556_v23  ;;  %v10625_v22 = vld [vmem:[#allocation7 + $0x76c] ss:$16 sps:$4 sm:$0xff]   ;;  %v10620_v23 = vld [vmem:[#allocation7 + $0x860] ss:$16 sps:$4 sm:$0xff]  }
 0x1ec   :  { %3750 = vmatprep.subr.bf16.mxu1 %v10559_v24  ;;  %v10623_v24 = vld [vmem:[#allocation7 + $0x768] ss:$16 sps:$4 sm:$0xff]  }
 0x1ee   :  { %3742 = vmatmul.mubr.bf16.vlgmr.msra.gmra.mrb[4].mxu1 %v12572_v58  ;;  %3439 = vmatpush1.bf16.msra.mxu0 %v10554_v27  ;;  %v10616_v58 = vld [vmem:[#allocation7 + $0x844] ss:$16 sps:$4 sm:$0xff]  }
 0x1ef   :  { %3751 = vmatpush1.bf16.msra.mxu1 %v10557_v28  ;;  %3440 = vmatprep.subr.bf16.mxu0 %v10562_v29  ;;  %v10628_v27 = vld [vmem:[#allocation7 + $0x884] ss:$16 sps:$4 sm:$0xff]   ;;  %v10631_v28 = vld [vmem:[#allocation7 + $0x78c] ss:$16 sps:$4 sm:$0xff]   ;;  %v10626_v29 = vld [vmem:[#allocation7 + $0x880] ss:$16 sps:$4 sm:$0xff]  }
 0x1f0   :  { %3752 = vmatprep.subr.bf16.mxu1 %v10565_v30  ;;  %3782 = vmatprep.mubr.bf16.mxu1 %v12576_v50  ;;  %v10629_v30 = vld [vmem:[#allocation7 + $0x788] ss:$16 sps:$4 sm:$0xff]  }
 0x1f2   :  { %3441 = vmatpush1.bf16.msra.mxu0 %v10560_v31  ;;  %v10634_v31 = vld [vmem:[#allocation7 + $0x8a4] ss:$16 sps:$4 sm:$0xff]  }
 0x1f3   :  { %3753 = vmatpush1.bf16.msra.mxu1 %v10563_v32  ;;  %3442 = vmatprep.subr.bf16.mxu0 %v10568_v33  ;;  %v10637_v32 = vld [vmem:[#allocation7 + $0x7ac] ss:$16 sps:$4 sm:$0xff]   ;;  %v10632_v33 = vld [vmem:[#allocation7 + $0x8a0] ss:$16 sps:$4 sm:$0xff]  }
 0x1f4   :  { %3754 = vmatprep.subr.bf16.mxu1 %v10571_v35  ;;  %v10635_v35 = vld [vmem:[#allocation7 + $0x7a8] ss:$16 sps:$4 sm:$0xff]  }
 0x1f6   :  { %3443 = vmatpush1.bf16.msra.mxu0 %v10566_v36  ;;  %v10640_v36 = vld [vmem:[#allocation7 + $0x8c4] ss:$16 sps:$4 sm:$0xff]  }
 0x1f7   :  { %3755 = vmatpush1.bf16.msra.mxu1 %v10569_v37  ;;  %3444 = vmatprep.subr.bf16.mxu0 %v10574_v38  ;;  %v10643_v37 = vld [vmem:[#allocation7 + $0x7cc] ss:$16 sps:$4 sm:$0xff]   ;;  %v10638_v38 = vld [vmem:[#allocation7 + $0x8c0] ss:$16 sps:$4 sm:$0xff]  }
 0x1f8   :  { %3756 = vmatprep.subr.bf16.mxu1 %v10577_v41  ;;  %v10641_v41 = vld [vmem:[#allocation7 + $0x7c8] ss:$16 sps:$4 sm:$0xff]  }
 0x1fa   :  { %3445 = vmatpush1.bf16.msra.mxu0 %v10572_v42  ;;  %v10646_v42 = vld [vmem:[#allocation7 + $0x8e4] ss:$16 sps:$4 sm:$0xff]  }
 0x1fb   :  { %3757 = vmatpush1.bf16.msra.mxu1 %v10575_v43  ;;  %3446 = vmatprep.subr.bf16.mxu0 %v10580_v44  ;;  %v10649_v43 = vld [vmem:[#allocation7 + $0x7ec] ss:$16 sps:$4 sm:$0xff]   ;;  %v10644_v44 = vld [vmem:[#allocation7 + $0x8e0] ss:$16 sps:$4 sm:$0xff]  }
 0x1fc   :  { %3758 = vmatprep.subr.bf16.mxu1 %v10583_v45  ;;  %v10647_v45 = vld [vmem:[#allocation7 + $0x7e8] ss:$16 sps:$4 sm:$0xff]  }
 0x1fe   :  { %3447 = vmatpush1.bf16.msra.mxu0 %v10578_v47  ;;  %v10652_v47 = vld [vmem:[#allocation7 + $0x904] ss:$16 sps:$4 sm:$0xff]  }
 0x1ff   :  { %3759 = vmatpush1.bf16.msra.mxu1 %v10581_v49  ;;  %3448 = vmatprep.subr.bf16.mxu0 %v10586_v25  ;;  %v10655_v49 = vld [vmem:[#allocation7 + $0x80c] ss:$16 sps:$4 sm:$0xff]   ;;  %v10650_v25 = vld [vmem:[#allocation7 + $0x900] ss:$16 sps:$4 sm:$0xff]  }
 0x200   :  { %3760 = vmatprep.subr.bf16.mxu1 %v10589_v52  ;;  %v10653_v52 = vld [vmem:[#allocation7 + $0x808] ss:$16 sps:$4 sm:$0xff]  }
 0x201   :  { %v12582_v59 = vpop.f32.mrb[0].mxu1 }
 0x202   :  { %v12584_v50 = vpop.f32.mrb[1].mxu1  ;;  %3449 = vmatpush1.bf16.msra.mxu0 %v10584_v53  ;;  %v10658_v53 = vld [vmem:[#allocation7 + $0x924] ss:$16 sps:$4 sm:$0xff]  }
 0x203   :  { %v3624_v62 = vpop.f32.mrb[2].mxu1  ;;  %3761 = vmatpush1.bf16.msra.mxu1 %v10587_v54  ;;  %3450 = vmatprep.subr.bf16.mxu0 %v10592_v55  ;;  %v10661_v54 = vld [vmem:[#allocation7 + $0x82c] ss:$16 sps:$4 sm:$0xff]   ;;  %v10656_v55 = vld [vmem:[#allocation7 + $0x920] ss:$16 sps:$4 sm:$0xff]  }
 0x204   :  { %v3625_v1 = vpop.f32.mrb[3].mxu1  ;;  %3762 = vmatprep.subr.bf16.mxu1 %v10595_v56  ;;  %v10659_v56 = vld [vmem:[#allocation7 + $0x828] ss:$16 sps:$4 sm:$0xff]  }
 0x205   :  { %v10665_v62 = vld [vmem:[#allocation7 + $0x848] ss:$16 sps:$4 sm:$0xff]   ;;  %v10673_v1 = vld [vmem:[#allocation7 + $0x86c] ss:$16 sps:$4 sm:$0xff]  }
 0x206   :  { %3451 = vmatpush1.bf16.msra.mxu0 %v10590_v51  ;;  %v10662_v51 = vld [vmem:[#allocation7 + $0x940] ss:$16 sps:$4 sm:$0xff]  }
 0x207   :  { %3763 = vmatpush1.bf16.msra.mxu1 %v10593_v63  ;;  %3452 = vmatprep.subr.bf16.mxu0 %v10598_v2  ;;  %v10670_v63 = vld [vmem:[#allocation7 + $0x964] ss:$16 sps:$4 sm:$0xff]   ;;  %v10668_v2 = vld [vmem:[#allocation7 + $0x960] ss:$16 sps:$4 sm:$0xff]  }
 0x208   :  { %3764 = vmatprep.subr.bf16.mxu1 %v10601_v3  ;;  %v10671_v3 = vld [vmem:[#allocation7 + $0x868] ss:$16 sps:$4 sm:$0xff]  }
 0x20a   :  { %3453 = vmatpush1.bf16.msra.mxu0 %v10596_v5  ;;  %v10676_v5 = vld [vmem:[#allocation7 + $0x984] ss:$16 sps:$4 sm:$0xff]  }
 0x20b   :  { %3765 = vmatpush1.bf16.msra.mxu1 %v10599_v6  ;;  %3463 = vmatprep.subr.bf16.mxu0 %v10604_v7  ;;  %v10679_v6 = vld [vmem:[#allocation7 + $0x88c] ss:$16 sps:$4 sm:$0xff]   ;;  %v10674_v7 = vld [vmem:[#allocation7 + $0x980] ss:$16 sps:$4 sm:$0xff]  }
 0x20c   :  { %3766 = vmatprep.subr.bf16.mxu1 %v10607_v8  ;;  %v10677_v8 = vld [vmem:[#allocation7 + $0x888] ss:$16 sps:$4 sm:$0xff]  }
 0x20d   :  { %3455 = vmatmul.mubr.bf16.vlgmr.msra.gmra.mrb[0].mxu0 %v12596_v11 }
 0x20e   :  { %3464 = vmatpush1.bf16.msra.mxu0 %v10602_v10  ;;  %3495 = vmatprep.mubr.bf16.mxu0 %v12599_v15  ;;  %v10685_v10 = vld [vmem:[#allocation7 + $0x8ac] ss:$16 sps:$4 sm:$0xff]  }
 0x20f   :  { %3767 = vmatpush1.bf16.msra.mxu1 %v10605_v12  ;;  %3465 = vmatprep.subr.bf16.mxu0 %v10610_v13  ;;  %v10683_v12 = vld [vmem:[#allocation7 + $0x8a8] ss:$16 sps:$4 sm:$0xff]   ;;  %v10688_v13 = vld [vmem:[#allocation7 + $0x9c4] ss:$16 sps:$4 sm:$0xff]  }
 0x210   :  { %3768 = vmatprep.subr.bf16.mxu1 %v10613_v14  ;;  %v10691_v14 = vld [vmem:[#allocation7 + $0x8cc] ss:$16 sps:$4 sm:$0xff]  }
 0x212   :  { %3466 = vmatpush1.bf16.msra.mxu0 %v10608_v16  ;;  %v10686_v16 = vld [vmem:[#allocation7 + $0x9c0] ss:$16 sps:$4 sm:$0xff]  }
 0x213   :  { %3769 = vmatpush1.bf16.msra.mxu1 %v10611_v17  ;;  %3467 = vmatprep.subr.bf16.mxu0 %v10616_v58  ;;  %v10689_v17 = vld [vmem:[#allocation7 + $0x8c8] ss:$16 sps:$4 sm:$0xff]   ;;  %v10694_v58 = vld [vmem:[#allocation7 + $0x9e4] ss:$16 sps:$4 sm:$0xff]  }
 0x214   :  { %3770 = vmatprep.subr.bf16.mxu1 %v10619_v18  ;;  %v10697_v18 = vld [vmem:[#allocation7 + $0x8ec] ss:$16 sps:$4 sm:$0xff]  }
 0x216   :  { %3468 = vmatpush1.bf16.msra.mxu0 %v10614_v19  ;;  %v849_v19 = vcombine.low %v12587_v4, %v12590_v57  ;;  %v10706_v4 = vld [vmem:[#allocation7 + $0xa20] ss:$16 sps:$4 sm:$0xff]   ;;  %v10709_v57 = vld [vmem:[#allocation7 + $0x928] ss:$16 sps:$4 sm:$0xff]  }
 0x217   :  { %3771 = vmatpush1.bf16.msra.mxu1 %v10617_v20  ;;  %3469 = vmatprep.subr.bf16.mxu0 %v10622_v21  ;;  %v10692_v20 = vld [vmem:[#allocation7 + $0x9e0] ss:$16 sps:$4 sm:$0xff]   ;;  %v10695_v21 = vld [vmem:[#allocation7 + $0x8e8] ss:$16 sps:$4 sm:$0xff]  }
 0x218   :  { %3772 = vmatprep.subr.bf16.mxu1 %v10625_v22  ;;  %v10702_v22 = vld [vmem:[#allocation7 + $0xa04] ss:$16 sps:$4 sm:$0xff]  }
 0x21a   :  { %3470 = vmatpush1.bf16.msra.mxu0 %v10620_v23  ;;  %v10705_v23 = vld [vmem:[#allocation7 + $0x90c] ss:$16 sps:$4 sm:$0xff]  }
 0x21b   :  { %3773 = vmatpush1.bf16.msra.mxu1 %v10623_v24  ;;  %3471 = vmatprep.subr.bf16.mxu0 %v10628_v27  ;;  %v10700_v24 = vld [vmem:[#allocation7 + $0xa00] ss:$16 sps:$4 sm:$0xff]   ;;  %v10703_v27 = vld [vmem:[#allocation7 + $0x908] ss:$16 sps:$4 sm:$0xff]  }
 0x21c   :  { %3774 = vmatprep.subr.bf16.mxu1 %v10631_v28  ;;  %v12608_v28 = vrot.slane %v849_v19, %v12520_v34  ;;  %v10772_v19 = vld [vmem:[#allocation7 + $0xb80] ss:$16 sps:$4 sm:$0xff]  }
 0x21e   :  { %3472 = vmatpush1.bf16.msra.mxu0 %v10626_v29  ;;  %v10708_v29 = vld [vmem:[#allocation7 + $0xa24] ss:$16 sps:$4 sm:$0xff]  }
 0x21f   :  { %3775 = vmatpush1.bf16.msra.mxu1 %v10629_v30  ;;  %3473 = vmatprep.subr.bf16.mxu0 %v10634_v31  ;;  %v10711_v30 = vld [vmem:[#allocation7 + $0x92c] ss:$16 sps:$4 sm:$0xff]   ;;  %v12612_v31 = vcombine.high %v12599_v15, %v12599_v15 }
 0x220   :  { %3776 = vmatprep.subr.bf16.mxu1 %v10637_v32  ;;  %v10714_v32 = vld [vmem:[#allocation7 + $0xa44] ss:$16 sps:$4 sm:$0xff]  }
 0x222   :  { %3474 = vmatpush1.bf16.msra.mxu0 %v10632_v33  ;;  %v10717_v33 = vld [vmem:[#allocation7 + $0x94c] ss:$16 sps:$4 sm:$0xff]  }
 0x223   :  { %3777 = vmatpush1.bf16.msra.mxu1 %v10635_v35  ;;  %3475 = vmatprep.subr.bf16.mxu0 %v10640_v36  ;;  %v10712_v35 = vld [vmem:[#allocation7 + $0xa40] ss:$16 sps:$4 sm:$0xff]   ;;  %v10715_v36 = vld [vmem:[#allocation7 + $0x948] ss:$16 sps:$4 sm:$0xff]  }
 0x224   :  { %3778 = vmatprep.subr.bf16.mxu1 %v10643_v37  ;;  %v10720_v37 = vld [vmem:[#allocation7 + $0xa64] ss:$16 sps:$4 sm:$0xff]  }
 0x226   :  { %3476 = vmatpush1.bf16.msra.mxu0 %v10638_v38  ;;  %v10723_v38 = vld [vmem:[#allocation7 + $0x96c] ss:$16 sps:$4 sm:$0xff]  }
 0x227   :  { %3779 = vmatpush1.bf16.msra.mxu1 %v10641_v41  ;;  %3477 = vmatprep.subr.bf16.mxu0 %v10646_v42  ;;  %v10721_v41 = vld [vmem:[#allocation7 + $0x968] ss:$16 sps:$4 sm:$0xff]   ;;  %v10726_v42 = vld [vmem:[#allocation7 + $0xa84] ss:$16 sps:$4 sm:$0xff]  }
 0x228   :  { %3780 = vmatprep.subr.bf16.mxu1 %v10649_v43  ;;  %v10729_v43 = vld [vmem:[#allocation7 + $0x98c] ss:$16 sps:$4 sm:$0xff]  }
 0x22a   :  { %3478 = vmatpush1.bf16.msra.mxu0 %v10644_v44  ;;  %v10724_v44 = vld [vmem:[#allocation7 + $0xa80] ss:$16 sps:$4 sm:$0xff]  }
 0x22b   :  { %3781 = vmatpush1.bf16.msra.mxu1 %v10647_v45  ;;  %3479 = vmatprep.subr.bf16.mxu0 %v10652_v47  ;;  %v10727_v45 = vld [vmem:[#allocation7 + $0x988] ss:$16 sps:$4 sm:$0xff]   ;;  %v10732_v47 = vld [vmem:[#allocation7 + $0xaa4] ss:$16 sps:$4 sm:$0xff]  }
 0x22c   :  { %3791 = vmatprep.subr.bf16.mxu1 %v10655_v49  ;;  %v10735_v49 = vld [vmem:[#allocation7 + $0x9ac] ss:$16 sps:$4 sm:$0xff]  }
 0x22e   :  { %3783 = vmatmul.mubr.bf16.vlgmr.msra.gmra.mrb[4].mxu1 %v12596_v11  ;;  %3480 = vmatpush1.bf16.msra.mxu0 %v10650_v25  ;;  %v10680_v11 = vld [vmem:[#allocation7 + $0x9a0] ss:$16 sps:$4 sm:$0xff]  }
 0x22f   :  { %3792 = vmatpush1.bf16.msra.mxu1 %v10653_v52  ;;  %3481 = vmatprep.subr.bf16.mxu0 %v10658_v53  ;;  %v10730_v25 = vld [vmem:[#allocation7 + $0xaa0] ss:$16 sps:$4 sm:$0xff]   ;;  %v10733_v52 = vld [vmem:[#allocation7 + $0x9a8] ss:$16 sps:$4 sm:$0xff]   ;;  %v10738_v53 = vld [vmem:[#allocation7 + $0xac4] ss:$16 sps:$4 sm:$0xff]  }
 0x230   :  { %3793 = vmatprep.subr.bf16.mxu1 %v10661_v54  ;;  %3823 = vmatprep.mubr.bf16.mxu1 %v12599_v15  ;;  %v10718_v15 = vld [vmem:[#allocation7 + $0xa60] ss:$16 sps:$4 sm:$0xff]   ;;  %v10741_v54 = vld [vmem:[#allocation7 + $0x9cc] ss:$16 sps:$4 sm:$0xff]  }
 0x232   :  { %3482 = vmatpush1.bf16.msra.mxu0 %v10656_v55  ;;  %v10736_v55 = vld [vmem:[#allocation7 + $0xac0] ss:$16 sps:$4 sm:$0xff]  }
 0x233   :  { %3794 = vmatpush1.bf16.msra.mxu1 %v10659_v56  ;;  %3483 = vmatprep.subr.bf16.mxu0 %v10664_v60  ;;  %v10739_v56 = vld [vmem:[#allocation7 + $0x9c8] ss:$16 sps:$4 sm:$0xff]   ;;  %v10744_v60 = vld [vmem:[#allocation7 + $0xae4] ss:$16 sps:$4 sm:$0xff]  }
 0x234   :  { %3795 = vmatprep.subr.bf16.mxu1 %v10667_v61  ;;  %v10747_v61 = vld [vmem:[#allocation7 + $0x9ec] ss:$16 sps:$4 sm:$0xff]  }
 0x236   :  { %3484 = vmatpush1.bf16.msra.mxu0 %v10662_v51  ;;  %v10742_v51 = vld [vmem:[#allocation7 + $0xae0] ss:$16 sps:$4 sm:$0xff]  }
 0x237   :  { %3796 = vmatpush1.bf16.msra.mxu1 %v10665_v62  ;;  %3485 = vmatprep.subr.bf16.mxu0 %v10670_v63  ;;  %v10745_v62 = vld [vmem:[#allocation7 + $0x9e8] ss:$16 sps:$4 sm:$0xff]   ;;  %v10750_v63 = vld [vmem:[#allocation7 + $0xb04] ss:$16 sps:$4 sm:$0xff]  }
 0x238   :  { %3797 = vmatprep.subr.bf16.mxu1 %v10673_v1  ;;  %v10753_v1 = vld [vmem:[#allocation7 + $0xa0c] ss:$16 sps:$4 sm:$0xff]  }
 0x23a   :  { %3486 = vmatpush1.bf16.msra.mxu0 %v10668_v2  ;;  %v10748_v2 = vld [vmem:[#allocation7 + $0xb00] ss:$16 sps:$4 sm:$0xff]  }
 0x23b   :  { %3798 = vmatpush1.bf16.msra.mxu1 %v10671_v3  ;;  %3487 = vmatprep.subr.bf16.mxu0 %v10676_v5  ;;  %v10751_v3 = vld [vmem:[#allocation7 + $0xa08] ss:$16 sps:$4 sm:$0xff]   ;;  %v10756_v5 = vld [vmem:[#allocation7 + $0xb24] ss:$16 sps:$4 sm:$0xff]  }
 0x23c   :  { %3799 = vmatprep.subr.bf16.mxu1 %v10679_v6  ;;  %v10759_v6 = vld [vmem:[#allocation7 + $0xa2c] ss:$16 sps:$4 sm:$0xff]  }
 0x23e   :  { %3488 = vmatpush1.bf16.msra.mxu0 %v10674_v7  ;;  %v10754_v7 = vld [vmem:[#allocation7 + $0xb20] ss:$16 sps:$4 sm:$0xff]  }
 0x23f   :  { %3800 = vmatpush1.bf16.msra.mxu1 %v10677_v8  ;;  %3489 = vmatprep.subr.bf16.mxu0 %v10682_v9  ;;  %v10757_v8 = vld [vmem:[#allocation7 + $0xa28] ss:$16 sps:$4 sm:$0xff]   ;;  %v10762_v9 = vld [vmem:[#allocation7 + $0xb44] ss:$16 sps:$4 sm:$0xff]  }
 0x240   :  { %3801 = vmatprep.subr.bf16.mxu1 %v10685_v10  ;;  %v10765_v10 = vld [vmem:[#allocation7 + $0xa4c] ss:$16 sps:$4 sm:$0xff]  }
 0x242   :  { %3490 = vmatpush1.bf16.msra.mxu0 %v10680_v11  ;;  %v10760_v11 = vld [vmem:[#allocation7 + $0xb40] ss:$16 sps:$4 sm:$0xff]  }
 0x243   :  { %3802 = vmatpush1.bf16.msra.mxu1 %v10683_v12  ;;  %3491 = vmatprep.subr.bf16.mxu0 %v10688_v13  ;;  %v10763_v12 = vld [vmem:[#allocation7 + $0xa48] ss:$16 sps:$4 sm:$0xff]   ;;  %v10768_v13 = vld [vmem:[#allocation7 + $0xb64] ss:$16 sps:$4 sm:$0xff]  }
 0x244   :  { %3803 = vmatprep.subr.bf16.mxu1 %v10691_v14  ;;  %v10771_v14 = vld [vmem:[#allocation7 + $0xa6c] ss:$16 sps:$4 sm:$0xff]  }
 0x246   :  { %3492 = vmatpush1.bf16.msra.mxu0 %v10686_v16  ;;  %v10766_v16 = vld [vmem:[#allocation7 + $0xb60] ss:$16 sps:$4 sm:$0xff]  }
 0x247   :  { %3804 = vmatpush1.bf16.msra.mxu1 %v10689_v17  ;;  %3493 = vmatprep.subr.bf16.mxu0 %v10694_v58  ;;  %v10769_v17 = vld [vmem:[#allocation7 + $0xa68] ss:$16 sps:$4 sm:$0xff]   ;;  %v10774_v58 = vld [vmem:[#allocation7 + $0xb84] ss:$16 sps:$4 sm:$0xff]  }
 0x248   :  { %3805 = vmatprep.subr.bf16.mxu1 %v10697_v18  ;;  %v10777_v18 = vld [vmem:[#allocation7 + $0xa8c] ss:$16 sps:$4 sm:$0xff]  }
 0x24a   :  { %3494 = vmatpush1.bf16.msra.mxu0 %v10692_v20  ;;  %v10775_v20 = vld [vmem:[#allocation7 + $0xa88] ss:$16 sps:$4 sm:$0xff]  }
 0x24b   :  { %3806 = vmatpush1.bf16.msra.mxu1 %v10695_v21  ;;  %3504 = vmatprep.subr.bf16.mxu0 %v10702_v22  ;;  %v10780_v21 = vld [vmem:[#allocation7 + $0xba4] ss:$16 sps:$4 sm:$0xff]   ;;  %v10783_v22 = vld [vmem:[#allocation7 + $0xaac] ss:$16 sps:$4 sm:$0xff]  }
 0x24c   :  { %3807 = vmatprep.subr.bf16.mxu1 %v10705_v23  ;;  %v10778_v23 = vld [vmem:[#allocation7 + $0xba0] ss:$16 sps:$4 sm:$0xff]  }
 0x24d   :  { %3496 = vmatmul.mubr.bf16.vlgmr.msra.gmra.mrb[0].mxu0 %v12608_v28 }
 0x24e   :  { %3505 = vmatpush1.bf16.msra.mxu0 %v10700_v24  ;;  %3536 = vmatprep.mubr.bf16.mxu0 %v12612_v31  ;;  %v10781_v24 = vld [vmem:[#allocation7 + $0xaa8] ss:$16 sps:$4 sm:$0xff]  }
 0x24f   :  { %3808 = vmatpush1.bf16.msra.mxu1 %v10703_v27  ;;  %3506 = vmatprep.subr.bf16.mxu0 %v10708_v29  ;;  %v10786_v27 = vld [vmem:[#allocation7 + $0xbc4] ss:$16 sps:$4 sm:$0xff]   ;;  %v10789_v29 = vld [vmem:[#allocation7 + $0xacc] ss:$16 sps:$4 sm:$0xff]  }
 0x250   :  { %3809 = vmatprep.subr.bf16.mxu1 %v10711_v30  ;;  %v10784_v30 = vld [vmem:[#allocation7 + $0xbc0] ss:$16 sps:$4 sm:$0xff]  }
 0x252   :  { %3507 = vmatpush1.bf16.msra.mxu0 %v10706_v4  ;;  %v10787_v4 = vld [vmem:[#allocation7 + $0xac8] ss:$16 sps:$4 sm:$0xff]  }
 0x253   :  { %3810 = vmatpush1.bf16.msra.mxu1 %v10709_v57  ;;  %3508 = vmatprep.subr.bf16.mxu0 %v10714_v32  ;;  %v10792_v57 = vld [vmem:[#allocation7 + $0xbe4] ss:$16 sps:$4 sm:$0xff]   ;;  %v10790_v32 = vld [vmem:[#allocation7 + $0xbe0] ss:$16 sps:$4 sm:$0xff]  }
 0x254   :  { %3811 = vmatprep.subr.bf16.mxu1 %v10717_v33  ;;  %v10793_v33 = vld [vmem:[#allocation7 + $0xae8] ss:$16 sps:$4 sm:$0xff]  }
 0x256   :  { %3509 = vmatpush1.bf16.msra.mxu0 %v10712_v35  ;;  %v10798_v35 = vld [vmem:[#allocation7 + $0xc04] ss:$16 sps:$4 sm:$0xff]  }
 0x257   :  { %3812 = vmatpush1.bf16.msra.mxu1 %v10715_v36  ;;  %3510 = vmatprep.subr.bf16.mxu0 %v10720_v37  ;;  %v10801_v36 = vld [vmem:[#allocation7 + $0xb0c] ss:$16 sps:$4 sm:$0xff]   ;;  %v10796_v37 = vld [vmem:[#allocation7 + $0xc00] ss:$16 sps:$4 sm:$0xff]  }
 0x258   :  { %3813 = vmatprep.subr.bf16.mxu1 %v10723_v38  ;;  %v10799_v38 = vld [vmem:[#allocation7 + $0xb08] ss:$16 sps:$4 sm:$0xff]  }
 0x25a   :  { %3511 = vmatpush1.bf16.msra.mxu0 %v10718_v15  ;;  %v852_v15 = vcombine.high %v12523_v39, %v12526_v40  ;;  %v10810_v39 = vld [vmem:[#allocation7 + $0xc44] ss:$16 sps:$4 sm:$0xff]   ;;  %v10813_v40 = vld [vmem:[#allocation7 + $0xb4c] ss:$16 sps:$4 sm:$0xff]  }
 0x25b   :  { %3814 = vmatpush1.bf16.msra.mxu1 %v10721_v41  ;;  %3512 = vmatprep.subr.bf16.mxu0 %v10726_v42  ;;  %v12622_v41 = vcombine.high %v12608_v28, %v12608_v28  ;;  %v10804_v42 = vld [vmem:[#allocation7 + $0xc24] ss:$16 sps:$4 sm:$0xff]  }
 0x25c   :  { %3815 = vmatprep.subr.bf16.mxu1 %v10729_v43  ;;  %v10807_v43 = vld [vmem:[#allocation7 + $0xb2c] ss:$16 sps:$4 sm:$0xff]  }
 0x25e   :  { %3513 = vmatpush1.bf16.msra.mxu0 %v10724_v44  ;;  %v12625_v44 = vrot.slane %v852_v15, %v12520_v34  ;;  %v10880_v15 = vld [vmem:[#allocation7 + $0xdc0] ss:$16 sps:$4 sm:$0xff]  }
 0x25f   :  { %3816 = vmatpush1.bf16.msra.mxu1 %v10727_v45  ;;  %3514 = vmatprep.subr.bf16.mxu0 %v10732_v47  ;;  %v10802_v45 = vld [vmem:[#allocation7 + $0xc20] ss:$16 sps:$4 sm:$0xff]   ;;  %v10805_v47 = vld [vmem:[#allocation7 + $0xb28] ss:$16 sps:$4 sm:$0xff]  }
 0x260   :  { %3817 = vmatprep.subr.bf16.mxu1 %v10735_v49  ;;  %v10811_v49 = vld [vmem:[#allocation7 + $0xb48] ss:$16 sps:$4 sm:$0xff]  }
 0x262   :  { %3515 = vmatpush1.bf16.msra.mxu0 %v10730_v25  ;;  %v10816_v25 = vld [vmem:[#allocation7 + $0xc64] ss:$16 sps:$4 sm:$0xff]  }
 0x263   :  { %3818 = vmatpush1.bf16.msra.mxu1 %v10733_v52  ;;  %3516 = vmatprep.subr.bf16.mxu0 %v10738_v53  ;;  %v10819_v52 = vld [vmem:[#allocation7 + $0xb6c] ss:$16 sps:$4 sm:$0xff]   ;;  %v10814_v53 = vld [vmem:[#allocation7 + $0xc60] ss:$16 sps:$4 sm:$0xff]  }
 0x264   :  { %3819 = vmatprep.subr.bf16.mxu1 %v10741_v54  ;;  %v10817_v54 = vld [vmem:[#allocation7 + $0xb68] ss:$16 sps:$4 sm:$0xff]  }
 0x266   :  { %3517 = vmatpush1.bf16.msra.mxu0 %v10736_v55  ;;  %v10822_v55 = vld [vmem:[#allocation7 + $0xc84] ss:$16 sps:$4 sm:$0xff]  }
 0x267   :  { %3820 = vmatpush1.bf16.msra.mxu1 %v10739_v56  ;;  %3518 = vmatprep.subr.bf16.mxu0 %v10744_v60  ;;  %v10825_v56 = vld [vmem:[#allocation7 + $0xb8c] ss:$16 sps:$4 sm:$0xff]   ;;  %v10820_v60 = vld [vmem:[#allocation7 + $0xc80] ss:$16 sps:$4 sm:$0xff]  }
 0x268   :  { %3821 = vmatprep.subr.bf16.mxu1 %v10747_v61  ;;  %v10823_v61 = vld [vmem:[#allocation7 + $0xb88] ss:$16 sps:$4 sm:$0xff]  }
 0x26a   :  { %3519 = vmatpush1.bf16.msra.mxu0 %v10742_v51  ;;  %v10828_v51 = vld [vmem:[#allocation7 + $0xca4] ss:$16 sps:$4 sm:$0xff]  }
 0x26b   :  { %3822 = vmatpush1.bf16.msra.mxu1 %v10745_v62  ;;  %3520 = vmatprep.subr.bf16.mxu0 %v10750_v63  ;;  %v10831_v62 = vld [vmem:[#allocation7 + $0xbac] ss:$16 sps:$4 sm:$0xff]   ;;  %v10826_v63 = vld [vmem:[#allocation7 + $0xca0] ss:$16 sps:$4 sm:$0xff]  }
 0x26c   :  { %3832 = vmatprep.subr.bf16.mxu1 %v10753_v1  ;;  %v10829_v1 = vld [vmem:[#allocation7 + $0xba8] ss:$16 sps:$4 sm:$0xff]  }
 0x26e   :  { %3824 = vmatmul.mubr.bf16.vlgmr.msra.gmra.mrb[4].mxu1 %v12608_v28  ;;  %3521 = vmatpush1.bf16.msra.mxu0 %v10748_v2  ;;  %v10808_v28 = vld [vmem:[#allocation7 + $0xc40] ss:$16 sps:$4 sm:$0xff]   ;;  %v10834_v2 = vld [vmem:[#allocation7 + $0xcc4] ss:$16 sps:$4 sm:$0xff]  }
 0x26f   :  { %3833 = vmatpush1.bf16.msra.mxu1 %v10751_v3  ;;  %3522 = vmatprep.subr.bf16.mxu0 %v10756_v5  ;;  %v10837_v3 = vld [vmem:[#allocation7 + $0xbcc] ss:$16 sps:$4 sm:$0xff]   ;;  %v10832_v5 = vld [vmem:[#allocation7 + $0xcc0] ss:$16 sps:$4 sm:$0xff]  }
 0x270   :  { %3834 = vmatprep.subr.bf16.mxu1 %v10759_v6  ;;  %3864 = vmatprep.mubr.bf16.mxu1 %v12612_v31  ;;  %v10795_v31 = vld [vmem:[#allocation7 + $0xaec] ss:$16 sps:$4 sm:$0xff]   ;;  %v10835_v6 = vld [vmem:[#allocation7 + $0xbc8] ss:$16 sps:$4 sm:$0xff]  }
 0x272   :  { %3523 = vmatpush1.bf16.msra.mxu0 %v10754_v7  ;;  %v10840_v7 = vld [vmem:[#allocation7 + $0xce4] ss:$16 sps:$4 sm:$0xff]  }
 0x273   :  { %3835 = vmatpush1.bf16.msra.mxu1 %v10757_v8  ;;  %3524 = vmatprep.subr.bf16.mxu0 %v10762_v9  ;;  %v10843_v8 = vld [vmem:[#allocation7 + $0xbec] ss:$16 sps:$4 sm:$0xff]   ;;  %v10838_v9 = vld [vmem:[#allocation7 + $0xce0] ss:$16 sps:$4 sm:$0xff]  }
 0x274   :  { %3836 = vmatprep.subr.bf16.mxu1 %v10765_v10  ;;  %v10841_v10 = vld [vmem:[#allocation7 + $0xbe8] ss:$16 sps:$4 sm:$0xff]  }
 0x276   :  { %3525 = vmatpush1.bf16.msra.mxu0 %v10760_v11  ;;  %v10846_v11 = vld [vmem:[#allocation7 + $0xd04] ss:$16 sps:$4 sm:$0xff]  }
 0x277   :  { %3837 = vmatpush1.bf16.msra.mxu1 %v10763_v12  ;;  %3526 = vmatprep.subr.bf16.mxu0 %v10768_v13  ;;  %v10849_v12 = vld [vmem:[#allocation7 + $0xc0c] ss:$16 sps:$4 sm:$0xff]   ;;  %v10844_v13 = vld [vmem:[#allocation7 + $0xd00] ss:$16 sps:$4 sm:$0xff]  }
 0x278   :  { %3838 = vmatprep.subr.bf16.mxu1 %v10771_v14  ;;  %v10847_v14 = vld [vmem:[#allocation7 + $0xc08] ss:$16 sps:$4 sm:$0xff]  }
 0x27a   :  { %3527 = vmatpush1.bf16.msra.mxu0 %v10766_v16  ;;  %v10852_v16 = vld [vmem:[#allocation7 + $0xd24] ss:$16 sps:$4 sm:$0xff]  }
 0x27b   :  { %3839 = vmatpush1.bf16.msra.mxu1 %v10769_v17  ;;  %3528 = vmatprep.subr.bf16.mxu0 %v10774_v58  ;;  %v10855_v17 = vld [vmem:[#allocation7 + $0xc2c] ss:$16 sps:$4 sm:$0xff]   ;;  %v10850_v58 = vld [vmem:[#allocation7 + $0xd20] ss:$16 sps:$4 sm:$0xff]  }
 0x27c   :  { %3840 = vmatprep.subr.bf16.mxu1 %v10777_v18  ;;  %v10853_v18 = vld [vmem:[#allocation7 + $0xc28] ss:$16 sps:$4 sm:$0xff]  }
 0x27e   :  { %3529 = vmatpush1.bf16.msra.mxu0 %v10772_v19  ;;  %v10858_v19 = vld [vmem:[#allocation7 + $0xd44] ss:$16 sps:$4 sm:$0xff]  }
 0x27f   :  { %3841 = vmatpush1.bf16.msra.mxu1 %v10775_v20  ;;  %3530 = vmatprep.subr.bf16.mxu0 %v10780_v21  ;;  %v10861_v20 = vld [vmem:[#allocation7 + $0xc4c] ss:$16 sps:$4 sm:$0xff]   ;;  %v10856_v21 = vld [vmem:[#allocation7 + $0xd40] ss:$16 sps:$4 sm:$0xff]  }
 0x280   :  { %3842 = vmatprep.subr.bf16.mxu1 %v10783_v22  ;;  %v10859_v22 = vld [vmem:[#allocation7 + $0xc48] ss:$16 sps:$4 sm:$0xff]  }
 0x282   :  { %3531 = vmatpush1.bf16.msra.mxu0 %v10778_v23  ;;  %v10864_v23 = vld [vmem:[#allocation7 + $0xd64] ss:$16 sps:$4 sm:$0xff]  }
 0x283   :  { %3843 = vmatpush1.bf16.msra.mxu1 %v10781_v24  ;;  %3532 = vmatprep.subr.bf16.mxu0 %v10786_v27  ;;  %v10867_v24 = vld [vmem:[#allocation7 + $0xc6c] ss:$16 sps:$4 sm:$0xff]   ;;  %v10862_v27 = vld [vmem:[#allocation7 + $0xd60] ss:$16 sps:$4 sm:$0xff]  }
 0x284   :  { %3844 = vmatprep.subr.bf16.mxu1 %v10789_v29  ;;  %v10865_v29 = vld [vmem:[#allocation7 + $0xc68] ss:$16 sps:$4 sm:$0xff]  }
 0x286   :  { %3533 = vmatpush1.bf16.msra.mxu0 %v10784_v30  ;;  %v10870_v30 = vld [vmem:[#allocation7 + $0xd84] ss:$16 sps:$4 sm:$0xff]  }
 0x287   :  { %3845 = vmatpush1.bf16.msra.mxu1 %v10787_v4  ;;  %3534 = vmatprep.subr.bf16.mxu0 %v10792_v57  ;;  %v10873_v4 = vld [vmem:[#allocation7 + $0xc8c] ss:$16 sps:$4 sm:$0xff]   ;;  %v10868_v57 = vld [vmem:[#allocation7 + $0xd80] ss:$16 sps:$4 sm:$0xff]  }
 0x288   :  { %3846 = vmatprep.subr.bf16.mxu1 %v10795_v31  ;;  %v10871_v31 = vld [vmem:[#allocation7 + $0xc88] ss:$16 sps:$4 sm:$0xff]  }
 0x28a   :  { %3535 = vmatpush1.bf16.msra.mxu0 %v10790_v32  ;;  %v10876_v32 = vld [vmem:[#allocation7 + $0xda4] ss:$16 sps:$4 sm:$0xff]  }
 0x28b   :  { %3847 = vmatpush1.bf16.msra.mxu1 %v10793_v33  ;;  %3545 = vmatprep.subr.bf16.mxu0 %v10798_v35  ;;  %v10879_v33 = vld [vmem:[#allocation7 + $0xcac] ss:$16 sps:$4 sm:$0xff]   ;;  %v10874_v35 = vld [vmem:[#allocation7 + $0xda0] ss:$16 sps:$4 sm:$0xff]  }
 0x28c   :  { %3848 = vmatprep.subr.bf16.mxu1 %v10801_v36  ;;  %v10877_v36 = vld [vmem:[#allocation7 + $0xca8] ss:$16 sps:$4 sm:$0xff]  }
 0x28d   :  { %3537 = vmatmul.mubr.bf16.vlgmr.msra.gmra.mrb[0].mxu0 %v12622_v41 }
 0x28e   :  { %3546 = vmatpush1.bf16.msra.mxu0 %v10796_v37  ;;  %3577 = vmatprep.mubr.bf16.mxu0 %v12625_v44  ;;  %v10882_v37 = vld [vmem:[#allocation7 + $0xdc4] ss:$16 sps:$4 sm:$0xff]  }
 0x28f   :  { %3849 = vmatpush1.bf16.msra.mxu1 %v10799_v38  ;;  %3547 = vmatprep.subr.bf16.mxu0 %v10804_v42  ;;  %v10885_v38 = vld [vmem:[#allocation7 + $0xccc] ss:$16 sps:$4 sm:$0xff]   ;;  %v10888_v42 = vld [vmem:[#allocation7 + $0xde4] ss:$16 sps:$4 sm:$0xff]  }
 0x290   :  { %3850 = vmatprep.subr.bf16.mxu1 %v10807_v43  ;;  %v10891_v43 = vld [vmem:[#allocation7 + $0xcec] ss:$16 sps:$4 sm:$0xff]  }
 0x292   :  { %3548 = vmatpush1.bf16.msra.mxu0 %v10802_v45  ;;  %v10889_v45 = vld [vmem:[#allocation7 + $0xce8] ss:$16 sps:$4 sm:$0xff]  }
 0x293   :  { %3851 = vmatpush1.bf16.msra.mxu1 %v10805_v47  ;;  %3549 = vmatprep.subr.bf16.mxu0 %v10810_v39  ;;  %v10894_v47 = vld [vmem:[#allocation7 + $0xd0c] ss:$16 sps:$4 sm:$0xff]   ;;  %v10940_v39 = vld [vmem:[#allocation10 + $0x40] sm:$0xff]  }
 0x294   :  { %3852 = vmatprep.subr.bf16.mxu1 %v10813_v40  ;;  %v10892_v40 = vld [vmem:[#allocation7 + $0xd08] ss:$16 sps:$4 sm:$0xff]  }
 0x296   :  { %3550 = vmatpush1.bf16.msra.mxu0 %v10808_v28  ;;  %v10941_v28 = vld [vmem:[#allocation10] sm:$0xff]  }
 0x297   :  { %3853 = vmatpush1.bf16.msra.mxu1 %v10811_v49  ;;  %3551 = vmatprep.subr.bf16.mxu0 %v10816_v25  ;;  %v10897_v49 = vld [vmem:[#allocation7 + $0xd2c] ss:$16 sps:$4 sm:$0xff]  }
 0x298   :  { %3854 = vmatprep.subr.bf16.mxu1 %v10819_v52  ;;  %v10942_v25 = vld [vmem:[#allocation10 + $0x48] sm:$0xff]   ;;  %v10895_v52 = vld [vmem:[#allocation7 + $0xd28] ss:$16 sps:$4 sm:$0xff]  }
 0x29a   :  { %3552 = vmatpush1.bf16.msra.mxu0 %v10814_v53  ;;  %v10943_v53 = vld [vmem:[#allocation10 + $0x8] sm:$0xff]  }
 0x29b   :  { %3855 = vmatpush1.bf16.msra.mxu1 %v10817_v54  ;;  %3553 = vmatprep.subr.bf16.mxu0 %v10822_v55  ;;  %v10900_v54 = vld [vmem:[#allocation7 + $0xd4c] ss:$16 sps:$4 sm:$0xff]   ;;  %v10944_v55 = vld [vmem:[#allocation10 + $0x50] sm:$0xff]  }
 0x29c   :  { %3856 = vmatprep.subr.bf16.mxu1 %v10825_v56  ;;  %v10898_v56 = vld [vmem:[#allocation7 + $0xd48] ss:$16 sps:$4 sm:$0xff]  }
 0x29e   :  { %3554 = vmatpush1.bf16.msra.mxu0 %v10820_v60  ;;  %v10945_v60 = vld [vmem:[#allocation10 + $0x10] sm:$0xff]  }
 0x29f   :  { %3857 = vmatpush1.bf16.msra.mxu1 %v10823_v61  ;;  %3555 = vmatprep.subr.bf16.mxu0 %v10828_v51  ;;  %v10903_v61 = vld [vmem:[#allocation7 + $0xd6c] ss:$16 sps:$4 sm:$0xff]  }
 0x2a0   :  { %3858 = vmatprep.subr.bf16.mxu1 %v10831_v62  ;;  %v10946_v51 = vld [vmem:[#allocation10 + $0x58] sm:$0xff]   ;;  %v10901_v62 = vld [vmem:[#allocation7 + $0xd68] ss:$16 sps:$4 sm:$0xff]  }
 0x2a2   :  { %3556 = vmatpush1.bf16.msra.mxu0 %v10826_v63  ;;  %v10947_v63 = vld [vmem:[#allocation10 + $0x18] sm:$0xff]  }
 0x2a3   :  { %3859 = vmatpush1.bf16.msra.mxu1 %v10829_v1  ;;  %3557 = vmatprep.subr.bf16.mxu0 %v10834_v2  ;;  %v10906_v1 = vld [vmem:[#allocation7 + $0xd8c] ss:$16 sps:$4 sm:$0xff]   ;;  %v10948_v2 = vld [vmem:[#allocation10 + $0x60] sm:$0xff]  }
 0x2a4   :  { %3860 = vmatprep.subr.bf16.mxu1 %v10837_v3  ;;  %v10904_v3 = vld [vmem:[#allocation7 + $0xd88] ss:$16 sps:$4 sm:$0xff]  }
 0x2a6   :  { %3558 = vmatpush1.bf16.msra.mxu0 %v10832_v5  ;;  %v10949_v5 = vld [vmem:[#allocation10 + $0x20] sm:$0xff]  }
 0x2a7   :  { %3861 = vmatpush1.bf16.msra.mxu1 %v10835_v6  ;;  %3559 = vmatprep.subr.bf16.mxu0 %v10840_v7  ;;  %v10909_v6 = vld [vmem:[#allocation7 + $0xdac] ss:$16 sps:$4 sm:$0xff]  }
 0x2a8   :  { %3862 = vmatprep.subr.bf16.mxu1 %v10843_v8  ;;  %v10950_v7 = vld [vmem:[#allocation10 + $0x68] sm:$0xff]   ;;  %v10907_v8 = vld [vmem:[#allocation7 + $0xda8] ss:$16 sps:$4 sm:$0xff]  }
 0x2aa   :  { %3560 = vmatpush1.bf16.msra.mxu0 %v10838_v9  ;;  %v10912_v9 = vld [vmem:[#allocation7 + $0xdcc] ss:$16 sps:$4 sm:$0xff]  }
 0x2ab   :  { %3863 = vmatpush1.bf16.msra.mxu1 %v10841_v10  ;;  %3561 = vmatprep.subr.bf16.mxu0 %v10846_v11  ;;  %v10910_v10 = vld [vmem:[#allocation7 + $0xdc8] ss:$16 sps:$4 sm:$0xff]   ;;  %v10915_v11 = vld [vmem:[#allocation7 + $0xdec] ss:$16 sps:$4 sm:$0xff]  }
 0x2ac   :  { %3873 = vmatprep.subr.bf16.mxu1 %v10849_v12  ;;  %v10913_v12 = vld [vmem:[#allocation7 + $0xde8] ss:$16 sps:$4 sm:$0xff]  }
 0x2ae   :  { %3865 = vmatmul.mubr.bf16.vlgmr.msra.gmra.mrb[4].mxu1 %v12622_v41  ;;  %3562 = vmatpush1.bf16.msra.mxu0 %v10844_v13  ;;  %v10883_v41 = vld [vmem:[#allocation7 + $0xcc8] ss:$16 sps:$4 sm:$0xff]   ;;  %v10918_v13 = vld [vmem:[#allocation7 + $0xe0c] ss:$16 sps:$4 sm:$0xff]  }
 0x2af   :  { %3874 = vmatpush1.bf16.msra.mxu1 %v10847_v14  ;;  %3563 = vmatprep.subr.bf16.mxu0 %v10852_v16  ;;  %v10916_v14 = vld [vmem:[#allocation7 + $0xe08] ss:$16 sps:$4 sm:$0xff]   ;;  %v10921_v16 = vld [vmem:[#allocation7 + $0xe2c] ss:$16 sps:$4 sm:$0xff]  }
 0x2b0   :  { %3875 = vmatprep.subr.bf16.mxu1 %v10855_v17  ;;  %3905 = vmatprep.mubr.bf16.mxu1 %v12625_v44  ;;  %v10886_v44 = vld [vmem:[#allocation7 + $0xde0] ss:$16 sps:$4 sm:$0xff]   ;;  %v10919_v17 = vld [vmem:[#allocation7 + $0xe28] ss:$16 sps:$4 sm:$0xff]  }
 0x2b2   :  { %3564 = vmatpush1.bf16.msra.mxu0 %v10850_v58  ;;  %v10924_v58 = vld [vmem:[#allocation7 + $0xe4c] ss:$16 sps:$4 sm:$0xff]  }
 0x2b3   :  { %3876 = vmatpush1.bf16.msra.mxu1 %v10853_v18  ;;  %3565 = vmatprep.subr.bf16.mxu0 %v10858_v19  ;;  %v10922_v18 = vld [vmem:[#allocation7 + $0xe48] ss:$16 sps:$4 sm:$0xff]   ;;  %v10927_v19 = vld [vmem:[#allocation7 + $0xe6c] ss:$16 sps:$4 sm:$0xff]  }
 0x2b4   :  { %3877 = vmatprep.subr.bf16.mxu1 %v10861_v20  ;;  %v10925_v20 = vld [vmem:[#allocation7 + $0xe68] ss:$16 sps:$4 sm:$0xff]  }
 0x2b6   :  { %3566 = vmatpush1.bf16.msra.mxu0 %v10856_v21  ;;  %v10930_v21 = vld [vmem:[#allocation7 + $0xe8c] ss:$16 sps:$4 sm:$0xff]  }
 0x2b7   :  { %3878 = vmatpush1.bf16.msra.mxu1 %v10859_v22  ;;  %3567 = vmatprep.subr.bf16.mxu0 %v10864_v23  ;;  %v10928_v22 = vld [vmem:[#allocation7 + $0xe88] ss:$16 sps:$4 sm:$0xff]   ;;  %v10933_v23 = vld [vmem:[#allocation7 + $0xeac] ss:$16 sps:$4 sm:$0xff]  }
 0x2b8   :  { %3879 = vmatprep.subr.bf16.mxu1 %v10867_v24  ;;  %v10931_v24 = vld [vmem:[#allocation7 + $0xea8] ss:$16 sps:$4 sm:$0xff]  }
 0x2ba   :  { %3568 = vmatpush1.bf16.msra.mxu0 %v10862_v27  ;;  %v10936_v27 = vld [vmem:[#allocation7 + $0xecc] ss:$16 sps:$4 sm:$0xff]  }
 0x2bb   :  { %3880 = vmatpush1.bf16.msra.mxu1 %v10865_v29  ;;  %3569 = vmatprep.subr.bf16.mxu0 %v10870_v30  ;;  %v10939_v29 = vld [vmem:[#allocation7 + $0xeec] ss:$16 sps:$4 sm:$0xff]   ;;  %v10937_v30 = vld [vmem:[#allocation7 + $0xee8] ss:$16 sps:$4 sm:$0xff]  }
 0x2bc   :  { %3881 = vmatprep.subr.bf16.mxu1 %v10873_v4  ;;  %v10951_v4 = vld [vmem:[#allocation10 + $0x28] sm:$0xff]  }
 0x2be   :  { %3570 = vmatpush1.bf16.msra.mxu0 %v10868_v57  ;;  %v10952_v57 = vld [vmem:[#allocation10 + $0x70] sm:$0xff]  }
 0x2bf   :  { %3882 = vmatpush1.bf16.msra.mxu1 %v10871_v31  ;;  %3571 = vmatprep.subr.bf16.mxu0 %v10876_v32  ;;  %v10953_v31 = vld [vmem:[#allocation10 + $0x30] sm:$0xff]   ;;  %v10954_v32 = vld [vmem:[#allocation10 + $0x78] sm:$0xff]  }
 0x2c0   :  { %3883 = vmatprep.subr.bf16.mxu1 %v10879_v33  ;;  %v10955_v33 = vld [vmem:[#allocation10 + $0x38] sm:$0xff]  }
 0x2c2   :  { %3572 = vmatpush1.bf16.msra.mxu0 %v10874_v35  ;;  %v10956_v35 = vld [vmem:[#allocation10 + $0xc0] sm:$0xff]  }
 0x2c3   :  { %3884 = vmatpush1.bf16.msra.mxu1 %v10877_v36  ;;  %3573 = vmatprep.subr.bf16.mxu0 %v10882_v37  ;;  %v10957_v36 = vld [vmem:[#allocation10 + $0x80] sm:$0xff]   ;;  %v10958_v37 = vld [vmem:[#allocation10 + $0xc8] sm:$0xff]  }
 0x2c4   :  { %3885 = vmatprep.subr.bf16.mxu1 %v10885_v38  ;;  %v10959_v38 = vld [vmem:[#allocation10 + $0x88] sm:$0xff]  }
 0x2c6   :  { %3574 = vmatpush1.bf16.msra.mxu0 %v10880_v15  ;;  %v10960_v15 = vld [vmem:[#allocation10 + $0xd0] sm:$0xff]  }
 0x2c7   :  { %3886 = vmatpush1.bf16.msra.mxu1 %v10883_v41  ;;  %3575 = vmatprep.subr.bf16.mxu0 %v10888_v42  ;;  %v10962_v41 = vld [vmem:[#allocation10 + $0xd8] sm:$0xff]  }
 0x2c8   :  { %3887 = vmatprep.subr.bf16.mxu1 %v10891_v43  ;;  %v10963_v42 = vld [vmem:[#allocation10 + $0x98] sm:$0xff]   ;;  %v10964_v43 = vld [vmem:[#allocation10 + $0xe0] sm:$0xff]  }
 0x2ca   :  { %3576 = vmatpush1.bf16.msra.mxu0 %v10886_v44  ;;  %v10965_v44 = vld [vmem:[#allocation10 + $0xa0] sm:$0xff]  }
 0x2cb   :  { %3888 = vmatpush1.bf16.msra.mxu1 %v10889_v45  ;;  %9958 = vmatprep.subr.bf16.mxu0 %v10940_v39  ;;  %v10966_v45 = vld [vmem:[#allocation10 + $0xe8] sm:$0xff]   ;;  %v10968_v39 = vld [vmem:[#allocation10 + $0xf0] sm:$0xff]  }
 0x2cc   :  { %3889 = vmatprep.subr.bf16.mxu1 %v10894_v47  ;;  %v10967_v47 = vld [vmem:[#allocation10 + $0xa8] sm:$0xff]  }
 0x2cd   :  { %3578 = vmatmul.mubr.bf16.vlgmr.msra.gmra.mrb[0].mxu0 %v12531_v46 }
 0x2ce   :  { %9959 = vmatpush3.bf16.msra.mxu0 %v10941_v28  ;;  %v10970_v28 = vld [vmem:[#allocation10 + $0xf8] sm:$0xff]  }
 0x2cf   :  { %3890 = vmatpush1.bf16.msra.mxu1 %v10892_v40  ;;  %9960 = vmatprep.subr.bf16.mxu0 %v10942_v25  ;;  %v10969_v40 = vld [vmem:[#allocation10 + $0xb0] sm:$0xff]   ;;  %v12636_v25 = vsub.s32 0, %v12517_v26 }
 0x2d0   :  { %3891 = vmatprep.subr.bf16.mxu1 %v10897_v49  ;;  %v10971_v49 = vld [vmem:[#allocation10 + $0xb8] sm:$0xff]  }
 0x2d2   :  { %9961 = vmatpush3.bf16.msra.mxu0 %v10943_v53  ;;  %v12639_v53 = vsub.s32 1, %v12517_v26 }
 0x2d3   :  { %3892 = vmatpush1.bf16.msra.mxu1 %v10895_v52  ;;  %9962 = vmatprep.subr.bf16.mxu0 %v10944_v55  ;;  %v719_v52 = vld [vmem:[#allocation8] sm:$0xf] }
 0x2d4   :  { %3893 = vmatprep.subr.bf16.mxu1 %v10900_v54  ;;  %v724_v54 = vrot.slane %v719_v52, %v12636_v25  ;;  %v728_v55 = vrot.slane %v719_v52, %v12639_v53 }
 0x2d6   :  { %9963 = vmatpush3.bf16.msra.mxu0 %v10945_v60 }
 0x2d7   :  { %3894 = vmatpush1.bf16.msra.mxu1 %v10898_v56  ;;  %9964 = vmatprep.subr.bf16.mxu0 %v10946_v51 }
 0x2d8   :  { %3895 = vmatprep.subr.bf16.mxu1 %v10903_v61 }
 0x2da   :  { %9965 = vmatpush3.bf16.msra.mxu0 %v10947_v63 }
 0x2db   :  { %3896 = vmatpush1.bf16.msra.mxu1 %v10901_v62  ;;  %9966 = vmatprep.subr.bf16.mxu0 %v10948_v2 }
 0x2dc   :  { %3897 = vmatprep.subr.bf16.mxu1 %v10906_v1 }
 0x2de   :  { %9967 = vmatpush3.bf16.msra.mxu0 %v10949_v5 }
 0x2df   :  { %3898 = vmatpush1.bf16.msra.mxu1 %v10904_v3  ;;  %9968 = vmatprep.subr.bf16.mxu0 %v10950_v7 }
 0x2e0   :  { %3899 = vmatprep.subr.bf16.mxu1 %v10909_v6 }
 0x2e2   :  { %9969 = vmatpush3.bf16.msra.mxu0 %v10951_v4  ;;  %v10984_v4 = vld [vmem:[#allocation13 + $0x40] ss:$8 sps:$4 sm:$0xff]  }
 0x2e3   :  { %3900 = vmatpush1.bf16.msra.mxu1 %v10907_v8  ;;  %9970 = vmatprep.subr.bf16.mxu0 %v10952_v57  ;;  %v12647_v8 = vsub.s32 2, %v12517_v26  ;;  %v10989_v57 = vld [vmem:[#allocation13 + $0x54] ss:$8 sps:$4 sm:$0xff]  }
 0x2e4   :  { %3901 = vmatprep.subr.bf16.mxu1 %v10912_v9  ;;  %v12650_v9 = vsub.s32 3, %v12517_v26 }
 0x2e6   :  { %9971 = vmatpush3.bf16.msra.mxu0 %v10953_v31  ;;  %v10987_v31 = vld [vmem:[#allocation13 + $0x50] ss:$8 sps:$4 sm:$0xff]  }
 0x2e7   :  { %3902 = vmatpush1.bf16.msra.mxu1 %v10910_v10  ;;  %9972 = vmatprep.subr.bf16.mxu0 %v10954_v32  ;;  %v732_v10 = vrot.slane %v719_v52, %v12647_v8  ;;  %v10992_v32 = vld [vmem:[#allocation13 + $0x64] ss:$8 sps:$4 sm:$0xff]  }
 0x2e8   :  { %3903 = vmatprep.subr.bf16.mxu1 %v10915_v11 }
 0x2ea   :  { %9973 = vmatpush3.bf16.msra.mxu0 %v10955_v33  ;;  %v10990_v33 = vld [vmem:[#allocation13 + $0x60] ss:$8 sps:$4 sm:$0xff]  }
 0x2eb   :  { %3904 = vmatpush1.bf16.msra.mxu1 %v10913_v12 }
 0x2ec   :  { %3914 = vmatprep.subr.bf16.mxu1 %v10918_v13 }
 0x2ee   :  { %3906 = vmatmul.mubr.bf16.vlgmr.msra.gmra.mrb[4].mxu1 %v12531_v46  ;;  %v10934_v46 = vld [vmem:[#allocation7 + $0xec8] ss:$16 sps:$4 sm:$0xff]  }
 0x2ef   :  { %3915 = vmatpush1.bf16.msra.mxu1 %v10916_v14  ;;  %3946 = vmatprep.mubr.bf16.mxu1 %v12238_v0 }
 0x2f0   :  { %3916 = vmatprep.subr.bf16.mxu1 %v10921_v16 }
 0x2f3   :  { %3917 = vmatpush1.bf16.msra.mxu1 %v10919_v17 }
 0x2f4   :  { %3918 = vmatprep.subr.bf16.mxu1 %v10924_v58 }
 0x2f7   :  { %3919 = vmatpush1.bf16.msra.mxu1 %v10922_v18 }
 0x2f8   :  { %3920 = vmatprep.subr.bf16.mxu1 %v10927_v19 }
 0x2fb   :  { %3921 = vmatpush1.bf16.msra.mxu1 %v10925_v20  ;;  %v10972_v20 = vld [vmem:[#allocation13] ss:$8 sps:$4 sm:$0xff]  }
 0x2fc   :  { %3922 = vmatprep.subr.bf16.mxu1 %v10930_v21  ;;  %v10974_v21 = vld [vmem:[#allocation13 + $0x4] ss:$8 sps:$4 sm:$0xff]  }
 0x2fd   :  { %4416 = vmatprep.subr.bf16.mxu0 %v10974_v21 }
 0x2ff   :  { %3923 = vmatpush1.bf16.msra.mxu1 %v10928_v22  ;;  %v10977_v22 = vld [vmem:[#allocation13 + $0x14] ss:$8 sps:$4 sm:$0xff]  }
 0x300   :  { %3924 = vmatprep.subr.bf16.mxu1 %v10933_v23  ;;  %v10975_v23 = vld [vmem:[#allocation13 + $0x10] ss:$8 sps:$4 sm:$0xff]  }
 0x303   :  { %3925 = vmatpush1.bf16.msra.mxu1 %v10931_v24  ;;  %v10980_v24 = vld [vmem:[#allocation13 + $0x24] ss:$8 sps:$4 sm:$0xff]  }
 0x304   :  { %3926 = vmatprep.subr.bf16.mxu1 %v10936_v27  ;;  %v10978_v27 = vld [vmem:[#allocation13 + $0x20] ss:$8 sps:$4 sm:$0xff]  }
 0x307   :  { %3927 = vmatpush1.bf16.msra.mxu1 %v10934_v46  ;;  %v10983_v46 = vld [vmem:[#allocation13 + $0x34] ss:$8 sps:$4 sm:$0xff]  }
 0x308   :  { %3928 = vmatprep.subr.bf16.mxu1 %v10939_v29  ;;  %v10981_v29 = vld [vmem:[#allocation13 + $0x30] ss:$8 sps:$4 sm:$0xff]  }
 0x30b   :  { %3929 = vmatpush1.bf16.msra.mxu1 %v10937_v30  ;;  %v10986_v30 = vld [vmem:[#allocation13 + $0x44] ss:$8 sps:$4 sm:$0xff]  }
 0x30c   :  { %9980 = vmatprep.subr.bf16.mxu1 %v10956_v35  ;;  %v10995_v35 = vld [vmem:[#allocation13 + $0x74] ss:$8 sps:$4 sm:$0xff]  }
 0x30e   :  { %3947 = vmatmul.mubr.bf16.vlgmr.msra.gmra.mrb[4].mxu1 %v12535_v48  ;;  %v10961_v48 = vld [vmem:[#allocation10 + $0x90] sm:$0xff]  }
 0x30f   :  { %9981 = vmatpush3.bf16.msra.mxu1 %v10957_v36  ;;  %v10993_v36 = vld [vmem:[#allocation13 + $0x70] ss:$8 sps:$4 sm:$0xff]  }
 0x310   :  { %9982 = vmatprep.subr.bf16.mxu1 %v10958_v37  ;;  %v10996_v37 = vld [vmem:[#allocation16] sm:$0xff]  }
 0x313   :  { %9983 = vmatpush3.bf16.msra.mxu1 %v10959_v38  ;;  %v12240_v38 = vmov 0.0  }
 0x314   :  { %9984 = vmatprep.subr.bf16.mxu1 %v10960_v15  ;;  %v10997_v15 = vld [vmem:[#allocation16 + $0x8] sm:$0xff]  }
 0x317   :  { %9985 = vmatpush3.bf16.msra.mxu1 %v10961_v48 }
 0x318   :  { %9986 = vmatprep.subr.bf16.mxu1 %v10962_v41 }
 0x31b   :  { %9987 = vmatpush3.bf16.msra.mxu1 %v10963_v42 }
 0x31c   :  { %9988 = vmatprep.subr.bf16.mxu1 %v10964_v43 }
 0x31f   :  { %9989 = vmatpush3.bf16.msra.mxu1 %v10965_v44 }
 0x320   :  { %9990 = vmatprep.subr.bf16.mxu1 %v10966_v45  ;;  %v9366_v45 = vld [vmem:[#allocation11] ss:$0 sm:$0xff] }
 0x323   :  { %9991 = vmatpush3.bf16.msra.mxu1 %v10967_v47 }
 0x324   :  { %9992 = vmatprep.subr.bf16.mxu1 %v10968_v39 }
 0x327   :  { %9993 = vmatpush3.bf16.msra.mxu1 %v10969_v40 }
 0x328   :  { %9994 = vmatprep.subr.bf16.mxu1 %v10970_v28 }
 0x32b   :  { %9995 = vmatpush3.bf16.msra.mxu1 %v10971_v49 }
 0x32c   :  { %10055 = vmatprep.subr.bf16.mxu1 %v12240_v38 }
 0x3a0   :  { %v3579_v56 = vpop.f32.mrb[0].mxu0 }
 0x3a1   :  { %v10075_v60 = vadd.f32 %v3579_v56, %v724_v54  ;;  %v3581_v61 = vpop.f32.mrb[1].mxu0 }
 0x3a2   :  { %v10077_v51 = vadd.f32 %v3581_v61, %v728_v55  ;;  %v3583_v62 = vpop.f32.mrb[2].mxu0  ;;  %v10999_v61 = vld [vmem:[#allocation16 + $0x18] sm:$0xff]  }
 0x3a3   :  { %v10076_v63 = vadd.f32 %v10075_v60, %v12582_v59  ;;  %v3584_v1 = vpop.f32.mrb[3].mxu0  ;;  %v736_v59 = vrot.slane %v719_v52, %v12650_v9  ;;  %v10998_v60 = vld [vmem:[#allocation16 + $0x10] sm:$0xff]   ;;  %v11001_v62 = vld [vmem:[#allocation16 + $0x28] sm:$0xff]  }
 0x3a4   :  { %v10078_v2 = vadd.f32 %v10077_v51, %v12584_v50  ;;  %v11000_v51 = vld [vmem:[#allocation16 + $0x20] sm:$0xff]   ;;  %v11003_v1 = vld [vmem:[#allocation16 + $0x38] sm:$0xff]  }
 0x3a5   :  { %v3955_v3 = vmax.f32 %v10076_v63, 0.0  ;;  %v11002_v63 = vld [vmem:[#allocation16 + $0x30] sm:$0xff]  }
 0x3a6   :  { %v3956_v5 = vmax.f32 %v10078_v2, 0.0  ;;  %v11004_v2 = vld [vmem:[#allocation19] ss:$16 sps:$4 sm:$0xff]  }
 0x3a7   :  { %v3959_v7 = vpack.c.bf16 %v3955_v3, %v3955_v3  ;;  %v11006_v3 = vld [vmem:[#allocation19 + $0x4] ss:$16 sps:$4 sm:$0xff]  }
 0x3a8   :  { %v3960_v6 = vpack.c.bf16 %v3956_v5, %v3956_v5  ;;  %v11009_v5 = vld [vmem:[#allocation19 + $0xc] ss:$16 sps:$4 sm:$0xff]  }
 0x3aa   :  { %4258 = vmatprep.mubr.bf16.mxu0 %v3960_v6  ;;  %v11012_v6 = vld [vmem:[#allocation19 + $0x24] ss:$16 sps:$4 sm:$0xff]  }
 0x3ab   :  { %4259 = vmatmul.mubr.bf16.vlgmr.msra.gmra.mrb[4].mxu0 %v3959_v7  ;;  %v11010_v7 = vld [vmem:[#allocation19 + $0x20] ss:$16 sps:$4 sm:$0xff]  }
 0x3ac   :  { %4448 = vmatprep.mubr.bf16.mxu0 %v12238_v0  ;;  %4417 = vmatpush1.bf16.msra.mxu0 %v10972_v20 }
 0x3ad   :  { %4418 = vmatprep.subr.bf16.mxu0 %v10977_v22 }
 0x3b0   :  { %4419 = vmatpush1.bf16.msra.mxu0 %v10975_v23 }
 0x3b1   :  { %4420 = vmatprep.subr.bf16.mxu0 %v10980_v24 }
 0x3b4   :  { %4421 = vmatpush1.bf16.msra.mxu0 %v10978_v27 }
 0x3b5   :  { %4422 = vmatprep.subr.bf16.mxu0 %v10983_v46 }
 0x3b8   :  { %4423 = vmatpush1.bf16.msra.mxu0 %v10981_v29 }
 0x3b9   :  { %4424 = vmatprep.subr.bf16.mxu0 %v10986_v30 }
 0x3bc   :  { %4425 = vmatpush1.bf16.msra.mxu0 %v10984_v4  ;;  %v4459_v4 = vld [vmem:[#allocation5] sm:$0xff] }
 0x3bd   :  { %4426 = vmatprep.subr.bf16.mxu0 %v10989_v57 }
 0x3c0   :  { %4427 = vmatpush1.bf16.msra.mxu0 %v10987_v31 }
 0x3c1   :  { %4428 = vmatprep.subr.bf16.mxu0 %v10992_v32 }
 0x3c4   :  { %4429 = vmatpush1.bf16.msra.mxu0 %v10990_v33  ;;  %v11007_v33 = vld [vmem:[#allocation19 + $0x8] ss:$16 sps:$4 sm:$0xff]  }
 0x3c5   :  { %4430 = vmatprep.subr.bf16.mxu0 %v10995_v35 }
 0x3c8   :  { %4431 = vmatpush1.bf16.msra.mxu0 %v10993_v36  ;;  %v11015_v36 = vld [vmem:[#allocation19 + $0x2c] ss:$16 sps:$4 sm:$0xff]  }
 0x3c9   :  { %4793 = vmatprep.subr.bf16.mxu0 %v11006_v3 }
 0x3e1   :  { %v3948_v11 = vpop.f32.mrb[4].mxu1 }
 0x3e2   :  { %v10079_v50 = vadd.f32 %v3948_v11, %v732_v10  ;;  %v3950_v12 = vpop.f32.mrb[5].mxu1  ;;  %v11018_v10 = vld [vmem:[#allocation19 + $0x44] ss:$16 sps:$4 sm:$0xff]  }
 0x3e3   :  { %v10080_v13 = vadd.f32 %v3950_v12, %v736_v59  ;;  %v3952_v14 = vpop.f32.mrb[6].mxu1  ;;  %v11016_v59 = vld [vmem:[#allocation19 + $0x40] ss:$16 sps:$4 sm:$0xff]   ;;  %v11024_v11 = vld [vmem:[#allocation19 + $0x64] ss:$16 sps:$4 sm:$0xff]  }
 0x3e4   :  { %v3957_v16 = vmax.f32 %v10079_v50, 0.0  ;;  %v3953_v17 = vpop.f32.mrb[7].mxu1  ;;  %v11022_v50 = vld [vmem:[#allocation19 + $0x60] ss:$16 sps:$4 sm:$0xff]   ;;  %v11030_v12 = vld [vmem:[#allocation19 + $0x84] ss:$16 sps:$4 sm:$0xff]  }
 0x3e5   :  { %v3958_v58 = vmax.f32 %v10080_v13, 0.0  ;;  %v11028_v13 = vld [vmem:[#allocation19 + $0x80] ss:$16 sps:$4 sm:$0xff]   ;;  %v11036_v14 = vld [vmem:[#allocation19 + $0xa4] ss:$16 sps:$4 sm:$0xff]  }
 0x3e6   :  { %v3961_v19 = vpack.c.bf16 %v3957_v16, %v3957_v16  ;;  %v11034_v16 = vld [vmem:[#allocation19 + $0xa0] ss:$16 sps:$4 sm:$0xff]   ;;  %v11042_v17 = vld [vmem:[#allocation19 + $0xc4] ss:$16 sps:$4 sm:$0xff]  }
 0x3e7   :  { %v3962_v18 = vpack.c.bf16 %v3958_v58, %v3958_v58  ;;  %v11040_v58 = vld [vmem:[#allocation19 + $0xc0] ss:$16 sps:$4 sm:$0xff]  }
 0x3e9   :  { %4298 = vmatprep.mubr.bf16.mxu1 %v3962_v18  ;;  %v4324_v18 = vld [vmem:[#allocation14] sm:$0x3] }
 0x3ea   :  { %4299 = vmatmul.mubr.bf16.vlgmr.msra.gmra.mrb[8].mxu1 %v3961_v19  ;;  %v4329_v19 = vrot.slane %v4324_v18, %v12636_v25  ;;  %v4333_v20 = vrot.slane %v4324_v18, %v12639_v53  ;;  %v11081_v18 = vld [vmem:[#allocation22 + $0x1ec] ss:$60 sps:$4 sm:$0xff]  }
 0x3eb   :  { %10056 = vmatpush3.bf16.msra.mxu1 %v10996_v37  ;;  %10071 = vmatprep.mubr.msk.bf16.mxu1 %vm12241_vm0, %v12240_v38  ;;  %v11013_v37 = vld [vmem:[#allocation19 + $0x28] ss:$16 sps:$4 sm:$0xff]  }
 0x3ec   :  { %10057 = vmatprep.subr.bf16.mxu1 %v12240_v38 }
 0x3ef   :  { %10058 = vmatpush3.bf16.msra.mxu1 %v10997_v15  ;;  %v11019_v15 = vld [vmem:[#allocation19 + $0x48] ss:$16 sps:$4 sm:$0xff]  }
 0x3f0   :  { %10059 = vmatprep.subr.bf16.mxu1 %v12240_v38 }
 0x3f3   :  { %10060 = vmatpush3.bf16.msra.mxu1 %v10998_v60 }
 0x3f4   :  { %10061 = vmatprep.subr.bf16.mxu1 %v12240_v38 }
 0x3f7   :  { %10062 = vmatpush3.bf16.msra.mxu1 %v10999_v61 }
 0x3f8   :  { %10063 = vmatprep.subr.bf16.mxu1 %v12240_v38 }
 0x3fb   :  { %10064 = vmatpush3.bf16.msra.mxu1 %v11000_v51 }
 0x3fc   :  { %10065 = vmatprep.subr.bf16.mxu1 %v12240_v38 }
 0x3ff   :  { %10066 = vmatpush3.bf16.msra.mxu1 %v11001_v62 }
 0x400   :  { %10067 = vmatprep.subr.bf16.mxu1 %v12240_v38 }
 0x403   :  { %10068 = vmatpush3.bf16.msra.mxu1 %v11002_v63 }
 0x404   :  { %10069 = vmatprep.subr.bf16.mxu1 %v12240_v38  ;;  %v11021_v38 = vld [vmem:[#allocation19 + $0x4c] ss:$16 sps:$4 sm:$0xff]  }
 0x407   :  { %10070 = vmatpush3.bf16.msra.mxu1 %v11003_v1  ;;  %v11052_v1 = vld [vmem:[#allocation22] ss:$60 sps:$4 sm:$0xff]  }
 0x408   :  { %4834 = vmatprep.subr.bf16.mxu1 %v11009_v5  ;;  %v11060_v5 = vld [vmem:[#allocation22 + $0x7c] ss:$60 sps:$4 sm:$0xff]  }
 0x47e   :  { %v9974_v48 = vpop.f32.mrb[4].mxu0 }
 0x47f   :  { %v9975_v41 = vpop.f32.mrb[5].mxu0 }
 0x480   :  { %v9976_v42 = vadd.f32 %v9975_v41, %v9974_v48  ;;  %v9977_v43 = vpop.f32.mrb[6].mxu0  ;;  %v11027_v48 = vld [vmem:[#allocation19 + $0x6c] ss:$16 sps:$4 sm:$0xff]   ;;  %v11025_v41 = vld [vmem:[#allocation19 + $0x68] ss:$16 sps:$4 sm:$0xff]  }
 0x481   :  { %v9978_v44 = vpop.f32.mrb[7].mxu0  ;;  %v11031_v43 = vld [vmem:[#allocation19 + $0x88] ss:$16 sps:$4 sm:$0xff]  }
 0x482   :  { %v4261_v40 = vadd.f32 %v9976_v42, %v9366_v45  ;;  %v11033_v42 = vld [vmem:[#allocation19 + $0x8c] ss:$16 sps:$4 sm:$0xff]   ;;  %v11037_v45 = vld [vmem:[#allocation19 + $0xa8] ss:$16 sps:$4 sm:$0xff]  }
 0x483   :  { %v11039_v44 = vld [vmem:[#allocation19 + $0xac] ss:$16 sps:$4 sm:$0xff]  }
 0x4bd   :  { %v9996_v47 = vpop.f32.mrb[8].mxu1 }
 0x4be   :  { %v9997_v39 = vpop.f32.mrb[9].mxu1 }
 0x4bf   :  { %v9998_v28 = vadd.f32 %v9997_v39, %v9996_v47  ;;  %v9999_v49 = vpop.f32.mrb[10].mxu1  ;;  %v11045_v47 = vld [vmem:[#allocation19 + $0xcc] ss:$16 sps:$4 sm:$0xff]   ;;  %v11048_v39 = vld [vmem:[#allocation19 + $0xe4] ss:$16 sps:$4 sm:$0xff]  }
 0x4c0   :  { %v10000_v52 = vpop.f32.mrb[11].mxu1  ;;  %v11049_v49 = vld [vmem:[#allocation19 + $0xe8] ss:$16 sps:$4 sm:$0xff]  }
 0x4c1   :  { %v4301_v54 = vadd.f32 %v9998_v28, %v4261_v40  ;;  %v11051_v40 = vld [vmem:[#allocation19 + $0xec] ss:$16 sps:$4 sm:$0xff]   ;;  %v11046_v28 = vld [vmem:[#allocation19 + $0xe0] ss:$16 sps:$4 sm:$0xff]   ;;  %v11054_v52 = vld [vmem:[#allocation22 + $0x4] ss:$60 sps:$4 sm:$0xff]  }
 0x4c3   :  { %v4306_v55 = vmax.f32 %v4301_v54, 0.0  ;;  %v11057_v54 = vld [vmem:[#allocation22 + $0xc] ss:$60 sps:$4 sm:$0xff]  }
 0x4c5   :  { %v4307_v56 = vpack.c.bf16 %v4306_v55, %v4306_v55  ;;  %v9415_v55 = vld [vmem:[#allocation17] ss:$0 sm:$0xff] }
 0x4c7   :  { %4449 = vmatmul.mubr.bf16.vlgmr.msra.gmra.mrb[8].mxu0 %v4307_v56 }
 0x4c8   :  { %4825 = vmatprep.mubr.bf16.mxu0 %v12238_v0  ;;  %4794 = vmatpush1.bf16.msra.mxu0 %v11004_v2  ;;  %v11055_v2 = vld [vmem:[#allocation22 + $0x8] ss:$60 sps:$4 sm:$0xff]  }
 0x4c9   :  { %4795 = vmatprep.subr.bf16.mxu0 %v11012_v6  ;;  %v11063_v6 = vld [vmem:[#allocation22 + $0x84] ss:$60 sps:$4 sm:$0xff]  }
 0x4cc   :  { %4796 = vmatpush1.bf16.msra.mxu0 %v11010_v7  ;;  %v11058_v7 = vld [vmem:[#allocation22 + $0x78] ss:$60 sps:$4 sm:$0xff]  }
 0x4cd   :  { %4797 = vmatprep.subr.bf16.mxu0 %v11018_v10  ;;  %v11061_v10 = vld [vmem:[#allocation22 + $0x80] ss:$60 sps:$4 sm:$0xff]  }
 0x4d0   :  { %4798 = vmatpush1.bf16.msra.mxu0 %v11016_v59  ;;  %v11066_v59 = vld [vmem:[#allocation22 + $0xf4] ss:$60 sps:$4 sm:$0xff]  }
 0x4d1   :  { %4799 = vmatprep.subr.bf16.mxu0 %v11024_v11  ;;  %v11069_v11 = vld [vmem:[#allocation22 + $0xfc] ss:$60 sps:$4 sm:$0xff]  }
 0x4d4   :  { %4800 = vmatpush1.bf16.msra.mxu0 %v11022_v50  ;;  %v11064_v50 = vld [vmem:[#allocation22 + $0xf0] ss:$60 sps:$4 sm:$0xff]  }
 0x4d5   :  { %4801 = vmatprep.subr.bf16.mxu0 %v11030_v12  ;;  %v11067_v12 = vld [vmem:[#allocation22 + $0xf8] ss:$60 sps:$4 sm:$0xff]  }
 0x4d8   :  { %4802 = vmatpush1.bf16.msra.mxu0 %v11028_v13  ;;  %v11072_v13 = vld [vmem:[#allocation22 + $0x16c] ss:$60 sps:$4 sm:$0xff]  }
 0x4d9   :  { %4803 = vmatprep.subr.bf16.mxu0 %v11036_v14  ;;  %v11075_v14 = vld [vmem:[#allocation22 + $0x174] ss:$60 sps:$4 sm:$0xff]  }
 0x4dc   :  { %4804 = vmatpush1.bf16.msra.mxu0 %v11034_v16  ;;  %v11070_v16 = vld [vmem:[#allocation22 + $0x168] ss:$60 sps:$4 sm:$0xff]  }
 0x4dd   :  { %4805 = vmatprep.subr.bf16.mxu0 %v11042_v17  ;;  %v11073_v17 = vld [vmem:[#allocation22 + $0x170] ss:$60 sps:$4 sm:$0xff]  }
 0x4e0   :  { %4806 = vmatpush1.bf16.msra.mxu0 %v11040_v58  ;;  %v11078_v58 = vld [vmem:[#allocation22 + $0x1e4] ss:$60 sps:$4 sm:$0xff]  }
 0x4e1   :  { %4807 = vmatprep.subr.bf16.mxu0 %v11048_v39  ;;  %v11118_v39 = vld [vmem:[#allocation22 + $0x528] ss:$60 sps:$4 sm:$0xff]  }
 0x4e4   :  { %4808 = vmatpush1.bf16.msra.mxu0 %v11046_v28  ;;  %v11126_v28 = vld [vmem:[#allocation22 + $0x5a4] ss:$60 sps:$4 sm:$0xff]  }
 0x4e5   :  { %7906 = vmatprep.subr.bf16.mxu0 %v11054_v52  ;;  %v11124_v52 = vld [vmem:[#allocation22 + $0x5a0] ss:$60 sps:$4 sm:$0xff]  }
 0x59a   :  { %v4450_v21 = vpop.f32.mrb[8].mxu0 }
 0x59b   :  { %v4451_v22 = vadd.f32 %v4450_v21, %v4329_v19  ;;  %v4452_v23 = vpop.f32.mrb[9].mxu0  ;;  %v11076_v19 = vld [vmem:[#allocation22 + $0x1e0] ss:$60 sps:$4 sm:$0xff]  }
 0x59c   :  { %v4453_v24 = vadd.f32 %v4452_v23, %v4333_v20  ;;  %v4454_v27 = vpop.f32.mrb[10].mxu0  ;;  %v11079_v20 = vld [vmem:[#allocation22 + $0x1e8] ss:$60 sps:$4 sm:$0xff]   ;;  %v11084_v21 = vld [vmem:[#allocation22 + $0x25c] ss:$60 sps:$4 sm:$0xff]  }
 0x59d   :  { %4457 = vst [vmem:[#allocation26] sm:$0xff] %v4451_v22  ;;  %v4455_v46 = vpop.f32.mrb[11].mxu0  ;;  %v11082_v23 = vld [vmem:[#allocation22 + $0x258] ss:$60 sps:$4 sm:$0xff]  }
 0x59e   :  { %4458 = vst [vmem:[#allocation28] sm:$0xff] %v4453_v24  ;;  %v4460_v29 = vmul.f32 0.5, %v4453_v24  ;;  %v11085_v24 = vld [vmem:[#allocation22 + $0x260] ss:$60 sps:$4 sm:$0xff]   ;;  %v11090_v27 = vld [vmem:[#allocation22 + $0x2d4] ss:$60 sps:$4 sm:$0xff]  }
 0x59f   :  { %v11093_v46 = vld [vmem:[#allocation22 + $0x2dc] ss:$60 sps:$4 sm:$0xff]  }
 0x5a0   :  { %v4461_v30 = vmul.f32 1.442695, %v4460_v29  ;;  %v11088_v29 = vld [vmem:[#allocation22 + $0x2d0] ss:$60 sps:$4 sm:$0xff]  }
 0x5a2   :  { %11756 = vpow2.f32 %v4461_v30  ;;  %v11091_v30 = vld [vmem:[#allocation22 + $0x2d8] ss:$60 sps:$4 sm:$0xff]  }
 0x5ac   :  { %v11757_v57 = vpop.eup %11756 }
 0x5ad   :  { %v4463_v31 = vmul.f32 %v11757_v57, %v4459_v4  ;;  %v11096_v4 = vld [vmem:[#allocation22 + $0x34c] ss:$60 sps:$4 sm:$0xff]   ;;  %v11099_v57 = vld [vmem:[#allocation22 + $0x354] ss:$60 sps:$4 sm:$0xff]  }
 0x5af   :  { %v4464_v32 = vadd.f32 %v4463_v31, %v4451_v22  ;;  %v11087_v22 = vld [vmem:[#allocation22 + $0x264] ss:$60 sps:$4 sm:$0xff]  }
 0x5b0   :  { %v11094_v31 = vld [vmem:[#allocation22 + $0x348] ss:$60 sps:$4 sm:$0xff]  }
 0x5b1   :  { %v4465_v35 = vpack.c.bf16 %v4464_v32, %v4464_v32  ;;  %v11097_v32 = vld [vmem:[#allocation22 + $0x350] ss:$60 sps:$4 sm:$0xff]  }
 0x5b3   :  { %10072 = vmatmul.mubr.bf16.vlgmr.msra.gmra.mrb[12].mxu1 %v4465_v35  ;;  %v11105_v35 = vld [vmem:[#allocation22 + $0x3cc] ss:$60 sps:$4 sm:$0xff]  }
 0x5b4   :  { %4835 = vmatpush1.bf16.msra.mxu1 %v11007_v33  ;;  %4866 = vmatprep.mubr.bf16.mxu1 %v12238_v0  ;;  %v11043_v0 = vld [vmem:[#allocation19 + $0xc8] ss:$16 sps:$4 sm:$0xff]  }
 0x5b5   :  { %4836 = vmatprep.subr.bf16.mxu1 %v11015_v36  ;;  %v11102_v33 = vld [vmem:[#allocation22 + $0x3c4] ss:$60 sps:$4 sm:$0xff]  }
 0x5b6   :  { %v11100_v36 = vld [vmem:[#allocation22 + $0x3c0] ss:$60 sps:$4 sm:$0xff]  }
 0x5b8   :  { %4837 = vmatpush1.bf16.msra.mxu1 %v11013_v37  ;;  %v11103_v37 = vld [vmem:[#allocation22 + $0x3c8] ss:$60 sps:$4 sm:$0xff]  }
 0x5b9   :  { %4838 = vmatprep.subr.bf16.mxu1 %v11021_v38  ;;  %v11108_v38 = vld [vmem:[#allocation22 + $0x43c] ss:$60 sps:$4 sm:$0xff]  }
 0x5bc   :  { %4839 = vmatpush1.bf16.msra.mxu1 %v11019_v15  ;;  %v11111_v15 = vld [vmem:[#allocation22 + $0x444] ss:$60 sps:$4 sm:$0xff]  }
 0x5bd   :  { %4840 = vmatprep.subr.bf16.mxu1 %v11027_v48  ;;  %v11106_v48 = vld [vmem:[#allocation22 + $0x438] ss:$60 sps:$4 sm:$0xff]  }
 0x5c0   :  { %4841 = vmatpush1.bf16.msra.mxu1 %v11025_v41  ;;  %v11109_v41 = vld [vmem:[#allocation22 + $0x440] ss:$60 sps:$4 sm:$0xff]  }
 0x5c1   :  { %4842 = vmatprep.subr.bf16.mxu1 %v11033_v42  ;;  %v11114_v42 = vld [vmem:[#allocation22 + $0x4b4] ss:$60 sps:$4 sm:$0xff]  }
 0x5c4   :  { %4843 = vmatpush1.bf16.msra.mxu1 %v11031_v43  ;;  %v11117_v43 = vld [vmem:[#allocation22 + $0x4bc] ss:$60 sps:$4 sm:$0xff]  }
 0x5c5   :  { %4844 = vmatprep.subr.bf16.mxu1 %v11039_v44  ;;  %v11112_v44 = vld [vmem:[#allocation22 + $0x4b0] ss:$60 sps:$4 sm:$0xff]  }
 0x5c8   :  { %4845 = vmatpush1.bf16.msra.mxu1 %v11037_v45  ;;  %v11115_v45 = vld [vmem:[#allocation22 + $0x4b8] ss:$60 sps:$4 sm:$0xff]  }
 0x5c9   :  { %4846 = vmatprep.subr.bf16.mxu1 %v11045_v47  ;;  %v11120_v47 = vld [vmem:[#allocation22 + $0x52c] ss:$60 sps:$4 sm:$0xff]  }
 0x5cc   :  { %4847 = vmatpush1.bf16.msra.mxu1 %v11043_v0  ;;  %v11123_v0 = vld [vmem:[#allocation22 + $0x534] ss:$60 sps:$4 sm:$0xff]  }
 0x5cd   :  { %4848 = vmatprep.subr.bf16.mxu1 %v11051_v40  ;;  %v11121_v40 = vld [vmem:[#allocation22 + $0x530] ss:$60 sps:$4 sm:$0xff]  }
 0x5d0   :  { %4849 = vmatpush1.bf16.msra.mxu1 %v11049_v49  ;;  %v11129_v49 = vld [vmem:[#allocation22 + $0x5ac] ss:$60 sps:$4 sm:$0xff]  }
 0x5d1   :  { %7988 = vmatprep.subr.bf16.mxu1 %v11057_v54  ;;  %v11127_v54 = vld [vmem:[#allocation22 + $0x5a8] ss:$60 sps:$4 sm:$0xff]  }
 0x686   :  { %v4571_v56 = vpop.f32.mrb[12].mxu1 }
 0x687   :  { %v4572_v60 = vadd.f32 %v9415_v55, %v4571_v56  ;;  %v10073_v61 = vpop.f32.mrb[13].mxu1  ;;  %v11132_v55 = vld [vmem:[#allocation22 + $0x61c] ss:$60 sps:$4 sm:$0xff]   ;;  %v11135_v56 = vld [vmem:[#allocation22 + $0x624] ss:$60 sps:$4 sm:$0xff]  }
 0x688   :  { %v4574_v51 = vpop.f32.mrb[14].mxu1  ;;  %v11133_v61 = vld [vmem:[#allocation22 + $0x620] ss:$60 sps:$4 sm:$0xff]  }
 0x689   :  { %v4577_v62 = vmax.f32 %v4572_v60, 0.0  ;;  %v10074_v63 = vpop.f32.mrb[15].mxu1  ;;  %v11130_v60 = vld [vmem:[#allocation22 + $0x618] ss:$60 sps:$4 sm:$0xff]  }
 0x68a   :  { %v11138_v51 = vld [vmem:[#allocation22 + $0x694] ss:$60 sps:$4 sm:$0xff]  }
 0x68b   :  { %v4578_v3 = vpack.c.bf16 %v4577_v62, %v4577_v62  ;;  %v11141_v62 = vld [vmem:[#allocation22 + $0x69c] ss:$60 sps:$4 sm:$0xff]   ;;  %v11136_v63 = vld [vmem:[#allocation22 + $0x690] ss:$60 sps:$4 sm:$0xff]  }
 0x68d   :  { %4826 = vmatmul.mubr.bf16.vlgmr.msra.gmra.mrb[12].mxu0 %v4578_v3  ;;  %4867 = vmatmul.mubr.bf16.vlgmr.msra.gmra.mrb[16].mxu1 %v4578_v3  ;;  %v11147_v3 = vld [vmem:[#allocation22 + $0x714] ss:$60 sps:$4 sm:$0xff]  }
 0x68e   :  { %7907 = vmatpush1.bf16.msra.mxu0 %v11052_v1  ;;  %7989 = vmatpush1.bf16.msra.mxu1 %v11055_v2  ;;  %v11139_v1 = vld [vmem:[#allocation22 + $0x698] ss:$60 sps:$4 sm:$0xff]   ;;  %v11144_v2 = vld [vmem:[#allocation22 + $0x70c] ss:$60 sps:$4 sm:$0xff]  }
 0x68f   :  { %7908 = vmatprep.subr.bf16.mxu0 %v11060_v5  ;;  %7990 = vmatprep.subr.bf16.mxu1 %v11063_v6  ;;  %v11142_v5 = vld [vmem:[#allocation22 + $0x708] ss:$60 sps:$4 sm:$0xff]   ;;  %v11145_v6 = vld [vmem:[#allocation22 + $0x710] ss:$60 sps:$4 sm:$0xff]  }
 0x692   :  { %7909 = vmatpush1.bf16.msra.mxu0 %v11058_v7  ;;  %7991 = vmatpush1.bf16.msra.mxu1 %v11061_v10  ;;  %v11150_v7 = vld [vmem:[#allocation22 + $0x784] ss:$60 sps:$4 sm:$0xff]   ;;  %v11153_v10 = vld [vmem:[#allocation22 + $0x78c] ss:$60 sps:$4 sm:$0xff]  }
 0x693   :  { %7910 = vmatprep.subr.bf16.mxu0 %v11066_v59  ;;  %7992 = vmatprep.subr.bf16.mxu1 %v11069_v11  ;;  %v12658_v59 = vld [vmem:[#allocation20] sm:$0xf] }
 0x694   :  { %v4616_v11 = vrot.slane %v12658_v59, %v12636_v25 }
 0x696   :  { %7911 = vmatpush1.bf16.msra.mxu0 %v11064_v50  ;;  %7993 = vmatpush1.bf16.msra.mxu1 %v11067_v12  ;;  %v4620_v50 = vrot.slane %v12658_v59, %v12639_v53  ;;  %v4628_v12 = vrot.slane %v12658_v59, %v12650_v9 }
 0x697   :  { %7912 = vmatprep.subr.bf16.mxu0 %v11072_v13  ;;  %7994 = vmatprep.subr.bf16.mxu1 %v11075_v14 }
 0x69a   :  { %7913 = vmatpush1.bf16.msra.mxu0 %v11070_v16  ;;  %7995 = vmatpush1.bf16.msra.mxu1 %v11073_v17 }
 0x69b   :  { %7914 = vmatprep.subr.bf16.mxu0 %v11078_v58  ;;  %7996 = vmatprep.subr.bf16.mxu1 %v11081_v18 }
 0x69e   :  { %7915 = vmatpush1.bf16.msra.mxu0 %v11076_v19  ;;  %7997 = vmatpush1.bf16.msra.mxu1 %v11079_v20 }
 0x69f   :  { %7916 = vmatprep.subr.bf16.mxu0 %v11084_v21  ;;  %7998 = vmatprep.subr.bf16.mxu1 %v11087_v22 }
 0x6a2   :  { %7917 = vmatpush1.bf16.msra.mxu0 %v11082_v23  ;;  %7999 = vmatpush1.bf16.msra.mxu1 %v11085_v24 }
 0x6a3   :  { %7918 = vmatprep.subr.bf16.mxu0 %v11090_v27  ;;  %8000 = vmatprep.subr.bf16.mxu1 %v11093_v46 }
 0x6a6   :  { %7919 = vmatpush1.bf16.msra.mxu0 %v11088_v29  ;;  %8001 = vmatpush1.bf16.msra.mxu1 %v11091_v30  ;;  %v11148_v30 = vld [vmem:[#allocation22 + $0x780] ss:$60 sps:$4 sm:$0xff]  }
 0x6a7   :  { %7920 = vmatprep.subr.bf16.mxu0 %v11096_v4  ;;  %8002 = vmatprep.subr.bf16.mxu1 %v11099_v57  ;;  %v11151_v4 = vld [vmem:[#allocation22 + $0x788] ss:$60 sps:$4 sm:$0xff]  }
 0x6aa   :  { %7921 = vmatpush1.bf16.msra.mxu0 %v11094_v31  ;;  %8003 = vmatpush1.bf16.msra.mxu1 %v11097_v32  ;;  %v11156_v31 = vld [vmem:[#allocation22 + $0x7fc] ss:$60 sps:$4 sm:$0xff]   ;;  %v11159_v32 = vld [vmem:[#allocation22 + $0x804] ss:$60 sps:$4 sm:$0xff]  }
 0x6ab   :  { %7922 = vmatprep.subr.bf16.mxu0 %v11102_v33  ;;  %8004 = vmatprep.subr.bf16.mxu1 %v11105_v35  ;;  %v11154_v35 = vld [vmem:[#allocation22 + $0x7f8] ss:$60 sps:$4 sm:$0xff]  }
 0x6ae   :  { %7923 = vmatpush1.bf16.msra.mxu0 %v11100_v36  ;;  %8005 = vmatpush1.bf16.msra.mxu1 %v11103_v37  ;;  %v11157_v36 = vld [vmem:[#allocation22 + $0x800] ss:$60 sps:$4 sm:$0xff]   ;;  %v11162_v37 = vld [vmem:[#allocation22 + $0x874] ss:$60 sps:$4 sm:$0xff]  }
 0x6af   :  { %7924 = vmatprep.subr.bf16.mxu0 %v11108_v38  ;;  %8006 = vmatprep.subr.bf16.mxu1 %v11111_v15  ;;  %v11165_v38 = vld [vmem:[#allocation22 + $0x87c] ss:$60 sps:$4 sm:$0xff]   ;;  %v11160_v15 = vld [vmem:[#allocation22 + $0x870] ss:$60 sps:$4 sm:$0xff]  }
 0x6b2   :  { %7925 = vmatpush1.bf16.msra.mxu0 %v11106_v48  ;;  %8007 = vmatpush1.bf16.msra.mxu1 %v11109_v41  ;;  %v11163_v48 = vld [vmem:[#allocation22 + $0x878] ss:$60 sps:$4 sm:$0xff]   ;;  %v11168_v41 = vld [vmem:[#allocation22 + $0x8ec] ss:$60 sps:$4 sm:$0xff]  }
 0x6b3   :  { %7926 = vmatprep.subr.bf16.mxu0 %v11114_v42  ;;  %8008 = vmatprep.subr.bf16.mxu1 %v11117_v43  ;;  %v11171_v42 = vld [vmem:[#allocation22 + $0x8f4] ss:$60 sps:$4 sm:$0xff]   ;;  %v11166_v43 = vld [vmem:[#allocation22 + $0x8e8] ss:$60 sps:$4 sm:$0xff]  }
 0x6b6   :  { %7927 = vmatpush1.bf16.msra.mxu0 %v11112_v44  ;;  %8009 = vmatpush1.bf16.msra.mxu1 %v11115_v45  ;;  %v11169_v44 = vld [vmem:[#allocation22 + $0x8f0] ss:$60 sps:$4 sm:$0xff]   ;;  %v11174_v45 = vld [vmem:[#allocation22 + $0x964] ss:$60 sps:$4 sm:$0xff]  }
 0x6b7   :  { %7928 = vmatprep.subr.bf16.mxu0 %v11120_v47  ;;  %8010 = vmatprep.subr.bf16.mxu1 %v11123_v0  ;;  %v11177_v47 = vld [vmem:[#allocation22 + $0x96c] ss:$60 sps:$4 sm:$0xff]   ;;  %v11172_v0 = vld [vmem:[#allocation22 + $0x960] ss:$60 sps:$4 sm:$0xff]  }
 0x6ba   :  { %7929 = vmatpush1.bf16.msra.mxu0 %v11118_v39  ;;  %8011 = vmatpush1.bf16.msra.mxu1 %v11121_v40  ;;  %v11175_v39 = vld [vmem:[#allocation22 + $0x968] ss:$60 sps:$4 sm:$0xff]   ;;  %v11180_v40 = vld [vmem:[#allocation22 + $0x9dc] ss:$60 sps:$4 sm:$0xff]  }
 0x6bb   :  { %7930 = vmatprep.subr.bf16.mxu0 %v11126_v28  ;;  %8012 = vmatprep.subr.bf16.mxu1 %v11129_v49  ;;  %v11183_v28 = vld [vmem:[#allocation22 + $0x9e4] ss:$60 sps:$4 sm:$0xff]   ;;  %v11178_v49 = vld [vmem:[#allocation22 + $0x9d8] ss:$60 sps:$4 sm:$0xff]  }
 0x6be   :  { %7931 = vmatpush1.bf16.msra.mxu0 %v11124_v52  ;;  %8013 = vmatpush1.bf16.msra.mxu1 %v11127_v54  ;;  %v11181_v52 = vld [vmem:[#allocation22 + $0x9e0] ss:$60 sps:$4 sm:$0xff]   ;;  %v11186_v54 = vld [vmem:[#allocation22 + $0xa54] ss:$60 sps:$4 sm:$0xff]  }
 0x6bf   :  { %7932 = vmatprep.subr.bf16.mxu0 %v11132_v55  ;;  %8014 = vmatprep.subr.bf16.mxu1 %v11135_v56  ;;  %v11189_v55 = vld [vmem:[#allocation22 + $0xa5c] ss:$60 sps:$4 sm:$0xff]   ;;  %v11184_v56 = vld [vmem:[#allocation22 + $0xa50] ss:$60 sps:$4 sm:$0xff]  }
 0x6c2   :  { %7933 = vmatpush1.bf16.msra.mxu0 %v11130_v60  ;;  %8015 = vmatpush1.bf16.msra.mxu1 %v11133_v61  ;;  %v11187_v60 = vld [vmem:[#allocation22 + $0xa58] ss:$60 sps:$4 sm:$0xff]   ;;  %v11192_v61 = vld [vmem:[#allocation22 + $0xacc] ss:$60 sps:$4 sm:$0xff]  }
 0x6c3   :  { %7934 = vmatprep.subr.bf16.mxu0 %v11138_v51  ;;  %8016 = vmatprep.subr.bf16.mxu1 %v11141_v62  ;;  %v11195_v51 = vld [vmem:[#allocation22 + $0xad4] ss:$60 sps:$4 sm:$0xff]   ;;  %v11190_v62 = vld [vmem:[#allocation22 + $0xac8] ss:$60 sps:$4 sm:$0xff]  }
 0x6c6   :  { %7935 = vmatpush1.bf16.msra.mxu0 %v11136_v63  ;;  %8017 = vmatpush1.bf16.msra.mxu1 %v11139_v1  ;;  %v11193_v63 = vld [vmem:[#allocation22 + $0xad0] ss:$60 sps:$4 sm:$0xff]   ;;  %v11198_v1 = vld [vmem:[#allocation22 + $0xb44] ss:$60 sps:$4 sm:$0xff]  }
 0x6c7   :  { %7936 = vmatprep.subr.bf16.mxu0 %v11144_v2  ;;  %8018 = vmatprep.subr.bf16.mxu1 %v11147_v3  ;;  %v11201_v2 = vld [vmem:[#allocation22 + $0xb4c] ss:$60 sps:$4 sm:$0xff]   ;;  %v11196_v3 = vld [vmem:[#allocation22 + $0xb40] ss:$60 sps:$4 sm:$0xff]  }
 0x6ca   :  { %7937 = vmatpush1.bf16.msra.mxu0 %v11142_v5  ;;  %8019 = vmatpush1.bf16.msra.mxu1 %v11145_v6  ;;  %v11199_v5 = vld [vmem:[#allocation22 + $0xb48] ss:$60 sps:$4 sm:$0xff]   ;;  %v11204_v6 = vld [vmem:[#allocation22 + $0xbbc] ss:$60 sps:$4 sm:$0xff]  }
 0x6cb   :  { %7947 = vmatprep.subr.bf16.mxu0 %v11150_v7  ;;  %8029 = vmatprep.subr.bf16.mxu1 %v11153_v10  ;;  %v11207_v7 = vld [vmem:[#allocation22 + $0xbc4] ss:$60 sps:$4 sm:$0xff]   ;;  %v11202_v10 = vld [vmem:[#allocation22 + $0xbb8] ss:$60 sps:$4 sm:$0xff]  }
 0x760   :  { %v4827_v13 = vpop.f32.mrb[12].mxu0  ;;  %v12666_v14 = vpop.f32.mrb[16].mxu1 }
 0x761   :  { %v4828_v16 = vadd.f32 %v4827_v13, %v4616_v11  ;;  %v4829_v17 = vpop.f32.mrb[13].mxu0  ;;  %v4870_v58 = vpop.f32.mrb[17].mxu1  ;;  %v11205_v11 = vld [vmem:[#allocation22 + $0xbc0] ss:$60 sps:$4 sm:$0xff]   ;;  %v11208_v13 = vld [vmem:[#allocation22 + $0xc30] ss:$60 sps:$4 sm:$0xff]  }
 0x762   :  { %v4830_v18 = vadd.f32 %v4829_v17, %v4620_v50  ;;  %v4871_v19 = vadd.f32 %v4870_v58, %v4628_v12  ;;  %v4831_v20 = vpop.f32.mrb[14].mxu0  ;;  %v4872_v21 = vpop.f32.mrb[18].mxu1  ;;  %v11210_v50 = vld [vmem:[#allocation22 + $0xc34] ss:$60 sps:$4 sm:$0xff]   ;;  %v11213_v12 = vld [vmem:[#allocation22 + $0xc3c] ss:$60 sps:$4 sm:$0xff]  }
 0x763   :  { %v4875_v22 = vmax.f32 %v4828_v16, 0.0  ;;  %v4832_v23 = vpop.f32.mrb[15].mxu0  ;;  %v4873_v24 = vpop.f32.mrb[19].mxu1  ;;  %v11211_v16 = vld [vmem:[#allocation22 + $0xc38] ss:$60 sps:$4 sm:$0xff]  }
 0x764   :  { %v4876_v27 = vmax.f32 %v4830_v18, 0.0  ;;  %v4878_v46 = vmax.f32 %v4871_v19, 0.0  ;;  %v11216_v17 = vld [vmem:[#allocation22 + $0xcac] ss:$60 sps:$4 sm:$0xff]   ;;  %v11219_v58 = vld [vmem:[#allocation22 + $0xcb4] ss:$60 sps:$4 sm:$0xff]  }
 0x765   :  { %v12670_v57 = vpack.c.bf16 %v4875_v22, %v4875_v22  ;;  %v11214_v18 = vld [vmem:[#allocation22 + $0xca8] ss:$60 sps:$4 sm:$0xff]   ;;  %v11217_v19 = vld [vmem:[#allocation22 + $0xcb0] ss:$60 sps:$4 sm:$0xff]   ;;  %v11220_v22 = vld [vmem:[#allocation22 + $0xd20] ss:$60 sps:$4 sm:$0xff]  }
 0x766   :  { %v12668_v29 = vpack.c.bf16 %v4876_v27, %v4876_v27  ;;  %v12674_v33 = vpack.c.bf16 %v4878_v46, %v4878_v46  ;;  %v11222_v20 = vld [vmem:[#allocation22 + $0xd24] ss:$60 sps:$4 sm:$0xff]   ;;  %v11225_v21 = vld [vmem:[#allocation22 + $0xd2c] ss:$60 sps:$4 sm:$0xff]   ;;  %v11228_v24 = vld [vmem:[#allocation22 + $0xd9c] ss:$60 sps:$4 sm:$0xff]  }
 0x767   :  { %v11223_v23 = vld [vmem:[#allocation22 + $0xd28] ss:$60 sps:$4 sm:$0xff]   ;;  %v11226_v46 = vld [vmem:[#allocation22 + $0xd98] ss:$60 sps:$4 sm:$0xff]  }
 0x768   :  { %7938 = vmatprep.mubr.bf16.mxu0 %v12668_v29  ;;  %8020 = vmatprep.mubr.bf16.mxu1 %v12668_v29  ;;  %v11231_v27 = vld [vmem:[#allocation22 + $0xda4] ss:$60 sps:$4 sm:$0xff]  }
 0x769   :  { %7939 = vmatmul.mubr.bf16.vlgmr.msra.gmra.mrb[16].mxu0 %v12670_v57  ;;  %8021 = vmatmul.mubr.bf16.vlgmr.msra.gmra.mrb[20].mxu1 %v12670_v57 }
 0x76a   :  { %7948 = vmatpush1.bf16.msra.mxu0 %v11148_v30  ;;  %8030 = vmatpush1.bf16.msra.mxu1 %v11151_v4  ;;  %v11229_v30 = vld [vmem:[#allocation22 + $0xda0] ss:$60 sps:$4 sm:$0xff]   ;;  %v4624_v4 = vrot.slane %v12658_v59, %v12647_v8  ;;  %v11246_v59 = vld [vmem:[#allocation22 + $0x14] ss:$60 sps:$4 sm:$0xff]  }
 0x76b   :  { %7979 = vmatprep.mubr.bf16.mxu0 %v12674_v33  ;;  %8061 = vmatprep.mubr.bf16.mxu1 %v12674_v33 }
 0x76c   :  { %7949 = vmatprep.subr.bf16.mxu0 %v11156_v31  ;;  %8031 = vmatprep.subr.bf16.mxu1 %v11159_v32  ;;  %v11234_v31 = vld [vmem:[#allocation22 + $0xe14] ss:$60 sps:$4 sm:$0xff]   ;;  %v11237_v32 = vld [vmem:[#allocation22 + $0xe1c] ss:$60 sps:$4 sm:$0xff]  }
 0x76e   :  { %7950 = vmatpush1.bf16.msra.mxu0 %v11154_v35  ;;  %8032 = vmatpush1.bf16.msra.mxu1 %v11157_v36  ;;  %v11232_v35 = vld [vmem:[#allocation22 + $0xe10] ss:$60 sps:$4 sm:$0xff]   ;;  %v11235_v36 = vld [vmem:[#allocation22 + $0xe18] ss:$60 sps:$4 sm:$0xff]  }
 0x76f   :  { %7951 = vmatprep.subr.bf16.mxu0 %v11162_v37  ;;  %8033 = vmatprep.subr.bf16.mxu1 %v11165_v38  ;;  %v4869_v37 = vadd.f32 %v12666_v14, %v4624_v4  ;;  %v11240_v38 = vld [vmem:[#allocation22 + $0xe8c] ss:$60 sps:$4 sm:$0xff]   ;;  %v11247_v14 = vld [vmem:[#allocation22 + $0x18] ss:$60 sps:$4 sm:$0xff]  }
 0x770   :  { %v11307_v4 = vld [vmem:[#allocation22 + $0x4c8] ss:$60 sps:$4 sm:$0xff]  }
 0x772   :  { %7952 = vmatpush1.bf16.msra.mxu0 %v11160_v15  ;;  %8034 = vmatpush1.bf16.msra.mxu1 %v11163_v48  ;;  %v11243_v15 = vld [vmem:[#allocation22 + $0xe94] ss:$60 sps:$4 sm:$0xff]   ;;  %v11238_v48 = vld [vmem:[#allocation22 + $0xe88] ss:$60 sps:$4 sm:$0xff]  }
 0x773   :  { %7953 = vmatprep.subr.bf16.mxu0 %v11168_v41  ;;  %8035 = vmatprep.subr.bf16.mxu1 %v11171_v42  ;;  %v11241_v41 = vld [vmem:[#allocation22 + $0xe90] ss:$60 sps:$4 sm:$0xff]   ;;  %v4877_v42 = vmax.f32 %v4869_v37, 0.0 }
 0x774   :  { %v11318_v37 = vld [vmem:[#allocation22 + $0x5b4] ss:$60 sps:$4 sm:$0xff]  }
 0x776   :  { %7954 = vmatpush1.bf16.msra.mxu0 %v11166_v43  ;;  %8036 = vmatpush1.bf16.msra.mxu1 %v11169_v44  ;;  %v11249_v43 = vld [vmem:[#allocation22 + $0x1c] ss:$60 sps:$4 sm:$0xff]   ;;  %v11244_v44 = vld [vmem:[#allocation22 + $0x10] ss:$60 sps:$4 sm:$0xff]  }
 0x777   :  { %7955 = vmatprep.subr.bf16.mxu0 %v11174_v45  ;;  %8037 = vmatprep.subr.bf16.mxu1 %v11177_v47  ;;  %v12683_v45 = vpack.c.bf16 %v4877_v42, %v4877_v42  ;;  %v11252_v47 = vld [vmem:[#allocation22 + $0x8c] ss:$60 sps:$4 sm:$0xff]   ;;  %v11327_v42 = vld [vmem:[#allocation22 + $0x634] ss:$60 sps:$4 sm:$0xff]  }
 0x77a   :  { %7956 = vmatpush1.bf16.msra.mxu0 %v11172_v0  ;;  %8038 = vmatpush1.bf16.msra.mxu1 %v11175_v39  ;;  %v11255_v0 = vld [vmem:[#allocation22 + $0x94] ss:$60 sps:$4 sm:$0xff]   ;;  %v11250_v39 = vld [vmem:[#allocation22 + $0x88] ss:$60 sps:$4 sm:$0xff]  }
 0x77b   :  { %7957 = vmatprep.subr.bf16.mxu0 %v11180_v40  ;;  %8039 = vmatprep.subr.bf16.mxu1 %v11183_v28  ;;  %v11253_v40 = vld [vmem:[#allocation22 + $0x90] ss:$60 sps:$4 sm:$0xff]   ;;  %v11258_v28 = vld [vmem:[#allocation22 + $0x104] ss:$60 sps:$4 sm:$0xff]  }
 0x77e   :  { %7958 = vmatpush1.bf16.msra.mxu0 %v11178_v49  ;;  %8040 = vmatpush1.bf16.msra.mxu1 %v11181_v52  ;;  %v11261_v49 = vld [vmem:[#allocation22 + $0x10c] ss:$60 sps:$4 sm:$0xff]   ;;  %v11256_v52 = vld [vmem:[#allocation22 + $0x100] ss:$60 sps:$4 sm:$0xff]  }
 0x77f   :  { %7959 = vmatprep.subr.bf16.mxu0 %v11186_v54  ;;  %8041 = vmatprep.subr.bf16.mxu1 %v11189_v55  ;;  %v11259_v54 = vld [vmem:[#allocation22 + $0x108] ss:$60 sps:$4 sm:$0xff]   ;;  %v11264_v55 = vld [vmem:[#allocation22 + $0x17c] ss:$60 sps:$4 sm:$0xff]  }
 0x782   :  { %7960 = vmatpush1.bf16.msra.mxu0 %v11184_v56  ;;  %8042 = vmatpush1.bf16.msra.mxu1 %v11187_v60  ;;  %v11267_v56 = vld [vmem:[#allocation22 + $0x184] ss:$60 sps:$4 sm:$0xff]   ;;  %v11262_v60 = vld [vmem:[#allocation22 + $0x178] ss:$60 sps:$4 sm:$0xff]  }
 0x783   :  { %7961 = vmatprep.subr.bf16.mxu0 %v11192_v61  ;;  %8043 = vmatprep.subr.bf16.mxu1 %v11195_v51  ;;  %v11265_v61 = vld [vmem:[#allocation22 + $0x180] ss:$60 sps:$4 sm:$0xff]   ;;  %v11270_v51 = vld [vmem:[#allocation22 + $0x1f4] ss:$60 sps:$4 sm:$0xff]  }
 0x786   :  { %7962 = vmatpush1.bf16.msra.mxu0 %v11190_v62  ;;  %8044 = vmatpush1.bf16.msra.mxu1 %v11193_v63  ;;  %v11273_v62 = vld [vmem:[#allocation22 + $0x1fc] ss:$60 sps:$4 sm:$0xff]   ;;  %v11268_v63 = vld [vmem:[#allocation22 + $0x1f0] ss:$60 sps:$4 sm:$0xff]  }
 0x787   :  { %7963 = vmatprep.subr.bf16.mxu0 %v11198_v1  ;;  %8045 = vmatprep.subr.bf16.mxu1 %v11201_v2  ;;  %v11271_v1 = vld [vmem:[#allocation22 + $0x1f8] ss:$60 sps:$4 sm:$0xff]   ;;  %v11276_v2 = vld [vmem:[#allocation22 + $0x26c] ss:$60 sps:$4 sm:$0xff]  }
 0x78a   :  { %7964 = vmatpush1.bf16.msra.mxu0 %v11196_v3  ;;  %8046 = vmatpush1.bf16.msra.mxu1 %v11199_v5  ;;  %v11279_v3 = vld [vmem:[#allocation22 + $0x274] ss:$60 sps:$4 sm:$0xff]   ;;  %v11274_v5 = vld [vmem:[#allocation22 + $0x268] ss:$60 sps:$4 sm:$0xff]  }
 0x78b   :  { %7965 = vmatprep.subr.bf16.mxu0 %v11204_v6  ;;  %8047 = vmatprep.subr.bf16.mxu1 %v11207_v7  ;;  %v11277_v6 = vld [vmem:[#allocation22 + $0x270] ss:$60 sps:$4 sm:$0xff]   ;;  %v11282_v7 = vld [vmem:[#allocation22 + $0x2e4] ss:$60 sps:$4 sm:$0xff]  }
 0x78e   :  { %7966 = vmatpush1.bf16.msra.mxu0 %v11202_v10  ;;  %8048 = vmatpush1.bf16.msra.mxu1 %v11205_v11  ;;  %v11285_v10 = vld [vmem:[#allocation22 + $0x2ec] ss:$60 sps:$4 sm:$0xff]   ;;  %v11280_v11 = vld [vmem:[#allocation22 + $0x2e0] ss:$60 sps:$4 sm:$0xff]  }
 0x78f   :  { %7967 = vmatprep.subr.bf16.mxu0 %v11210_v50  ;;  %8049 = vmatprep.subr.bf16.mxu1 %v11213_v12  ;;  %v11283_v50 = vld [vmem:[#allocation22 + $0x2e8] ss:$60 sps:$4 sm:$0xff]   ;;  %v11288_v12 = vld [vmem:[#allocation22 + $0x35c] ss:$60 sps:$4 sm:$0xff]  }
 0x792   :  { %7968 = vmatpush1.bf16.msra.mxu0 %v11208_v13  ;;  %8050 = vmatpush1.bf16.msra.mxu1 %v11211_v16  ;;  %v11291_v13 = vld [vmem:[#allocation22 + $0x364] ss:$60 sps:$4 sm:$0xff]   ;;  %v11286_v16 = vld [vmem:[#allocation22 + $0x358] ss:$60 sps:$4 sm:$0xff]  }
 0x793   :  { %7969 = vmatprep.subr.bf16.mxu0 %v11216_v17  ;;  %8051 = vmatprep.subr.bf16.mxu1 %v11219_v58  ;;  %v11289_v17 = vld [vmem:[#allocation22 + $0x360] ss:$60 sps:$4 sm:$0xff]   ;;  %v11294_v58 = vld [vmem:[#allocation22 + $0x3d4] ss:$60 sps:$4 sm:$0xff]  }
 0x796   :  { %7970 = vmatpush1.bf16.msra.mxu0 %v11214_v18  ;;  %8052 = vmatpush1.bf16.msra.mxu1 %v11217_v19  ;;  %v11297_v18 = vld [vmem:[#allocation22 + $0x3dc] ss:$60 sps:$4 sm:$0xff]   ;;  %v11292_v19 = vld [vmem:[#allocation22 + $0x3d0] ss:$60 sps:$4 sm:$0xff]  }
 0x797   :  { %7971 = vmatprep.subr.bf16.mxu0 %v11222_v20  ;;  %8053 = vmatprep.subr.bf16.mxu1 %v11225_v21  ;;  %v11295_v20 = vld [vmem:[#allocation22 + $0x3d8] ss:$60 sps:$4 sm:$0xff]   ;;  %v11300_v21 = vld [vmem:[#allocation22 + $0x44c] ss:$60 sps:$4 sm:$0xff]  }
 0x79a   :  { %7972 = vmatpush1.bf16.msra.mxu0 %v11220_v22  ;;  %8054 = vmatpush1.bf16.msra.mxu1 %v11223_v23  ;;  %v11303_v22 = vld [vmem:[#allocation22 + $0x454] ss:$60 sps:$4 sm:$0xff]   ;;  %v11298_v23 = vld [vmem:[#allocation22 + $0x448] ss:$60 sps:$4 sm:$0xff]  }
 0x79b   :  { %7973 = vmatprep.subr.bf16.mxu0 %v11228_v24  ;;  %8055 = vmatprep.subr.bf16.mxu1 %v11231_v27  ;;  %v11301_v24 = vld [vmem:[#allocation22 + $0x450] ss:$60 sps:$4 sm:$0xff]   ;;  %v11306_v27 = vld [vmem:[#allocation22 + $0x4c4] ss:$60 sps:$4 sm:$0xff]  }
 0x79e   :  { %7974 = vmatpush1.bf16.msra.mxu0 %v11226_v46  ;;  %8056 = vmatpush1.bf16.msra.mxu1 %v11229_v30  ;;  %v11309_v46 = vld [vmem:[#allocation22 + $0x4cc] ss:$60 sps:$4 sm:$0xff]   ;;  %v11304_v30 = vld [vmem:[#allocation22 + $0x4c0] ss:$60 sps:$4 sm:$0xff]  }
 0x79f   :  { %7975 = vmatprep.subr.bf16.mxu0 %v11234_v31  ;;  %8057 = vmatprep.subr.bf16.mxu1 %v11237_v32  ;;  %v11312_v31 = vld [vmem:[#allocation22 + $0x53c] ss:$60 sps:$4 sm:$0xff]   ;;  %v11315_v32 = vld [vmem:[#allocation22 + $0x544] ss:$60 sps:$4 sm:$0xff]  }
 0x7a2   :  { %7976 = vmatpush1.bf16.msra.mxu0 %v11232_v35  ;;  %8058 = vmatpush1.bf16.msra.mxu1 %v11235_v36  ;;  %v11310_v35 = vld [vmem:[#allocation22 + $0x538] ss:$60 sps:$4 sm:$0xff]   ;;  %v11313_v36 = vld [vmem:[#allocation22 + $0x540] ss:$60 sps:$4 sm:$0xff]  }
 0x7a3   :  { %7977 = vmatprep.subr.bf16.mxu0 %v11240_v38  ;;  %8059 = vmatprep.subr.bf16.mxu1 %v11243_v15  ;;  %v11321_v38 = vld [vmem:[#allocation22 + $0x5bc] ss:$60 sps:$4 sm:$0xff]   ;;  %v11316_v15 = vld [vmem:[#allocation22 + $0x5b0] ss:$60 sps:$4 sm:$0xff]  }
 0x7a6   :  { %7978 = vmatpush1.bf16.msra.mxu0 %v11238_v48  ;;  %8060 = vmatpush1.bf16.msra.mxu1 %v11241_v41  ;;  %v11319_v48 = vld [vmem:[#allocation22 + $0x5b8] ss:$60 sps:$4 sm:$0xff]   ;;  %v11324_v41 = vld [vmem:[#allocation22 + $0x62c] ss:$60 sps:$4 sm:$0xff]  }
 0x7a7   :  { %8070 = vmatprep.subr.bf16.mxu0 %v11246_v59  ;;  %8152 = vmatprep.subr.bf16.mxu1 %v11249_v43  ;;  %v11322_v59 = vld [vmem:[#allocation22 + $0x628] ss:$60 sps:$4 sm:$0xff]   ;;  %v11325_v43 = vld [vmem:[#allocation22 + $0x630] ss:$60 sps:$4 sm:$0xff]  }
 0x7a9   :  { %7980 = vmatmul.mubr.bf16.vlgmr.msra.gmra.mrb[16].mxu0 %v12683_v45  ;;  %8062 = vmatmul.mubr.bf16.vlgmr.msra.gmra.mrb[20].mxu1 %v12683_v45 }
 0x7aa   :  { %8071 = vmatpush1.bf16.msra.mxu0 %v11244_v44  ;;  %8102 = vmatprep.mubr.bf16.mxu0 %v12668_v29  ;;  %v11330_v44 = vld [vmem:[#allocation22 + $0x6a4] ss:$60 sps:$4 sm:$0xff]  }
 0x7ab   :  { %8153 = vmatpush1.bf16.msra.mxu1 %v11247_v14  ;;  %8184 = vmatprep.mubr.bf16.mxu1 %v12668_v29  ;;  %v11333_v14 = vld [vmem:[#allocation22 + $0x6ac] ss:$60 sps:$4 sm:$0xff]  }
 0x7ac   :  { %8072 = vmatprep.subr.bf16.mxu0 %v11252_v47  ;;  %8154 = vmatprep.subr.bf16.mxu1 %v11255_v0  ;;  %v11328_v47 = vld [vmem:[#allocation22 + $0x6a0] ss:$60 sps:$4 sm:$0xff]   ;;  %v11331_v0 = vld [vmem:[#allocation22 + $0x6a8] ss:$60 sps:$4 sm:$0xff]  }
 0x7ae   :  { %8073 = vmatpush1.bf16.msra.mxu0 %v11250_v39  ;;  %v11336_v39 = vld [vmem:[#allocation22 + $0x71c] ss:$60 sps:$4 sm:$0xff]  }
 0x7af   :  { %8155 = vmatpush1.bf16.msra.mxu1 %v11253_v40  ;;  %8074 = vmatprep.subr.bf16.mxu0 %v11258_v28  ;;  %v11339_v40 = vld [vmem:[#allocation22 + $0x724] ss:$60 sps:$4 sm:$0xff]   ;;  %v11334_v28 = vld [vmem:[#allocation22 + $0x718] ss:$60 sps:$4 sm:$0xff]  }
 0x7b0   :  { %8156 = vmatprep.subr.bf16.mxu1 %v11261_v49  ;;  %v11337_v49 = vld [vmem:[#allocation22 + $0x720] ss:$60 sps:$4 sm:$0xff]  }
 0x7b2   :  { %8075 = vmatpush1.bf16.msra.mxu0 %v11256_v52  ;;  %v11342_v52 = vld [vmem:[#allocation22 + $0x794] ss:$60 sps:$4 sm:$0xff]  }
 0x7b3   :  { %8157 = vmatpush1.bf16.msra.mxu1 %v11259_v54  ;;  %8076 = vmatprep.subr.bf16.mxu0 %v11264_v55  ;;  %v11345_v54 = vld [vmem:[#allocation22 + $0x79c] ss:$60 sps:$4 sm:$0xff]   ;;  %v11340_v55 = vld [vmem:[#allocation22 + $0x790] ss:$60 sps:$4 sm:$0xff]  }
 0x7b4   :  { %8158 = vmatprep.subr.bf16.mxu1 %v11267_v56  ;;  %v11343_v56 = vld [vmem:[#allocation22 + $0x798] ss:$60 sps:$4 sm:$0xff]  }
 0x7b6   :  { %8077 = vmatpush1.bf16.msra.mxu0 %v11262_v60  ;;  %v11348_v60 = vld [vmem:[#allocation22 + $0x80c] ss:$60 sps:$4 sm:$0xff]  }
 0x7b7   :  { %8159 = vmatpush1.bf16.msra.mxu1 %v11265_v61  ;;  %8078 = vmatprep.subr.bf16.mxu0 %v11270_v51  ;;  %v11351_v61 = vld [vmem:[#allocation22 + $0x814] ss:$60 sps:$4 sm:$0xff]   ;;  %v11346_v51 = vld [vmem:[#allocation22 + $0x808] ss:$60 sps:$4 sm:$0xff]  }
 0x7b8   :  { %8160 = vmatprep.subr.bf16.mxu1 %v11273_v62  ;;  %v11349_v62 = vld [vmem:[#allocation22 + $0x810] ss:$60 sps:$4 sm:$0xff]  }
 0x7ba   :  { %8079 = vmatpush1.bf16.msra.mxu0 %v11268_v63  ;;  %v11354_v63 = vld [vmem:[#allocation22 + $0x884] ss:$60 sps:$4 sm:$0xff]  }
 0x7bb   :  { %8161 = vmatpush1.bf16.msra.mxu1 %v11271_v1  ;;  %8080 = vmatprep.subr.bf16.mxu0 %v11276_v2  ;;  %v11357_v1 = vld [vmem:[#allocation22 + $0x88c] ss:$60 sps:$4 sm:$0xff]   ;;  %v11352_v2 = vld [vmem:[#allocation22 + $0x880] ss:$60 sps:$4 sm:$0xff]  }
 0x7bc   :  { %8162 = vmatprep.subr.bf16.mxu1 %v11279_v3  ;;  %v11355_v3 = vld [vmem:[#allocation22 + $0x888] ss:$60 sps:$4 sm:$0xff]  }
 0x7be   :  { %8081 = vmatpush1.bf16.msra.mxu0 %v11274_v5  ;;  %v11360_v5 = vld [vmem:[#allocation22 + $0x8fc] ss:$60 sps:$4 sm:$0xff]  }
 0x7bf   :  { %8163 = vmatpush1.bf16.msra.mxu1 %v11277_v6  ;;  %8082 = vmatprep.subr.bf16.mxu0 %v11282_v7  ;;  %v11363_v6 = vld [vmem:[#allocation22 + $0x904] ss:$60 sps:$4 sm:$0xff]   ;;  %v11358_v7 = vld [vmem:[#allocation22 + $0x8f8] ss:$60 sps:$4 sm:$0xff]  }
 0x7c0   :  { %8164 = vmatprep.subr.bf16.mxu1 %v11285_v10  ;;  %v11361_v10 = vld [vmem:[#allocation22 + $0x900] ss:$60 sps:$4 sm:$0xff]  }
 0x7c2   :  { %8083 = vmatpush1.bf16.msra.mxu0 %v11280_v11  ;;  %v11366_v11 = vld [vmem:[#allocation22 + $0x974] ss:$60 sps:$4 sm:$0xff]  }
 0x7c3   :  { %8165 = vmatpush1.bf16.msra.mxu1 %v11283_v50  ;;  %8084 = vmatprep.subr.bf16.mxu0 %v11288_v12  ;;  %v11369_v50 = vld [vmem:[#allocation22 + $0x97c] ss:$60 sps:$4 sm:$0xff]   ;;  %v11364_v12 = vld [vmem:[#allocation22 + $0x970] ss:$60 sps:$4 sm:$0xff]  }
 0x7c4   :  { %8166 = vmatprep.subr.bf16.mxu1 %v11291_v13  ;;  %v11367_v13 = vld [vmem:[#allocation22 + $0x978] ss:$60 sps:$4 sm:$0xff]  }
 0x7c6   :  { %8085 = vmatpush1.bf16.msra.mxu0 %v11286_v16  ;;  %v11372_v16 = vld [vmem:[#allocation22 + $0x9ec] ss:$60 sps:$4 sm:$0xff]  }
 0x7c7   :  { %8167 = vmatpush1.bf16.msra.mxu1 %v11289_v17  ;;  %8086 = vmatprep.subr.bf16.mxu0 %v11294_v58  ;;  %v11375_v17 = vld [vmem:[#allocation22 + $0x9f4] ss:$60 sps:$4 sm:$0xff]   ;;  %v11370_v58 = vld [vmem:[#allocation22 + $0x9e8] ss:$60 sps:$4 sm:$0xff]  }
 0x7c8   :  { %8168 = vmatprep.subr.bf16.mxu1 %v11297_v18  ;;  %v11373_v18 = vld [vmem:[#allocation22 + $0x9f0] ss:$60 sps:$4 sm:$0xff]  }
 0x7ca   :  { %8087 = vmatpush1.bf16.msra.mxu0 %v11292_v19  ;;  %v11378_v19 = vld [vmem:[#allocation22 + $0xa64] ss:$60 sps:$4 sm:$0xff]  }
 0x7cb   :  { %8169 = vmatpush1.bf16.msra.mxu1 %v11295_v20  ;;  %8088 = vmatprep.subr.bf16.mxu0 %v11300_v21  ;;  %v11381_v20 = vld [vmem:[#allocation22 + $0xa6c] ss:$60 sps:$4 sm:$0xff]   ;;  %v11376_v21 = vld [vmem:[#allocation22 + $0xa60] ss:$60 sps:$4 sm:$0xff]  }
 0x7cc   :  { %8170 = vmatprep.subr.bf16.mxu1 %v11303_v22  ;;  %v11379_v22 = vld [vmem:[#allocation22 + $0xa68] ss:$60 sps:$4 sm:$0xff]  }
 0x7ce   :  { %8089 = vmatpush1.bf16.msra.mxu0 %v11298_v23  ;;  %v11384_v23 = vld [vmem:[#allocation22 + $0xadc] ss:$60 sps:$4 sm:$0xff]  }
 0x7cf   :  { %8171 = vmatpush1.bf16.msra.mxu1 %v11301_v24  ;;  %8090 = vmatprep.subr.bf16.mxu0 %v11306_v27  ;;  %v11387_v24 = vld [vmem:[#allocation22 + $0xae4] ss:$60 sps:$4 sm:$0xff]   ;;  %v11382_v27 = vld [vmem:[#allocation22 + $0xad8] ss:$60 sps:$4 sm:$0xff]  }
 0x7d0   :  { %8172 = vmatprep.subr.bf16.mxu1 %v11309_v46  ;;  %v11385_v46 = vld [vmem:[#allocation22 + $0xae0] ss:$60 sps:$4 sm:$0xff]  }
 0x7d2   :  { %8091 = vmatpush1.bf16.msra.mxu0 %v11304_v30  ;;  %v11390_v30 = vld [vmem:[#allocation22 + $0xb54] ss:$60 sps:$4 sm:$0xff]  }
 0x7d3   :  { %8173 = vmatpush1.bf16.msra.mxu1 %v11307_v4  ;;  %8092 = vmatprep.subr.bf16.mxu0 %v11312_v31  ;;  %v11393_v4 = vld [vmem:[#allocation22 + $0xb5c] ss:$60 sps:$4 sm:$0xff]   ;;  %v11388_v31 = vld [vmem:[#allocation22 + $0xb50] ss:$60 sps:$4 sm:$0xff]  }
 0x7d4   :  { %8174 = vmatprep.subr.bf16.mxu1 %v11315_v32  ;;  %v11391_v32 = vld [vmem:[#allocation22 + $0xb58] ss:$60 sps:$4 sm:$0xff]  }
 0x7d6   :  { %8093 = vmatpush1.bf16.msra.mxu0 %v11310_v35  ;;  %v11396_v35 = vld [vmem:[#allocation22 + $0xbcc] ss:$60 sps:$4 sm:$0xff]  }
 0x7d7   :  { %8175 = vmatpush1.bf16.msra.mxu1 %v11313_v36  ;;  %8094 = vmatprep.subr.bf16.mxu0 %v11318_v37  ;;  %v11399_v36 = vld [vmem:[#allocation22 + $0xbd4] ss:$60 sps:$4 sm:$0xff]   ;;  %v11394_v37 = vld [vmem:[#allocation22 + $0xbc8] ss:$60 sps:$4 sm:$0xff]  }
 0x7d8   :  { %8176 = vmatprep.subr.bf16.mxu1 %v11321_v38  ;;  %v11397_v38 = vld [vmem:[#allocation22 + $0xbd0] ss:$60 sps:$4 sm:$0xff]  }
 0x7da   :  { %8095 = vmatpush1.bf16.msra.mxu0 %v11316_v15  ;;  %v11402_v15 = vld [vmem:[#allocation22 + $0xc44] ss:$60 sps:$4 sm:$0xff]  }
 0x7db   :  { %8177 = vmatpush1.bf16.msra.mxu1 %v11319_v48  ;;  %8096 = vmatprep.subr.bf16.mxu0 %v11324_v41  ;;  %v11405_v48 = vld [vmem:[#allocation22 + $0xc4c] ss:$60 sps:$4 sm:$0xff]   ;;  %v11400_v41 = vld [vmem:[#allocation22 + $0xc40] ss:$60 sps:$4 sm:$0xff]  }
 0x7dc   :  { %8178 = vmatprep.subr.bf16.mxu1 %v11327_v42  ;;  %v11403_v42 = vld [vmem:[#allocation22 + $0xc48] ss:$60 sps:$4 sm:$0xff]  }
 0x7de   :  { %8097 = vmatpush1.bf16.msra.mxu0 %v11322_v59  ;;  %v11408_v59 = vld [vmem:[#allocation22 + $0xcbc] ss:$60 sps:$4 sm:$0xff]  }
 0x7df   :  { %8179 = vmatpush1.bf16.msra.mxu1 %v11325_v43  ;;  %8098 = vmatprep.subr.bf16.mxu0 %v11330_v44  ;;  %v11411_v43 = vld [vmem:[#allocation22 + $0xcc4] ss:$60 sps:$4 sm:$0xff]   ;;  %v11406_v44 = vld [vmem:[#allocation22 + $0xcb8] ss:$60 sps:$4 sm:$0xff]  }
 0x7e0   :  { %8180 = vmatprep.subr.bf16.mxu1 %v11333_v14  ;;  %v11409_v14 = vld [vmem:[#allocation22 + $0xcc0] ss:$60 sps:$4 sm:$0xff]  }
 0x7e2   :  { %8099 = vmatpush1.bf16.msra.mxu0 %v11328_v47  ;;  %v11414_v47 = vld [vmem:[#allocation22 + $0xd34] ss:$60 sps:$4 sm:$0xff]  }
 0x7e3   :  { %8181 = vmatpush1.bf16.msra.mxu1 %v11331_v0  ;;  %8100 = vmatprep.subr.bf16.mxu0 %v11336_v39  ;;  %v11417_v0 = vld [vmem:[#allocation22 + $0xd3c] ss:$60 sps:$4 sm:$0xff]   ;;  %v11412_v39 = vld [vmem:[#allocation22 + $0xd30] ss:$60 sps:$4 sm:$0xff]  }
 0x7e4   :  { %8182 = vmatprep.subr.bf16.mxu1 %v11339_v40  ;;  %v11415_v40 = vld [vmem:[#allocation22 + $0xd38] ss:$60 sps:$4 sm:$0xff]  }
 0x7e6   :  { %8101 = vmatpush1.bf16.msra.mxu0 %v11334_v28  ;;  %v11420_v28 = vld [vmem:[#allocation22 + $0xdac] ss:$60 sps:$4 sm:$0xff]  }
 0x7e7   :  { %8183 = vmatpush1.bf16.msra.mxu1 %v11337_v49  ;;  %8111 = vmatprep.subr.bf16.mxu0 %v11342_v52  ;;  %v11423_v49 = vld [vmem:[#allocation22 + $0xdb4] ss:$60 sps:$4 sm:$0xff]   ;;  %v11418_v52 = vld [vmem:[#allocation22 + $0xda8] ss:$60 sps:$4 sm:$0xff]  }
 0x7e8   :  { %8193 = vmatprep.subr.bf16.mxu1 %v11345_v54  ;;  %v11421_v54 = vld [vmem:[#allocation22 + $0xdb0] ss:$60 sps:$4 sm:$0xff]  }
 0x7e9   :  { %8103 = vmatmul.mubr.bf16.vlgmr.msra.gmra.mrb[20].mxu0 %v12670_v57 }
 0x7ea   :  { %8185 = vmatmul.mubr.bf16.vlgmr.msra.gmra.mrb[24].mxu1 %v12670_v57  ;;  %8112 = vmatpush1.bf16.msra.mxu0 %v11340_v55  ;;  %v11426_v55 = vld [vmem:[#allocation22 + $0xe24] ss:$60 sps:$4 sm:$0xff]  }
 0x7eb   :  { %8143 = vmatprep.mubr.bf16.mxu0 %v12674_v33  ;;  %8194 = vmatpush1.bf16.msra.mxu1 %v11343_v56  ;;  %v11429_v56 = vld [vmem:[#allocation22 + $0xe2c] ss:$60 sps:$4 sm:$0xff]  }
 0x7ec   :  { %8225 = vmatprep.mubr.bf16.mxu1 %v12674_v33  ;;  %8113 = vmatprep.subr.bf16.mxu0 %v11348_v60  ;;  %v11424_v60 = vld [vmem:[#allocation22 + $0xe20] ss:$60 sps:$4 sm:$0xff]  }
 0x7ed   :  { %8195 = vmatprep.subr.bf16.mxu1 %v11351_v61  ;;  %v11427_v61 = vld [vmem:[#allocation22 + $0xe28] ss:$60 sps:$4 sm:$0xff]  }
 0x7ee   :  { %8114 = vmatpush1.bf16.msra.mxu0 %v11346_v51  ;;  %v11432_v51 = vld [vmem:[#allocation22 + $0xe9c] ss:$60 sps:$4 sm:$0xff]  }
 0x7ef   :  { %8196 = vmatpush1.bf16.msra.mxu1 %v11349_v62  ;;  %8115 = vmatprep.subr.bf16.mxu0 %v11354_v63  ;;  %v11435_v62 = vld [vmem:[#allocation22 + $0xea4] ss:$60 sps:$4 sm:$0xff]   ;;  %v11430_v63 = vld [vmem:[#allocation22 + $0xe98] ss:$60 sps:$4 sm:$0xff]  }
 0x7f0   :  { %8197 = vmatprep.subr.bf16.mxu1 %v11357_v1  ;;  %v11433_v1 = vld [vmem:[#allocation22 + $0xea0] ss:$60 sps:$4 sm:$0xff]  }
 0x7f2   :  { %8116 = vmatpush1.bf16.msra.mxu0 %v11352_v2  ;;  %v11438_v2 = vld [vmem:[#allocation22 + $0x24] ss:$60 sps:$4 sm:$0xff]  }
 0x7f3   :  { %8198 = vmatpush1.bf16.msra.mxu1 %v11355_v3  ;;  %8117 = vmatprep.subr.bf16.mxu0 %v11360_v5  ;;  %v11441_v3 = vld [vmem:[#allocation22 + $0x2c] ss:$60 sps:$4 sm:$0xff]   ;;  %v11436_v5 = vld [vmem:[#allocation22 + $0x20] ss:$60 sps:$4 sm:$0xff]  }
 0x7f4   :  { %8199 = vmatprep.subr.bf16.mxu1 %v11363_v6  ;;  %v11439_v6 = vld [vmem:[#allocation22 + $0x28] ss:$60 sps:$4 sm:$0xff]  }
 0x7f6   :  { %8118 = vmatpush1.bf16.msra.mxu0 %v11358_v7  ;;  %v11444_v7 = vld [vmem:[#allocation22 + $0x9c] ss:$60 sps:$4 sm:$0xff]  }
 0x7f7   :  { %8200 = vmatpush1.bf16.msra.mxu1 %v11361_v10  ;;  %8119 = vmatprep.subr.bf16.mxu0 %v11366_v11  ;;  %v11447_v10 = vld [vmem:[#allocation22 + $0xa4] ss:$60 sps:$4 sm:$0xff]   ;;  %v11442_v11 = vld [vmem:[#allocation22 + $0x98] ss:$60 sps:$4 sm:$0xff]  }
 0x7f8   :  { %8201 = vmatprep.subr.bf16.mxu1 %v11369_v50  ;;  %v11445_v50 = vld [vmem:[#allocation22 + $0xa0] ss:$60 sps:$4 sm:$0xff]  }
 0x7fa   :  { %8120 = vmatpush1.bf16.msra.mxu0 %v11364_v12  ;;  %v11450_v12 = vld [vmem:[#allocation22 + $0x114] ss:$60 sps:$4 sm:$0xff]  }
 0x7fb   :  { %8202 = vmatpush1.bf16.msra.mxu1 %v11367_v13  ;;  %8121 = vmatprep.subr.bf16.mxu0 %v11372_v16  ;;  %v11453_v13 = vld [vmem:[#allocation22 + $0x11c] ss:$60 sps:$4 sm:$0xff]   ;;  %v11448_v16 = vld [vmem:[#allocation22 + $0x110] ss:$60 sps:$4 sm:$0xff]  }
 0x7fc   :  { %8203 = vmatprep.subr.bf16.mxu1 %v11375_v17  ;;  %v11451_v17 = vld [vmem:[#allocation22 + $0x118] ss:$60 sps:$4 sm:$0xff]  }
 0x7fe   :  { %8122 = vmatpush1.bf16.msra.mxu0 %v11370_v58  ;;  %v11456_v58 = vld [vmem:[#allocation22 + $0x18c] ss:$60 sps:$4 sm:$0xff]  }
 0x7ff   :  { %8204 = vmatpush1.bf16.msra.mxu1 %v11373_v18  ;;  %8123 = vmatprep.subr.bf16.mxu0 %v11378_v19  ;;  %v11459_v18 = vld [vmem:[#allocation22 + $0x194] ss:$60 sps:$4 sm:$0xff]   ;;  %v11454_v19 = vld [vmem:[#allocation22 + $0x188] ss:$60 sps:$4 sm:$0xff]  }
 0x800   :  { %8205 = vmatprep.subr.bf16.mxu1 %v11381_v20  ;;  %v11457_v20 = vld [vmem:[#allocation22 + $0x190] ss:$60 sps:$4 sm:$0xff]  }
 0x802   :  { %8124 = vmatpush1.bf16.msra.mxu0 %v11376_v21  ;;  %v11462_v21 = vld [vmem:[#allocation22 + $0x204] ss:$60 sps:$4 sm:$0xff]  }
 0x803   :  { %8206 = vmatpush1.bf16.msra.mxu1 %v11379_v22  ;;  %8125 = vmatprep.subr.bf16.mxu0 %v11384_v23  ;;  %v11465_v22 = vld [vmem:[#allocation22 + $0x20c] ss:$60 sps:$4 sm:$0xff]   ;;  %v11460_v23 = vld [vmem:[#allocation22 + $0x200] ss:$60 sps:$4 sm:$0xff]  }
 0x804   :  { %8207 = vmatprep.subr.bf16.mxu1 %v11387_v24  ;;  %v11463_v24 = vld [vmem:[#allocation22 + $0x208] ss:$60 sps:$4 sm:$0xff]  }
 0x806   :  { %8126 = vmatpush1.bf16.msra.mxu0 %v11382_v27  ;;  %v11468_v27 = vld [vmem:[#allocation22 + $0x27c] ss:$60 sps:$4 sm:$0xff]  }
 0x807   :  { %8208 = vmatpush1.bf16.msra.mxu1 %v11385_v46  ;;  %8127 = vmatprep.subr.bf16.mxu0 %v11390_v30  ;;  %v11471_v46 = vld [vmem:[#allocation22 + $0x284] ss:$60 sps:$4 sm:$0xff]   ;;  %v11466_v30 = vld [vmem:[#allocation22 + $0x278] ss:$60 sps:$4 sm:$0xff]  }
 0x808   :  { %8209 = vmatprep.subr.bf16.mxu1 %v11393_v4  ;;  %v11469_v4 = vld [vmem:[#allocation22 + $0x280] ss:$60 sps:$4 sm:$0xff]  }
 0x80a   :  { %8128 = vmatpush1.bf16.msra.mxu0 %v11388_v31  ;;  %v11474_v31 = vld [vmem:[#allocation22 + $0x2f4] ss:$60 sps:$4 sm:$0xff]  }
 0x80b   :  { %8210 = vmatpush1.bf16.msra.mxu1 %v11391_v32  ;;  %8129 = vmatprep.subr.bf16.mxu0 %v11396_v35  ;;  %v11477_v32 = vld [vmem:[#allocation22 + $0x2fc] ss:$60 sps:$4 sm:$0xff]   ;;  %v11472_v35 = vld [vmem:[#allocation22 + $0x2f0] ss:$60 sps:$4 sm:$0xff]  }
 0x80c   :  { %8211 = vmatprep.subr.bf16.mxu1 %v11399_v36  ;;  %v11475_v36 = vld [vmem:[#allocation22 + $0x2f8] ss:$60 sps:$4 sm:$0xff]  }
 0x80e   :  { %8130 = vmatpush1.bf16.msra.mxu0 %v11394_v37  ;;  %v11480_v37 = vld [vmem:[#allocation22 + $0x36c] ss:$60 sps:$4 sm:$0xff]  }
 0x80f   :  { %8212 = vmatpush1.bf16.msra.mxu1 %v11397_v38  ;;  %8131 = vmatprep.subr.bf16.mxu0 %v11402_v15  ;;  %v11483_v38 = vld [vmem:[#allocation22 + $0x374] ss:$60 sps:$4 sm:$0xff]   ;;  %v11478_v15 = vld [vmem:[#allocation22 + $0x368] ss:$60 sps:$4 sm:$0xff]  }
 0x810   :  { %8213 = vmatprep.subr.bf16.mxu1 %v11405_v48  ;;  %v11481_v48 = vld [vmem:[#allocation22 + $0x370] ss:$60 sps:$4 sm:$0xff]  }
 0x812   :  { %8132 = vmatpush1.bf16.msra.mxu0 %v11400_v41  ;;  %v11486_v41 = vld [vmem:[#allocation22 + $0x3e4] ss:$60 sps:$4 sm:$0xff]  }
 0x813   :  { %8214 = vmatpush1.bf16.msra.mxu1 %v11403_v42  ;;  %8133 = vmatprep.subr.bf16.mxu0 %v11408_v59  ;;  %v11489_v42 = vld [vmem:[#allocation22 + $0x3ec] ss:$60 sps:$4 sm:$0xff]   ;;  %v11484_v59 = vld [vmem:[#allocation22 + $0x3e0] ss:$60 sps:$4 sm:$0xff]  }
 0x814   :  { %8215 = vmatprep.subr.bf16.mxu1 %v11411_v43  ;;  %v11487_v43 = vld [vmem:[#allocation22 + $0x3e8] ss:$60 sps:$4 sm:$0xff]  }
 0x816   :  { %8134 = vmatpush1.bf16.msra.mxu0 %v11406_v44  ;;  %v11492_v44 = vld [vmem:[#allocation22 + $0x45c] ss:$60 sps:$4 sm:$0xff]  }
 0x817   :  { %8216 = vmatpush1.bf16.msra.mxu1 %v11409_v14  ;;  %8135 = vmatprep.subr.bf16.mxu0 %v11414_v47  ;;  %v11495_v14 = vld [vmem:[#allocation22 + $0x464] ss:$60 sps:$4 sm:$0xff]   ;;  %v11490_v47 = vld [vmem:[#allocation22 + $0x458] ss:$60 sps:$4 sm:$0xff]  }
 0x818   :  { %8217 = vmatprep.subr.bf16.mxu1 %v11417_v0  ;;  %v11493_v0 = vld [vmem:[#allocation22 + $0x460] ss:$60 sps:$4 sm:$0xff]  }
 0x81a   :  { %8136 = vmatpush1.bf16.msra.mxu0 %v11412_v39  ;;  %v11498_v39 = vld [vmem:[#allocation22 + $0x4d4] ss:$60 sps:$4 sm:$0xff]  }
 0x81b   :  { %8218 = vmatpush1.bf16.msra.mxu1 %v11415_v40  ;;  %8137 = vmatprep.subr.bf16.mxu0 %v11420_v28  ;;  %v11501_v40 = vld [vmem:[#allocation22 + $0x4dc] ss:$60 sps:$4 sm:$0xff]   ;;  %v11496_v28 = vld [vmem:[#allocation22 + $0x4d0] ss:$60 sps:$4 sm:$0xff]  }
 0x81c   :  { %8219 = vmatprep.subr.bf16.mxu1 %v11423_v49  ;;  %v11499_v49 = vld [vmem:[#allocation22 + $0x4d8] ss:$60 sps:$4 sm:$0xff]  }
 0x81e   :  { %8138 = vmatpush1.bf16.msra.mxu0 %v11418_v52  ;;  %v11504_v52 = vld [vmem:[#allocation22 + $0x54c] ss:$60 sps:$4 sm:$0xff]  }
 0x81f   :  { %8220 = vmatpush1.bf16.msra.mxu1 %v11421_v54  ;;  %8139 = vmatprep.subr.bf16.mxu0 %v11426_v55  ;;  %v11507_v54 = vld [vmem:[#allocation22 + $0x554] ss:$60 sps:$4 sm:$0xff]   ;;  %v11502_v55 = vld [vmem:[#allocation22 + $0x548] ss:$60 sps:$4 sm:$0xff]  }
 0x820   :  { %8221 = vmatprep.subr.bf16.mxu1 %v11429_v56  ;;  %v11505_v56 = vld [vmem:[#allocation22 + $0x550] ss:$60 sps:$4 sm:$0xff]  }
 0x822   :  { %8140 = vmatpush1.bf16.msra.mxu0 %v11424_v60  ;;  %v11510_v60 = vld [vmem:[#allocation22 + $0x5c4] ss:$60 sps:$4 sm:$0xff]  }
 0x823   :  { %8222 = vmatpush1.bf16.msra.mxu1 %v11427_v61  ;;  %8141 = vmatprep.subr.bf16.mxu0 %v11432_v51  ;;  %v11513_v61 = vld [vmem:[#allocation22 + $0x5cc] ss:$60 sps:$4 sm:$0xff]   ;;  %v11508_v51 = vld [vmem:[#allocation22 + $0x5c0] ss:$60 sps:$4 sm:$0xff]  }
 0x824   :  { %8223 = vmatprep.subr.bf16.mxu1 %v11435_v62  ;;  %v11511_v62 = vld [vmem:[#allocation22 + $0x5c8] ss:$60 sps:$4 sm:$0xff]  }
 0x826   :  { %8142 = vmatpush1.bf16.msra.mxu0 %v11430_v63  ;;  %v11516_v63 = vld [vmem:[#allocation22 + $0x63c] ss:$60 sps:$4 sm:$0xff]  }
 0x827   :  { %8224 = vmatpush1.bf16.msra.mxu1 %v11433_v1  ;;  %8234 = vmatprep.subr.bf16.mxu0 %v11438_v2  ;;  %v11519_v1 = vld [vmem:[#allocation22 + $0x644] ss:$60 sps:$4 sm:$0xff]   ;;  %v11514_v2 = vld [vmem:[#allocation22 + $0x638] ss:$60 sps:$4 sm:$0xff]  }
 0x828   :  { %8316 = vmatprep.subr.bf16.mxu1 %v11441_v3  ;;  %v11517_v3 = vld [vmem:[#allocation22 + $0x640] ss:$60 sps:$4 sm:$0xff]  }
 0x829   :  { %8144 = vmatmul.mubr.bf16.vlgmr.msra.gmra.mrb[20].mxu0 %v12683_v45 }
 0x82a   :  { %8226 = vmatmul.mubr.bf16.vlgmr.msra.gmra.mrb[24].mxu1 %v12683_v45  ;;  %8235 = vmatpush1.bf16.msra.mxu0 %v11436_v5  ;;  %v11522_v5 = vld [vmem:[#allocation22 + $0x6b4] ss:$60 sps:$4 sm:$0xff]  }
 0x82b   :  { %8266 = vmatprep.mubr.bf16.mxu0 %v12668_v29  ;;  %8317 = vmatpush1.bf16.msra.mxu1 %v11439_v6  ;;  %v11525_v6 = vld [vmem:[#allocation22 + $0x6bc] ss:$60 sps:$4 sm:$0xff]  }
 0x82c   :  { %8348 = vmatprep.mubr.bf16.mxu1 %v12668_v29  ;;  %8236 = vmatprep.subr.bf16.mxu0 %v11444_v7  ;;  %v11520_v7 = vld [vmem:[#allocation22 + $0x6b0] ss:$60 sps:$4 sm:$0xff]  }
 0x82d   :  { %8318 = vmatprep.subr.bf16.mxu1 %v11447_v10  ;;  %v11523_v10 = vld [vmem:[#allocation22 + $0x6b8] ss:$60 sps:$4 sm:$0xff]  }
 0x82e   :  { %8237 = vmatpush1.bf16.msra.mxu0 %v11442_v11  ;;  %v11528_v11 = vld [vmem:[#allocation22 + $0x72c] ss:$60 sps:$4 sm:$0xff]  }
 0x82f   :  { %8319 = vmatpush1.bf16.msra.mxu1 %v11445_v50  ;;  %8238 = vmatprep.subr.bf16.mxu0 %v11450_v12  ;;  %v11531_v50 = vld [vmem:[#allocation22 + $0x734] ss:$60 sps:$4 sm:$0xff]   ;;  %v11526_v12 = vld [vmem:[#allocation22 + $0x728] ss:$60 sps:$4 sm:$0xff]  }
 0x830   :  { %8320 = vmatprep.subr.bf16.mxu1 %v11453_v13  ;;  %v11529_v13 = vld [vmem:[#allocation22 + $0x730] ss:$60 sps:$4 sm:$0xff]  }
 0x832   :  { %8239 = vmatpush1.bf16.msra.mxu0 %v11448_v16  ;;  %v11534_v16 = vld [vmem:[#allocation22 + $0x7a4] ss:$60 sps:$4 sm:$0xff]  }
 0x833   :  { %8321 = vmatpush1.bf16.msra.mxu1 %v11451_v17  ;;  %8240 = vmatprep.subr.bf16.mxu0 %v11456_v58  ;;  %v11537_v17 = vld [vmem:[#allocation22 + $0x7ac] ss:$60 sps:$4 sm:$0xff]   ;;  %v11532_v58 = vld [vmem:[#allocation22 + $0x7a0] ss:$60 sps:$4 sm:$0xff]  }
 0x834   :  { %8322 = vmatprep.subr.bf16.mxu1 %v11459_v18  ;;  %v11535_v18 = vld [vmem:[#allocation22 + $0x7a8] ss:$60 sps:$4 sm:$0xff]  }
 0x836   :  { %8241 = vmatpush1.bf16.msra.mxu0 %v11454_v19  ;;  %v11540_v19 = vld [vmem:[#allocation22 + $0x81c] ss:$60 sps:$4 sm:$0xff]  }
 0x837   :  { %8323 = vmatpush1.bf16.msra.mxu1 %v11457_v20  ;;  %8242 = vmatprep.subr.bf16.mxu0 %v11462_v21  ;;  %v11543_v20 = vld [vmem:[#allocation22 + $0x824] ss:$60 sps:$4 sm:$0xff]   ;;  %v11538_v21 = vld [vmem:[#allocation22 + $0x818] ss:$60 sps:$4 sm:$0xff]  }
 0x838   :  { %8324 = vmatprep.subr.bf16.mxu1 %v11465_v22  ;;  %v11541_v22 = vld [vmem:[#allocation22 + $0x820] ss:$60 sps:$4 sm:$0xff]  }
 0x83a   :  { %8243 = vmatpush1.bf16.msra.mxu0 %v11460_v23  ;;  %v11546_v23 = vld [vmem:[#allocation22 + $0x894] ss:$60 sps:$4 sm:$0xff]  }
 0x83b   :  { %8325 = vmatpush1.bf16.msra.mxu1 %v11463_v24  ;;  %8244 = vmatprep.subr.bf16.mxu0 %v11468_v27  ;;  %v11549_v24 = vld [vmem:[#allocation22 + $0x89c] ss:$60 sps:$4 sm:$0xff]   ;;  %v11544_v27 = vld [vmem:[#allocation22 + $0x890] ss:$60 sps:$4 sm:$0xff]  }
 0x83c   :  { %8326 = vmatprep.subr.bf16.mxu1 %v11471_v46  ;;  %v11547_v46 = vld [vmem:[#allocation22 + $0x898] ss:$60 sps:$4 sm:$0xff]  }
 0x83e   :  { %8245 = vmatpush1.bf16.msra.mxu0 %v11466_v30  ;;  %v11552_v30 = vld [vmem:[#allocation22 + $0x90c] ss:$60 sps:$4 sm:$0xff]  }
 0x83f   :  { %8327 = vmatpush1.bf16.msra.mxu1 %v11469_v4  ;;  %8246 = vmatprep.subr.bf16.mxu0 %v11474_v31  ;;  %v11555_v4 = vld [vmem:[#allocation22 + $0x914] ss:$60 sps:$4 sm:$0xff]   ;;  %v11550_v31 = vld [vmem:[#allocation22 + $0x908] ss:$60 sps:$4 sm:$0xff]  }
 0x840   :  { %8328 = vmatprep.subr.bf16.mxu1 %v11477_v32  ;;  %v11553_v32 = vld [vmem:[#allocation22 + $0x910] ss:$60 sps:$4 sm:$0xff]  }
 0x842   :  { %8247 = vmatpush1.bf16.msra.mxu0 %v11472_v35  ;;  %v11558_v35 = vld [vmem:[#allocation22 + $0x984] ss:$60 sps:$4 sm:$0xff]  }
 0x843   :  { %8329 = vmatpush1.bf16.msra.mxu1 %v11475_v36  ;;  %8248 = vmatprep.subr.bf16.mxu0 %v11480_v37  ;;  %v11561_v36 = vld [vmem:[#allocation22 + $0x98c] ss:$60 sps:$4 sm:$0xff]   ;;  %v11556_v37 = vld [vmem:[#allocation22 + $0x980] ss:$60 sps:$4 sm:$0xff]  }
 0x844   :  { %8330 = vmatprep.subr.bf16.mxu1 %v11483_v38  ;;  %v12701_v38 = vld [vmem:[#allocation23] sm:$0xff] }
 0x846   :  { %8249 = vmatpush1.bf16.msra.mxu0 %v11478_v15  ;;  %v11559_v15 = vld [vmem:[#allocation22 + $0x988] ss:$60 sps:$4 sm:$0xff]  }
 0x847   :  { %8331 = vmatpush1.bf16.msra.mxu1 %v11481_v48  ;;  %8250 = vmatprep.subr.bf16.mxu0 %v11486_v41  ;;  %v11564_v48 = vld [vmem:[#allocation22 + $0x9fc] ss:$60 sps:$4 sm:$0xff]   ;;  %v11567_v41 = vld [vmem:[#allocation22 + $0xa04] ss:$60 sps:$4 sm:$0xff]  }
 0x848   :  { %8332 = vmatprep.subr.bf16.mxu1 %v11489_v42  ;;  %v5402_v42 = vrot.slane %v12701_v38, %v12636_v25 }
 0x84a   :  { %8251 = vmatpush1.bf16.msra.mxu0 %v11484_v59  ;;  %v5410_v59 = vrot.slane %v12701_v38, %v12647_v8 }
 0x84b   :  { %8333 = vmatpush1.bf16.msra.mxu1 %v11487_v43  ;;  %8252 = vmatprep.subr.bf16.mxu0 %v11492_v44  ;;  %v5406_v43 = vrot.slane %v12701_v38, %v12639_v53  ;;  %v5414_v44 = vrot.slane %v12701_v38, %v12650_v9 }
 0x84c   :  { %8334 = vmatprep.subr.bf16.mxu1 %v11495_v14  ;;  %v11562_v14 = vld [vmem:[#allocation22 + $0x9f8] ss:$60 sps:$4 sm:$0xff]  }
 0x84e   :  { %8253 = vmatpush1.bf16.msra.mxu0 %v11490_v47  ;;  %v11565_v47 = vld [vmem:[#allocation22 + $0xa00] ss:$60 sps:$4 sm:$0xff]  }
 0x84f   :  { %8335 = vmatpush1.bf16.msra.mxu1 %v11493_v0  ;;  %8254 = vmatprep.subr.bf16.mxu0 %v11498_v39  ;;  %v11570_v0 = vld [vmem:[#allocation22 + $0xa74] ss:$60 sps:$4 sm:$0xff]  }
 0x850   :  { %8336 = vmatprep.subr.bf16.mxu1 %v11501_v40 }
 0x852   :  { %8255 = vmatpush1.bf16.msra.mxu0 %v11496_v28  ;;  %v11573_v28 = vld [vmem:[#allocation22 + $0xa7c] ss:$60 sps:$4 sm:$0xff]  }
 0x853   :  { %8337 = vmatpush1.bf16.msra.mxu1 %v11499_v49  ;;  %8256 = vmatprep.subr.bf16.mxu0 %v11504_v52 }
 0x854   :  { %8338 = vmatprep.subr.bf16.mxu1 %v11507_v54 }
 0x856   :  { %8257 = vmatpush1.bf16.msra.mxu0 %v11502_v55 }
 0x857   :  { %8339 = vmatpush1.bf16.msra.mxu1 %v11505_v56  ;;  %8258 = vmatprep.subr.bf16.mxu0 %v11510_v60  ;;  %v11568_v56 = vld [vmem:[#allocation22 + $0xa70] ss:$60 sps:$4 sm:$0xff]  }
 0x858   :  { %8340 = vmatprep.subr.bf16.mxu1 %v11513_v61 }
 0x85a   :  { %8259 = vmatpush1.bf16.msra.mxu0 %v11508_v51 }
 0x85b   :  { %8341 = vmatpush1.bf16.msra.mxu1 %v11511_v62  ;;  %8260 = vmatprep.subr.bf16.mxu0 %v11516_v63  ;;  %v11571_v63 = vld [vmem:[#allocation22 + $0xa78] ss:$60 sps:$4 sm:$0xff]  }
 0x85c   :  { %8342 = vmatprep.subr.bf16.mxu1 %v11519_v1  ;;  %v11576_v1 = vld [vmem:[#allocation22 + $0xaec] ss:$60 sps:$4 sm:$0xff]  }
 0x85e   :  { %8261 = vmatpush1.bf16.msra.mxu0 %v11514_v2 }
 0x85f   :  { %8343 = vmatpush1.bf16.msra.mxu1 %v11517_v3  ;;  %8262 = vmatprep.subr.bf16.mxu0 %v11522_v5 }
 0x860   :  { %8344 = vmatprep.subr.bf16.mxu1 %v11525_v6 }
 0x862   :  { %8263 = vmatpush1.bf16.msra.mxu0 %v11520_v7 }
 0x863   :  { %8345 = vmatpush1.bf16.msra.mxu1 %v11523_v10  ;;  %8264 = vmatprep.subr.bf16.mxu0 %v11528_v11  ;;  %v11579_v11 = vld [vmem:[#allocation22 + $0xaf4] ss:$60 sps:$4 sm:$0xff]  }
 0x864   :  { %8346 = vmatprep.subr.bf16.mxu1 %v11531_v50  ;;  %v11574_v50 = vld [vmem:[#allocation22 + $0xae8] ss:$60 sps:$4 sm:$0xff]  }
 0x866   :  { %8265 = vmatpush1.bf16.msra.mxu0 %v11526_v12  ;;  %v11577_v12 = vld [vmem:[#allocation22 + $0xaf0] ss:$60 sps:$4 sm:$0xff]  }
 0x867   :  { %8347 = vmatpush1.bf16.msra.mxu1 %v11529_v13  ;;  %8275 = vmatprep.subr.bf16.mxu0 %v11534_v16  ;;  %v11582_v13 = vld [vmem:[#allocation22 + $0xb64] ss:$60 sps:$4 sm:$0xff]   ;;  %v11585_v16 = vld [vmem:[#allocation22 + $0xb6c] ss:$60 sps:$4 sm:$0xff]  }
 0x868   :  { %8357 = vmatprep.subr.bf16.mxu1 %v11537_v17  ;;  %v11580_v17 = vld [vmem:[#allocation22 + $0xb60] ss:$60 sps:$4 sm:$0xff]  }
 0x869   :  { %8267 = vmatmul.mubr.bf16.vlgmr.msra.gmra.mrb[24].mxu0 %v12670_v57 }
 0x86a   :  { %8349 = vmatmul.mubr.bf16.vlgmr.msra.gmra.mrb[28].mxu1 %v12670_v57  ;;  %8276 = vmatpush1.bf16.msra.mxu0 %v11532_v58  ;;  %v11583_v58 = vld [vmem:[#allocation22 + $0xb68] ss:$60 sps:$4 sm:$0xff]  }
 0x86b   :  { %8307 = vmatprep.mubr.bf16.mxu0 %v12674_v33  ;;  %8358 = vmatpush1.bf16.msra.mxu1 %v11535_v18  ;;  %v11588_v18 = vld [vmem:[#allocation22 + $0xbdc] ss:$60 sps:$4 sm:$0xff]  }
 0x86c   :  { %8389 = vmatprep.mubr.bf16.mxu1 %v12674_v33  ;;  %8277 = vmatprep.subr.bf16.mxu0 %v11540_v19  ;;  %v11591_v19 = vld [vmem:[#allocation22 + $0xbe4] ss:$60 sps:$4 sm:$0xff]  }
 0x86d   :  { %8359 = vmatprep.subr.bf16.mxu1 %v11543_v20  ;;  %v11586_v20 = vld [vmem:[#allocation22 + $0xbd8] ss:$60 sps:$4 sm:$0xff]  }
 0x86e   :  { %8278 = vmatpush1.bf16.msra.mxu0 %v11538_v21 }
 0x86f   :  { %8360 = vmatpush1.bf16.msra.mxu1 %v11541_v22  ;;  %8279 = vmatprep.subr.bf16.mxu0 %v11546_v23  ;;  %v11589_v22 = vld [vmem:[#allocation22 + $0xbe0] ss:$60 sps:$4 sm:$0xff]   ;;  %v11594_v23 = vld [vmem:[#allocation22 + $0xc54] ss:$60 sps:$4 sm:$0xff]  }
 0x870   :  { %8361 = vmatprep.subr.bf16.mxu1 %v11549_v24 }
 0x872   :  { %8280 = vmatpush1.bf16.msra.mxu0 %v11544_v27 }
 0x873   :  { %8362 = vmatpush1.bf16.msra.mxu1 %v11547_v46  ;;  %8281 = vmatprep.subr.bf16.mxu0 %v11552_v30  ;;  %v11597_v46 = vld [vmem:[#allocation22 + $0xc5c] ss:$60 sps:$4 sm:$0xff]  }
 0x874   :  { %8363 = vmatprep.subr.bf16.mxu1 %v11555_v4 }
 0x876   :  { %8282 = vmatpush1.bf16.msra.mxu0 %v11550_v31 }
 0x877   :  { %8364 = vmatpush1.bf16.msra.mxu1 %v11553_v32  ;;  %8283 = vmatprep.subr.bf16.mxu0 %v11558_v35  ;;  %v11592_v35 = vld [vmem:[#allocation22 + $0xc50] ss:$60 sps:$4 sm:$0xff]  }
 0x878   :  { %8365 = vmatprep.subr.bf16.mxu1 %v11561_v36 }
 0x87a   :  { %8284 = vmatpush1.bf16.msra.mxu0 %v11556_v37  ;;  %v11595_v37 = vld [vmem:[#allocation22 + $0xc58] ss:$60 sps:$4 sm:$0xff]  }
 0x87b   :  { %8366 = vmatpush1.bf16.msra.mxu1 %v11559_v15  ;;  %8285 = vmatprep.subr.bf16.mxu0 %v11564_v48  ;;  %v11600_v15 = vld [vmem:[#allocation22 + $0xccc] ss:$60 sps:$4 sm:$0xff]   ;;  %v11603_v48 = vld [vmem:[#allocation22 + $0xcd4] ss:$60 sps:$4 sm:$0xff]  }
 0x87c   :  { %v7981_v39 = vpop.f32.mrb[16].mxu0  ;;  %v8063_v40 = vpop.f32.mrb[20].mxu1  ;;  %8367 = vmatprep.subr.bf16.mxu1 %v11567_v41  ;;  %v11598_v41 = vld [vmem:[#allocation22 + $0xcc8] ss:$60 sps:$4 sm:$0xff]  }
 0x87d   :  { %v10081_v49 = vadd.f32 %v7981_v39, %v5402_v42  ;;  %v10083_v52 = vadd.f32 %v8063_v40, %v5410_v59  ;;  %v7983_v54 = vpop.f32.mrb[17].mxu0  ;;  %v8065_v55 = vpop.f32.mrb[21].mxu1  ;;  %v11601_v42 = vld [vmem:[#allocation22 + $0xcd0] ss:$60 sps:$4 sm:$0xff]   ;;  %v11606_v59 = vld [vmem:[#allocation22 + $0xd44] ss:$60 sps:$4 sm:$0xff]  }
 0x87e   :  { %v10082_v60 = vadd.f32 %v7983_v54, %v5406_v43  ;;  %v10084_v61 = vadd.f32 %v8065_v55, %v5414_v44  ;;  %v7985_v51 = vpop.f32.mrb[18].mxu0  ;;  %v8067_v62 = vpop.f32.mrb[22].mxu1  ;;  %8286 = vmatpush1.bf16.msra.mxu0 %v11562_v14  ;;  %v11609_v43 = vld [vmem:[#allocation22 + $0xd4c] ss:$60 sps:$4 sm:$0xff]   ;;  %v11604_v44 = vld [vmem:[#allocation22 + $0xd40] ss:$60 sps:$4 sm:$0xff]  }
 0x87f   :  { %v9936_v2 = vmul.f32 -1.442695, %v10081_v49  ;;  %v9938_v3 = vmul.f32 -1.442695, %v10083_v52  ;;  %8368 = vmatpush1.bf16.msra.mxu1 %v11565_v47  ;;  %v7986_v5 = vpop.f32.mrb[19].mxu0  ;;  %v8068_v6 = vpop.f32.mrb[23].mxu1  ;;  %8287 = vmatprep.subr.bf16.mxu0 %v11570_v0 }
 0x880   :  { %v9937_v7 = vmul.f32 -1.442695, %v10082_v60  ;;  %v9939_v10 = vmul.f32 -1.442695, %v10084_v61  ;;  %8369 = vmatprep.subr.bf16.mxu1 %v11573_v28  ;;  %v11607_v14 = vld [vmem:[#allocation22 + $0xd48] ss:$60 sps:$4 sm:$0xff]  }
 0x881   :  { %11758 = vpow2.f32 %v9936_v2  ;;  %v11612_v47 = vld [vmem:[#allocation22 + $0xdbc] ss:$60 sps:$4 sm:$0xff]   ;;  %v11615_v39 = vld [vmem:[#allocation22 + $0xdc4] ss:$60 sps:$4 sm:$0xff]   ;;  %v11624_v2 = vld [vmem:[#allocation22 + $0xeac] ss:$60 sps:$4 sm:$0xff]  }
 0x882   :  { %11760 = vpow2.f32 %v9938_v3  ;;  %8288 = vmatpush1.bf16.msra.mxu0 %v11568_v56  ;;  %v11610_v49 = vld [vmem:[#allocation22 + $0xdb8] ss:$60 sps:$4 sm:$0xff]   ;;  %v11613_v55 = vld [vmem:[#allocation22 + $0xdc0] ss:$60 sps:$4 sm:$0xff]  }
 0x883   :  { %11762 = vpow2.f32 %v9937_v7  ;;  %8370 = vmatpush1.bf16.msra.mxu1 %v11571_v63  ;;  %8289 = vmatprep.subr.bf16.mxu0 %v11576_v1  ;;  %v11618_v56 = vld [vmem:[#allocation22 + $0xe34] ss:$60 sps:$4 sm:$0xff]   ;;  %v11621_v61 = vld [vmem:[#allocation22 + $0xe3c] ss:$60 sps:$4 sm:$0xff]   ;;  %v11622_v7 = vld [vmem:[#allocation22 + $0xea8] ss:$60 sps:$4 sm:$0xff]  }
 0x884   :  { %11764 = vpow2.f32 %v9939_v10  ;;  %8371 = vmatprep.subr.bf16.mxu1 %v11579_v11  ;;  %v11616_v63 = vld [vmem:[#allocation22 + $0xe30] ss:$60 sps:$4 sm:$0xff]   ;;  %v11619_v1 = vld [vmem:[#allocation22 + $0xe38] ss:$60 sps:$4 sm:$0xff]  }
 0x885   :  { %v11627_v6 = vld [vmem:[#allocation22 + $0xeb4] ss:$60 sps:$4 sm:$0xff]  }
 0x886   :  { %8290 = vmatpush1.bf16.msra.mxu0 %v11574_v50  ;;  %v11625_v10 = vld [vmem:[#allocation22 + $0xeb0] ss:$60 sps:$4 sm:$0xff]   ;;  %v11631_v50 = vld [vmem:[#allocation22 + $0x3f8] ss:$60 sps:$4 sm:$0xff]  }
 0x887   :  { %8372 = vmatpush1.bf16.msra.mxu1 %v11577_v12  ;;  %8291 = vmatprep.subr.bf16.mxu0 %v11582_v13  ;;  %v11630_v11 = vld [vmem:[#allocation22 + $0x34] ss:$60 sps:$4 sm:$0xff]  }
 0x888   :  { %8373 = vmatprep.subr.bf16.mxu1 %v11585_v16  ;;  %v11628_v12 = vld [vmem:[#allocation22 + $0x30] ss:$60 sps:$4 sm:$0xff]   ;;  %v11632_v13 = vld [vmem:[#allocation22 + $0x38] ss:$60 sps:$4 sm:$0xff]  }
 0x889   :  { %v11635_v16 = vld [vmem:[#allocation22 + $0xac] ss:$60 sps:$4 sm:$0xff]  }
 0x88a   :  { %8292 = vmatpush1.bf16.msra.mxu0 %v11580_v17  ;;  %v11636_v17 = vld [vmem:[#allocation22 + $0x470] ss:$60 sps:$4 sm:$0xff]  }
 0x88b   :  { %v11759_v21 = vpop.eup %11758  ;;  %8374 = vmatpush1.bf16.msra.mxu1 %v11583_v58  ;;  %8293 = vmatprep.subr.bf16.mxu0 %v11588_v18  ;;  %v11633_v58 = vld [vmem:[#allocation22 + $0xa8] ss:$60 sps:$4 sm:$0xff]   ;;  %v11637_v18 = vld [vmem:[#allocation22 + $0xb0] ss:$60 sps:$4 sm:$0xff]  }
 0x88c   :  { %v11761_v24 = vpop.eup %11760  ;;  %v8605_v27 = vadd.f32 1.0, %v11759_v21  ;;  %8375 = vmatprep.subr.bf16.mxu1 %v11591_v19  ;;  %v11640_v19 = vld [vmem:[#allocation22 + $0x124] ss:$60 sps:$4 sm:$0xff]  }
 0x88d   :  { %v11763_v30 = vpop.eup %11762  ;;  %v8607_v4 = vadd.f32 1.0, %v11761_v24  ;;  %v11638_v21 = vld [vmem:[#allocation22 + $0x120] ss:$60 sps:$4 sm:$0xff]  }
 0x88e   :  { %v11765_v31 = vpop.eup %11764  ;;  %11766 = vrcp.f32 %v8605_v27  ;;  %v8606_v32 = vadd.f32 1.0, %v11763_v30  ;;  %8294 = vmatpush1.bf16.msra.mxu0 %v11586_v20  ;;  %v11641_v20 = vld [vmem:[#allocation22 + $0x4e8] ss:$60 sps:$4 sm:$0xff]   ;;  %v11646_v24 = vld [vmem:[#allocation22 + $0x560] ss:$60 sps:$4 sm:$0xff]  }
 0x88f   :  { %11768 = vrcp.f32 %v8607_v4  ;;  %v8608_v36 = vadd.f32 1.0, %v11765_v31  ;;  %8376 = vmatpush1.bf16.msra.mxu1 %v11589_v22  ;;  %8295 = vmatprep.subr.bf16.mxu0 %v11594_v23  ;;  %v11642_v22 = vld [vmem:[#allocation22 + $0x128] ss:$60 sps:$4 sm:$0xff]   ;;  %v11645_v23 = vld [vmem:[#allocation22 + $0x19c] ss:$60 sps:$4 sm:$0xff]  }
 0x890   :  { %11770 = vrcp.f32 %v8606_v32  ;;  %8377 = vmatprep.subr.bf16.mxu1 %v11597_v46  ;;  %v11643_v27 = vld [vmem:[#allocation22 + $0x198] ss:$60 sps:$4 sm:$0xff]   ;;  %v11647_v46 = vld [vmem:[#allocation22 + $0x1a0] ss:$60 sps:$4 sm:$0xff]   ;;  %v11655_v32 = vld [vmem:[#allocation22 + $0x28c] ss:$60 sps:$4 sm:$0xff]  }
 0x891   :  { %11772 = vrcp.f32 %v8608_v36  ;;  %v11650_v30 = vld [vmem:[#allocation22 + $0x214] ss:$60 sps:$4 sm:$0xff]   ;;  %v11653_v36 = vld [vmem:[#allocation22 + $0x288] ss:$60 sps:$4 sm:$0xff]  }
 0x892   :  { %8296 = vmatpush1.bf16.msra.mxu0 %v11592_v35  ;;  %v11651_v4 = vld [vmem:[#allocation22 + $0x5d8] ss:$60 sps:$4 sm:$0xff]   ;;  %v11656_v35 = vld [vmem:[#allocation22 + $0x650] ss:$60 sps:$4 sm:$0xff]  }
 0x893   :  { %8378 = vmatpush1.bf16.msra.mxu1 %v11595_v37  ;;  %8297 = vmatprep.subr.bf16.mxu0 %v11600_v15  ;;  %v11652_v31 = vld [vmem:[#allocation22 + $0x218] ss:$60 sps:$4 sm:$0xff]   ;;  %v11657_v37 = vld [vmem:[#allocation22 + $0x290] ss:$60 sps:$4 sm:$0xff]   ;;  %v11660_v15 = vld [vmem:[#allocation22 + $0x304] ss:$60 sps:$4 sm:$0xff]  }
 0x894   :  { %8379 = vmatprep.subr.bf16.mxu1 %v11603_v48  ;;  %v11661_v48 = vld [vmem:[#allocation22 + $0x6c8] ss:$60 sps:$4 sm:$0xff]  }
 0x896   :  { %8298 = vmatpush1.bf16.msra.mxu0 %v11598_v41  ;;  %v11658_v41 = vld [vmem:[#allocation22 + $0x300] ss:$60 sps:$4 sm:$0xff]  }
 0x897   :  { %8380 = vmatpush1.bf16.msra.mxu1 %v11601_v42  ;;  %8299 = vmatprep.subr.bf16.mxu0 %v11606_v59  ;;  %v11662_v42 = vld [vmem:[#allocation22 + $0x308] ss:$60 sps:$4 sm:$0xff]   ;;  %v11665_v59 = vld [vmem:[#allocation22 + $0x37c] ss:$60 sps:$4 sm:$0xff]  }
 0x898   :  { %v11767_v0 = vpop.eup %11766  ;;  %8381 = vmatprep.subr.bf16.mxu1 %v11609_v43  ;;  %v11666_v43 = vld [vmem:[#allocation22 + $0x740] ss:$60 sps:$4 sm:$0xff]  }
 0x899   :  { %v11769_v40 = vpop.eup %11768 }
 0x89a   :  { %v11771_v28 = vpop.eup %11770  ;;  %8300 = vmatpush1.bf16.msra.mxu0 %v11604_v44  ;;  %v11663_v44 = vld [vmem:[#allocation22 + $0x378] ss:$60 sps:$4 sm:$0xff]  }
 0x89b   :  { %v11773_v52 = vpop.eup %11772  ;;  %v9951_v54 = vpack.c.bf16 %v11771_v28, %v11767_v0  ;;  %8382 = vmatpush1.bf16.msra.mxu1 %v11607_v14  ;;  %8301 = vmatprep.subr.bf16.mxu0 %v11612_v47  ;;  %v11667_v14 = vld [vmem:[#allocation22 + $0x380] ss:$60 sps:$4 sm:$0xff]   ;;  %v11670_v47 = vld [vmem:[#allocation22 + $0x3f4] ss:$60 sps:$4 sm:$0xff]   ;;  %v11675_v28 = vld [vmem:[#allocation22 + $0x46c] ss:$60 sps:$4 sm:$0xff]  }
 0x89c   :  { %v9952_v60 = vpack.c.bf16 %v11773_v52, %v11769_v40  ;;  %8383 = vmatprep.subr.bf16.mxu1 %v11615_v39  ;;  %v11671_v0 = vld [vmem:[#allocation22 + $0xb78] ss:$60 sps:$4 sm:$0xff]   ;;  %v11668_v39 = vld [vmem:[#allocation22 + $0x3f0] ss:$60 sps:$4 sm:$0xff]   ;;  %v11673_v52 = vld [vmem:[#allocation22 + $0x468] ss:$60 sps:$4 sm:$0xff]  }
 0x89d   :  { %v12712_v51 = vrot.slane %v9951_v54, %v12520_v34  ;;  %v11672_v40 = vld [vmem:[#allocation22 + $0x7b8] ss:$60 sps:$4 sm:$0xff]   ;;  %v11677_v54 = vld [vmem:[#allocation22 + $0x830] ss:$60 sps:$4 sm:$0xff]  }
 0x89e   :  { %v12715_v62 = vrot.slane %v9952_v60, %v12520_v34  ;;  %8302 = vmatpush1.bf16.msra.mxu0 %v11610_v49  ;;  %v11676_v49 = vld [vmem:[#allocation22 + $0xbf0] ss:$60 sps:$4 sm:$0xff]   ;;  %v11678_v60 = vld [vmem:[#allocation22 + $0x4e0] ss:$60 sps:$4 sm:$0xff]  }
 0x89f   :  { %8384 = vmatpush1.bf16.msra.mxu1 %v11613_v55  ;;  %8303 = vmatprep.subr.bf16.mxu0 %v11618_v56  ;;  %v11680_v55 = vld [vmem:[#allocation22 + $0x4e4] ss:$60 sps:$4 sm:$0xff]  }
 0x8a0   :  { %v8712_v3 = vcombine.low %v12712_v51, %v12715_v62  ;;  %v8713_v5 = vcombine.high %v12712_v51, %v12715_v62  ;;  %8385 = vmatprep.subr.bf16.mxu1 %v11621_v61  ;;  %v11681_v56 = vld [vmem:[#allocation22 + $0xc68] ss:$60 sps:$4 sm:$0xff]  }
 0x8a1   :  { %v11682_v61 = vld [vmem:[#allocation22 + $0x8a8] ss:$60 sps:$4 sm:$0xff]  }
 0x8a2   :  { %8304 = vmatpush1.bf16.msra.mxu0 %v11616_v63  ;;  %v11685_v63 = vld [vmem:[#allocation22 + $0x55c] ss:$60 sps:$4 sm:$0xff]   ;;  %v12757_v51 = vld [vmem:[#allocation23 + $0x8] sm:$0xff] }
 0x8a3   :  { %8386 = vmatpush1.bf16.msra.mxu1 %v11619_v1  ;;  %8305 = vmatprep.subr.bf16.mxu0 %v11624_v2  ;;  %v11686_v1 = vld [vmem:[#allocation22 + $0xce0] ss:$60 sps:$4 sm:$0xff]   ;;  %v11683_v2 = vld [vmem:[#allocation22 + $0x558] ss:$60 sps:$4 sm:$0xff]   ;;  %v5434_v62 = vrot.slane %v12757_v51, %v12636_v25 }
 0x8a4   :  { %8387 = vmatprep.subr.bf16.mxu1 %v11627_v6  ;;  %v11687_v6 = vld [vmem:[#allocation22 + $0x920] ss:$60 sps:$4 sm:$0xff]  }
 0x8a6   :  { %8306 = vmatpush1.bf16.msra.mxu0 %v11622_v7  ;;  %v11690_v7 = vld [vmem:[#allocation22 + $0x5d4] ss:$60 sps:$4 sm:$0xff]  }
 0x8a7   :  { %8388 = vmatpush1.bf16.msra.mxu1 %v11625_v10  ;;  %8398 = vmatprep.subr.bf16.mxu0 %v11630_v11  ;;  %v11691_v10 = vld [vmem:[#allocation22 + $0xd58] ss:$60 sps:$4 sm:$0xff]   ;;  %v11688_v11 = vld [vmem:[#allocation22 + $0x5d0] ss:$60 sps:$4 sm:$0xff]  }
 0x8a8   :  { %10011 = vmatprep.subr.bf16.mxu1 %v11631_v50  ;;  %v11692_v50 = vld [vmem:[#allocation22 + $0x998] ss:$60 sps:$4 sm:$0xff]  }
 0x8a9   :  { %8308 = vmatmul.mubr.bf16.vlgmr.msra.gmra.mrb[24].mxu0 %v12683_v45 }
 0x8aa   :  { %8390 = vmatmul.mubr.bf16.vlgmr.msra.gmra.mrb[28].mxu1 %v12683_v45  ;;  %8399 = vmatpush1.bf16.msra.mxu0 %v11628_v12  ;;  %v11695_v12 = vld [vmem:[#allocation22 + $0x64c] ss:$60 sps:$4 sm:$0xff]  }
 0x8ab   :  { %8430 = vmatprep.mubr.bf16.mxu0 %v12668_v29  ;;  %10012 = vmatpush3.bf16.msra.mxu1 %v11632_v13  ;;  %v11696_v13 = vld [vmem:[#allocation22 + $0xdd0] ss:$60 sps:$4 sm:$0xff]  }
 0x8ac   :  { %8512 = vmatprep.mubr.bf16.mxu1 %v12668_v29  ;;  %8400 = vmatprep.subr.bf16.mxu0 %v11635_v16  ;;  %v11648_v29 = vld [vmem:[#allocation22 + $0x210] ss:$60 sps:$4 sm:$0xff]   ;;  %v11693_v16 = vld [vmem:[#allocation22 + $0x648] ss:$60 sps:$4 sm:$0xff]  }
 0x8ad   :  { %10013 = vmatprep.subr.bf16.mxu1 %v11636_v17  ;;  %v11697_v17 = vld [vmem:[#allocation22 + $0xa10] ss:$60 sps:$4 sm:$0xff]  }
 0x8ae   :  { %8401 = vmatpush1.bf16.msra.mxu0 %v11633_v58  ;;  %v11700_v58 = vld [vmem:[#allocation22 + $0x6c4] ss:$60 sps:$4 sm:$0xff]  }
 0x8af   :  { %10014 = vmatpush3.bf16.msra.mxu1 %v11637_v18  ;;  %8402 = vmatprep.subr.bf16.mxu0 %v11640_v19  ;;  %v11701_v18 = vld [vmem:[#allocation22 + $0xe48] ss:$60 sps:$4 sm:$0xff]   ;;  %v11698_v19 = vld [vmem:[#allocation22 + $0x6c0] ss:$60 sps:$4 sm:$0xff]  }
 0x8b0   :  { %10015 = vmatprep.subr.bf16.mxu1 %v11641_v20  ;;  %v11702_v20 = vld [vmem:[#allocation22 + $0xa88] ss:$60 sps:$4 sm:$0xff]  }
 0x8b2   :  { %8403 = vmatpush1.bf16.msra.mxu0 %v11638_v21  ;;  %v11705_v21 = vld [vmem:[#allocation22 + $0x73c] ss:$60 sps:$4 sm:$0xff]  }
 0x8b3   :  { %10016 = vmatpush3.bf16.msra.mxu1 %v11642_v22  ;;  %8404 = vmatprep.subr.bf16.mxu0 %v11645_v23  ;;  %v11706_v22 = vld [vmem:[#allocation22 + $0xec0] ss:$60 sps:$4 sm:$0xff]   ;;  %v11703_v23 = vld [vmem:[#allocation22 + $0x738] ss:$60 sps:$4 sm:$0xff]  }
 0x8b4   :  { %10017 = vmatprep.subr.bf16.mxu1 %v11646_v24  ;;  %v11707_v24 = vld [vmem:[#allocation22 + $0xb00] ss:$60 sps:$4 sm:$0xff]  }
 0x8b6   :  { %8405 = vmatpush1.bf16.msra.mxu0 %v11643_v27  ;;  %v11710_v27 = vld [vmem:[#allocation22 + $0x7b4] ss:$60 sps:$4 sm:$0xff]  }
 0x8b7   :  { %10018 = vmatpush3.bf16.msra.mxu1 %v11647_v46  ;;  %8406 = vmatprep.subr.bf16.mxu0 %v11650_v30  ;;  %v11708_v46 = vld [vmem:[#allocation22 + $0x7b0] ss:$60 sps:$4 sm:$0xff]  }
 0x8b8   :  { %10019 = vmatprep.subr.bf16.mxu1 %v11651_v4  ;;  %v11713_v30 = vld [vmem:[#allocation22 + $0x82c] ss:$60 sps:$4 sm:$0xff]  }
 0x8b9   :  { %v11711_v4 = vld [vmem:[#allocation22 + $0x828] ss:$60 sps:$4 sm:$0xff]  }
 0x8ba   :  { %8407 = vmatpush1.bf16.msra.mxu0 %v11648_v29  ;;  %v11716_v29 = vld [vmem:[#allocation22 + $0x8a4] ss:$60 sps:$4 sm:$0xff]  }
 0x8bb   :  { %10020 = vmatpush3.bf16.msra.mxu1 %v11652_v31  ;;  %8408 = vmatprep.subr.bf16.mxu0 %v11655_v32  ;;  %v11714_v31 = vld [vmem:[#allocation22 + $0x8a0] ss:$60 sps:$4 sm:$0xff]  }
 0x8bc   :  { %10021 = vmatprep.subr.bf16.mxu1 %v11656_v35  ;;  %v11719_v32 = vld [vmem:[#allocation22 + $0x91c] ss:$60 sps:$4 sm:$0xff]  }
 0x8bd   :  { %v11717_v35 = vld [vmem:[#allocation22 + $0x918] ss:$60 sps:$4 sm:$0xff]  }
 0x8be   :  { %8409 = vmatpush1.bf16.msra.mxu0 %v11653_v36  ;;  %v11722_v36 = vld [vmem:[#allocation22 + $0x994] ss:$60 sps:$4 sm:$0xff]  }
 0x8bf   :  { %10022 = vmatpush3.bf16.msra.mxu1 %v11657_v37  ;;  %8410 = vmatprep.subr.bf16.mxu0 %v11660_v15  ;;  %v5417_v37 = vsub.s32 4, %v12517_v26  ;;  %v5425_v15 = vsub.s32 6, %v12517_v26 }
 0x8c0   :  { %10023 = vmatprep.subr.bf16.mxu1 %v11661_v48  ;;  %v5421_v48 = vsub.s32 5, %v12517_v26 }
 0x8c2   :  { %8411 = vmatpush1.bf16.msra.mxu0 %v11658_v41  ;;  %v11725_v41 = vld [vmem:[#allocation22 + $0xa0c] ss:$60 sps:$4 sm:$0xff]  }
 0x8c3   :  { %10024 = vmatpush3.bf16.msra.mxu1 %v11662_v42  ;;  %8412 = vmatprep.subr.bf16.mxu0 %v11665_v59  ;;  %v5418_v42 = vrot.slane %v12701_v38, %v5417_v37  ;;  %v5426_v59 = vrot.slane %v12701_v38, %v5425_v15 }
 0x8c4   :  { %10025 = vmatprep.subr.bf16.mxu1 %v11666_v43  ;;  %v5422_v43 = vrot.slane %v12701_v38, %v5421_v48 }
 0x8c6   :  { %8413 = vmatpush1.bf16.msra.mxu0 %v11663_v44  ;;  %v11723_v44 = vld [vmem:[#allocation22 + $0xa08] ss:$60 sps:$4 sm:$0xff]  }
 0x8c7   :  { %10026 = vmatpush3.bf16.msra.mxu1 %v11667_v14  ;;  %8414 = vmatprep.subr.bf16.mxu0 %v11670_v47  ;;  %v11728_v47 = vld [vmem:[#allocation22 + $0xa84] ss:$60 sps:$4 sm:$0xff]  }
 0x8c8   :  { %10033 = vmatprep.subr.bf16.mxu1 %v11671_v0 }
 0x8ca   :  { %8513 = vmatmul.mubr.bf16.vlgmr.msra.gmra.mrb[32].mxu1 %v12670_v57  ;;  %8415 = vmatpush1.bf16.msra.mxu0 %v11668_v39 }
 0x8cb   :  { %10034 = vmatpush3.bf16.msra.mxu1 %v11672_v40  ;;  %8552 = vmatprep.mubr.bf16.mxu1 %v12674_v33 }
 0x8cc   :  { %8416 = vmatprep.subr.bf16.mxu0 %v11675_v28  ;;  %10035 = vmatprep.subr.bf16.mxu1 %v11676_v49 }
 0x8ce   :  { %8417 = vmatpush1.bf16.msra.mxu0 %v11673_v52 }
 0x8cf   :  { %10036 = vmatpush3.bf16.msra.mxu1 %v11677_v54  ;;  %8418 = vmatprep.subr.bf16.mxu0 %v11680_v55 }
 0x8d0   :  { %10037 = vmatprep.subr.bf16.mxu1 %v11681_v56  ;;  %v11726_v56 = vld [vmem:[#allocation22 + $0xa80] ss:$60 sps:$4 sm:$0xff]  }
 0x8d2   :  { %8419 = vmatpush1.bf16.msra.mxu0 %v11678_v60 }
 0x8d3   :  { %10038 = vmatpush3.bf16.msra.mxu1 %v11682_v61  ;;  %8420 = vmatprep.subr.bf16.mxu0 %v11685_v63 }
 0x8d4   :  { %10039 = vmatprep.subr.bf16.mxu1 %v11686_v1 }
 0x8d6   :  { %8421 = vmatpush1.bf16.msra.mxu0 %v11683_v2  ;;  %v11731_v2 = vld [vmem:[#allocation22 + $0xafc] ss:$60 sps:$4 sm:$0xff]  }
 0x8d7   :  { %10040 = vmatpush3.bf16.msra.mxu1 %v11687_v6  ;;  %8422 = vmatprep.subr.bf16.mxu0 %v11690_v7 }
 0x8d8   :  { %10041 = vmatprep.subr.bf16.mxu1 %v11691_v10 }
 0x8da   :  { %8423 = vmatpush1.bf16.msra.mxu0 %v11688_v11  ;;  %v11729_v11 = vld [vmem:[#allocation22 + $0xaf8] ss:$60 sps:$4 sm:$0xff]  }
 0x8db   :  { %10042 = vmatpush3.bf16.msra.mxu1 %v11692_v50  ;;  %8424 = vmatprep.subr.bf16.mxu0 %v11695_v12  ;;  %v11734_v50 = vld [vmem:[#allocation22 + $0xb74] ss:$60 sps:$4 sm:$0xff]  }
 0x8dc   :  { %10043 = vmatprep.subr.bf16.mxu1 %v11696_v13  ;;  %v11732_v12 = vld [vmem:[#allocation22 + $0xb70] ss:$60 sps:$4 sm:$0xff]  }
 0x8dd   :  { %v11737_v13 = vld [vmem:[#allocation22 + $0xbec] ss:$60 sps:$4 sm:$0xff]  }
 0x8de   :  { %8425 = vmatpush1.bf16.msra.mxu0 %v11693_v16  ;;  %v11735_v16 = vld [vmem:[#allocation22 + $0xbe8] ss:$60 sps:$4 sm:$0xff]  }
 0x8df   :  { %10044 = vmatpush3.bf16.msra.mxu1 %v11697_v17  ;;  %8426 = vmatprep.subr.bf16.mxu0 %v11700_v58  ;;  %v11740_v58 = vld [vmem:[#allocation22 + $0xc64] ss:$60 sps:$4 sm:$0xff]  }
 0x8e0   :  { %10045 = vmatprep.subr.bf16.mxu1 %v11701_v18 }
 0x8e2   :  { %8427 = vmatpush1.bf16.msra.mxu0 %v11698_v19 }
 0x8e3   :  { %10046 = vmatpush3.bf16.msra.mxu1 %v11702_v20  ;;  %8428 = vmatprep.subr.bf16.mxu0 %v11705_v21 }
 0x8e4   :  { %10047 = vmatprep.subr.bf16.mxu1 %v11706_v22 }
 0x8e6   :  { %8429 = vmatpush1.bf16.msra.mxu0 %v11703_v23 }
 0x8e7   :  { %10048 = vmatpush3.bf16.msra.mxu1 %v11707_v24  ;;  %8439 = vmatprep.subr.bf16.mxu0 %v11710_v27  ;;  %v11738_v24 = vld [vmem:[#allocation22 + $0xc60] ss:$60 sps:$4 sm:$0xff]  }
 0x8e9   :  { %8431 = vmatmul.mubr.bf16.vlgmr.msra.gmra.mrb[28].mxu0 %v12670_v57  ;;  %v11720_v57 = vld [vmem:[#allocation22 + $0x990] ss:$60 sps:$4 sm:$0xff]  }
 0x8ea   :  { %8553 = vmatmul.mubr.bf16.vlgmr.msra.gmra.mrb[36].mxu1 %v12683_v45  ;;  %8440 = vmatpush1.bf16.msra.mxu0 %v11708_v46  ;;  %v11743_v46 = vld [vmem:[#allocation22 + $0xcdc] ss:$60 sps:$4 sm:$0xff]  }
 0x8eb   :  { %8471 = vmatprep.mubr.bf16.mxu0 %v12674_v33  ;;  %8441 = vmatprep.subr.bf16.mxu0 %v11713_v30  ;;  %v5429_v33 = vsub.s32 7, %v12517_v26  ;;  %v11741_v30 = vld [vmem:[#allocation22 + $0xcd8] ss:$60 sps:$4 sm:$0xff]  }
 0x8ed   :  { %v5430_v14 = vrot.slane %v12701_v38, %v5429_v33 }
 0x8ee   :  { %8442 = vmatpush1.bf16.msra.mxu0 %v11711_v4  ;;  %v11746_v4 = vld [vmem:[#allocation22 + $0xd54] ss:$60 sps:$4 sm:$0xff]  }
 0x8ef   :  { %8443 = vmatprep.subr.bf16.mxu0 %v11716_v29  ;;  %v11744_v29 = vld [vmem:[#allocation22 + $0xd50] ss:$60 sps:$4 sm:$0xff]  }
 0x8f2   :  { %8444 = vmatpush1.bf16.msra.mxu0 %v11714_v31  ;;  %v11749_v31 = vld [vmem:[#allocation22 + $0xdcc] ss:$60 sps:$4 sm:$0xff]  }
 0x8f3   :  { %8445 = vmatprep.subr.bf16.mxu0 %v11719_v32 }
 0x8f6   :  { %8446 = vmatpush1.bf16.msra.mxu0 %v11717_v35 }
 0x8f7   :  { %8447 = vmatprep.subr.bf16.mxu0 %v11722_v36 }
 0x8fa   :  { %8448 = vmatpush1.bf16.msra.mxu0 %v11720_v57  ;;  %v11747_v57 = vld [vmem:[#allocation22 + $0xdc8] ss:$60 sps:$4 sm:$0xff]  }
 0x8fb   :  { %8449 = vmatprep.subr.bf16.mxu0 %v11725_v41 }
 0x8fc   :  { %v8145_v0 = vpop.f32.mrb[20].mxu0 }
 0x8fd   :  { %v10085_v39 = vadd.f32 %v8145_v0, %v5418_v42  ;;  %v8227_v40 = vpop.f32.mrb[24].mxu1  ;;  %v8147_v28 = vpop.f32.mrb[21].mxu0  ;;  %v11752_v42 = vld [vmem:[#allocation22 + $0xe44] ss:$60 sps:$4 sm:$0xff]  }
 0x8fe   :  { %v10087_v49 = vadd.f32 %v8227_v40, %v5426_v59  ;;  %v10086_v52 = vadd.f32 %v8147_v28, %v5422_v43  ;;  %v8229_v54 = vpop.f32.mrb[25].mxu1  ;;  %v8149_v55 = vpop.f32.mrb[22].mxu0  ;;  %8450 = vmatpush1.bf16.msra.mxu0 %v11723_v44  ;;  %v8722_v40 = vrot.slane %v8712_v3, %v12520_v34  ;;  %v8729_v28 = vrot.slane %v8713_v5, %v12520_v34 }
 0x8ff   :  { %v9940_v60 = vmul.f32 -1.442695, %v10085_v39  ;;  %v10088_v61 = vadd.f32 %v8229_v54, %v5430_v14  ;;  %v8231_v63 = vpop.f32.mrb[26].mxu1  ;;  %v8150_v1 = vpop.f32.mrb[23].mxu0  ;;  %8451 = vmatprep.subr.bf16.mxu0 %v11728_v47  ;;  %v11750_v14 = vld [vmem:[#allocation22 + $0xe40] ss:$60 sps:$4 sm:$0xff]   ;;  %v5442_v3 = vrot.slane %v12757_v51, %v12647_v8  ;;  %v5438_v5 = vrot.slane %v12757_v51, %v12639_v53 }
 0x900   :  { %v9942_v6 = vmul.f32 -1.442695, %v10087_v49  ;;  %v9941_v38 = vmul.f32 -1.442695, %v10086_v52  ;;  %v8232_v7 = vpop.f32.mrb[27].mxu1  ;;  %v5446_v63 = vrot.slane %v12757_v51, %v12650_v9 }
 0x901   :  { %11774 = vpow2.f32 %v9940_v60  ;;  %v9943_v10 = vmul.f32 -1.442695, %v10088_v61  ;;  %v11755_v47 = vld [vmem:[#allocation22 + $0xebc] ss:$60 sps:$4 sm:$0xff]  }
 0x902   :  { %11776 = vpow2.f32 %v9942_v6  ;;  %8452 = vmatpush1.bf16.msra.mxu0 %v11726_v56  ;;  %v11753_v54 = vld [vmem:[#allocation22 + $0xeb8] ss:$60 sps:$4 sm:$0xff]  }
 0x903   :  { %11778 = vpow2.f32 %v9941_v38  ;;  %8453 = vmatprep.subr.bf16.mxu0 %v11731_v2 }
 0x904   :  { %11780 = vpow2.f32 %v9943_v10 }
 0x906   :  { %8454 = vmatpush1.bf16.msra.mxu0 %v11729_v11 }
 0x907   :  { %8455 = vmatprep.subr.bf16.mxu0 %v11734_v50 }
 0x90a   :  { %8456 = vmatpush1.bf16.msra.mxu0 %v11732_v12 }
 0x90b   :  { %v11775_v17 = vpop.eup %11774  ;;  %8457 = vmatprep.subr.bf16.mxu0 %v11737_v13 }
 0x90c   :  { %v11777_v18 = vpop.eup %11776  ;;  %v8609_v19 = vadd.f32 1.0, %v11775_v17 }
 0x90d   :  { %v11779_v20 = vpop.eup %11778  ;;  %v8611_v21 = vadd.f32 1.0, %v11777_v18 }
 0x90e   :  { %v11781_v22 = vpop.eup %11780  ;;  %11782 = vrcp.f32 %v8609_v19  ;;  %v8610_v23 = vadd.f32 1.0, %v11779_v20  ;;  %8458 = vmatpush1.bf16.msra.mxu0 %v11735_v16 }
 0x90f   :  { %11784 = vrcp.f32 %v8611_v21  ;;  %v8612_v27 = vadd.f32 1.0, %v11781_v22  ;;  %8459 = vmatprep.subr.bf16.mxu0 %v11740_v58 }
 0x910   :  { %11786 = vrcp.f32 %v8610_v23 }
 0x911   :  { %11788 = vrcp.f32 %v8612_v27 }
 0x912   :  { %8460 = vmatpush1.bf16.msra.mxu0 %v11738_v24 }
 0x913   :  { %8461 = vmatprep.subr.bf16.mxu0 %v11743_v46 }
 0x916   :  { %8462 = vmatpush1.bf16.msra.mxu0 %v11741_v30 }
 0x917   :  { %8463 = vmatprep.subr.bf16.mxu0 %v11746_v4 }
 0x918   :  { %v11783_v32 = vpop.eup %11782 }
 0x919   :  { %v11785_v35 = vpop.eup %11784 }
 0x91a   :  { %v11787_v36 = vpop.eup %11786  ;;  %8464 = vmatpush1.bf16.msra.mxu0 %v11744_v29 }
 0x91b   :  { %v11789_v33 = vpop.eup %11788  ;;  %v9953_v41 = vpack.c.bf16 %v11787_v36, %v11783_v32  ;;  %8465 = vmatprep.subr.bf16.mxu0 %v11749_v31 }
 0x91c   :  { %v9954_v59 = vpack.c.bf16 %v11789_v33, %v11785_v35 }
 0x91d   :  { %v8704_v43 = vrot.slane %v9953_v41, %v12520_v34 }
 0x91e   :  { %v8711_v44 = vrot.slane %v9954_v59, %v12520_v34  ;;  %8466 = vmatpush1.bf16.msra.mxu0 %v11747_v57 }
 0x91f   :  { %8467 = vmatprep.subr.bf16.mxu0 %v11752_v42 }
 0x920   :  { %v8714_v0 = vcombine.low %v8704_v43, %v8711_v44  ;;  %v8715_v39 = vcombine.high %v8704_v43, %v8711_v44  ;;  %v5458_v43 = vrot.slane %v12757_v51, %v5425_v15 }
 0x922   :  { %v8736_v49 = vrot.slane %v8714_v0, %v12520_v34  ;;  %v8743_v52 = vrot.slane %v8715_v39, %v12520_v34  ;;  %8468 = vmatpush1.bf16.msra.mxu0 %v11750_v14 }
 0x923   :  { %8469 = vmatprep.subr.bf16.mxu0 %v11755_v47 }
 0x924   :  { %v8744_v55 = vcombine.low %v8722_v40, %v8736_v49  ;;  %v8745_v56 = vcombine.high %v8722_v40, %v8736_v49  ;;  %v8746_v60 = vcombine.low %v8729_v28, %v8743_v52  ;;  %v8747_v61 = vcombine.high %v8729_v28, %v8743_v52 }
 0x925   :  { %v5450_v52 = vrot.slane %v12757_v51, %v5417_v37 }
 0x926   :  { %8823 = vst [vmem:[#allocation25] sm:$0xff] %v8744_v55  ;;  %8825 = vst [vmem:[#allocation25 + $0xf] sm:$0xff] %v8746_v60  ;;  %8470 = vmatpush1.bf16.msra.mxu0 %v11753_v54  ;;  %v5454_v54 = vrot.slane %v12757_v51, %v5421_v48 }
 0x927   :  { %8827 = vst [vmem:[#allocation25 + $0x1e] sm:$0xff] %v8745_v56  ;;  %8829 = vst [vmem:[#allocation25 + $0x2d] sm:$0xff] %v8747_v61 }
 0x929   :  { %8472 = vmatmul.mubr.bf16.vlgmr.msra.gmra.mrb[28].mxu0 %v12683_v45 }
 0x97c   :  { %v8309_v1 = vpop.f32.mrb[24].mxu0 }
 0x97d   :  { %v10089_v2 = vadd.f32 %v8309_v1, %v5434_v62  ;;  %v8391_v6 = vpop.f32.mrb[28].mxu1  ;;  %v8311_v38 = vpop.f32.mrb[25].mxu0 }
 0x97e   :  { %v10091_v7 = vadd.f32 %v8391_v6, %v5442_v3  ;;  %v10090_v45 = vadd.f32 %v8311_v38, %v5438_v5  ;;  %v8393_v10 = vpop.f32.mrb[29].mxu1  ;;  %v8313_v11 = vpop.f32.mrb[26].mxu0 }
 0x97f   :  { %v9944_v50 = vmul.f32 -1.442695, %v10089_v2  ;;  %v10092_v12 = vadd.f32 %v8393_v10, %v5446_v63  ;;  %v8395_v25 = vpop.f32.mrb[30].mxu1  ;;  %v8314_v13 = vpop.f32.mrb[27].mxu0 }
 0x980   :  { %v9946_v16 = vmul.f32 -1.442695, %v10091_v7  ;;  %v9945_v8 = vmul.f32 -1.442695, %v10090_v45  ;;  %v8396_v17 = vpop.f32.mrb[31].mxu1 }
 0x981   :  { %11790 = vpow2.f32 %v9944_v50  ;;  %v9947_v53 = vmul.f32 -1.442695, %v10092_v12 }
 0x982   :  { %11792 = vpow2.f32 %v9946_v16 }
 0x983   :  { %11794 = vpow2.f32 %v9945_v8 }
 0x984   :  { %11796 = vpow2.f32 %v9947_v53 }
 0x98b   :  { %v11791_v9 = vpop.eup %11790 }
 0x98c   :  { %v11793_v58 = vpop.eup %11792  ;;  %v8613_v18 = vadd.f32 1.0, %v11791_v9 }
 0x98d   :  { %v11795_v19 = vpop.eup %11794  ;;  %v8615_v20 = vadd.f32 1.0, %v11793_v58 }
 0x98e   :  { %v11797_v21 = vpop.eup %11796  ;;  %11798 = vrcp.f32 %v8613_v18  ;;  %v8614_v22 = vadd.f32 1.0, %v11795_v19 }
 0x98f   :  { %11800 = vrcp.f32 %v8615_v20  ;;  %v8616_v23 = vadd.f32 1.0, %v11797_v21 }
 0x990   :  { %11802 = vrcp.f32 %v8614_v22 }
 0x991   :  { %11804 = vrcp.f32 %v8616_v23 }
 0x998   :  { %v11799_v24 = vpop.eup %11798 }
 0x999   :  { %v11801_v27 = vpop.eup %11800 }
 0x99a   :  { %v11803_v46 = vpop.eup %11802 }
 0x99b   :  { %v11805_v30 = vpop.eup %11804  ;;  %v9955_v4 = vpack.c.bf16 %v11803_v46, %v11799_v24 }
 0x99c   :  { %v9956_v29 = vpack.c.bf16 %v11805_v30, %v11801_v27 }
 0x99d   :  { %v8757_v31 = vrot.slane %v9955_v4, %v12520_v34  ;;  %v10027_v32 = vpop.f32.mrb[32].mxu1 }
 0x99e   :  { %v8764_v35 = vrot.slane %v9956_v29, %v12520_v34  ;;  %v10028_v36 = vpop.f32.mrb[33].mxu1 }
 0x99f   :  { %v10029_v57 = vadd.f32 %v10028_v36, %v10027_v32  ;;  %v10030_v33 = vpop.f32.mrb[34].mxu1 }
 0x9a0   :  { %v8779_v41 = vcombine.low %v8757_v31, %v8764_v35  ;;  %v8780_v42 = vcombine.high %v8757_v31, %v8764_v35  ;;  %v10031_v59 = vpop.f32.mrb[35].mxu1 }
 0x9a1   :  { %v8515_v47 = vadd.f32 %v10029_v57, %v5458_v43 }
 0x9a2   :  { %v8789_v25 = vrot.slane %v8779_v41, %v12520_v34  ;;  %v8796_v13 = vrot.slane %v8780_v42, %v12520_v34 }
 0x9bd   :  { %v10049_v44 = vpop.f32.mrb[36].mxu1 }
 0x9be   :  { %v10050_v14 = vpop.f32.mrb[37].mxu1 }
 0x9bf   :  { %v10051_v0 = vadd.f32 %v10050_v14, %v10049_v44  ;;  %v10052_v39 = vpop.f32.mrb[38].mxu1 }
 0x9c0   :  { %v10053_v40 = vpop.f32.mrb[39].mxu1 }
 0x9c1   :  { %v8555_v28 = vadd.f32 %v10051_v0, %v8515_v47 }
 0x9c3   :  { %v9950_v49 = vmul.f32 -1.442695, %v8555_v28 }
 0x9c5   :  { %11806 = vpow2.f32 %v9950_v49 }
 0x9cf   :  { %v11807_v63 = vpop.eup %11806 }
 0x9d0   :  { %v8619_v1 = vadd.f32 1.0, %v11807_v63 }
 0x9fc   :  { %v8473_v55 = vpop.f32.mrb[28].mxu0 }
 0x9fd   :  { %v10093_v56 = vadd.f32 %v8473_v55, %v5450_v52  ;;  %v8475_v15 = vpop.f32.mrb[29].mxu0 }
 0x9fe   :  { %v10094_v60 = vadd.f32 %v8475_v15, %v5454_v54  ;;  %v8477_v61 = vpop.f32.mrb[30].mxu0 }
 0x9ff   :  { %v9948_v62 = vmul.f32 -1.442695, %v10093_v56  ;;  %v8478_v3 = vpop.f32.mrb[31].mxu0 }
 0xa00   :  { %v9949_v5 = vmul.f32 -1.442695, %v10094_v60 }
 0xa01   :  { %11808 = vpow2.f32 %v9948_v62 }
 0xa02   :  { %11810 = vpow2.f32 %v9949_v5 }
 0xa03   :  { %11812 = vrcp.f32 %v8619_v1 }
 0xa0b   :  { %v11809_v2 = vpop.eup %11808 }
 0xa0c   :  { %v11811_v37 = vpop.eup %11810  ;;  %v8617_v6 = vadd.f32 1.0, %v11809_v2 }
 0xa0d   :  { %v8618_v38 = vadd.f32 1.0, %v11811_v37  ;;  %v11813_v26 = vpop.eup %11812 }
 0xa0e   :  { %11814 = vrcp.f32 %v8617_v6  ;;  %v8664_v51 = vpack.c.bf16 %v11813_v26, %v11813_v26 }
 0xa0f   :  { %11816 = vrcp.f32 %v8618_v38 }
 0xa10   :  { %v8778_v10 = vrot.slane %v8664_v51, %v12520_v34 }
 0xa18   :  { %v11815_v48 = vpop.eup %11814 }
 0xa19   :  { %v11817_v7 = vpop.eup %11816 }
 0xa1a   :  { %v9957_v45 = vpack.c.bf16 %v11817_v7, %v11815_v48 }
 0xa1c   :  { %v8771_v11 = vrot.slane %v9957_v45, %v12520_v34 }
 0xa1e   :  { %v8781_v50 = vcombine.low %v8771_v11, %v8778_v10  ;;  %v8782_v12 = vcombine.high %v8771_v11, %v8778_v10 }
 0xa20   :  { %v8803_v16 = vrot.slane %v8781_v50, %v12520_v34  ;;  %v8810_v8 = vrot.slane %v8782_v12, %v12520_v34 }
 0xa22   :  { %v8811_v17 = vcombine.low %v8789_v25, %v8803_v16  ;;  %v8812_v53 = vcombine.high %v8789_v25, %v8803_v16  ;;  %v8813_v9 = vcombine.low %v8796_v13, %v8810_v8  ;;  %v8814_v58 = vcombine.high %v8796_v13, %v8810_v8 }
 0xa24   :  { %8824 = vst [vmem:[#allocation25 + $0x8] sm:$0x7f] %v8811_v17  ;;  %8826 = vst [vmem:[#allocation25 + $0x17] sm:$0x7f] %v8813_v9 }
 0xa25   :  { %8828 = vst [vmem:[#allocation25 + $0x26] sm:$0x7f] %v8812_v53  ;;  %8830 = vst [vmem:[#allocation25 + $0x35] sm:$0x7f] %v8814_v58 }
 0xa26   :  { %8835 = vsyncadd [#allocation4], 720  ;;  %s12242_s13 = smov [#allocation25]  }
 0xa27   :  { %s8836_s16 = sshll.u32 %s12242_s13, 4  ;;  %s8837_s16 = int_to_ptr.vmem [resolvable:$true] %s8836_s16 }
 0xa28   :  { %s12126_s30 = scalar_lea.vmem %s8837_s16, 240  ;;  %s12130_s17 = scalar_lea.vmem %s8837_s16, 960 }
 0xa29   :  { %p12127_p0 = scmp.ne.s32.totalorder %s8837_s16, %s12126_s30  ;;  %p12131_p1 = scmp.lt.s32.totalorder %s8837_s16, %s8837_s16 }
 0xa2a   :  { %p12132_p2 = scmp.lt.s32.totalorder %s12130_s17, %s12126_s30 }
 0xa2c   :  { %p12133_p3 = por %p12132_p2, %p12131_p1 }
 0xa2e   :  { %p12134_p4 = pnand %p12133_p3, %p12127_p0 }
 0xa30   :  { %12137 = shalt.err (!%p12134_p4)
}
 0xa31   :  { %s12138_s22 = scalar_lea.hbm %s12843_s14, 240 }
 0xa32   :  { %p12139_p5 = scmp.ne.s32.totalorder %s12843_s14, %s12138_s22  ;;  %p12142_p6 = scmp.lt.u32.totalorder %s12138_s22, %s12843_s14 }
 0xa34   :  { %p12144_p7 = pnand %p12142_p6, %p12139_p5 }
 0xa36   :  { %12147 = shalt.err (!%p12144_p7)
}
 0xa37   :  { %s12853_s11 = smov 15   ;;  %s12854_s29 = smov 240  }
 0xa38   :  { %8842 = dma.vmem_to_hbm [thread:$0]  %s8837_s16, 240, %s12843_s14, [#allocation4], %s12854_s29, %s12854_s29, %s12853_s11  }
 0xa39   :  { %8847 = vsyncadd [#allocation27], 96  ;;  %s12243_s23 = smov [#allocation26]  }
 0xa3a   :  { %s8848_s4 = sshll.u32 %s12243_s23, 4  ;;  %s8849_s4 = int_to_ptr.vmem [resolvable:$true] %s8848_s4 }
 0xa3b   :  { %s12148_s28 = scalar_lea.vmem %s8849_s4, 32  ;;  %s12152_s18 = scalar_lea.vmem %s8849_s4, 128 }
 0xa3c   :  { %p12149_p8 = scmp.ne.s32.totalorder %s8849_s4, %s12148_s28  ;;  %p12153_p9 = scmp.lt.s32.totalorder %s8849_s4, %s8849_s4 }
 0xa3d   :  { %p12154_p10 = scmp.lt.s32.totalorder %s12152_s18, %s12148_s28 }
 0xa3f   :  { %p12155_p11 = por %p12154_p10, %p12153_p9 }
 0xa41   :  { %p12156_p12 = pnand %p12155_p11, %p12149_p8 }
 0xa43   :  { %12159 = shalt.err (!%p12156_p12)
}
 0xa44   :  { %s12160_s7 = scalar_lea.hbm %s12844_s15, 32 }
 0xa45   :  { %p12161_p13 = scmp.ne.s32.totalorder %s12844_s15, %s12160_s7  ;;  %p12164_p0 = scmp.lt.u32.totalorder %s12160_s7, %s12844_s15 }
 0xa47   :  { %p12166_p1 = pnand %p12164_p0, %p12161_p13 }
 0xa49   :  { %12169 = shalt.err (!%p12166_p1)
}
 0xa4a   :  { %8854 = dma.vmem_to_hbm [thread:$0]  %s8849_s4, 32, %s12844_s15, [#allocation27], %s12216_s25, %s12216_s25, %s12217_s21  }
 0xa4b   :  { %8859 = vsyncadd [#allocation27], 96  ;;  %s12244_s13 = smov [#allocation28]  }
 0xa4c   :  { %s8860_s16 = sshll.u32 %s12244_s13, 4  ;;  %s8861_s16 = int_to_ptr.vmem [resolvable:$true] %s8860_s16 }
 0xa4d   :  { %s12170_s30 = scalar_lea.vmem %s8861_s16, 32  ;;  %s12174_s17 = scalar_lea.vmem %s8861_s16, 128 }
 0xa4e   :  { %p12171_p2 = scmp.ne.s32.totalorder %s8861_s16, %s12170_s30  ;;  %p12175_p3 = scmp.lt.s32.totalorder %s8861_s16, %s8861_s16 }
 0xa4f   :  { %p12176_p4 = scmp.lt.s32.totalorder %s12174_s17, %s12170_s30 }
 0xa51   :  { %p12177_p5 = por %p12176_p4, %p12175_p3 }
 0xa53   :  { %p12178_p6 = pnand %p12177_p5, %p12171_p2 }
 0xa55   :  { %12181 = shalt.err (!%p12178_p6)
}
 0xa56   :  { %s12855_s22 = sld [smem:[#allocation40_spill]] }
 0xa5c   :  { %s12182_s24 = scalar_lea.hbm %s12855_s22, 32 }
 0xa5d   :  { %p12183_p7 = scmp.ne.s32.totalorder %s12855_s22, %s12182_s24  ;;  %p12186_p8 = scmp.lt.u32.totalorder %s12182_s24, %s12855_s22 }
 0xa5f   :  { %p12188_p9 = pnand %p12186_p8, %p12183_p7 }
 0xa61   :  { %12191 = shalt.err (!%p12188_p9)
}
 0xa62   :  { %8866 = dma.vmem_to_hbm [thread:$0]  %s8861_s16, 32, %s12855_s22, [#allocation27], %s12216_s25, %s12216_s25, %s12217_s21  }
 0xa63   :  { %12208 = dma.done.wait [#allocation4], 960  }
 0xa64   :  { %12209 = vsyncadd [#allocation4], 4294966336 }
 0xa65   :  { %12210 = dma.done.wait [#allocation27], 256  }
 0xa66   :  { %12211 = vsyncadd [#allocation27], 4294967040 }
 0xa67   :  { %8876 = vsyncpa [#allocation3], 1 }
 0xa68   :  { %8877 = vsyncpa [#allocation6], 1 }
 0xa69   :  { %8878 = vsyncpa [#allocation9], 1 }
 0xa6a   :  { %8879 = vsyncpa [#allocation12], 1 }
 0xa6b   :  { %8880 = vsyncpa [#allocation15], 1 }
 0xa6c   :  { %8881 = vsyncpa [#allocation18], 1 }
 0xa6d   :  { %8882 = vsyncpa [#allocation21], 1 }
 0xa6e   :  { %8883 = vsyncpa [#allocation24], 1 }
 0xa6f   :  { %8884 = vsyncpa [#allocation4], 1 }
 0xa70   :  { %8885 = vsyncpa [#allocation27], 1 }

// kernel: tpu_custom_call.1
= control target key start
LH: loop header
LB: loop body
LE: loop exit
PB: predicated region body
PF: predicated region fallthrough
CT: control target
= control target key end

     0   :  { %s12829_s0 = inlined_call_operand.hbm [shape: bf16[2,1920], index: 0, kind: input, shape index: {}]   ;;  %s12830_s1 = inlined_call_operand.hbm [shape: f32[2,128], index: 1, kind: input, shape index: {}]   ;;  %s12831_s2 = inlined_call_operand.hbm [shape: bf16[1920,512], index: 2, kind: input, shape index: {}]   ;;  %s12832_s3 = inlined_call_operand.hbm [shape: f32[1,512], index: 3, kind: input, shape index: {}]   ;;  %s12833_s4 = inlined_call_operand.hbm [shape: bf16[512,128], index: 4, kind: input, shape index: {}]   ;;  %s12834_s5 = inlined_call_operand.hbm [shape: f32[1,128], index: 5, kind: input, shape index: {}]   ;;  %s12835_s6 = inlined_call_operand.hbm [shape: bf16[128,256], index: 6, kind: input, shape index: {}]   ;;  %s12836_s7 = inlined_call_operand.hbm [shape: f32[1,256], index: 7, kind: input, shape index: {}]   ;;  %s12837_s8 = inlined_call_operand.hbm [shape: bf16[128,128], index: 8, kind: input, shape index: {}]   ;;  %s12838_s9 = inlined_call_operand.hbm [shape: f32[1,128], index: 9, kind: input, shape index: {}]   ;;  %s12839_s10 = inlined_call_operand.hbm [shape: bf16[128,512], index: 10, kind: input, shape index: {}]   ;;  %s12840_s11 = inlined_call_operand.hbm [shape: f32[1,512], index: 11, kind: input, shape index: {}]   ;;  %s12841_s12 = inlined_call_operand.hbm [shape: bf16[512,1920], index: 12, kind: input, shape index: {}]   ;;  %s12842_s13 = inlined_call_operand.hbm [shape: f32[1,1920], index: 13, kind: input, shape index: {}]   ;;  %s12843_s14 = inlined_call_operand.hbm [shape: bf16[2,1920], index: 14, kind: output, shape index: {0}]   ;;  %s12844_s15 = inlined_call_operand.hbm [shape: f32[2,128], index: 15, kind: output, shape index: {1}]   ;;  %s12845_s16 = inlined_call_operand.hbm [shape: f32[2,128], index: 16, kind: output, shape index: {2}]  }
   0x1   :  { %12850 = sst [smem:[#allocation39_spill]] %s12829_s0 }
   0x2   :  { %12851 = sst [smem:[#allocation40_spill]] %s12845_s16 }
   0x3   :  { %22 = vsyncpa [#allocation3], 0 }
   0x4   :  { %23 = vsyncpa [#allocation6], 0 }
   0x5   :  { %24 = vsyncpa [#allocation9], 0 }
   0x6   :  { %25 = vsyncpa [#allocation12], 0 }
   0x7   :  { %26 = vsyncpa [#allocation15], 0 }
   0x8   :  { %27 = vsyncpa [#allocation18], 0 }
   0x9   :  { %28 = vsyncpa [#allocation21], 0 }
   0xa   :  { %29 = vsyncpa [#allocation24], 0 }
   0xb   :  { %30 = vsyncpa [#allocation4], 0 }
   0xc   :  { %31 = vsyncpa [#allocation27], 0 }
   0xd   :  { %36 = vsyncadd [#allocation3], 720  ;;  %s12212_s21 = smov [#allocation2]   ;;  %s12852_s25 = sld [smem:[#allocation39_spill]] }
   0xe   :  { %s37_s22 = sshll.u32 %s12212_s21, 4  ;;  %s38_s22 = int_to_ptr.vmem [resolvable:$true] %s37_s22 }
  0x13   :  { %s11818_s26 = scalar_lea.hbm %s12852_s25, 240 }
  0x14   :  { %p11819_p0 = scmp.ne.s32.totalorder %s12852_s25, %s11818_s26  ;;  %p11822_p1 = scmp.lt.u32.totalorder %s11818_s26, %s12852_s25 }
  0x16   :  { %p11824_p2 = pnand %p11822_p1, %p11819_p0 }
  0x18   :  { %11827 = shalt.err (!%p11824_p2)
}
  0x19   :  { %s11828_s0 = scalar_lea.vmem %s38_s22, 240  ;;  %s11832_s17 = scalar_lea.vmem %s38_s22, 960 }
  0x1a   :  { %p11829_p3 = scmp.ne.s32.totalorder %s38_s22, %s11828_s0  ;;  %p11833_p4 = scmp.lt.s32.totalorder %s38_s22, %s38_s22 }
  0x1b   :  { %p11834_p5 = scmp.lt.s32.totalorder %s11832_s17, %s11828_s0 }
  0x1d   :  { %p11835_p6 = por %p11834_p5, %p11833_p4 }
  0x1f   :  { %p11836_p7 = pnand %p11835_p6, %p11829_p3 }
  0x21   :  { %11839 = shalt.err (!%p11836_p7)
}
  0x22   :  { %s12847_s18 = smov 240   ;;  %s12848_s19 = smov 15  }
  0x23   :  { %43 = dma.hbm_to_vmem [thread:$0]  %s12852_s25, 240, %s38_s22, [#allocation3], %s12847_s18, %s12847_s18, %s12848_s19  }
  0x24   :  { %48 = vsyncadd [#allocation6], 96  ;;  %s12215_s23 = smov [#allocation5]   ;;  %s11840_s28 = scalar_lea.hbm %s12830_s1, 32 }
  0x25   :  { %s49_s24 = sshll.u32 %s12215_s23, 4  ;;  %p11841_p8 = scmp.ne.s32.totalorder %s12830_s1, %s11840_s28  ;;  %s50_s24 = int_to_ptr.vmem [resolvable:$true] %s49_s24 }
  0x26   :  { %p11844_p9 = scmp.lt.u32.totalorder %s11840_s28, %s12830_s1 }
  0x28   :  { %p11846_p10 = pnand %p11844_p9, %p11841_p8 }
  0x2a   :  { %11849 = shalt.err (!%p11846_p10)
}
  0x2b   :  { %s11850_s20 = scalar_lea.vmem %s50_s24, 32  ;;  %s11854_s22 = scalar_lea.vmem %s50_s24, 128 }
  0x2c   :  { %p11851_p11 = scmp.ne.s32.totalorder %s50_s24, %s11850_s20  ;;  %p11855_p12 = scmp.lt.s32.totalorder %s50_s24, %s50_s24 }
  0x2d   :  { %p11856_p13 = scmp.lt.s32.totalorder %s11854_s22, %s11850_s20 }
  0x2f   :  { %p11857_p0 = por %p11856_p13, %p11855_p12 }
  0x31   :  { %p11858_p1 = pnand %p11857_p0, %p11851_p11 }
  0x33   :  { %11861 = shalt.err (!%p11858_p1)
}
  0x34   :  { %s12216_s25 = smov 32   ;;  %s12217_s21 = smov 2  }
  0x35   :  { %55 = dma.hbm_to_vmem [thread:$0]  %s12830_s1, 32, %s50_s24, [#allocation6], %s12216_s25, %s12216_s25, %s12217_s21  }
  0x36   :  { %s12218_s27 = smov [#allocation8]   ;;  %s12219_s29 = smov [#allocation11]  }
  0x37   :  { %s74_s28 = sshll.u32 %s12218_s27, 4  ;;  %s96_s30 = sshll.u32 %s12219_s29, 4  ;;  %s75_s28 = int_to_ptr.vmem [resolvable:$true] %s74_s28  ;;  %s97_s30 = int_to_ptr.vmem [resolvable:$true] %s96_s30 }
  0x38   :  { %s11862_s20 = scalar_lea.hbm %s12832_s3, 64 }
  0x39   :  { %p11863_p2 = scmp.ne.s32.totalorder %s12832_s3, %s11862_s20  ;;  %p11866_p3 = scmp.lt.u32.totalorder %s11862_s20, %s12832_s3 }
  0x3b   :  { %p11868_p4 = pnand %p11866_p3, %p11863_p2 }
  0x3d   :  { %11871 = shalt.err (!%p11868_p4)
}
  0x3e   :  { %s11872_s1 = scalar_lea.vmem %s75_s28, 64  ;;  %p11877_p6 = scmp.lt.s32.totalorder %s75_s28, %s75_s28 }
  0x3f   :  { %p11873_p5 = scmp.ne.s32.totalorder %s75_s28, %s11872_s1  ;;  %p11878_p7 = scmp.lt.s32.totalorder %s11872_s1, %s11872_s1 }
  0x41   :  { %p11879_p8 = por %p11878_p7, %p11877_p6 }
  0x43   :  { %p11880_p9 = pnand %p11879_p8, %p11873_p5 }
  0x45   :  { %11883 = shalt.err (!%p11880_p9)
}
  0x46   :  { %77 = dma.hbm_to_vmem [thread:$0]  %s12832_s3, 64, %s75_s28, [#allocation9]  }
  0x47   :  { %s11884_s27 = scalar_lea.hbm %s12834_s5, 16 }
  0x48   :  { %p11885_p10 = scmp.ne.s32.totalorder %s12834_s5, %s11884_s27  ;;  %p11888_p11 = scmp.lt.u32.totalorder %s11884_s27, %s12834_s5 }
  0x4a   :  { %p11890_p12 = pnand %p11888_p11, %p11885_p10 }
  0x4c   :  { %11893 = shalt.err (!%p11890_p12)
}
  0x4d   :  { %s11894_s17 = scalar_lea.vmem %s97_s30, 16  ;;  %s11898_s20 = scalar_lea.vmem %s97_s30, 32 }
  0x4e   :  { %p11895_p13 = scmp.ne.s32.totalorder %s97_s30, %s11894_s17  ;;  %p11899_p0 = scmp.lt.s32.totalorder %s97_s30, %s97_s30 }
  0x4f   :  { %p11900_p1 = scmp.lt.s32.totalorder %s11898_s20, %s11894_s17 }
  0x51   :  { %p11901_p2 = por %p11900_p1, %p11899_p0 }
  0x53   :  { %p11902_p3 = pnand %p11901_p2, %p11895_p13 }
  0x55   :  { %11905 = shalt.err (!%p11902_p3)
}
  0x56   :  { %99 = dma.hbm_to_vmem [thread:$0]  %s12834_s5, 16, %s97_s30, [#allocation12]  }
  0x57   :  { %s12220_s22 = smov [#allocation14]   ;;  %s12221_s24 = smov [#allocation17]  }
  0x58   :  { %s118_s1 = sshll.u32 %s12220_s22, 4  ;;  %s140_s23 = sshll.u32 %s12221_s24, 4  ;;  %s119_s1 = int_to_ptr.vmem [resolvable:$true] %s118_s1  ;;  %s141_s23 = int_to_ptr.vmem [resolvable:$true] %s140_s23 }
  0x59   :  { %s11906_s27 = scalar_lea.hbm %s12836_s7, 32 }
  0x5a   :  { %p11907_p4 = scmp.ne.s32.totalorder %s12836_s7, %s11906_s27  ;;  %p11910_p5 = scmp.lt.u32.totalorder %s11906_s27, %s12836_s7 }
  0x5c   :  { %p11912_p6 = pnand %p11910_p5, %p11907_p4 }
  0x5e   :  { %11915 = shalt.err (!%p11912_p6)
}
  0x5f   :  { %s11916_s5 = scalar_lea.vmem %s119_s1, 32  ;;  %p11921_p8 = scmp.lt.s32.totalorder %s119_s1, %s119_s1 }
  0x60   :  { %p11917_p7 = scmp.ne.s32.totalorder %s119_s1, %s11916_s5  ;;  %p11922_p9 = scmp.lt.s32.totalorder %s11916_s5, %s11916_s5 }
  0x62   :  { %p11923_p10 = por %p11922_p9, %p11921_p8 }
  0x64   :  { %p11924_p11 = pnand %p11923_p10, %p11917_p7 }
  0x66   :  { %11927 = shalt.err (!%p11924_p11)
}
  0x67   :  { %121 = dma.hbm_to_vmem [thread:$0]  %s12836_s7, 32, %s119_s1, [#allocation15]  }
  0x68   :  { %s11928_s28 = scalar_lea.hbm %s12838_s9, 16 }
  0x69   :  { %p11929_p12 = scmp.ne.s32.totalorder %s12838_s9, %s11928_s28  ;;  %p11932_p13 = scmp.lt.u32.totalorder %s11928_s28, %s12838_s9 }
  0x6b   :  { %p11934_p0 = pnand %p11932_p13, %p11929_p12 }
  0x6d   :  { %11937 = shalt.err (!%p11934_p0)
}
  0x6e   :  { %s11938_s27 = scalar_lea.vmem %s141_s23, 16  ;;  %s11942_s16 = scalar_lea.vmem %s141_s23, 32 }
  0x6f   :  { %p11939_p1 = scmp.ne.s32.totalorder %s141_s23, %s11938_s27  ;;  %p11943_p2 = scmp.lt.s32.totalorder %s141_s23, %s141_s23 }
  0x70   :  { %p11944_p3 = scmp.lt.s32.totalorder %s11942_s16, %s11938_s27 }
  0x72   :  { %p11945_p4 = por %p11944_p3, %p11943_p2 }
  0x74   :  { %p11946_p5 = pnand %p11945_p4, %p11939_p1 }
  0x76   :  { %11949 = shalt.err (!%p11946_p5)
}
  0x77   :  { %143 = dma.hbm_to_vmem [thread:$0]  %s12838_s9, 16, %s141_s23, [#allocation18]  }
  0x78   :  { %s12222_s19 = smov [#allocation20]   ;;  %s12223_s0 = smov [#allocation7]  }
  0x79   :  { %s162_s29 = sshll.u32 %s12222_s19, 4  ;;  %s61_s5 = sshll.u32 %s12223_s0, 4  ;;  %s163_s29 = int_to_ptr.vmem [resolvable:$true] %s162_s29  ;;  %s62_s5 = int_to_ptr.vmem [resolvable:$true] %s61_s5 }
  0x7a   :  { %s11950_s20 = scalar_lea.hbm %s12840_s11, 64 }
  0x7b   :  { %p11951_p6 = scmp.ne.s32.totalorder %s12840_s11, %s11950_s20  ;;  %p11954_p7 = scmp.lt.u32.totalorder %s11950_s20, %s12840_s11 }
  0x7d   :  { %p11956_p8 = pnand %p11954_p7, %p11951_p6 }
  0x7f   :  { %11959 = shalt.err (!%p11956_p8)
}
  0x80   :  { %s11960_s9 = scalar_lea.vmem %s163_s29, 64  ;;  %p11965_p10 = scmp.lt.s32.totalorder %s163_s29, %s163_s29 }
  0x81   :  { %p11961_p9 = scmp.ne.s32.totalorder %s163_s29, %s11960_s9  ;;  %p11966_p11 = scmp.lt.s32.totalorder %s11960_s9, %s11960_s9 }
  0x83   :  { %p11967_p12 = por %p11966_p11, %p11965_p10 }
  0x85   :  { %p11968_p13 = pnand %p11967_p12, %p11961_p9 }
  0x87   :  { %11971 = shalt.err (!%p11968_p13)
}
  0x88   :  { %165 = dma.hbm_to_vmem [thread:$0]  %s12840_s11, 64, %s163_s29, [#allocation21]  }
  0x89   :  { %s11972_s16 = scalar_lea.hbm %s12831_s2, 61440 }
  0x8a   :  { %p11973_p0 = scmp.ne.s32.totalorder %s12831_s2, %s11972_s16  ;;  %p11976_p1 = scmp.lt.u32.totalorder %s11972_s16, %s12831_s2 }
  0x8c   :  { %p11978_p2 = pnand %p11976_p1, %p11973_p0 }
  0x8e   :  { %11981 = shalt.err (!%p11978_p2)
}
  0x8f   :  { %s11982_s30 = scalar_lea.vmem %s62_s5, 61440  ;;  %p11987_p4 = scmp.lt.s32.totalorder %s62_s5, %s62_s5 }
  0x90   :  { %p11983_p3 = scmp.ne.s32.totalorder %s62_s5, %s11982_s30  ;;  %p11988_p5 = scmp.lt.s32.totalorder %s11982_s30, %s11982_s30 }
  0x92   :  { %p11989_p6 = por %p11988_p5, %p11987_p4 }
  0x94   :  { %p11990_p7 = pnand %p11989_p6, %p11983_p3 }
  0x96   :  { %11993 = shalt.err (!%p11990_p7)
}
  0x97   :  { %s12224_s11 = smov 256   ;;  %s12225_s29 = smov 16  }
  0x98   :  { %67 = dma.hbm_to_vmem [thread:$0]  %s12831_s2, 61440, %s62_s5, [#allocation6], %s12224_s11, %s12224_s11, %s12225_s29  }
  0x99   :  { %s12226_s3 = smov [#allocation10]   ;;  %s11994_s9 = scalar_lea.hbm %s12833_s4, 4096 }
  0x9a   :  { %s83_s28 = sshll.u32 %s12226_s3, 4  ;;  %p11995_p8 = scmp.ne.s32.totalorder %s12833_s4, %s11994_s9  ;;  %s84_s28 = int_to_ptr.vmem [resolvable:$true] %s83_s28 }
  0x9b   :  { %p11998_p9 = scmp.lt.u32.totalorder %s11994_s9, %s12833_s4 }
  0x9d   :  { %p12000_p10 = pnand %p11998_p9, %p11995_p8 }
  0x9f   :  { %12003 = shalt.err (!%p12000_p10)
}
  0xa0   :  { %s12004_s16 = scalar_lea.vmem %s84_s28, 4096  ;;  %p12009_p12 = scmp.lt.s32.totalorder %s84_s28, %s84_s28 }
  0xa1   :  { %p12005_p11 = scmp.ne.s32.totalorder %s84_s28, %s12004_s16  ;;  %p12010_p13 = scmp.lt.s32.totalorder %s12004_s16, %s12004_s16 }
  0xa3   :  { %p12011_p0 = por %p12010_p13, %p12009_p12 }
  0xa5   :  { %p12012_p1 = pnand %p12011_p0, %p12005_p11 }
  0xa7   :  { %12015 = shalt.err (!%p12012_p1)
}
  0xa8   :  { %s12227_s2 = smov 64   ;;  %s12228_s5 = smov 4  }
  0xa9   :  { %89 = dma.hbm_to_vmem [thread:$0]  %s12833_s4, 4096, %s84_s28, [#allocation9], %s12227_s2, %s12227_s2, %s12228_s5  }
  0xaa   :  { %s12229_s19 = smov [#allocation13]   ;;  %s12016_s20 = scalar_lea.hbm %s12835_s6, 2048 }
  0xab   :  { %s105_s0 = sshll.u32 %s12229_s19, 4  ;;  %p12017_p2 = scmp.ne.s32.totalorder %s12835_s6, %s12016_s20  ;;  %s106_s0 = int_to_ptr.vmem [resolvable:$true] %s105_s0 }
  0xac   :  { %p12020_p3 = scmp.lt.u32.totalorder %s12016_s20, %s12835_s6 }
  0xae   :  { %p12022_p4 = pnand %p12020_p3, %p12017_p2 }
  0xb0   :  { %12025 = shalt.err (!%p12022_p4)
}
  0xb1   :  { %s12026_s23 = scalar_lea.vmem %s106_s0, 2048  ;;  %p12031_p6 = scmp.lt.s32.totalorder %s106_s0, %s106_s0 }
  0xb2   :  { %p12027_p5 = scmp.ne.s32.totalorder %s106_s0, %s12026_s23  ;;  %p12032_p7 = scmp.lt.s32.totalorder %s12026_s23, %s12026_s23 }
  0xb4   :  { %p12033_p8 = por %p12032_p7, %p12031_p6 }
  0xb6   :  { %p12034_p9 = pnand %p12033_p8, %p12027_p5 }
  0xb8   :  { %12037 = shalt.err (!%p12034_p9)
}
  0xb9   :  { %s12230_s4 = smov 128   ;;  %s12231_s28 = smov 8  }
  0xba   :  { %111 = dma.hbm_to_vmem [thread:$0]  %s12835_s6, 2048, %s106_s0, [#allocation12], %s12230_s4, %s12230_s4, %s12231_s28  }
  0xbb   :  { %s12232_s27 = smov [#allocation16]   ;;  %s12233_s7 = smov [#allocation19]  }
  0xbc   :  { %s127_s16 = sshll.u32 %s12232_s27, 4  ;;  %s149_s1 = sshll.u32 %s12233_s7, 4  ;;  %s128_s16 = int_to_ptr.vmem [resolvable:$true] %s127_s16  ;;  %s150_s1 = int_to_ptr.vmem [resolvable:$true] %s149_s1 }
  0xbd   :  { %s12038_s17 = scalar_lea.hbm %s12837_s8, 1024 }
  0xbe   :  { %p12039_p10 = scmp.ne.s32.totalorder %s12837_s8, %s12038_s17  ;;  %p12042_p11 = scmp.lt.u32.totalorder %s12038_s17, %s12837_s8 }
  0xc0   :  { %p12044_p12 = pnand %p12042_p11, %p12039_p10 }
  0xc2   :  { %12047 = shalt.err (!%p12044_p12)
}
  0xc3   :  { %s12048_s6 = scalar_lea.vmem %s128_s16, 1024  ;;  %p12053_p0 = scmp.lt.s32.totalorder %s128_s16, %s128_s16 }
  0xc4   :  { %p12049_p13 = scmp.ne.s32.totalorder %s128_s16, %s12048_s6  ;;  %p12054_p1 = scmp.lt.s32.totalorder %s12048_s6, %s12048_s6 }
  0xc6   :  { %p12055_p2 = por %p12054_p1, %p12053_p0 }
  0xc8   :  { %p12056_p3 = pnand %p12055_p2, %p12049_p13 }
  0xca   :  { %12059 = shalt.err (!%p12056_p3)
}
  0xcb   :  { %133 = dma.hbm_to_vmem [thread:$0]  %s12837_s8, 1024, %s128_s16, [#allocation15], %s12227_s2, %s12227_s2, %s12228_s5  }
  0xcc   :  { %s12060_s28 = scalar_lea.hbm %s12839_s10, 4096 }
  0xcd   :  { %p12061_p4 = scmp.ne.s32.totalorder %s12839_s10, %s12060_s28  ;;  %p12064_p5 = scmp.lt.u32.totalorder %s12060_s28, %s12839_s10 }
  0xcf   :  { %p12066_p6 = pnand %p12064_p5, %p12061_p4 }
  0xd1   :  { %12069 = shalt.err (!%p12066_p6)
}
  0xd2   :  { %s12070_s19 = scalar_lea.vmem %s150_s1, 4096  ;;  %p12075_p8 = scmp.lt.s32.totalorder %s150_s1, %s150_s1 }
  0xd3   :  { %p12071_p7 = scmp.ne.s32.totalorder %s150_s1, %s12070_s19  ;;  %p12076_p9 = scmp.lt.s32.totalorder %s12070_s19, %s12070_s19 }
  0xd5   :  { %p12077_p10 = por %p12076_p9, %p12075_p8 }
  0xd7   :  { %p12078_p11 = pnand %p12077_p10, %p12071_p7 }
  0xd9   :  { %12081 = shalt.err (!%p12078_p11)
}
  0xda   :  { %155 = dma.hbm_to_vmem [thread:$0]  %s12839_s10, 4096, %s150_s1, [#allocation18], %s12224_s11, %s12224_s11, %s12225_s29  }
  0xdb   :  { %s12234_s5 = smov [#allocation22]   ;;  %s12082_s20 = scalar_lea.hbm %s12841_s12, 61440 }
  0xdc   :  { %s171_s16 = sshll.u32 %s12234_s5, 4  ;;  %p12083_p12 = scmp.ne.s32.totalorder %s12841_s12, %s12082_s20  ;;  %s172_s16 = int_to_ptr.vmem [resolvable:$true] %s171_s16 }
  0xdd   :  { %p12086_p13 = scmp.lt.u32.totalorder %s12082_s20, %s12841_s12 }
  0xdf   :  { %p12088_p0 = pnand %p12086_p13, %p12083_p12 }
  0xe1   :  { %12091 = shalt.err (!%p12088_p0)
}
  0xe2   :  { %s12092_s0 = scalar_lea.vmem %s172_s16, 61440  ;;  %p12097_p2 = scmp.lt.s32.totalorder %s172_s16, %s172_s16 }
  0xe3   :  { %p12093_p1 = scmp.ne.s32.totalorder %s172_s16, %s12092_s0  ;;  %p12098_p3 = scmp.lt.s32.totalorder %s12092_s0, %s12092_s0 }
  0xe5   :  { %p12099_p4 = por %p12098_p3, %p12097_p2 }
  0xe7   :  { %p12100_p5 = pnand %p12099_p4, %p12093_p1 }
  0xe9   :  { %12103 = shalt.err (!%p12100_p5)
}
  0xea   :  { %s12235_s10 = smov 960   ;;  %s12236_s11 = smov 60  }
  0xeb   :  { %177 = dma.hbm_to_vmem [thread:$0]  %s12841_s12, 61440, %s172_s16, [#allocation21], %s12235_s10, %s12235_s10, %s12236_s11  }
  0xec   :  { %s12237_s9 = smov [#allocation23]   ;;  %s12104_s18 = scalar_lea.hbm %s12842_s13, 240 }
  0xed   :  { %s184_s23 = sshll.u32 %s12237_s9, 4  ;;  %p12105_p6 = scmp.ne.s32.totalorder %s12842_s13, %s12104_s18  ;;  %s185_s23 = int_to_ptr.vmem [resolvable:$true] %s184_s23 }
  0xee   :  { %p12108_p7 = scmp.lt.u32.totalorder %s12104_s18, %s12842_s13 }
  0xf0   :  { %p12110_p8 = pnand %p12108_p7, %p12105_p6 }
  0xf2   :  { %12113 = shalt.err (!%p12110_p8)
}
  0xf3   :  { %s12114_s8 = scalar_lea.vmem %s185_s23, 240  ;;  %s12118_s12 = scalar_lea.vmem %s185_s23, 256 }
  0xf4   :  { %p12115_p9 = scmp.ne.s32.totalorder %s185_s23, %s12114_s8  ;;  %p12119_p10 = scmp.lt.s32.totalorder %s185_s23, %s185_s23 }
  0xf5   :  { %p12120_p11 = scmp.lt.s32.totalorder %s12118_s12, %s12114_s8 }
  0xf7   :  { %p12121_p12 = por %p12120_p11, %p12119_p10 }
  0xf9   :  { %p12122_p13 = pnand %p12121_p12, %p12115_p9 }
  0xfb   :  { %12125 = shalt.err (!%p12122_p13)
}
  0xfc   :  { %187 = dma.hbm_to_vmem [thread:$0]  %s12842_s13, 240, %s185_s23, [#allocation24]  }
  0xfd   :  { %12192 = dma.done.wait [#allocation3], 960  }
  0xfe   :  { %12193 = vsyncadd [#allocation3], 4294966336 }
  0xff   :  { %12194 = dma.done.wait [#allocation6], 61568  }
 0x100   :  { %12195 = vsyncadd [#allocation6], 4294905728 }
 0x101   :  { %12196 = dma.done.wait [#allocation9], 4160  }
 0x102   :  { %12197 = vsyncadd [#allocation9], 4294963136 }
 0x103   :  { %12198 = dma.done.wait [#allocation12], 2064  }
 0x104   :  { %12199 = vsyncadd [#allocation12], 4294965232 }
 0x105   :  { %12200 = dma.done.wait [#allocation15], 1056  }
 0x106   :  { %12201 = vsyncadd [#allocation15], 4294966240 }
 0x107   :  { %12202 = dma.done.wait [#allocation18], 4112  }
 0x108   :  { %12203 = vsyncadd [#allocation18], 4294963184 }
 0x109   :  { %12204 = dma.done.wait [#allocation21], 61504  }
 0x10a   :  { %12205 = vsyncadd [#allocation21], 4294905792 }
 0x10b   :  { %12206 = dma.done.wait [#allocation24], 240  }
 0x10c   :  { %12207 = vsyncadd [#allocation24], 4294967056  ;;  %v12238_v0 = vmov 0   ;;  %v10208_v1 = vld [vmem:[#allocation7 + $0x4] ss:$16 sps:$4 sm:$0xff]   ;;  %v721_v19 = vlaneseq  ;;  %vm12241_vm0 = vmmov 0  }
 0x10d   :  { %3618 = vmatprep.mubr.bf16.mxu1 %v12238_v0  ;;  %v10210_v2 = vld [vmem:[#allocation7 + $0xe04] ss:$16 sps:$4 sm:$0xff]   ;;  %3299 = vmatprep.subr.bf16.mxu0 %v10208_v1  ;;  %v10212_v3 = vld [vmem:[#allocation7] ss:$16 sps:$4 sm:$0xff]   ;;  %v12239_v20 = vmov 1966171168  }
 0x10e   :  { %v10213_v4 = vld [vmem:[#allocation7 + $0xe00] ss:$16 sps:$4 sm:$0xff]   ;;  %3586 = vmatprep.subr.bf16.mxu1 %v10210_v2  ;;  %v10214_v5 = vld [vmem:[#allocation7 + $0x24] ss:$16 sps:$4 sm:$0xff]   ;;  %3300 = vmatpush1.bf16.msra.mxu0 %v10212_v3  ;;  %v754_v21 = vunpack.c.l.s4 %v12239_v20  ;;  %v12517_v26 = vshrl.u32 %v721_v19, 7 }
 0x10f   :  { %3587 = vmatpush1.bf16.msra.mxu1 %v10213_v4  ;;  %v10216_v6 = vld [vmem:[#allocation7 + $0xe24] ss:$16 sps:$4 sm:$0xff]   ;;  %v10218_v7 = vld [vmem:[#allocation7 + $0x20] ss:$16 sps:$4 sm:$0xff]   ;;  %3301 = vmatprep.subr.bf16.mxu0 %v10214_v5  ;;  %v10264_v45 = vld [vmem:[#allocation7 + $0xc] ss:$16 sps:$4 sm:$0xff]  }
 0x110   :  { %v10219_v8 = vld [vmem:[#allocation7 + $0xe20] ss:$16 sps:$4 sm:$0xff]   ;;  %3588 = vmatprep.subr.bf16.mxu1 %v10216_v6  ;;  %v10220_v9 = vld [vmem:[#allocation7 + $0x44] ss:$16 sps:$4 sm:$0xff]   ;;  %v755_v27 = vunpack.c.0.s8 %v754_v21  ;;  %v10262_v47 = vld [vmem:[#allocation7 + $0x8] ss:$16 sps:$4 sm:$0xff]  }
 0x111   :  { %v10222_v10 = vld [vmem:[#allocation7 + $0xe44] ss:$16 sps:$4 sm:$0xff]   ;;  %v10224_v11 = vld [vmem:[#allocation7 + $0x40] ss:$16 sps:$4 sm:$0xff]   ;;  %v10270_v51 = vld [vmem:[#allocation7 + $0x2c] ss:$16 sps:$4 sm:$0xff]  }
 0x112   :  { %v10225_v12 = vld [vmem:[#allocation7 + $0xe40] ss:$16 sps:$4 sm:$0xff]   ;;  %3302 = vmatpush1.bf16.msra.mxu0 %v10218_v7  ;;  %v10226_v13 = vld [vmem:[#allocation7 + $0x64] ss:$16 sps:$4 sm:$0xff]   ;;  %v12520_v34 = vsub.s32 %v755_v27, %v12517_v26  ;;  %v10268_v52 = vld [vmem:[#allocation7 + $0x28] ss:$16 sps:$4 sm:$0xff]  }
 0x113   :  { %3589 = vmatpush1.bf16.msra.mxu1 %v10219_v8  ;;  %3303 = vmatprep.subr.bf16.mxu0 %v10220_v9  ;;  %v10228_v14 = vld [vmem:[#allocation7 + $0xe64] ss:$16 sps:$4 sm:$0xff]   ;;  %v10230_v15 = vld [vmem:[#allocation7 + $0x60] ss:$16 sps:$4 sm:$0xff]   ;;  %v10276_v55 = vld [vmem:[#allocation7 + $0x4c] ss:$16 sps:$4 sm:$0xff]  }
 0x114   :  { %3590 = vmatprep.subr.bf16.mxu1 %v10222_v10  ;;  %v10231_v16 = vld [vmem:[#allocation7 + $0xe60] ss:$16 sps:$4 sm:$0xff]   ;;  %v10232_v17 = vld [vmem:[#allocation7 + $0x84] ss:$16 sps:$4 sm:$0xff]   ;;  %v10274_v56 = vld [vmem:[#allocation7 + $0x48] ss:$16 sps:$4 sm:$0xff]  }
 0x115   :  { %v10234_v18 = vld [vmem:[#allocation7 + $0xe84] ss:$16 sps:$4 sm:$0xff]   ;;  %v10236_v22 = vld [vmem:[#allocation7 + $0x80] ss:$16 sps:$4 sm:$0xff]   ;;  %v10282_v59 = vld [vmem:[#allocation7 + $0x6c] ss:$16 sps:$4 sm:$0xff]  }
 0x116   :  { %3304 = vmatpush1.bf16.msra.mxu0 %v10224_v11  ;;  %v10237_v23 = vld [vmem:[#allocation7 + $0xe80] ss:$16 sps:$4 sm:$0xff]   ;;  %v10238_v24 = vld [vmem:[#allocation7 + $0xa4] ss:$16 sps:$4 sm:$0xff]   ;;  %v10280_v60 = vld [vmem:[#allocation7 + $0x68] ss:$16 sps:$4 sm:$0xff]  }
 0x117   :  { %3591 = vmatpush1.bf16.msra.mxu1 %v10225_v12  ;;  %3305 = vmatprep.subr.bf16.mxu0 %v10226_v13  ;;  %v10240_v25 = vld [vmem:[#allocation7 + $0xea4] ss:$16 sps:$4 sm:$0xff]   ;;  %v10242_v28 = vld [vmem:[#allocation7 + $0xa0] ss:$16 sps:$4 sm:$0xff]   ;;  %v10288_v63 = vld [vmem:[#allocation7 + $0x8c] ss:$16 sps:$4 sm:$0xff]  }
 0x118   :  { %3592 = vmatprep.subr.bf16.mxu1 %v10228_v14  ;;  %v10243_v29 = vld [vmem:[#allocation7 + $0xea0] ss:$16 sps:$4 sm:$0xff]   ;;  %v10244_v30 = vld [vmem:[#allocation7 + $0xc4] ss:$16 sps:$4 sm:$0xff]   ;;  %v10308_v1 = vld [vmem:[#allocation2] ss:$15 sps:$4 sm:$0xff]  }
 0x119   :  { %v10246_v31 = vld [vmem:[#allocation7 + $0xec4] ss:$16 sps:$4 sm:$0xff]   ;;  %v10248_v32 = vld [vmem:[#allocation7 + $0xc0] ss:$16 sps:$4 sm:$0xff]   ;;  %v10310_v2 = vld [vmem:[#allocation2 + $0x1e] ss:$15 sps:$4 sm:$0xff]   ;;  %v759_v5 = vrot.slane %v10308_v1, %v12520_v34 }
 0x11a   :  { %3306 = vmatpush1.bf16.msra.mxu0 %v10230_v15  ;;  %v10249_v33 = vld [vmem:[#allocation7 + $0xec0] ss:$16 sps:$4 sm:$0xff]   ;;  %v10258_v35 = vld [vmem:[#allocation2 + $0xc] ss:$15 sps:$4 sm:$0x77]   ;;  %v773_v6 = vrot.slane %v10310_v2, %v12520_v34 }
 0x11b   :  { %3593 = vmatpush1.bf16.msra.mxu1 %v10231_v16  ;;  %3307 = vmatprep.subr.bf16.mxu0 %v10232_v17  ;;  %v10260_v36 = vld [vmem:[#allocation2 + $0x2a] ss:$15 sps:$4 sm:$0x77]   ;;  %v12523_v39 = vrot.slane %v10258_v35, %v12520_v34  ;;  %v10254_v41 = vld [vmem:[#allocation7 + $0xe0] ss:$16 sps:$4 sm:$0xff]  }
 0x11c   :  { %3594 = vmatprep.subr.bf16.mxu1 %v10234_v18  ;;  %v10250_v37 = vld [vmem:[#allocation7 + $0xe4] ss:$16 sps:$4 sm:$0xff]   ;;  %v12526_v40 = vrot.slane %v10260_v36, %v12520_v34  ;;  %v10255_v42 = vld [vmem:[#allocation7 + $0xee0] ss:$16 sps:$4 sm:$0xff]   ;;  %v10286_v3 = vld [vmem:[#allocation7 + $0x88] ss:$16 sps:$4 sm:$0xff]   ;;  %v782_v9 = vcombine.high %v759_v5, %v773_v6  ;;  %v781_v20 = vcombine.low %v759_v5, %v773_v6 }
 0x11d   :  { %v10252_v38 = vld [vmem:[#allocation7 + $0xee4] ss:$16 sps:$4 sm:$0xff]   ;;  %v10265_v49 = vld [vmem:[#allocation7 + $0x100] ss:$16 sps:$4 sm:$0xff]   ;;  %v10294_v8 = vld [vmem:[#allocation7 + $0xac] ss:$16 sps:$4 sm:$0xff]  }
 0x11e   :  { %3308 = vmatpush1.bf16.msra.mxu0 %v10236_v22  ;;  %v10256_v43 = vld [vmem:[#allocation7 + $0x104] ss:$16 sps:$4 sm:$0xff]   ;;  %v851_v44 = vcombine.low %v12523_v39, %v12526_v40  ;;  %v10271_v53 = vld [vmem:[#allocation7 + $0x120] ss:$16 sps:$4 sm:$0xff]   ;;  %v10292_v10 = vld [vmem:[#allocation7 + $0xa8] ss:$16 sps:$4 sm:$0xff]   ;;  %v805_v12 = vrot.slane %v782_v9, %v12520_v34 }
 0x11f   :  { %3595 = vmatpush1.bf16.msra.mxu1 %v10237_v23  ;;  %3309 = vmatprep.subr.bf16.mxu0 %v10238_v24  ;;  %v10266_v50 = vld [vmem:[#allocation7 + $0x124] ss:$16 sps:$4 sm:$0xff]   ;;  %v10277_v57 = vld [vmem:[#allocation7 + $0x140] ss:$16 sps:$4 sm:$0xff]   ;;  %v10300_v14 = vld [vmem:[#allocation7 + $0xcc] ss:$16 sps:$4 sm:$0xff]  }
 0x120   :  { %3596 = vmatprep.subr.bf16.mxu1 %v10240_v25  ;;  %v12531_v46 = vrot.slane %v851_v44, %v12520_v34  ;;  %v10272_v54 = vld [vmem:[#allocation7 + $0x144] ss:$16 sps:$4 sm:$0xff]   ;;  %v10283_v61 = vld [vmem:[#allocation7 + $0x160] ss:$16 sps:$4 sm:$0xff]   ;;  %3331 = vmatprep.mubr.bf16.mxu0 %v805_v12  ;;  %v10298_v15 = vld [vmem:[#allocation7 + $0xc8] ss:$16 sps:$4 sm:$0xff]   ;;  %v12542_v25 = vrot.slane %v781_v20, %v12520_v34 }
 0x121   :  { %v10278_v58 = vld [vmem:[#allocation7 + $0x164] ss:$16 sps:$4 sm:$0xff]   ;;  %v10289_v4 = vld [vmem:[#allocation7 + $0x180] ss:$16 sps:$4 sm:$0xff]   ;;  %v10306_v18 = vld [vmem:[#allocation7 + $0xec] ss:$16 sps:$4 sm:$0xff]  }
 0x122   :  { %3310 = vmatpush1.bf16.msra.mxu0 %v10242_v28  ;;  %v12535_v48 = vcombine.high %v12531_v46, %v12531_v46  ;;  %v10284_v62 = vld [vmem:[#allocation7 + $0x184] ss:$16 sps:$4 sm:$0xff]   ;;  %v10295_v11 = vld [vmem:[#allocation7 + $0x1a0] ss:$16 sps:$4 sm:$0xff]   ;;  %v10304_v19 = vld [vmem:[#allocation7 + $0xe8] ss:$16 sps:$4 sm:$0xff]  }
 0x123   :  { %3597 = vmatpush1.bf16.msra.mxu1 %v10243_v29  ;;  %3311 = vmatprep.subr.bf16.mxu0 %v10244_v30  ;;  %v10290_v7 = vld [vmem:[#allocation7 + $0x1a4] ss:$16 sps:$4 sm:$0xff]   ;;  %v10301_v16 = vld [vmem:[#allocation7 + $0x1c0] ss:$16 sps:$4 sm:$0xff]   ;;  %v10317_v23 = vld [vmem:[#allocation7 + $0x10c] ss:$16 sps:$4 sm:$0xff]   ;;  %v12544_v30 = vcombine.high %v805_v12, %v805_v12 }
 0x124   :  { %3598 = vmatprep.subr.bf16.mxu1 %v10246_v31  ;;  %v10296_v13 = vld [vmem:[#allocation7 + $0x1c4] ss:$16 sps:$4 sm:$0xff]   ;;  %v10307_v21 = vld [vmem:[#allocation7 + $0x1e0] ss:$16 sps:$4 sm:$0xff]   ;;  %v10315_v27 = vld [vmem:[#allocation7 + $0x108] ss:$16 sps:$4 sm:$0xff]  }
 0x125   :  { %v10302_v17 = vld [vmem:[#allocation7 + $0x1e4] ss:$16 sps:$4 sm:$0xff]   ;;  %v10312_v24 = vld [vmem:[#allocation7 + $0x200] ss:$16 sps:$4 sm:$0xff]   ;;  %v10323_v29 = vld [vmem:[#allocation7 + $0x12c] ss:$16 sps:$4 sm:$0xff]  }
 0x126   :  { %3312 = vmatpush1.bf16.msra.mxu0 %v10248_v32  ;;  %v10314_v22 = vld [vmem:[#allocation7 + $0x204] ss:$16 sps:$4 sm:$0xff]   ;;  %v10318_v31 = vld [vmem:[#allocation7 + $0x220] ss:$16 sps:$4 sm:$0xff]   ;;  %v10321_v32 = vld [vmem:[#allocation7 + $0x128] ss:$16 sps:$4 sm:$0xff]  }
 0x127   :  { %3599 = vmatpush1.bf16.msra.mxu1 %v10249_v33  ;;  %3313 = vmatprep.subr.bf16.mxu0 %v10250_v37  ;;  %v10320_v28 = vld [vmem:[#allocation7 + $0x224] ss:$16 sps:$4 sm:$0xff]   ;;  %v10329_v35 = vld [vmem:[#allocation7 + $0x14c] ss:$16 sps:$4 sm:$0xff]   ;;  %v10324_v36 = vld [vmem:[#allocation7 + $0x240] ss:$16 sps:$4 sm:$0xff]  }
 0x128   :  { %3600 = vmatprep.subr.bf16.mxu1 %v10252_v38  ;;  %v10326_v33 = vld [vmem:[#allocation7 + $0x244] ss:$16 sps:$4 sm:$0xff]   ;;  %v10327_v37 = vld [vmem:[#allocation7 + $0x148] ss:$16 sps:$4 sm:$0xff]   ;;  %v10360_v1 = vld [vmem:[#allocation7 + $0x300] ss:$16 sps:$4 sm:$0xff]  }
 0x129   :  { %v10332_v38 = vld [vmem:[#allocation7 + $0x264] ss:$16 sps:$4 sm:$0xff]   ;;  %v10363_v2 = vld [vmem:[#allocation7 + $0x208] ss:$16 sps:$4 sm:$0xff]   ;;  %v10366_v5 = vld [vmem:[#allocation7 + $0x320] ss:$16 sps:$4 sm:$0xff]  }
 0x12a   :  { %3314 = vmatpush1.bf16.msra.mxu0 %v10254_v41  ;;  %v10335_v41 = vld [vmem:[#allocation7 + $0x16c] ss:$16 sps:$4 sm:$0xff]   ;;  %v10338_v44 = vld [vmem:[#allocation7 + $0x284] ss:$16 sps:$4 sm:$0xff]   ;;  %v10369_v6 = vld [vmem:[#allocation7 + $0x228] ss:$16 sps:$4 sm:$0xff]  }
 0x12b   :  { %3601 = vmatpush1.bf16.msra.mxu1 %v10255_v42  ;;  %3315 = vmatprep.subr.bf16.mxu0 %v10256_v43  ;;  %v10330_v42 = vld [vmem:[#allocation7 + $0x260] ss:$16 sps:$4 sm:$0xff]   ;;  %v10333_v43 = vld [vmem:[#allocation7 + $0x168] ss:$16 sps:$4 sm:$0xff]   ;;  %v10395_v20 = vld [vmem:[#allocation7 + $0x2ac] ss:$16 sps:$4 sm:$0xff]  }
 0x12c   :  { %3627 = vmatprep.subr.bf16.mxu1 %v10264_v45  ;;  %v10341_v45 = vld [vmem:[#allocation7 + $0x18c] ss:$16 sps:$4 sm:$0xff]   ;;  %v10372_v9 = vld [vmem:[#allocation7 + $0x340] ss:$16 sps:$4 sm:$0xff]  }
 0x12e   :  { %3619 = vmatmul.mubr.bf16.vlgmr.msra.gmra.mrb[0].mxu1 %v12535_v48  ;;  %3316 = vmatpush1.bf16.msra.mxu0 %v10265_v49  ;;  %v10339_v49 = vld [vmem:[#allocation7 + $0x188] ss:$16 sps:$4 sm:$0xff]  }
 0x12f   :  { %3628 = vmatpush1.bf16.msra.mxu1 %v10262_v47  ;;  %3317 = vmatprep.subr.bf16.mxu0 %v10266_v50  ;;  %v10336_v47 = vld [vmem:[#allocation7 + $0x280] ss:$16 sps:$4 sm:$0xff]   ;;  %v10344_v50 = vld [vmem:[#allocation7 + $0x2a4] ss:$16 sps:$4 sm:$0xff]  }
 0x130   :  { %3629 = vmatprep.subr.bf16.mxu1 %v10270_v51  ;;  %3659 = vmatprep.mubr.bf16.mxu1 %v805_v12  ;;  %v10347_v51 = vld [vmem:[#allocation7 + $0x1ac] ss:$16 sps:$4 sm:$0xff]  }
 0x131   :  { %v10383_v12 = vld [vmem:[#allocation7 + $0x26c] ss:$16 sps:$4 sm:$0xff]  }
 0x132   :  { %3318 = vmatpush1.bf16.msra.mxu0 %v10271_v53  ;;  %v10345_v53 = vld [vmem:[#allocation7 + $0x1a8] ss:$16 sps:$4 sm:$0xff]  }
 0x133   :  { %3630 = vmatpush1.bf16.msra.mxu1 %v10268_v52  ;;  %3319 = vmatprep.subr.bf16.mxu0 %v10272_v54  ;;  %v10342_v52 = vld [vmem:[#allocation7 + $0x2a0] ss:$16 sps:$4 sm:$0xff]   ;;  %v10350_v54 = vld [vmem:[#allocation7 + $0x2c4] ss:$16 sps:$4 sm:$0xff]  }
 0x134   :  { %3631 = vmatprep.subr.bf16.mxu1 %v10276_v55  ;;  %v10353_v55 = vld [vmem:[#allocation7 + $0x1cc] ss:$16 sps:$4 sm:$0xff]  }
 0x136   :  { %3320 = vmatpush1.bf16.msra.mxu0 %v10277_v57  ;;  %v10351_v57 = vld [vmem:[#allocation7 + $0x1c8] ss:$16 sps:$4 sm:$0xff]  }
 0x137   :  { %3632 = vmatpush1.bf16.msra.mxu1 %v10274_v56  ;;  %3321 = vmatprep.subr.bf16.mxu0 %v10278_v58  ;;  %v10348_v56 = vld [vmem:[#allocation7 + $0x2c0] ss:$16 sps:$4 sm:$0xff]   ;;  %v10356_v58 = vld [vmem:[#allocation7 + $0x2e4] ss:$16 sps:$4 sm:$0xff]  }
 0x138   :  { %3633 = vmatprep.subr.bf16.mxu1 %v10282_v59  ;;  %v10359_v59 = vld [vmem:[#allocation7 + $0x1ec] ss:$16 sps:$4 sm:$0xff]  }
 0x13a   :  { %3322 = vmatpush1.bf16.msra.mxu0 %v10283_v61  ;;  %v10357_v61 = vld [vmem:[#allocation7 + $0x1e8] ss:$16 sps:$4 sm:$0xff]  }
 0x13b   :  { %3634 = vmatpush1.bf16.msra.mxu1 %v10280_v60  ;;  %3323 = vmatprep.subr.bf16.mxu0 %v10284_v62  ;;  %v10354_v60 = vld [vmem:[#allocation7 + $0x2e0] ss:$16 sps:$4 sm:$0xff]   ;;  %v10362_v62 = vld [vmem:[#allocation7 + $0x304] ss:$16 sps:$4 sm:$0xff]  }
 0x13c   :  { %3635 = vmatprep.subr.bf16.mxu1 %v10288_v63  ;;  %v10365_v63 = vld [vmem:[#allocation7 + $0x20c] ss:$16 sps:$4 sm:$0xff]  }
 0x13e   :  { %3324 = vmatpush1.bf16.msra.mxu0 %v10289_v4  ;;  %v10371_v4 = vld [vmem:[#allocation7 + $0x22c] ss:$16 sps:$4 sm:$0xff]  }
 0x13f   :  { %3636 = vmatpush1.bf16.msra.mxu1 %v10286_v3  ;;  %3325 = vmatprep.subr.bf16.mxu0 %v10290_v7  ;;  %v10368_v3 = vld [vmem:[#allocation7 + $0x324] ss:$16 sps:$4 sm:$0xff]  }
 0x140   :  { %3637 = vmatprep.subr.bf16.mxu1 %v10294_v8  ;;  %v10374_v7 = vld [vmem:[#allocation7 + $0x344] ss:$16 sps:$4 sm:$0xff]   ;;  %v10377_v8 = vld [vmem:[#allocation7 + $0x24c] ss:$16 sps:$4 sm:$0xff]  }
 0x142   :  { %3326 = vmatpush1.bf16.msra.mxu0 %v10295_v11  ;;  %v10380_v11 = vld [vmem:[#allocation7 + $0x364] ss:$16 sps:$4 sm:$0xff]  }
 0x143   :  { %3638 = vmatpush1.bf16.msra.mxu1 %v10292_v10  ;;  %3327 = vmatprep.subr.bf16.mxu0 %v10296_v13  ;;  %v10375_v10 = vld [vmem:[#allocation7 + $0x248] ss:$16 sps:$4 sm:$0xff]   ;;  %v10378_v13 = vld [vmem:[#allocation7 + $0x360] ss:$16 sps:$4 sm:$0xff]  }
 0x144   :  { %3639 = vmatprep.subr.bf16.mxu1 %v10300_v14  ;;  %v10381_v14 = vld [vmem:[#allocation7 + $0x268] ss:$16 sps:$4 sm:$0xff]  }
 0x146   :  { %3328 = vmatpush1.bf16.msra.mxu0 %v10301_v16  ;;  %v10389_v16 = vld [vmem:[#allocation7 + $0x28c] ss:$16 sps:$4 sm:$0xff]  }
 0x147   :  { %3640 = vmatpush1.bf16.msra.mxu1 %v10298_v15  ;;  %3329 = vmatprep.subr.bf16.mxu0 %v10302_v17  ;;  %v10386_v15 = vld [vmem:[#allocation7 + $0x384] ss:$16 sps:$4 sm:$0xff]   ;;  %v10384_v17 = vld [vmem:[#allocation7 + $0x380] ss:$16 sps:$4 sm:$0xff]  }
 0x148   :  { %3641 = vmatprep.subr.bf16.mxu1 %v10306_v18  ;;  %v10387_v18 = vld [vmem:[#allocation7 + $0x288] ss:$16 sps:$4 sm:$0xff]  }
 0x14a   :  { %3330 = vmatpush1.bf16.msra.mxu0 %v10307_v21  ;;  %v10390_v21 = vld [vmem:[#allocation7 + $0x3a0] ss:$16 sps:$4 sm:$0xff]  }
 0x14b   :  { %3642 = vmatpush1.bf16.msra.mxu1 %v10304_v19  ;;  %3340 = vmatprep.subr.bf16.mxu0 %v10314_v22  ;;  %v10392_v19 = vld [vmem:[#allocation7 + $0x3a4] ss:$16 sps:$4 sm:$0xff]   ;;  %v10393_v22 = vld [vmem:[#allocation7 + $0x2a8] ss:$16 sps:$4 sm:$0xff]  }
 0x14c   :  { %3643 = vmatprep.subr.bf16.mxu1 %v10317_v23  ;;  %v10398_v23 = vld [vmem:[#allocation7 + $0x3c4] ss:$16 sps:$4 sm:$0xff]  }
 0x14d   :  { %3332 = vmatmul.mubr.bf16.vlgmr.msra.gmra.mrb[0].mxu0 %v12542_v25 }
 0x14e   :  { %3341 = vmatpush1.bf16.msra.mxu0 %v10312_v24  ;;  %3372 = vmatprep.mubr.bf16.mxu0 %v12544_v30  ;;  %v10401_v24 = vld [vmem:[#allocation7 + $0x2cc] ss:$16 sps:$4 sm:$0xff]  }
 0x14f   :  { %3644 = vmatpush1.bf16.msra.mxu1 %v10315_v27  ;;  %3342 = vmatprep.subr.bf16.mxu0 %v10320_v28  ;;  %v10396_v27 = vld [vmem:[#allocation7 + $0x3c0] ss:$16 sps:$4 sm:$0xff]   ;;  %v10399_v28 = vld [vmem:[#allocation7 + $0x2c8] ss:$16 sps:$4 sm:$0xff]  }
 0x150   :  { %3645 = vmatprep.subr.bf16.mxu1 %v10323_v29  ;;  %v10404_v29 = vld [vmem:[#allocation7 + $0x3e4] ss:$16 sps:$4 sm:$0xff]  }
 0x152   :  { %3343 = vmatpush1.bf16.msra.mxu0 %v10318_v31  ;;  %v10402_v31 = vld [vmem:[#allocation7 + $0x3e0] ss:$16 sps:$4 sm:$0xff]  }
 0x153   :  { %3646 = vmatpush1.bf16.msra.mxu1 %v10321_v32  ;;  %3344 = vmatprep.subr.bf16.mxu0 %v10326_v33  ;;  %v10405_v32 = vld [vmem:[#allocation7 + $0x2e8] ss:$16 sps:$4 sm:$0xff]   ;;  %v10410_v33 = vld [vmem:[#allocation7 + $0x404] ss:$16 sps:$4 sm:$0xff]  }
 0x154   :  { %3647 = vmatprep.subr.bf16.mxu1 %v10329_v35  ;;  %v10413_v35 = vld [vmem:[#allocation7 + $0x30c] ss:$16 sps:$4 sm:$0xff]  }
 0x156   :  { %3345 = vmatpush1.bf16.msra.mxu0 %v10324_v36  ;;  %v10408_v36 = vld [vmem:[#allocation7 + $0x400] ss:$16 sps:$4 sm:$0xff]  }
 0x157   :  { %3648 = vmatpush1.bf16.msra.mxu1 %v10327_v37  ;;  %3346 = vmatprep.subr.bf16.mxu0 %v10332_v38  ;;  %v12552_v37 = vcombine.high %v12542_v25, %v12542_v25  ;;  %v10411_v38 = vld [vmem:[#allocation7 + $0x308] ss:$16 sps:$4 sm:$0xff]  }
 0x158   :  { %3649 = vmatprep.subr.bf16.mxu1 %v10335_v41  ;;  %v10416_v41 = vld [vmem:[#allocation7 + $0x424] ss:$16 sps:$4 sm:$0xff]  }
 0x15a   :  { %3347 = vmatpush1.bf16.msra.mxu0 %v10330_v42  ;;  %v10419_v42 = vld [vmem:[#allocation7 + $0x32c] ss:$16 sps:$4 sm:$0xff]  }
 0x15b   :  { %3650 = vmatpush1.bf16.msra.mxu1 %v10333_v43  ;;  %3348 = vmatprep.subr.bf16.mxu0 %v10338_v44  ;;  %v10414_v43 = vld [vmem:[#allocation7 + $0x420] ss:$16 sps:$4 sm:$0xff]   ;;  %v10417_v44 = vld [vmem:[#allocation7 + $0x328] ss:$16 sps:$4 sm:$0xff]  }
 0x15c   :  { %3651 = vmatprep.subr.bf16.mxu1 %v10341_v45  ;;  %v10422_v45 = vld [vmem:[#allocation7 + $0x444] ss:$16 sps:$4 sm:$0xff]  }
 0x15e   :  { %3349 = vmatpush1.bf16.msra.mxu0 %v10336_v47  ;;  %v10504_v47 = vld [vmem:[#allocation2 + $0x4] ss:$15 sps:$4 sm:$0xff]  }
 0x15f   :  { %3652 = vmatpush1.bf16.msra.mxu1 %v10339_v49  ;;  %3350 = vmatprep.subr.bf16.mxu0 %v10344_v50  ;;  %v10505_v49 = vld [vmem:[#allocation2 + $0x22] ss:$15 sps:$4 sm:$0xff]   ;;  %v12556_v50 = vrot.slane %v10504_v47, %v12520_v34  ;;  %v10500_v47 = vld [vmem:[#allocation7 + $0x5e4] ss:$16 sps:$4 sm:$0xff]  }
 0x160   :  { %3653 = vmatprep.subr.bf16.mxu1 %v10347_v51  ;;  %v12559_v51 = vrot.slane %v10505_v49, %v12520_v34  ;;  %v10503_v49 = vld [vmem:[#allocation7 + $0x4ec] ss:$16 sps:$4 sm:$0xff]  }
 0x162   :  { %3351 = vmatpush1.bf16.msra.mxu0 %v10342_v52  ;;  %v10420_v52 = vld [vmem:[#allocation7 + $0x440] ss:$16 sps:$4 sm:$0xff]  }
 0x163   :  { %3654 = vmatpush1.bf16.msra.mxu1 %v10345_v53  ;;  %3352 = vmatprep.subr.bf16.mxu0 %v10350_v54  ;;  %v10423_v53 = vld [vmem:[#allocation7 + $0x348] ss:$16 sps:$4 sm:$0xff]   ;;  %v10428_v54 = vld [vmem:[#allocation7 + $0x464] ss:$16 sps:$4 sm:$0xff]  }
 0x164   :  { %3655 = vmatprep.subr.bf16.mxu1 %v10353_v55  ;;  %v784_v55 = vcombine.high %v12556_v50, %v12559_v51 }
 0x166   :  { %3353 = vmatpush1.bf16.msra.mxu0 %v10348_v56  ;;  %v10431_v56 = vld [vmem:[#allocation7 + $0x36c] ss:$16 sps:$4 sm:$0xff]  }
 0x167   :  { %3656 = vmatpush1.bf16.msra.mxu1 %v10351_v57  ;;  %3354 = vmatprep.subr.bf16.mxu0 %v10356_v58  ;;  %v12564_v57 = vrot.slane %v784_v55, %v12520_v34  ;;  %v10426_v58 = vld [vmem:[#allocation7 + $0x460] ss:$16 sps:$4 sm:$0xff]   ;;  %v10511_v55 = vld [vmem:[#allocation7 + $0x50c] ss:$16 sps:$4 sm:$0xff]  }
 0x168   :  { %3657 = vmatprep.subr.bf16.mxu1 %v10359_v59  ;;  %v10429_v59 = vld [vmem:[#allocation7 + $0x368] ss:$16 sps:$4 sm:$0xff]  }
 0x16a   :  { %3355 = vmatpush1.bf16.msra.mxu0 %v10354_v60  ;;  %v10434_v60 = vld [vmem:[#allocation7 + $0x484] ss:$16 sps:$4 sm:$0xff]  }
 0x16b   :  { %3658 = vmatpush1.bf16.msra.mxu1 %v10357_v61  ;;  %3356 = vmatprep.subr.bf16.mxu0 %v10362_v62  ;;  %v10437_v61 = vld [vmem:[#allocation7 + $0x38c] ss:$16 sps:$4 sm:$0xff]   ;;  %v10432_v62 = vld [vmem:[#allocation7 + $0x480] ss:$16 sps:$4 sm:$0xff]  }
 0x16c   :  { %3668 = vmatprep.subr.bf16.mxu1 %v10365_v63  ;;  %v10435_v63 = vld [vmem:[#allocation7 + $0x388] ss:$16 sps:$4 sm:$0xff]  }
 0x16e   :  { %3660 = vmatmul.mubr.bf16.vlgmr.msra.gmra.mrb[4].mxu1 %v12542_v25  ;;  %3357 = vmatpush1.bf16.msra.mxu0 %v10360_v1  ;;  %v10425_v25 = vld [vmem:[#allocation7 + $0x34c] ss:$16 sps:$4 sm:$0xff]   ;;  %v10440_v1 = vld [vmem:[#allocation7 + $0x4a4] ss:$16 sps:$4 sm:$0xff]  }
 0x16f   :  { %3669 = vmatpush1.bf16.msra.mxu1 %v10363_v2  ;;  %3358 = vmatprep.subr.bf16.mxu0 %v10368_v3  ;;  %v10443_v2 = vld [vmem:[#allocation7 + $0x3ac] ss:$16 sps:$4 sm:$0xff]   ;;  %v10438_v3 = vld [vmem:[#allocation7 + $0x4a0] ss:$16 sps:$4 sm:$0xff]  }
 0x170   :  { %3670 = vmatprep.subr.bf16.mxu1 %v10371_v4  ;;  %3700 = vmatprep.mubr.bf16.mxu1 %v12544_v30  ;;  %v10407_v30 = vld [vmem:[#allocation7 + $0x2ec] ss:$16 sps:$4 sm:$0xff]   ;;  %v10441_v4 = vld [vmem:[#allocation7 + $0x3a8] ss:$16 sps:$4 sm:$0xff]  }
 0x172   :  { %3359 = vmatpush1.bf16.msra.mxu0 %v10366_v5  ;;  %v10446_v5 = vld [vmem:[#allocation7 + $0x4c4] ss:$16 sps:$4 sm:$0xff]  }
 0x173   :  { %3671 = vmatpush1.bf16.msra.mxu1 %v10369_v6  ;;  %3360 = vmatprep.subr.bf16.mxu0 %v10374_v7  ;;  %v10449_v6 = vld [vmem:[#allocation7 + $0x3cc] ss:$16 sps:$4 sm:$0xff]   ;;  %v10444_v7 = vld [vmem:[#allocation7 + $0x4c0] ss:$16 sps:$4 sm:$0xff]  }
 0x174   :  { %3672 = vmatprep.subr.bf16.mxu1 %v10377_v8  ;;  %v10447_v8 = vld [vmem:[#allocation7 + $0x3c8] ss:$16 sps:$4 sm:$0xff]  }
 0x176   :  { %3361 = vmatpush1.bf16.msra.mxu0 %v10372_v9  ;;  %v10452_v9 = vld [vmem:[#allocation7 + $0x4e4] ss:$16 sps:$4 sm:$0xff]  }
 0x177   :  { %3673 = vmatpush1.bf16.msra.mxu1 %v10375_v10  ;;  %3362 = vmatprep.subr.bf16.mxu0 %v10380_v11  ;;  %v10455_v10 = vld [vmem:[#allocation7 + $0x3ec] ss:$16 sps:$4 sm:$0xff]   ;;  %v10450_v11 = vld [vmem:[#allocation7 + $0x4e0] ss:$16 sps:$4 sm:$0xff]  }
 0x178   :  { %3674 = vmatprep.subr.bf16.mxu1 %v10383_v12  ;;  %v10453_v12 = vld [vmem:[#allocation7 + $0x3e8] ss:$16 sps:$4 sm:$0xff]  }
 0x17a   :  { %3363 = vmatpush1.bf16.msra.mxu0 %v10378_v13  ;;  %v10458_v13 = vld [vmem:[#allocation7 + $0x504] ss:$16 sps:$4 sm:$0xff]  }
 0x17b   :  { %3675 = vmatpush1.bf16.msra.mxu1 %v10381_v14  ;;  %3364 = vmatprep.subr.bf16.mxu0 %v10386_v15  ;;  %v10461_v14 = vld [vmem:[#allocation7 + $0x40c] ss:$16 sps:$4 sm:$0xff]   ;;  %v10456_v15 = vld [vmem:[#allocation7 + $0x500] ss:$16 sps:$4 sm:$0xff]  }
 0x17c   :  { %3676 = vmatprep.subr.bf16.mxu1 %v10389_v16  ;;  %v10459_v16 = vld [vmem:[#allocation7 + $0x408] ss:$16 sps:$4 sm:$0xff]  }
 0x17e   :  { %3365 = vmatpush1.bf16.msra.mxu0 %v10384_v17  ;;  %v10464_v17 = vld [vmem:[#allocation7 + $0x524] ss:$16 sps:$4 sm:$0xff]  }
 0x17f   :  { %3677 = vmatpush1.bf16.msra.mxu1 %v10387_v18  ;;  %3366 = vmatprep.subr.bf16.mxu0 %v10392_v19  ;;  %v10467_v18 = vld [vmem:[#allocation7 + $0x42c] ss:$16 sps:$4 sm:$0xff]   ;;  %v10462_v19 = vld [vmem:[#allocation7 + $0x520] ss:$16 sps:$4 sm:$0xff]  }
 0x180   :  { %3678 = vmatprep.subr.bf16.mxu1 %v10395_v20  ;;  %v10465_v20 = vld [vmem:[#allocation7 + $0x428] ss:$16 sps:$4 sm:$0xff]  }
 0x182   :  { %3367 = vmatpush1.bf16.msra.mxu0 %v10390_v21  ;;  %v10470_v21 = vld [vmem:[#allocation7 + $0x544] ss:$16 sps:$4 sm:$0xff]  }
 0x183   :  { %3679 = vmatpush1.bf16.msra.mxu1 %v10393_v22  ;;  %3368 = vmatprep.subr.bf16.mxu0 %v10398_v23  ;;  %v10473_v22 = vld [vmem:[#allocation7 + $0x44c] ss:$16 sps:$4 sm:$0xff]   ;;  %v10468_v23 = vld [vmem:[#allocation7 + $0x540] ss:$16 sps:$4 sm:$0xff]  }
 0x184   :  { %3680 = vmatprep.subr.bf16.mxu1 %v10401_v24  ;;  %v10471_v24 = vld [vmem:[#allocation7 + $0x448] ss:$16 sps:$4 sm:$0xff]  }
 0x186   :  { %3369 = vmatpush1.bf16.msra.mxu0 %v10396_v27  ;;  %v10476_v27 = vld [vmem:[#allocation7 + $0x564] ss:$16 sps:$4 sm:$0xff]  }
 0x187   :  { %3681 = vmatpush1.bf16.msra.mxu1 %v10399_v28  ;;  %3370 = vmatprep.subr.bf16.mxu0 %v10404_v29  ;;  %v10479_v28 = vld [vmem:[#allocation7 + $0x46c] ss:$16 sps:$4 sm:$0xff]   ;;  %v10474_v29 = vld [vmem:[#allocation7 + $0x560] ss:$16 sps:$4 sm:$0xff]  }
 0x188   :  { %3682 = vmatprep.subr.bf16.mxu1 %v10407_v30  ;;  %v10477_v30 = vld [vmem:[#allocation7 + $0x468] ss:$16 sps:$4 sm:$0xff]  }
 0x18a   :  { %3371 = vmatpush1.bf16.msra.mxu0 %v10402_v31  ;;  %v10482_v31 = vld [vmem:[#allocation7 + $0x584] ss:$16 sps:$4 sm:$0xff]  }
 0x18b   :  { %3683 = vmatpush1.bf16.msra.mxu1 %v10405_v32  ;;  %3381 = vmatprep.subr.bf16.mxu0 %v10410_v33  ;;  %v10485_v32 = vld [vmem:[#allocation7 + $0x48c] ss:$16 sps:$4 sm:$0xff]   ;;  %v10480_v33 = vld [vmem:[#allocation7 + $0x580] ss:$16 sps:$4 sm:$0xff]  }
 0x18c   :  { %3684 = vmatprep.subr.bf16.mxu1 %v10413_v35  ;;  %v10483_v35 = vld [vmem:[#allocation7 + $0x488] ss:$16 sps:$4 sm:$0xff]  }
 0x18d   :  { %3373 = vmatmul.mubr.bf16.vlgmr.msra.gmra.mrb[0].mxu0 %v12552_v37 }
 0x18e   :  { %3382 = vmatpush1.bf16.msra.mxu0 %v10408_v36  ;;  %3413 = vmatprep.mubr.bf16.mxu0 %v12564_v57  ;;  %v10488_v36 = vld [vmem:[#allocation7 + $0x5a4] ss:$16 sps:$4 sm:$0xff]  }
 0x18f   :  { %3685 = vmatpush1.bf16.msra.mxu1 %v10411_v38  ;;  %3383 = vmatprep.subr.bf16.mxu0 %v10416_v41  ;;  %v10486_v38 = vld [vmem:[#allocation7 + $0x5a0] ss:$16 sps:$4 sm:$0xff]   ;;  %v10489_v41 = vld [vmem:[#allocation7 + $0x4a8] ss:$16 sps:$4 sm:$0xff]  }
 0x190   :  { %3686 = vmatprep.subr.bf16.mxu1 %v10419_v42  ;;  %v10494_v42 = vld [vmem:[#allocation7 + $0x5c4] ss:$16 sps:$4 sm:$0xff]  }
 0x192   :  { %3384 = vmatpush1.bf16.msra.mxu0 %v10414_v43  ;;  %v10497_v43 = vld [vmem:[#allocation7 + $0x4cc] ss:$16 sps:$4 sm:$0xff]  }
 0x193   :  { %3687 = vmatpush1.bf16.msra.mxu1 %v10417_v44  ;;  %3385 = vmatprep.subr.bf16.mxu0 %v10422_v45  ;;  %v10492_v44 = vld [vmem:[#allocation7 + $0x5c0] ss:$16 sps:$4 sm:$0xff]   ;;  %v10495_v45 = vld [vmem:[#allocation7 + $0x4c8] ss:$16 sps:$4 sm:$0xff]  }
 0x194   :  { %3688 = vmatprep.subr.bf16.mxu1 %v10425_v25  ;;  %v10498_v25 = vld [vmem:[#allocation7 + $0x5e0] ss:$16 sps:$4 sm:$0xff]  }
 0x196   :  { %3386 = vmatpush1.bf16.msra.mxu0 %v10420_v52  ;;  %v783_v52 = vcombine.low %v12556_v50, %v12559_v51  ;;  %v12576_v50 = vcombine.high %v12564_v57, %v12564_v57  ;;  %v10512_v51 = vld [vmem:[#allocation7 + $0x620] ss:$16 sps:$4 sm:$0xff]  }
 0x197   :  { %3689 = vmatpush1.bf16.msra.mxu1 %v10423_v53  ;;  %3387 = vmatprep.subr.bf16.mxu0 %v10428_v54  ;;  %v10501_v53 = vld [vmem:[#allocation7 + $0x4e8] ss:$16 sps:$4 sm:$0xff]   ;;  %v10508_v54 = vld [vmem:[#allocation7 + $0x604] ss:$16 sps:$4 sm:$0xff]  }
 0x198   :  { %3690 = vmatprep.subr.bf16.mxu1 %v10431_v56  ;;  %v10506_v56 = vld [vmem:[#allocation7 + $0x600] ss:$16 sps:$4 sm:$0xff]  }
 0x19a   :  { %3388 = vmatpush1.bf16.msra.mxu0 %v10426_v58  ;;  %v12572_v58 = vrot.slane %v783_v52, %v12520_v34  ;;  %v10589_v52 = vld [vmem:[#allocation7 + $0x6ac] ss:$16 sps:$4 sm:$0xff]  }
 0x19b   :  { %3691 = vmatpush1.bf16.msra.mxu1 %v10429_v59  ;;  %3389 = vmatprep.subr.bf16.mxu0 %v10434_v60  ;;  %v10509_v59 = vld [vmem:[#allocation7 + $0x508] ss:$16 sps:$4 sm:$0xff]   ;;  %v10514_v60 = vld [vmem:[#allocation7 + $0x624] ss:$16 sps:$4 sm:$0xff]  }
 0x19c   :  { %3692 = vmatprep.subr.bf16.mxu1 %v10437_v61  ;;  %v10517_v61 = vld [vmem:[#allocation7 + $0x52c] ss:$16 sps:$4 sm:$0xff]  }
 0x19e   :  { %3390 = vmatpush1.bf16.msra.mxu0 %v10432_v62  ;;  %v10515_v62 = vld [vmem:[#allocation7 + $0x528] ss:$16 sps:$4 sm:$0xff]  }
 0x19f   :  { %3693 = vmatpush1.bf16.msra.mxu1 %v10435_v63  ;;  %3391 = vmatprep.subr.bf16.mxu0 %v10440_v1  ;;  %v10520_v63 = vld [vmem:[#allocation7 + $0x644] ss:$16 sps:$4 sm:$0xff]   ;;  %v10523_v1 = vld [vmem:[#allocation7 + $0x54c] ss:$16 sps:$4 sm:$0xff]  }
 0x1a0   :  { %3694 = vmatprep.subr.bf16.mxu1 %v10443_v2  ;;  %v10518_v2 = vld [vmem:[#allocation7 + $0x640] ss:$16 sps:$4 sm:$0xff]  }
 0x1a2   :  { %3392 = vmatpush1.bf16.msra.mxu0 %v10438_v3  ;;  %v10521_v3 = vld [vmem:[#allocation7 + $0x548] ss:$16 sps:$4 sm:$0xff]  }
 0x1a3   :  { %3695 = vmatpush1.bf16.msra.mxu1 %v10441_v4  ;;  %3393 = vmatprep.subr.bf16.mxu0 %v10446_v5  ;;  %v10526_v4 = vld [vmem:[#allocation7 + $0x664] ss:$16 sps:$4 sm:$0xff]   ;;  %v10524_v5 = vld [vmem:[#allocation7 + $0x660] ss:$16 sps:$4 sm:$0xff]  }
 0x1a4   :  { %3696 = vmatprep.subr.bf16.mxu1 %v10449_v6  ;;  %v10527_v6 = vld [vmem:[#allocation7 + $0x568] ss:$16 sps:$4 sm:$0xff]  }
 0x1a6   :  { %3394 = vmatpush1.bf16.msra.mxu0 %v10444_v7  ;;  %v10532_v7 = vld [vmem:[#allocation7 + $0x684] ss:$16 sps:$4 sm:$0xff]  }
 0x1a7   :  { %3697 = vmatpush1.bf16.msra.mxu1 %v10447_v8  ;;  %3395 = vmatprep.subr.bf16.mxu0 %v10452_v9  ;;  %v10535_v8 = vld [vmem:[#allocation7 + $0x58c] ss:$16 sps:$4 sm:$0xff]   ;;  %v10530_v9 = vld [vmem:[#allocation7 + $0x680] ss:$16 sps:$4 sm:$0xff]  }
 0x1a8   :  { %3698 = vmatprep.subr.bf16.mxu1 %v10455_v10  ;;  %v10533_v10 = vld [vmem:[#allocation7 + $0x588] ss:$16 sps:$4 sm:$0xff]  }
 0x1aa   :  { %3396 = vmatpush1.bf16.msra.mxu0 %v10450_v11  ;;  %v10538_v11 = vld [vmem:[#allocation7 + $0x6a4] ss:$16 sps:$4 sm:$0xff]  }
 0x1ab   :  { %3699 = vmatpush1.bf16.msra.mxu1 %v10453_v12  ;;  %3397 = vmatprep.subr.bf16.mxu0 %v10458_v13  ;;  %v10541_v12 = vld [vmem:[#allocation7 + $0x5ac] ss:$16 sps:$4 sm:$0xff]   ;;  %v10536_v13 = vld [vmem:[#allocation7 + $0x6a0] ss:$16 sps:$4 sm:$0xff]  }
 0x1ac   :  { %3709 = vmatprep.subr.bf16.mxu1 %v10461_v14  ;;  %v10539_v14 = vld [vmem:[#allocation7 + $0x5a8] ss:$16 sps:$4 sm:$0xff]  }
 0x1ae   :  { %3701 = vmatmul.mubr.bf16.vlgmr.msra.gmra.mrb[4].mxu1 %v12552_v37  ;;  %3398 = vmatpush1.bf16.msra.mxu0 %v10456_v15  ;;  %v10491_v37 = vld [vmem:[#allocation7 + $0x4ac] ss:$16 sps:$4 sm:$0xff]   ;;  %v10544_v15 = vld [vmem:[#allocation7 + $0x6c4] ss:$16 sps:$4 sm:$0xff]  }
 0x1af   :  { %3710 = vmatpush1.bf16.msra.mxu1 %v10459_v16  ;;  %3399 = vmatprep.subr.bf16.mxu0 %v10464_v17  ;;  %v10547_v16 = vld [vmem:[#allocation7 + $0x5cc] ss:$16 sps:$4 sm:$0xff]   ;;  %v10542_v17 = vld [vmem:[#allocation7 + $0x6c0] ss:$16 sps:$4 sm:$0xff]  }
 0x1b0   :  { %3711 = vmatprep.subr.bf16.mxu1 %v10467_v18  ;;  %3741 = vmatprep.mubr.bf16.mxu1 %v12564_v57  ;;  %v10529_v57 = vld [vmem:[#allocation7 + $0x56c] ss:$16 sps:$4 sm:$0xff]   ;;  %v10545_v18 = vld [vmem:[#allocation7 + $0x5c8] ss:$16 sps:$4 sm:$0xff]  }
 0x1b2   :  { %3400 = vmatpush1.bf16.msra.mxu0 %v10462_v19  ;;  %v10550_v19 = vld [vmem:[#allocation7 + $0x6e4] ss:$16 sps:$4 sm:$0xff]  }
 0x1b3   :  { %3712 = vmatpush1.bf16.msra.mxu1 %v10465_v20  ;;  %3401 = vmatprep.subr.bf16.mxu0 %v10470_v21  ;;  %v10553_v20 = vld [vmem:[#allocation7 + $0x5ec] ss:$16 sps:$4 sm:$0xff]   ;;  %v10548_v21 = vld [vmem:[#allocation7 + $0x6e0] ss:$16 sps:$4 sm:$0xff]  }
 0x1b4   :  { %3713 = vmatprep.subr.bf16.mxu1 %v10473_v22  ;;  %v10551_v22 = vld [vmem:[#allocation7 + $0x5e8] ss:$16 sps:$4 sm:$0xff]  }
 0x1b6   :  { %3402 = vmatpush1.bf16.msra.mxu0 %v10468_v23  ;;  %v10556_v23 = vld [vmem:[#allocation7 + $0x704] ss:$16 sps:$4 sm:$0xff]  }
 0x1b7   :  { %3714 = vmatpush1.bf16.msra.mxu1 %v10471_v24  ;;  %3403 = vmatprep.subr.bf16.mxu0 %v10476_v27  ;;  %v10559_v24 = vld [vmem:[#allocation7 + $0x60c] ss:$16 sps:$4 sm:$0xff]   ;;  %v10554_v27 = vld [vmem:[#allocation7 + $0x700] ss:$16 sps:$4 sm:$0xff]  }
 0x1b8   :  { %3715 = vmatprep.subr.bf16.mxu1 %v10479_v28  ;;  %v10557_v28 = vld [vmem:[#allocation7 + $0x608] ss:$16 sps:$4 sm:$0xff]  }
 0x1ba   :  { %3404 = vmatpush1.bf16.msra.mxu0 %v10474_v29  ;;  %v10562_v29 = vld [vmem:[#allocation7 + $0x724] ss:$16 sps:$4 sm:$0xff]  }
 0x1bb   :  { %3716 = vmatpush1.bf16.msra.mxu1 %v10477_v30  ;;  %3405 = vmatprep.subr.bf16.mxu0 %v10482_v31  ;;  %v10565_v30 = vld [vmem:[#allocation7 + $0x62c] ss:$16 sps:$4 sm:$0xff]   ;;  %v10560_v31 = vld [vmem:[#allocation7 + $0x720] ss:$16 sps:$4 sm:$0xff]  }
 0x1bc   :  { %3717 = vmatprep.subr.bf16.mxu1 %v10485_v32  ;;  %v10563_v32 = vld [vmem:[#allocation7 + $0x628] ss:$16 sps:$4 sm:$0xff]  }
 0x1be   :  { %3406 = vmatpush1.bf16.msra.mxu0 %v10480_v33  ;;  %v10568_v33 = vld [vmem:[#allocation7 + $0x744] ss:$16 sps:$4 sm:$0xff]  }
 0x1bf   :  { %3718 = vmatpush1.bf16.msra.mxu1 %v10483_v35  ;;  %3407 = vmatprep.subr.bf16.mxu0 %v10488_v36  ;;  %v10571_v35 = vld [vmem:[#allocation7 + $0x64c] ss:$16 sps:$4 sm:$0xff]   ;;  %v10566_v36 = vld [vmem:[#allocation7 + $0x740] ss:$16 sps:$4 sm:$0xff]  }
 0x1c0   :  { %3719 = vmatprep.subr.bf16.mxu1 %v10491_v37  ;;  %v10569_v37 = vld [vmem:[#allocation7 + $0x648] ss:$16 sps:$4 sm:$0xff]  }
 0x1c2   :  { %3408 = vmatpush1.bf16.msra.mxu0 %v10486_v38  ;;  %v10574_v38 = vld [vmem:[#allocation7 + $0x764] ss:$16 sps:$4 sm:$0xff]  }
 0x1c3   :  { %3720 = vmatpush1.bf16.msra.mxu1 %v10489_v41  ;;  %3409 = vmatprep.subr.bf16.mxu0 %v10494_v42  ;;  %v10577_v41 = vld [vmem:[#allocation7 + $0x66c] ss:$16 sps:$4 sm:$0xff]   ;;  %v10572_v42 = vld [vmem:[#allocation7 + $0x760] ss:$16 sps:$4 sm:$0xff]  }
 0x1c4   :  { %3721 = vmatprep.subr.bf16.mxu1 %v10497_v43  ;;  %v10575_v43 = vld [vmem:[#allocation7 + $0x668] ss:$16 sps:$4 sm:$0xff]  }
 0x1c6   :  { %3410 = vmatpush1.bf16.msra.mxu0 %v10492_v44  ;;  %v10580_v44 = vld [vmem:[#allocation7 + $0x784] ss:$16 sps:$4 sm:$0xff]  }
 0x1c7   :  { %3722 = vmatpush1.bf16.msra.mxu1 %v10495_v45  ;;  %3411 = vmatprep.subr.bf16.mxu0 %v10500_v47  ;;  %v10583_v45 = vld [vmem:[#allocation7 + $0x68c] ss:$16 sps:$4 sm:$0xff]   ;;  %v10578_v47 = vld [vmem:[#allocation7 + $0x780] ss:$16 sps:$4 sm:$0xff]  }
 0x1c8   :  { %3723 = vmatprep.subr.bf16.mxu1 %v10503_v49  ;;  %v10581_v49 = vld [vmem:[#allocation7 + $0x688] ss:$16 sps:$4 sm:$0xff]  }
 0x1ca   :  { %3412 = vmatpush1.bf16.msra.mxu0 %v10498_v25  ;;  %v10586_v25 = vld [vmem:[#allocation7 + $0x7a4] ss:$16 sps:$4 sm:$0xff]  }
 0x1cb   :  { %3724 = vmatpush1.bf16.msra.mxu1 %v10501_v53  ;;  %3422 = vmatprep.subr.bf16.mxu0 %v10508_v54  ;;  %v10584_v53 = vld [vmem:[#allocation7 + $0x7a0] ss:$16 sps:$4 sm:$0xff]   ;;  %v10587_v54 = vld [vmem:[#allocation7 + $0x6a8] ss:$16 sps:$4 sm:$0xff]  }
 0x1cc   :  { %3725 = vmatprep.subr.bf16.mxu1 %v10511_v55  ;;  %v10592_v55 = vld [vmem:[#allocation7 + $0x7c4] ss:$16 sps:$4 sm:$0xff]  }
 0x1cd   :  { %3414 = vmatmul.mubr.bf16.vlgmr.msra.gmra.mrb[0].mxu0 %v12572_v58 }
 0x1ce   :  { %3423 = vmatpush1.bf16.msra.mxu0 %v10506_v56  ;;  %3454 = vmatprep.mubr.bf16.mxu0 %v12576_v50  ;;  %v10595_v56 = vld [vmem:[#allocation7 + $0x6cc] ss:$16 sps:$4 sm:$0xff]  }
 0x1cf   :  { %3726 = vmatpush1.bf16.msra.mxu1 %v10509_v59  ;;  %3424 = vmatprep.subr.bf16.mxu0 %v10514_v60  ;;  %v10698_v60 = vld [vmem:[#allocation2 + $0x8] ss:$15 sps:$4 sm:$0xff]  }
 0x1d0   :  { %3727 = vmatprep.subr.bf16.mxu1 %v10517_v61  ;;  %v10699_v61 = vld [vmem:[#allocation2 + $0x26] ss:$15 sps:$4 sm:$0xff]  }
 0x1d2   :  { %3425 = vmatpush1.bf16.msra.mxu0 %v10512_v51  ;;  %v10590_v51 = vld [vmem:[#allocation7 + $0x7c0] ss:$16 sps:$4 sm:$0xff]  }
 0x1d3   :  { %3728 = vmatpush1.bf16.msra.mxu1 %v10515_v62  ;;  %3426 = vmatprep.subr.bf16.mxu0 %v10520_v63  ;;  %v10593_v63 = vld [vmem:[#allocation7 + $0x6c8] ss:$16 sps:$4 sm:$0xff]  }
 0x1d4   :  { %3729 = vmatprep.subr.bf16.mxu1 %v10523_v1 }
 0x1d6   :  { %3427 = vmatpush1.bf16.msra.mxu0 %v10518_v2  ;;  %v10598_v2 = vld [vmem:[#allocation7 + $0x7e4] ss:$16 sps:$4 sm:$0xff]  }
 0x1d7   :  { %3730 = vmatpush1.bf16.msra.mxu1 %v10521_v3  ;;  %3428 = vmatprep.subr.bf16.mxu0 %v10526_v4  ;;  %v10601_v3 = vld [vmem:[#allocation7 + $0x6ec] ss:$16 sps:$4 sm:$0xff]   ;;  %v12587_v4 = vrot.slane %v10698_v60, %v12520_v34  ;;  %v10664_v60 = vld [vmem:[#allocation7 + $0x944] ss:$16 sps:$4 sm:$0xff]  }
 0x1d8   :  { %3731 = vmatprep.subr.bf16.mxu1 %v10529_v57  ;;  %v12590_v57 = vrot.slane %v10699_v61, %v12520_v34  ;;  %v10667_v61 = vld [vmem:[#allocation7 + $0x84c] ss:$16 sps:$4 sm:$0xff]  }
 0x1da   :  { %3429 = vmatpush1.bf16.msra.mxu0 %v10524_v5  ;;  %v10596_v5 = vld [vmem:[#allocation7 + $0x7e0] ss:$16 sps:$4 sm:$0xff]  }
 0x1db   :  { %3732 = vmatpush1.bf16.msra.mxu1 %v10527_v6  ;;  %3430 = vmatprep.subr.bf16.mxu0 %v10532_v7  ;;  %v10599_v6 = vld [vmem:[#allocation7 + $0x6e8] ss:$16 sps:$4 sm:$0xff]   ;;  %v10604_v7 = vld [vmem:[#allocation7 + $0x804] ss:$16 sps:$4 sm:$0xff]  }
 0x1dc   :  { %3733 = vmatprep.subr.bf16.mxu1 %v10535_v8  ;;  %v10607_v8 = vld [vmem:[#allocation7 + $0x70c] ss:$16 sps:$4 sm:$0xff]  }
 0x1de   :  { %3431 = vmatpush1.bf16.msra.mxu0 %v10530_v9  ;;  %v850_v9 = vcombine.high %v12587_v4, %v12590_v57 }
 0x1df   :  { %3734 = vmatpush1.bf16.msra.mxu1 %v10533_v10  ;;  %3432 = vmatprep.subr.bf16.mxu0 %v10538_v11  ;;  %v10602_v10 = vld [vmem:[#allocation7 + $0x800] ss:$16 sps:$4 sm:$0xff]   ;;  %v12596_v11 = vcombine.high %v12572_v58, %v12572_v58 }
 0x1e0   :  { %3735 = vmatprep.subr.bf16.mxu1 %v10541_v12  ;;  %v10605_v12 = vld [vmem:[#allocation7 + $0x708] ss:$16 sps:$4 sm:$0xff]  }
 0x1e2   :  { %3433 = vmatpush1.bf16.msra.mxu0 %v10536_v13  ;;  %v10610_v13 = vld [vmem:[#allocation7 + $0x824] ss:$16 sps:$4 sm:$0xff]  }
 0x1e3   :  { %3736 = vmatpush1.bf16.msra.mxu1 %v10539_v14  ;;  %3434 = vmatprep.subr.bf16.mxu0 %v10544_v15  ;;  %v10613_v14 = vld [vmem:[#allocation7 + $0x72c] ss:$16 sps:$4 sm:$0xff]   ;;  %v12599_v15 = vrot.slane %v850_v9, %v12520_v34  ;;  %v10682_v9 = vld [vmem:[#allocation7 + $0x9a4] ss:$16 sps:$4 sm:$0xff]  }
 0x1e4   :  { %3737 = vmatprep.subr.bf16.mxu1 %v10547_v16  ;;  %v10608_v16 = vld [vmem:[#allocation7 + $0x820] ss:$16 sps:$4 sm:$0xff]  }
 0x1e6   :  { %3435 = vmatpush1.bf16.msra.mxu0 %v10542_v17  ;;  %v10611_v17 = vld [vmem:[#allocation7 + $0x728] ss:$16 sps:$4 sm:$0xff]  }
 0x1e7   :  { %3738 = vmatpush1.bf16.msra.mxu1 %v10545_v18  ;;  %3436 = vmatprep.subr.bf16.mxu0 %v10550_v19  ;;  %v10619_v18 = vld [vmem:[#allocation7 + $0x74c] ss:$16 sps:$4 sm:$0xff]   ;;  %v10614_v19 = vld [vmem:[#allocation7 + $0x840] ss:$16 sps:$4 sm:$0xff]  }
 0x1e8   :  { %3739 = vmatprep.subr.bf16.mxu1 %v10553_v20  ;;  %v10617_v20 = vld [vmem:[#allocation7 + $0x748] ss:$16 sps:$4 sm:$0xff]  }
 0x1ea   :  { %3437 = vmatpush1.bf16.msra.mxu0 %v10548_v21  ;;  %v10622_v21 = vld [vmem:[#allocation7 + $0x864] ss:$16 sps:$4 sm:$0xff]  }
 0x1eb   :  { %3740 = vmatpush1.bf16.msra.mxu1 %v10551_v22  ;;  %3438 = vmatprep.subr.bf16.mxu0 %v10556_v23  ;;  %v10625_v22 = vld [vmem:[#allocation7 + $0x76c] ss:$16 sps:$4 sm:$0xff]   ;;  %v10620_v23 = vld [vmem:[#allocation7 + $0x860] ss:$16 sps:$4 sm:$0xff]  }
 0x1ec   :  { %3750 = vmatprep.subr.bf16.mxu1 %v10559_v24  ;;  %v10623_v24 = vld [vmem:[#allocation7 + $0x768] ss:$16 sps:$4 sm:$0xff]  }
 0x1ee   :  { %3742 = vmatmul.mubr.bf16.vlgmr.msra.gmra.mrb[4].mxu1 %v12572_v58  ;;  %3439 = vmatpush1.bf16.msra.mxu0 %v10554_v27  ;;  %v10616_v58 = vld [vmem:[#allocation7 + $0x844] ss:$16 sps:$4 sm:$0xff]  }
 0x1ef   :  { %3751 = vmatpush1.bf16.msra.mxu1 %v10557_v28  ;;  %3440 = vmatprep.subr.bf16.mxu0 %v10562_v29  ;;  %v10628_v27 = vld [vmem:[#allocation7 + $0x884] ss:$16 sps:$4 sm:$0xff]   ;;  %v10631_v28 = vld [vmem:[#allocation7 + $0x78c] ss:$16 sps:$4 sm:$0xff]   ;;  %v10626_v29 = vld [vmem:[#allocation7 + $0x880] ss:$16 sps:$4 sm:$0xff]  }
 0x1f0   :  { %3752 = vmatprep.subr.bf16.mxu1 %v10565_v30  ;;  %3782 = vmatprep.mubr.bf16.mxu1 %v12576_v50  ;;  %v10629_v30 = vld [vmem:[#allocation7 + $0x788] ss:$16 sps:$4 sm:$0xff]  }
 0x1f2   :  { %3441 = vmatpush1.bf16.msra.mxu0 %v10560_v31  ;;  %v10634_v31 = vld [vmem:[#allocation7 + $0x8a4] ss:$16 sps:$4 sm:$0xff]  }
 0x1f3   :  { %3753 = vmatpush1.bf16.msra.mxu1 %v10563_v32  ;;  %3442 = vmatprep.subr.bf16.mxu0 %v10568_v33  ;;  %v10637_v32 = vld [vmem:[#allocation7 + $0x7ac] ss:$16 sps:$4 sm:$0xff]   ;;  %v10632_v33 = vld [vmem:[#allocation7 + $0x8a0] ss:$16 sps:$4 sm:$0xff]  }
 0x1f4   :  { %3754 = vmatprep.subr.bf16.mxu1 %v10571_v35  ;;  %v10635_v35 = vld [vmem:[#allocation7 + $0x7a8] ss:$16 sps:$4 sm:$0xff]  }
 0x1f6   :  { %3443 = vmatpush1.bf16.msra.mxu0 %v10566_v36  ;;  %v10640_v36 = vld [vmem:[#allocation7 + $0x8c4] ss:$16 sps:$4 sm:$0xff]  }
 0x1f7   :  { %3755 = vmatpush1.bf16.msra.mxu1 %v10569_v37  ;;  %3444 = vmatprep.subr.bf16.mxu0 %v10574_v38  ;;  %v10643_v37 = vld [vmem:[#allocation7 + $0x7cc] ss:$16 sps:$4 sm:$0xff]   ;;  %v10638_v38 = vld [vmem:[#allocation7 + $0x8c0] ss:$16 sps:$4 sm:$0xff]  }
 0x1f8   :  { %3756 = vmatprep.subr.bf16.mxu1 %v10577_v41  ;;  %v10641_v41 = vld [vmem:[#allocation7 + $0x7c8] ss:$16 sps:$4 sm:$0xff]  }
 0x1fa   :  { %3445 = vmatpush1.bf16.msra.mxu0 %v10572_v42  ;;  %v10646_v42 = vld [vmem:[#allocation7 + $0x8e4] ss:$16 sps:$4 sm:$0xff]  }
 0x1fb   :  { %3757 = vmatpush1.bf16.msra.mxu1 %v10575_v43  ;;  %3446 = vmatprep.subr.bf16.mxu0 %v10580_v44  ;;  %v10649_v43 = vld [vmem:[#allocation7 + $0x7ec] ss:$16 sps:$4 sm:$0xff]   ;;  %v10644_v44 = vld [vmem:[#allocation7 + $0x8e0] ss:$16 sps:$4 sm:$0xff]  }
 0x1fc   :  { %3758 = vmatprep.subr.bf16.mxu1 %v10583_v45  ;;  %v10647_v45 = vld [vmem:[#allocation7 + $0x7e8] ss:$16 sps:$4 sm:$0xff]  }
 0x1fe   :  { %3447 = vmatpush1.bf16.msra.mxu0 %v10578_v47  ;;  %v10652_v47 = vld [vmem:[#allocation7 + $0x904] ss:$16 sps:$4 sm:$0xff]  }
 0x1ff   :  { %3759 = vmatpush1.bf16.msra.mxu1 %v10581_v49  ;;  %3448 = vmatprep.subr.bf16.mxu0 %v10586_v25  ;;  %v10655_v49 = vld [vmem:[#allocation7 + $0x80c] ss:$16 sps:$4 sm:$0xff]   ;;  %v10650_v25 = vld [vmem:[#allocation7 + $0x900] ss:$16 sps:$4 sm:$0xff]  }
 0x200   :  { %3760 = vmatprep.subr.bf16.mxu1 %v10589_v52  ;;  %v10653_v52 = vld [vmem:[#allocation7 + $0x808] ss:$16 sps:$4 sm:$0xff]  }
 0x201   :  { %v12582_v59 = vpop.f32.mrb[0].mxu1 }
 0x202   :  { %v12584_v50 = vpop.f32.mrb[1].mxu1  ;;  %3449 = vmatpush1.bf16.msra.mxu0 %v10584_v53  ;;  %v10658_v53 = vld [vmem:[#allocation7 + $0x924] ss:$16 sps:$4 sm:$0xff]  }
 0x203   :  { %v3624_v62 = vpop.f32.mrb[2].mxu1  ;;  %3761 = vmatpush1.bf16.msra.mxu1 %v10587_v54  ;;  %3450 = vmatprep.subr.bf16.mxu0 %v10592_v55  ;;  %v10661_v54 = vld [vmem:[#allocation7 + $0x82c] ss:$16 sps:$4 sm:$0xff]   ;;  %v10656_v55 = vld [vmem:[#allocation7 + $0x920] ss:$16 sps:$4 sm:$0xff]  }
 0x204   :  { %v3625_v1 = vpop.f32.mrb[3].mxu1  ;;  %3762 = vmatprep.subr.bf16.mxu1 %v10595_v56  ;;  %v10659_v56 = vld [vmem:[#allocation7 + $0x828] ss:$16 sps:$4 sm:$0xff]  }
 0x205   :  { %v10665_v62 = vld [vmem:[#allocation7 + $0x848] ss:$16 sps:$4 sm:$0xff]   ;;  %v10673_v1 = vld [vmem:[#allocation7 + $0x86c] ss:$16 sps:$4 sm:$0xff]  }
 0x206   :  { %3451 = vmatpush1.bf16.msra.mxu0 %v10590_v51  ;;  %v10662_v51 = vld [vmem:[#allocation7 + $0x940] ss:$16 sps:$4 sm:$0xff]  }
 0x207   :  { %3763 = vmatpush1.bf16.msra.mxu1 %v10593_v63  ;;  %3452 = vmatprep.subr.bf16.mxu0 %v10598_v2  ;;  %v10670_v63 = vld [vmem:[#allocation7 + $0x964] ss:$16 sps:$4 sm:$0xff]   ;;  %v10668_v2 = vld [vmem:[#allocation7 + $0x960] ss:$16 sps:$4 sm:$0xff]  }
 0x208   :  { %3764 = vmatprep.subr.bf16.mxu1 %v10601_v3  ;;  %v10671_v3 = vld [vmem:[#allocation7 + $0x868] ss:$16 sps:$4 sm:$0xff]  }
 0x20a   :  { %3453 = vmatpush1.bf16.msra.mxu0 %v10596_v5  ;;  %v10676_v5 = vld [vmem:[#allocation7 + $0x984] ss:$16 sps:$4 sm:$0xff]  }
 0x20b   :  { %3765 = vmatpush1.bf16.msra.mxu1 %v10599_v6  ;;  %3463 = vmatprep.subr.bf16.mxu0 %v10604_v7  ;;  %v10679_v6 = vld [vmem:[#allocation7 + $0x88c] ss:$16 sps:$4 sm:$0xff]   ;;  %v10674_v7 = vld [vmem:[#allocation7 + $0x980] ss:$16 sps:$4 sm:$0xff]  }
 0x20c   :  { %3766 = vmatprep.subr.bf16.mxu1 %v10607_v8  ;;  %v10677_v8 = vld [vmem:[#allocation7 + $0x888] ss:$16 sps:$4 sm:$0xff]  }
 0x20d   :  { %3455 = vmatmul.mubr.bf16.vlgmr.msra.gmra.mrb[0].mxu0 %v12596_v11 }
 0x20e   :  { %3464 = vmatpush1.bf16.msra.mxu0 %v10602_v10  ;;  %3495 = vmatprep.mubr.bf16.mxu0 %v12599_v15  ;;  %v10685_v10 = vld [vmem:[#allocation7 + $0x8ac] ss:$16 sps:$4 sm:$0xff]  }
 0x20f   :  { %3767 = vmatpush1.bf16.msra.mxu1 %v10605_v12  ;;  %3465 = vmatprep.subr.bf16.mxu0 %v10610_v13  ;;  %v10683_v12 = vld [vmem:[#allocation7 + $0x8a8] ss:$16 sps:$4 sm:$0xff]   ;;  %v10688_v13 = vld [vmem:[#allocation7 + $0x9c4] ss:$16 sps:$4 sm:$0xff]  }
 0x210   :  { %3768 = vmatprep.subr.bf16.mxu1 %v10613_v14  ;;  %v10691_v14 = vld [vmem:[#allocation7 + $0x8cc] ss:$16 sps:$4 sm:$0xff]  }
 0x212   :  { %3466 = vmatpush1.bf16.msra.mxu0 %v10608_v16  ;;  %v10686_v16 = vld [vmem:[#allocation7 + $0x9c0] ss:$16 sps:$4 sm:$0xff]  }
 0x213   :  { %3769 = vmatpush1.bf16.msra.mxu1 %v10611_v17  ;;  %3467 = vmatprep.subr.bf16.mxu0 %v10616_v58  ;;  %v10689_v17 = vld [vmem:[#allocation7 + $0x8c8] ss:$16 sps:$4 sm:$0xff]   ;;  %v10694_v58 = vld [vmem:[#allocation7 + $0x9e4] ss:$16 sps:$4 sm:$0xff]  }
 0x214   :  { %3770 = vmatprep.subr.bf16.mxu1 %v10619_v18  ;;  %v10697_v18 = vld [vmem:[#allocation7 + $0x8ec] ss:$16 sps:$4 sm:$0xff]  }
 0x216   :  { %3468 = vmatpush1.bf16.msra.mxu0 %v10614_v19  ;;  %v849_v19 = vcombine.low %v12587_v4, %v12590_v57  ;;  %v10706_v4 = vld [vmem:[#allocation7 + $0xa20] ss:$16 sps:$4 sm:$0xff]   ;;  %v10709_v57 = vld [vmem:[#allocation7 + $0x928] ss:$16 sps:$4 sm:$0xff]  }
 0x217   :  { %3771 = vmatpush1.bf16.msra.mxu1 %v10617_v20  ;;  %3469 = vmatprep.subr.bf16.mxu0 %v10622_v21  ;;  %v10692_v20 = vld [vmem:[#allocation7 + $0x9e0] ss:$16 sps:$4 sm:$0xff]   ;;  %v10695_v21 = vld [vmem:[#allocation7 + $0x8e8] ss:$16 sps:$4 sm:$0xff]  }
 0x218   :  { %3772 = vmatprep.subr.bf16.mxu1 %v10625_v22  ;;  %v10702_v22 = vld [vmem:[#allocation7 + $0xa04] ss:$16 sps:$4 sm:$0xff]  }
 0x21a   :  { %3470 = vmatpush1.bf16.msra.mxu0 %v10620_v23  ;;  %v10705_v23 = vld [vmem:[#allocation7 + $0x90c] ss:$16 sps:$4 sm:$0xff]  }
 0x21b   :  { %3773 = vmatpush1.bf16.msra.mxu1 %v10623_v24  ;;  %3471 = vmatprep.subr.bf16.mxu0 %v10628_v27  ;;  %v10700_v24 = vld [vmem:[#allocation7 + $0xa00] ss:$16 sps:$4 sm:$0xff]   ;;  %v10703_v27 = vld [vmem:[#allocation7 + $0x908] ss:$16 sps:$4 sm:$0xff]  }
 0x21c   :  { %3774 = vmatprep.subr.bf16.mxu1 %v10631_v28  ;;  %v12608_v28 = vrot.slane %v849_v19, %v12520_v34  ;;  %v10772_v19 = vld [vmem:[#allocation7 + $0xb80] ss:$16 sps:$4 sm:$0xff]  }
 0x21e   :  { %3472 = vmatpush1.bf16.msra.mxu0 %v10626_v29  ;;  %v10708_v29 = vld [vmem:[#allocation7 + $0xa24] ss:$16 sps:$4 sm:$0xff]  }
 0x21f   :  { %3775 = vmatpush1.bf16.msra.mxu1 %v10629_v30  ;;  %3473 = vmatprep.subr.bf16.mxu0 %v10634_v31  ;;  %v10711_v30 = vld [vmem:[#allocation7 + $0x92c] ss:$16 sps:$4 sm:$0xff]   ;;  %v12612_v31 = vcombine.high %v12599_v15, %v12599_v15 }
 0x220   :  { %3776 = vmatprep.subr.bf16.mxu1 %v10637_v32  ;;  %v10714_v32 = vld [vmem:[#allocation7 + $0xa44] ss:$16 sps:$4 sm:$0xff]  }
 0x222   :  { %3474 = vmatpush1.bf16.msra.mxu0 %v10632_v33  ;;  %v10717_v33 = vld [vmem:[#allocation7 + $0x94c] ss:$16 sps:$4 sm:$0xff]  }
 0x223   :  { %3777 = vmatpush1.bf16.msra.mxu1 %v10635_v35  ;;  %3475 = vmatprep.subr.bf16.mxu0 %v10640_v36  ;;  %v10712_v35 = vld [vmem:[#allocation7 + $0xa40] ss:$16 sps:$4 sm:$0xff]   ;;  %v10715_v36 = vld [vmem:[#allocation7 + $0x948] ss:$16 sps:$4 sm:$0xff]  }
 0x224   :  { %3778 = vmatprep.subr.bf16.mxu1 %v10643_v37  ;;  %v10720_v37 = vld [vmem:[#allocation7 + $0xa64] ss:$16 sps:$4 sm:$0xff]  }
 0x226   :  { %3476 = vmatpush1.bf16.msra.mxu0 %v10638_v38  ;;  %v10723_v38 = vld [vmem:[#allocation7 + $0x96c] ss:$16 sps:$4 sm:$0xff]  }
 0x227   :  { %3779 = vmatpush1.bf16.msra.mxu1 %v10641_v41  ;;  %3477 = vmatprep.subr.bf16.mxu0 %v10646_v42  ;;  %v10721_v41 = vld [vmem:[#allocation7 + $0x968] ss:$16 sps:$4 sm:$0xff]   ;;  %v10726_v42 = vld [vmem:[#allocation7 + $0xa84] ss:$16 sps:$4 sm:$0xff]  }
 0x228   :  { %3780 = vmatprep.subr.bf16.mxu1 %v10649_v43  ;;  %v10729_v43 = vld [vmem:[#allocation7 + $0x98c] ss:$16 sps:$4 sm:$0xff]  }
 0x22a   :  { %3478 = vmatpush1.bf16.msra.mxu0 %v10644_v44  ;;  %v10724_v44 = vld [vmem:[#allocation7 + $0xa80] ss:$16 sps:$4 sm:$0xff]  }
 0x22b   :  { %3781 = vmatpush1.bf16.msra.mxu1 %v10647_v45  ;;  %3479 = vmatprep.subr.bf16.mxu0 %v10652_v47  ;;  %v10727_v45 = vld [vmem:[#allocation7 + $0x988] ss:$16 sps:$4 sm:$0xff]   ;;  %v10732_v47 = vld [vmem:[#allocation7 + $0xaa4] ss:$16 sps:$4 sm:$0xff]  }
 0x22c   :  { %3791 = vmatprep.subr.bf16.mxu1 %v10655_v49  ;;  %v10735_v49 = vld [vmem:[#allocation7 + $0x9ac] ss:$16 sps:$4 sm:$0xff]  }
 0x22e   :  { %3783 = vmatmul.mubr.bf16.vlgmr.msra.gmra.mrb[4].mxu1 %v12596_v11  ;;  %3480 = vmatpush1.bf16.msra.mxu0 %v10650_v25  ;;  %v10680_v11 = vld [vmem:[#allocation7 + $0x9a0] ss:$16 sps:$4 sm:$0xff]  }
 0x22f   :  { %3792 = vmatpush1.bf16.msra.mxu1 %v10653_v52  ;;  %3481 = vmatprep.subr.bf16.mxu0 %v10658_v53  ;;  %v10730_v25 = vld [vmem:[#allocation7 + $0xaa0] ss:$16 sps:$4 sm:$0xff]   ;;  %v10733_v52 = vld [vmem:[#allocation7 + $0x9a8] ss:$16 sps:$4 sm:$0xff]   ;;  %v10738_v53 = vld [vmem:[#allocation7 + $0xac4] ss:$16 sps:$4 sm:$0xff]  }
 0x230   :  { %3793 = vmatprep.subr.bf16.mxu1 %v10661_v54  ;;  %3823 = vmatprep.mubr.bf16.mxu1 %v12599_v15  ;;  %v10718_v15 = vld [vmem:[#allocation7 + $0xa60] ss:$16 sps:$4 sm:$0xff]   ;;  %v10741_v54 = vld [vmem:[#allocation7 + $0x9cc] ss:$16 sps:$4 sm:$0xff]  }
 0x232   :  { %3482 = vmatpush1.bf16.msra.mxu0 %v10656_v55  ;;  %v10736_v55 = vld [vmem:[#allocation7 + $0xac0] ss:$16 sps:$4 sm:$0xff]  }
 0x233   :  { %3794 = vmatpush1.bf16.msra.mxu1 %v10659_v56  ;;  %3483 = vmatprep.subr.bf16.mxu0 %v10664_v60  ;;  %v10739_v56 = vld [vmem:[#allocation7 + $0x9c8] ss:$16 sps:$4 sm:$0xff]   ;;  %v10744_v60 = vld [vmem:[#allocation7 + $0xae4] ss:$16 sps:$4 sm:$0xff]  }
 0x234   :  { %3795 = vmatprep.subr.bf16.mxu1 %v10667_v61  ;;  %v10747_v61 = vld [vmem:[#allocation7 + $0x9ec] ss:$16 sps:$4 sm:$0xff]  }
 0x236   :  { %3484 = vmatpush1.bf16.msra.mxu0 %v10662_v51  ;;  %v10742_v51 = vld [vmem:[#allocation7 + $0xae0] ss:$16 sps:$4 sm:$0xff]  }
 0x237   :  { %3796 = vmatpush1.bf16.msra.mxu1 %v10665_v62  ;;  %3485 = vmatprep.subr.bf16.mxu0 %v10670_v63  ;;  %v10745_v62 = vld [vmem:[#allocation7 + $0x9e8] ss:$16 sps:$4 sm:$0xff]   ;;  %v10750_v63 = vld [vmem:[#allocation7 + $0xb04] ss:$16 sps:$4 sm:$0xff]  }
 0x238   :  { %3797 = vmatprep.subr.bf16.mxu1 %v10673_v1  ;;  %v10753_v1 = vld [vmem:[#allocation7 + $0xa0c] ss:$16 sps:$4 sm:$0xff]  }
 0x23a   :  { %3486 = vmatpush1.bf16.msra.mxu0 %v10668_v2  ;;  %v10748_v2 = vld [vmem:[#allocation7 + $0xb00] ss:$16 sps:$4 sm:$0xff]  }
 0x23b   :  { %3798 = vmatpush1.bf16.msra.mxu1 %v10671_v3  ;;  %3487 = vmatprep.subr.bf16.mxu0 %v10676_v5  ;;  %v10751_v3 = vld [vmem:[#allocation7 + $0xa08] ss:$16 sps:$4 sm:$0xff]   ;;  %v10756_v5 = vld [vmem:[#allocation7 + $0xb24] ss:$16 sps:$4 sm:$0xff]  }
 0x23c   :  { %3799 = vmatprep.subr.bf16.mxu1 %v10679_v6  ;;  %v10759_v6 = vld [vmem:[#allocation7 + $0xa2c] ss:$16 sps:$4 sm:$0xff]  }
 0x23e   :  { %3488 = vmatpush1.bf16.msra.mxu0 %v10674_v7  ;;  %v10754_v7 = vld [vmem:[#allocation7 + $0xb20] ss:$16 sps:$4 sm:$0xff]  }
 0x23f   :  { %3800 = vmatpush1.bf16.msra.mxu1 %v10677_v8  ;;  %3489 = vmatprep.subr.bf16.mxu0 %v10682_v9  ;;  %v10757_v8 = vld [vmem:[#allocation7 + $0xa28] ss:$16 sps:$4 sm:$0xff]   ;;  %v10762_v9 = vld [vmem:[#allocation7 + $0xb44] ss:$16 sps:$4 sm:$0xff]  }
 0x240   :  { %3801 = vmatprep.subr.bf16.mxu1 %v10685_v10  ;;  %v10765_v10 = vld [vmem:[#allocation7 + $0xa4c] ss:$16 sps:$4 sm:$0xff]  }
 0x242   :  { %3490 = vmatpush1.bf16.msra.mxu0 %v10680_v11  ;;  %v10760_v11 = vld [vmem:[#allocation7 + $0xb40] ss:$16 sps:$4 sm:$0xff]  }
 0x243   :  { %3802 = vmatpush1.bf16.msra.mxu1 %v10683_v12  ;;  %3491 = vmatprep.subr.bf16.mxu0 %v10688_v13  ;;  %v10763_v12 = vld [vmem:[#allocation7 + $0xa48] ss:$16 sps:$4 sm:$0xff]   ;;  %v10768_v13 = vld [vmem:[#allocation7 + $0xb64] ss:$16 sps:$4 sm:$0xff]  }
 0x244   :  { %3803 = vmatprep.subr.bf16.mxu1 %v10691_v14  ;;  %v10771_v14 = vld [vmem:[#allocation7 + $0xa6c] ss:$16 sps:$4 sm:$0xff]  }
 0x246   :  { %3492 = vmatpush1.bf16.msra.mxu0 %v10686_v16  ;;  %v10766_v16 = vld [vmem:[#allocation7 + $0xb60] ss:$16 sps:$4 sm:$0xff]  }
 0x247   :  { %3804 = vmatpush1.bf16.msra.mxu1 %v10689_v17  ;;  %3493 = vmatprep.subr.bf16.mxu0 %v10694_v58  ;;  %v10769_v17 = vld [vmem:[#allocation7 + $0xa68] ss:$16 sps:$4 sm:$0xff]   ;;  %v10774_v58 = vld [vmem:[#allocation7 + $0xb84] ss:$16 sps:$4 sm:$0xff]  }
 0x248   :  { %3805 = vmatprep.subr.bf16.mxu1 %v10697_v18  ;;  %v10777_v18 = vld [vmem:[#allocation7 + $0xa8c] ss:$16 sps:$4 sm:$0xff]  }
 0x24a   :  { %3494 = vmatpush1.bf16.msra.mxu0 %v10692_v20  ;;  %v10775_v20 = vld [vmem:[#allocation7 + $0xa88] ss:$16 sps:$4 sm:$0xff]  }
 0x24b   :  { %3806 = vmatpush1.bf16.msra.mxu1 %v10695_v21  ;;  %3504 = vmatprep.subr.bf16.mxu0 %v10702_v22  ;;  %v10780_v21 = vld [vmem:[#allocation7 + $0xba4] ss:$16 sps:$4 sm:$0xff]   ;;  %v10783_v22 = vld [vmem:[#allocation7 + $0xaac] ss:$16 sps:$4 sm:$0xff]  }
 0x24c   :  { %3807 = vmatprep.subr.bf16.mxu1 %v10705_v23  ;;  %v10778_v23 = vld [vmem:[#allocation7 + $0xba0] ss:$16 sps:$4 sm:$0xff]  }
 0x24d   :  { %3496 = vmatmul.mubr.bf16.vlgmr.msra.gmra.mrb[0].mxu0 %v12608_v28 }
 0x24e   :  { %3505 = vmatpush1.bf16.msra.mxu0 %v10700_v24  ;;  %3536 = vmatprep.mubr.bf16.mxu0 %v12612_v31  ;;  %v10781_v24 = vld [vmem:[#allocation7 + $0xaa8] ss:$16 sps:$4 sm:$0xff]  }
 0x24f   :  { %3808 = vmatpush1.bf16.msra.mxu1 %v10703_v27  ;;  %3506 = vmatprep.subr.bf16.mxu0 %v10708_v29  ;;  %v10786_v27 = vld [vmem:[#allocation7 + $0xbc4] ss:$16 sps:$4 sm:$0xff]   ;;  %v10789_v29 = vld [vmem:[#allocation7 + $0xacc] ss:$16 sps:$4 sm:$0xff]  }
 0x250   :  { %3809 = vmatprep.subr.bf16.mxu1 %v10711_v30  ;;  %v10784_v30 = vld [vmem:[#allocation7 + $0xbc0] ss:$16 sps:$4 sm:$0xff]  }
 0x252   :  { %3507 = vmatpush1.bf16.msra.mxu0 %v10706_v4  ;;  %v10787_v4 = vld [vmem:[#allocation7 + $0xac8] ss:$16 sps:$4 sm:$0xff]  }
 0x253   :  { %3810 = vmatpush1.bf16.msra.mxu1 %v10709_v57  ;;  %3508 = vmatprep.subr.bf16.mxu0 %v10714_v32  ;;  %v10792_v57 = vld [vmem:[#allocation7 + $0xbe4] ss:$16 sps:$4 sm:$0xff]   ;;  %v10790_v32 = vld [vmem:[#allocation7 + $0xbe0] ss:$16 sps:$4 sm:$0xff]  }
 0x254   :  { %3811 = vmatprep.subr.bf16.mxu1 %v10717_v33  ;;  %v10793_v33 = vld [vmem:[#allocation7 + $0xae8] ss:$16 sps:$4 sm:$0xff]  }
 0x256   :  { %3509 = vmatpush1.bf16.msra.mxu0 %v10712_v35  ;;  %v10798_v35 = vld [vmem:[#allocation7 + $0xc04] ss:$16 sps:$4 sm:$0xff]  }
 0x257   :  { %3812 = vmatpush1.bf16.msra.mxu1 %v10715_v36  ;;  %3510 = vmatprep.subr.bf16.mxu0 %v10720_v37  ;;  %v10801_v36 = vld [vmem:[#allocation7 + $0xb0c] ss:$16 sps:$4 sm:$0xff]   ;;  %v10796_v37 = vld [vmem:[#allocation7 + $0xc00] ss:$16 sps:$4 sm:$0xff]  }
 0x258   :  { %3813 = vmatprep.subr.bf16.mxu1 %v10723_v38  ;;  %v10799_v38 = vld [vmem:[#allocation7 + $0xb08] ss:$16 sps:$4 sm:$0xff]  }
 0x25a   :  { %3511 = vmatpush1.bf16.msra.mxu0 %v10718_v15  ;;  %v852_v15 = vcombine.high %v12523_v39, %v12526_v40  ;;  %v10810_v39 = vld [vmem:[#allocation7 + $0xc44] ss:$16 sps:$4 sm:$0xff]   ;;  %v10813_v40 = vld [vmem:[#allocation7 + $0xb4c] ss:$16 sps:$4 sm:$0xff]  }
 0x25b   :  { %3814 = vmatpush1.bf16.msra.mxu1 %v10721_v41  ;;  %3512 = vmatprep.subr.bf16.mxu0 %v10726_v42  ;;  %v12622_v41 = vcombine.high %v12608_v28, %v12608_v28  ;;  %v10804_v42 = vld [vmem:[#allocation7 + $0xc24] ss:$16 sps:$4 sm:$0xff]  }
 0x25c   :  { %3815 = vmatprep.subr.bf16.mxu1 %v10729_v43  ;;  %v10807_v43 = vld [vmem:[#allocation7 + $0xb2c] ss:$16 sps:$4 sm:$0xff]  }
 0x25e   :  { %3513 = vmatpush1.bf16.msra.mxu0 %v10724_v44  ;;  %v12625_v44 = vrot.slane %v852_v15, %v12520_v34  ;;  %v10880_v15 = vld [vmem:[#allocation7 + $0xdc0] ss:$16 sps:$4 sm:$0xff]  }
 0x25f   :  { %3816 = vmatpush1.bf16.msra.mxu1 %v10727_v45  ;;  %3514 = vmatprep.subr.bf16.mxu0 %v10732_v47  ;;  %v10802_v45 = vld [vmem:[#allocation7 + $0xc20] ss:$16 sps:$4 sm:$0xff]   ;;  %v10805_v47 = vld [vmem:[#allocation7 + $0xb28] ss:$16 sps:$4 sm:$0xff]  }
 0x260   :  { %3817 = vmatprep.subr.bf16.mxu1 %v10735_v49  ;;  %v10811_v49 = vld [vmem:[#allocation7 + $0xb48] ss:$16 sps:$4 sm:$0xff]  }
 0x262   :  { %3515 = vmatpush1.bf16.msra.mxu0 %v10730_v25  ;;  %v10816_v25 = vld [vmem:[#allocation7 + $0xc64] ss:$16 sps:$4 sm:$0xff]  }
 0x263   :  { %3818 = vmatpush1.bf16.msra.mxu1 %v10733_v52  ;;  %3516 = vmatprep.subr.bf16.mxu0 %v10738_v53  ;;  %v10819_v52 = vld [vmem:[#allocation7 + $0xb6c] ss:$16 sps:$4 sm:$0xff]   ;;  %v10814_v53 = vld [vmem:[#allocation7 + $0xc60] ss:$16 sps:$4 sm:$0xff]  }
 0x264   :  { %3819 = vmatprep.subr.bf16.mxu1 %v10741_v54  ;;  %v10817_v54 = vld [vmem:[#allocation7 + $0xb68] ss:$16 sps:$4 sm:$0xff]  }
 0x266   :  { %3517 = vmatpush1.bf16.msra.mxu0 %v10736_v55  ;;  %v10822_v55 = vld [vmem:[#allocation7 + $0xc84] ss:$16 sps:$4 sm:$0xff]  }
 0x267   :  { %3820 = vmatpush1.bf16.msra.mxu1 %v10739_v56  ;;  %3518 = vmatprep.subr.bf16.mxu0 %v10744_v60  ;;  %v10825_v56 = vld [vmem:[#allocation7 + $0xb8c] ss:$16 sps:$4 sm:$0xff]   ;;  %v10820_v60 = vld [vmem:[#allocation7 + $0xc80] ss:$16 sps:$4 sm:$0xff]  }
 0x268   :  { %3821 = vmatprep.subr.bf16.mxu1 %v10747_v61  ;;  %v10823_v61 = vld [vmem:[#allocation7 + $0xb88] ss:$16 sps:$4 sm:$0xff]  }
 0x26a   :  { %3519 = vmatpush1.bf16.msra.mxu0 %v10742_v51  ;;  %v10828_v51 = vld [vmem:[#allocation7 + $0xca4] ss:$16 sps:$4 sm:$0xff]  }
 0x26b   :  { %3822 = vmatpush1.bf16.msra.mxu1 %v10745_v62  ;;  %3520 = vmatprep.subr.bf16.mxu0 %v10750_v63  ;;  %v10831_v62 = vld [vmem:[#allocation7 + $0xbac] ss:$16 sps:$4 sm:$0xff]   ;;  %v10826_v63 = vld [vmem:[#allocation7 + $0xca0] ss:$16 sps:$4 sm:$0xff]  }
 0x26c   :  { %3832 = vmatprep.subr.bf16.mxu1 %v10753_v1  ;;  %v10829_v1 = vld [vmem:[#allocation7 + $0xba8] ss:$16 sps:$4 sm:$0xff]  }
 0x26e   :  { %3824 = vmatmul.mubr.bf16.vlgmr.msra.gmra.mrb[4].mxu1 %v12608_v28  ;;  %3521 = vmatpush1.bf16.msra.mxu0 %v10748_v2  ;;  %v10808_v28 = vld [vmem:[#allocation7 + $0xc40] ss:$16 sps:$4 sm:$0xff]   ;;  %v10834_v2 = vld [vmem:[#allocation7 + $0xcc4] ss:$16 sps:$4 sm:$0xff]  }
 0x26f   :  { %3833 = vmatpush1.bf16.msra.mxu1 %v10751_v3  ;;  %3522 = vmatprep.subr.bf16.mxu0 %v10756_v5  ;;  %v10837_v3 = vld [vmem:[#allocation7 + $0xbcc] ss:$16 sps:$4 sm:$0xff]   ;;  %v10832_v5 = vld [vmem:[#allocation7 + $0xcc0] ss:$16 sps:$4 sm:$0xff]  }
 0x270   :  { %3834 = vmatprep.subr.bf16.mxu1 %v10759_v6  ;;  %3864 = vmatprep.mubr.bf16.mxu1 %v12612_v31  ;;  %v10795_v31 = vld [vmem:[#allocation7 + $0xaec] ss:$16 sps:$4 sm:$0xff]   ;;  %v10835_v6 = vld [vmem:[#allocation7 + $0xbc8] ss:$16 sps:$4 sm:$0xff]  }
 0x272   :  { %3523 = vmatpush1.bf16.msra.mxu0 %v10754_v7  ;;  %v10840_v7 = vld [vmem:[#allocation7 + $0xce4] ss:$16 sps:$4 sm:$0xff]  }
 0x273   :  { %3835 = vmatpush1.bf16.msra.mxu1 %v10757_v8  ;;  %3524 = vmatprep.subr.bf16.mxu0 %v10762_v9  ;;  %v10843_v8 = vld [vmem:[#allocation7 + $0xbec] ss:$16 sps:$4 sm:$0xff]   ;;  %v10838_v9 = vld [vmem:[#allocation7 + $0xce0] ss:$16 sps:$4 sm:$0xff]  }
 0x274   :  { %3836 = vmatprep.subr.bf16.mxu1 %v10765_v10  ;;  %v10841_v10 = vld [vmem:[#allocation7 + $0xbe8] ss:$16 sps:$4 sm:$0xff]  }
 0x276   :  { %3525 = vmatpush1.bf16.msra.mxu0 %v10760_v11  ;;  %v10846_v11 = vld [vmem:[#allocation7 + $0xd04] ss:$16 sps:$4 sm:$0xff]  }
 0x277   :  { %3837 = vmatpush1.bf16.msra.mxu1 %v10763_v12  ;;  %3526 = vmatprep.subr.bf16.mxu0 %v10768_v13  ;;  %v10849_v12 = vld [vmem:[#allocation7 + $0xc0c] ss:$16 sps:$4 sm:$0xff]   ;;  %v10844_v13 = vld [vmem:[#allocation7 + $0xd00] ss:$16 sps:$4 sm:$0xff]  }
 0x278   :  { %3838 = vmatprep.subr.bf16.mxu1 %v10771_v14  ;;  %v10847_v14 = vld [vmem:[#allocation7 + $0xc08] ss:$16 sps:$4 sm:$0xff]  }
 0x27a   :  { %3527 = vmatpush1.bf16.msra.mxu0 %v10766_v16  ;;  %v10852_v16 = vld [vmem:[#allocation7 + $0xd24] ss:$16 sps:$4 sm:$0xff]  }
 0x27b   :  { %3839 = vmatpush1.bf16.msra.mxu1 %v10769_v17  ;;  %3528 = vmatprep.subr.bf16.mxu0 %v10774_v58  ;;  %v10855_v17 = vld [vmem:[#allocation7 + $0xc2c] ss:$16 sps:$4 sm:$0xff]   ;;  %v10850_v58 = vld [vmem:[#allocation7 + $0xd20] ss:$16 sps:$4 sm:$0xff]  }
 0x27c   :  { %3840 = vmatprep.subr.bf16.mxu1 %v10777_v18  ;;  %v10853_v18 = vld [vmem:[#allocation7 + $0xc28] ss:$16 sps:$4 sm:$0xff]  }
 0x27e   :  { %3529 = vmatpush1.bf16.msra.mxu0 %v10772_v19  ;;  %v10858_v19 = vld [vmem:[#allocation7 + $0xd44] ss:$16 sps:$4 sm:$0xff]  }
 0x27f   :  { %3841 = vmatpush1.bf16.msra.mxu1 %v10775_v20  ;;  %3530 = vmatprep.subr.bf16.mxu0 %v10780_v21  ;;  %v10861_v20 = vld [vmem:[#allocation7 + $0xc4c] ss:$16 sps:$4 sm:$0xff]   ;;  %v10856_v21 = vld [vmem:[#allocation7 + $0xd40] ss:$16 sps:$4 sm:$0xff]  }
 0x280   :  { %3842 = vmatprep.subr.bf16.mxu1 %v10783_v22  ;;  %v10859_v22 = vld [vmem:[#allocation7 + $0xc48] ss:$16 sps:$4 sm:$0xff]  }
 0x282   :  { %3531 = vmatpush1.bf16.msra.mxu0 %v10778_v23  ;;  %v10864_v23 = vld [vmem:[#allocation7 + $0xd64] ss:$16 sps:$4 sm:$0xff]  }
 0x283   :  { %3843 = vmatpush1.bf16.msra.mxu1 %v10781_v24  ;;  %3532 = vmatprep.subr.bf16.mxu0 %v10786_v27  ;;  %v10867_v24 = vld [vmem:[#allocation7 + $0xc6c] ss:$16 sps:$4 sm:$0xff]   ;;  %v10862_v27 = vld [vmem:[#allocation7 + $0xd60] ss:$16 sps:$4 sm:$0xff]  }
 0x284   :  { %3844 = vmatprep.subr.bf16.mxu1 %v10789_v29  ;;  %v10865_v29 = vld [vmem:[#allocation7 + $0xc68] ss:$16 sps:$4 sm:$0xff]  }
 0x286   :  { %3533 = vmatpush1.bf16.msra.mxu0 %v10784_v30  ;;  %v10870_v30 = vld [vmem:[#allocation7 + $0xd84] ss:$16 sps:$4 sm:$0xff]  }
 0x287   :  { %3845 = vmatpush1.bf16.msra.mxu1 %v10787_v4  ;;  %3534 = vmatprep.subr.bf16.mxu0 %v10792_v57  ;;  %v10873_v4 = vld [vmem:[#allocation7 + $0xc8c] ss:$16 sps:$4 sm:$0xff]   ;;  %v10868_v57 = vld [vmem:[#allocation7 + $0xd80] ss:$16 sps:$4 sm:$0xff]  }
 0x288   :  { %3846 = vmatprep.subr.bf16.mxu1 %v10795_v31  ;;  %v10871_v31 = vld [vmem:[#allocation7 + $0xc88] ss:$16 sps:$4 sm:$0xff]  }
 0x28a   :  { %3535 = vmatpush1.bf16.msra.mxu0 %v10790_v32  ;;  %v10876_v32 = vld [vmem:[#allocation7 + $0xda4] ss:$16 sps:$4 sm:$0xff]  }
 0x28b   :  { %3847 = vmatpush1.bf16.msra.mxu1 %v10793_v33  ;;  %3545 = vmatprep.subr.bf16.mxu0 %v10798_v35  ;;  %v10879_v33 = vld [vmem:[#allocation7 + $0xcac] ss:$16 sps:$4 sm:$0xff]   ;;  %v10874_v35 = vld [vmem:[#allocation7 + $0xda0] ss:$16 sps:$4 sm:$0xff]  }
 0x28c   :  { %3848 = vmatprep.subr.bf16.mxu1 %v10801_v36  ;;  %v10877_v36 = vld [vmem:[#allocation7 + $0xca8] ss:$16 sps:$4 sm:$0xff]  }
 0x28d   :  { %3537 = vmatmul.mubr.bf16.vlgmr.msra.gmra.mrb[0].mxu0 %v12622_v41 }
 0x28e   :  { %3546 = vmatpush1.bf16.msra.mxu0 %v10796_v37  ;;  %3577 = vmatprep.mubr.bf16.mxu0 %v12625_v44  ;;  %v10882_v37 = vld [vmem:[#allocation7 + $0xdc4] ss:$16 sps:$4 sm:$0xff]  }
 0x28f   :  { %3849 = vmatpush1.bf16.msra.mxu1 %v10799_v38  ;;  %3547 = vmatprep.subr.bf16.mxu0 %v10804_v42  ;;  %v10885_v38 = vld [vmem:[#allocation7 + $0xccc] ss:$16 sps:$4 sm:$0xff]   ;;  %v10888_v42 = vld [vmem:[#allocation7 + $0xde4] ss:$16 sps:$4 sm:$0xff]  }
 0x290   :  { %3850 = vmatprep.subr.bf16.mxu1 %v10807_v43  ;;  %v10891_v43 = vld [vmem:[#allocation7 + $0xcec] ss:$16 sps:$4 sm:$0xff]  }
 0x292   :  { %3548 = vmatpush1.bf16.msra.mxu0 %v10802_v45  ;;  %v10889_v45 = vld [vmem:[#allocation7 + $0xce8] ss:$16 sps:$4 sm:$0xff]  }
 0x293   :  { %3851 = vmatpush1.bf16.msra.mxu1 %v10805_v47  ;;  %3549 = vmatprep.subr.bf16.mxu0 %v10810_v39  ;;  %v10894_v47 = vld [vmem:[#allocation7 + $0xd0c] ss:$16 sps:$4 sm:$0xff]   ;;  %v10940_v39 = vld [vmem:[#allocation10 + $0x40] sm:$0xff]  }
 0x294   :  { %3852 = vmatprep.subr.bf16.mxu1 %v10813_v40  ;;  %v10892_v40 = vld [vmem:[#allocation7 + $0xd08] ss:$16 sps:$4 sm:$0xff]  }
 0x296   :  { %3550 = vmatpush1.bf16.msra.mxu0 %v10808_v28  ;;  %v10941_v28 = vld [vmem:[#allocation10] sm:$0xff]  }
 0x297   :  { %3853 = vmatpush1.bf16.msra.mxu1 %v10811_v49  ;;  %3551 = vmatprep.subr.bf16.mxu0 %v10816_v25  ;;  %v10897_v49 = vld [vmem:[#allocation7 + $0xd2c] ss:$16 sps:$4 sm:$0xff]  }
 0x298   :  { %3854 = vmatprep.subr.bf16.mxu1 %v10819_v52  ;;  %v10942_v25 = vld [vmem:[#allocation10 + $0x48] sm:$0xff]   ;;  %v10895_v52 = vld [vmem:[#allocation7 + $0xd28] ss:$16 sps:$4 sm:$0xff]  }
 0x29a   :  { %3552 = vmatpush1.bf16.msra.mxu0 %v10814_v53  ;;  %v10943_v53 = vld [vmem:[#allocation10 + $0x8] sm:$0xff]  }
 0x29b   :  { %3855 = vmatpush1.bf16.msra.mxu1 %v10817_v54  ;;  %3553 = vmatprep.subr.bf16.mxu0 %v10822_v55  ;;  %v10900_v54 = vld [vmem:[#allocation7 + $0xd4c] ss:$16 sps:$4 sm:$0xff]   ;;  %v10944_v55 = vld [vmem:[#allocation10 + $0x50] sm:$0xff]  }
 0x29c   :  { %3856 = vmatprep.subr.bf16.mxu1 %v10825_v56  ;;  %v10898_v56 = vld [vmem:[#allocation7 + $0xd48] ss:$16 sps:$4 sm:$0xff]  }
 0x29e   :  { %3554 = vmatpush1.bf16.msra.mxu0 %v10820_v60  ;;  %v10945_v60 = vld [vmem:[#allocation10 + $0x10] sm:$0xff]  }
 0x29f   :  { %3857 = vmatpush1.bf16.msra.mxu1 %v10823_v61  ;;  %3555 = vmatprep.subr.bf16.mxu0 %v10828_v51  ;;  %v10903_v61 = vld [vmem:[#allocation7 + $0xd6c] ss:$16 sps:$4 sm:$0xff]  }
 0x2a0   :  { %3858 = vmatprep.subr.bf16.mxu1 %v10831_v62  ;;  %v10946_v51 = vld [vmem:[#allocation10 + $0x58] sm:$0xff]   ;;  %v10901_v62 = vld [vmem:[#allocation7 + $0xd68] ss:$16 sps:$4 sm:$0xff]  }
 0x2a2   :  { %3556 = vmatpush1.bf16.msra.mxu0 %v10826_v63  ;;  %v10947_v63 = vld [vmem:[#allocation10 + $0x18] sm:$0xff]  }
 0x2a3   :  { %3859 = vmatpush1.bf16.msra.mxu1 %v10829_v1  ;;  %3557 = vmatprep.subr.bf16.mxu0 %v10834_v2  ;;  %v10906_v1 = vld [vmem:[#allocation7 + $0xd8c] ss:$16 sps:$4 sm:$0xff]   ;;  %v10948_v2 = vld [vmem:[#allocation10 + $0x60] sm:$0xff]  }
 0x2a4   :  { %3860 = vmatprep.subr.bf16.mxu1 %v10837_v3  ;;  %v10904_v3 = vld [vmem:[#allocation7 + $0xd88] ss:$16 sps:$4 sm:$0xff]  }
 0x2a6   :  { %3558 = vmatpush1.bf16.msra.mxu0 %v10832_v5  ;;  %v10949_v5 = vld [vmem:[#allocation10 + $0x20] sm:$0xff]  }
 0x2a7   :  { %3861 = vmatpush1.bf16.msra.mxu1 %v10835_v6  ;;  %3559 = vmatprep.subr.bf16.mxu0 %v10840_v7  ;;  %v10909_v6 = vld [vmem:[#allocation7 + $0xdac] ss:$16 sps:$4 sm:$0xff]  }
 0x2a8   :  { %3862 = vmatprep.subr.bf16.mxu1 %v10843_v8  ;;  %v10950_v7 = vld [vmem:[#allocation10 + $0x68] sm:$0xff]   ;;  %v10907_v8 = vld [vmem:[#allocation7 + $0xda8] ss:$16 sps:$4 sm:$0xff]  }
 0x2aa   :  { %3560 = vmatpush1.bf16.msra.mxu0 %v10838_v9  ;;  %v10912_v9 = vld [vmem:[#allocation7 + $0xdcc] ss:$16 sps:$4 sm:$0xff]  }
 0x2ab   :  { %3863 = vmatpush1.bf16.msra.mxu1 %v10841_v10  ;;  %3561 = vmatprep.subr.bf16.mxu0 %v10846_v11  ;;  %v10910_v10 = vld [vmem:[#allocation7 + $0xdc8] ss:$16 sps:$4 sm:$0xff]   ;;  %v10915_v11 = vld [vmem:[#allocation7 + $0xdec] ss:$16 sps:$4 sm:$0xff]  }
 0x2ac   :  { %3873 = vmatprep.subr.bf16.mxu1 %v10849_v12  ;;  %v10913_v12 = vld [vmem:[#allocation7 + $0xde8] ss:$16 sps:$4 sm:$0xff]  }
 0x2ae   :  { %3865 = vmatmul.mubr.bf16.vlgmr.msra.gmra.mrb[4].mxu1 %v12622_v41  ;;  %3562 = vmatpush1.bf16.msra.mxu0 %v10844_v13  ;;  %v10883_v41 = vld [vmem:[#allocation7 + $0xcc8] ss:$16 sps:$4 sm:$0xff]   ;;  %v10918_v13 = vld [vmem:[#allocation7 + $0xe0c] ss:$16 sps:$4 sm:$0xff]  }
 0x2af   :  { %3874 = vmatpush1.bf16.msra.mxu1 %v10847_v14  ;;  %3563 = vmatprep.subr.bf16.mxu0 %v10852_v16  ;;  %v10916_v14 = vld [vmem:[#allocation7 + $0xe08] ss:$16 sps:$4 sm:$0xff]   ;;  %v10921_v16 = vld [vmem:[#allocation7 + $0xe2c] ss:$16 sps:$4 sm:$0xff]  }
 0x2b0   :  { %3875 = vmatprep.subr.bf16.mxu1 %v10855_v17  ;;  %3905 = vmatprep.mubr.bf16.mxu1 %v12625_v44  ;;  %v10886_v44 = vld [vmem:[#allocation7 + $0xde0] ss:$16 sps:$4 sm:$0xff]   ;;  %v10919_v17 = vld [vmem:[#allocation7 + $0xe28] ss:$16 sps:$4 sm:$0xff]  }
 0x2b2   :  { %3564 = vmatpush1.bf16.msra.mxu0 %v10850_v58  ;;  %v10924_v58 = vld [vmem:[#allocation7 + $0xe4c] ss:$16 sps:$4 sm:$0xff]  }
 0x2b3   :  { %3876 = vmatpush1.bf16.msra.mxu1 %v10853_v18  ;;  %3565 = vmatprep.subr.bf16.mxu0 %v10858_v19  ;;  %v10922_v18 = vld [vmem:[#allocation7 + $0xe48] ss:$16 sps:$4 sm:$0xff]   ;;  %v10927_v19 = vld [vmem:[#allocation7 + $0xe6c] ss:$16 sps:$4 sm:$0xff]  }
 0x2b4   :  { %3877 = vmatprep.subr.bf16.mxu1 %v10861_v20  ;;  %v10925_v20 = vld [vmem:[#allocation7 + $0xe68] ss:$16 sps:$4 sm:$0xff]  }
 0x2b6   :  { %3566 = vmatpush1.bf16.msra.mxu0 %v10856_v21  ;;  %v10930_v21 = vld [vmem:[#allocation7 + $0xe8c] ss:$16 sps:$4 sm:$0xff]  }
 0x2b7   :  { %3878 = vmatpush1.bf16.msra.mxu1 %v10859_v22  ;;  %3567 = vmatprep.subr.bf16.mxu0 %v10864_v23  ;;  %v10928_v22 = vld [vmem:[#allocation7 + $0xe88] ss:$16 sps:$4 sm:$0xff]   ;;  %v10933_v23 = vld [vmem:[#allocation7 + $0xeac] ss:$16 sps:$4 sm:$0xff]  }
 0x2b8   :  { %3879 = vmatprep.subr.bf16.mxu1 %v10867_v24  ;;  %v10931_v24 = vld [vmem:[#allocation7 + $0xea8] ss:$16 sps:$4 sm:$0xff]  }
 0x2ba   :  { %3568 = vmatpush1.bf16.msra.mxu0 %v10862_v27  ;;  %v10936_v27 = vld [vmem:[#allocation7 + $0xecc] ss:$16 sps:$4 sm:$0xff]  }
 0x2bb   :  { %3880 = vmatpush1.bf16.msra.mxu1 %v10865_v29  ;;  %3569 = vmatprep.subr.bf16.mxu0 %v10870_v30  ;;  %v10939_v29 = vld [vmem:[#allocation7 + $0xeec] ss:$16 sps:$4 sm:$0xff]   ;;  %v10937_v30 = vld [vmem:[#allocation7 + $0xee8] ss:$16 sps:$4 sm:$0xff]  }
 0x2bc   :  { %3881 = vmatprep.subr.bf16.mxu1 %v10873_v4  ;;  %v10951_v4 = vld [vmem:[#allocation10 + $0x28] sm:$0xff]  }
 0x2be   :  { %3570 = vmatpush1.bf16.msra.mxu0 %v10868_v57  ;;  %v10952_v57 = vld [vmem:[#allocation10 + $0x70] sm:$0xff]  }
 0x2bf   :  { %3882 = vmatpush1.bf16.msra.mxu1 %v10871_v31  ;;  %3571 = vmatprep.subr.bf16.mxu0 %v10876_v32  ;;  %v10953_v31 = vld [vmem:[#allocation10 + $0x30] sm:$0xff]   ;;  %v10954_v32 = vld [vmem:[#allocation10 + $0x78] sm:$0xff]  }
 0x2c0   :  { %3883 = vmatprep.subr.bf16.mxu1 %v10879_v33  ;;  %v10955_v33 = vld [vmem:[#allocation10 + $0x38] sm:$0xff]  }
 0x2c2   :  { %3572 = vmatpush1.bf16.msra.mxu0 %v10874_v35  ;;  %v10956_v35 = vld [vmem:[#allocation10 + $0xc0] sm:$0xff]  }
 0x2c3   :  { %3884 = vmatpush1.bf16.msra.mxu1 %v10877_v36  ;;  %3573 = vmatprep.subr.bf16.mxu0 %v10882_v37  ;;  %v10957_v36 = vld [vmem:[#allocation10 + $0x80] sm:$0xff]   ;;  %v10958_v37 = vld [vmem:[#allocation10 + $0xc8] sm:$0xff]  }
 0x2c4   :  { %3885 = vmatprep.subr.bf16.mxu1 %v10885_v38  ;;  %v10959_v38 = vld [vmem:[#allocation10 + $0x88] sm:$0xff]  }
 0x2c6   :  { %3574 = vmatpush1.bf16.msra.mxu0 %v10880_v15  ;;  %v10960_v15 = vld [vmem:[#allocation10 + $0xd0] sm:$0xff]  }
 0x2c7   :  { %3886 = vmatpush1.bf16.msra.mxu1 %v10883_v41  ;;  %3575 = vmatprep.subr.bf16.mxu0 %v10888_v42  ;;  %v10962_v41 = vld [vmem:[#allocation10 + $0xd8] sm:$0xff]  }
 0x2c8   :  { %3887 = vmatprep.subr.bf16.mxu1 %v10891_v43  ;;  %v10963_v42 = vld [vmem:[#allocation10 + $0x98] sm:$0xff]   ;;  %v10964_v43 = vld [vmem:[#allocation10 + $0xe0] sm:$0xff]  }
 0x2ca   :  { %3576 = vmatpush1.bf16.msra.mxu0 %v10886_v44  ;;  %v10965_v44 = vld [vmem:[#allocation10 + $0xa0] sm:$0xff]  }
 0x2cb   :  { %3888 = vmatpush1.bf16.msra.mxu1 %v10889_v45  ;;  %9958 = vmatprep.subr.bf16.mxu0 %v10940_v39  ;;  %v10966_v45 = vld [vmem:[#allocation10 + $0xe8] sm:$0xff]   ;;  %v10968_v39 = vld [vmem:[#allocation10 + $0xf0] sm:$0xff]  }
 0x2cc   :  { %3889 = vmatprep.subr.bf16.mxu1 %v10894_v47  ;;  %v10967_v47 = vld [vmem:[#allocation10 + $0xa8] sm:$0xff]  }
 0x2cd   :  { %3578 = vmatmul.mubr.bf16.vlgmr.msra.gmra.mrb[0].mxu0 %v12531_v46 }
 0x2ce   :  { %9959 = vmatpush3.bf16.msra.mxu0 %v10941_v28  ;;  %v10970_v28 = vld [vmem:[#allocation10 + $0xf8] sm:$0xff]  }
 0x2cf   :  { %3890 = vmatpush1.bf16.msra.mxu1 %v10892_v40  ;;  %9960 = vmatprep.subr.bf16.mxu0 %v10942_v25  ;;  %v10969_v40 = vld [vmem:[#allocation10 + $0xb0] sm:$0xff]   ;;  %v12636_v25 = vsub.s32 0, %v12517_v26 }
 0x2d0   :  { %3891 = vmatprep.subr.bf16.mxu1 %v10897_v49  ;;  %v10971_v49 = vld [vmem:[#allocation10 + $0xb8] sm:$0xff]  }
 0x2d2   :  { %9961 = vmatpush3.bf16.msra.mxu0 %v10943_v53  ;;  %v12639_v53 = vsub.s32 1, %v12517_v26 }
 0x2d3   :  { %3892 = vmatpush1.bf16.msra.mxu1 %v10895_v52  ;;  %9962 = vmatprep.subr.bf16.mxu0 %v10944_v55  ;;  %v719_v52 = vld [vmem:[#allocation8] sm:$0xf] }
 0x2d4   :  { %3893 = vmatprep.subr.bf16.mxu1 %v10900_v54  ;;  %v724_v54 = vrot.slane %v719_v52, %v12636_v25  ;;  %v728_v55 = vrot.slane %v719_v52, %v12639_v53 }
 0x2d6   :  { %9963 = vmatpush3.bf16.msra.mxu0 %v10945_v60 }
 0x2d7   :  { %3894 = vmatpush1.bf16.msra.mxu1 %v10898_v56  ;;  %9964 = vmatprep.subr.bf16.mxu0 %v10946_v51 }
 0x2d8   :  { %3895 = vmatprep.subr.bf16.mxu1 %v10903_v61 }
 0x2da   :  { %9965 = vmatpush3.bf16.msra.mxu0 %v10947_v63 }
 0x2db   :  { %3896 = vmatpush1.bf16.msra.mxu1 %v10901_v62  ;;  %9966 = vmatprep.subr.bf16.mxu0 %v10948_v2 }
 0x2dc   :  { %3897 = vmatprep.subr.bf16.mxu1 %v10906_v1 }
 0x2de   :  { %9967 = vmatpush3.bf16.msra.mxu0 %v10949_v5 }
 0x2df   :  { %3898 = vmatpush1.bf16.msra.mxu1 %v10904_v3  ;;  %9968 = vmatprep.subr.bf16.mxu0 %v10950_v7 }
 0x2e0   :  { %3899 = vmatprep.subr.bf16.mxu1 %v10909_v6 }
 0x2e2   :  { %9969 = vmatpush3.bf16.msra.mxu0 %v10951_v4  ;;  %v10984_v4 = vld [vmem:[#allocation13 + $0x40] ss:$8 sps:$4 sm:$0xff]  }
 0x2e3   :  { %3900 = vmatpush1.bf16.msra.mxu1 %v10907_v8  ;;  %9970 = vmatprep.subr.bf16.mxu0 %v10952_v57  ;;  %v12647_v8 = vsub.s32 2, %v12517_v26  ;;  %v10989_v57 = vld [vmem:[#allocation13 + $0x54] ss:$8 sps:$4 sm:$0xff]  }
 0x2e4   :  { %3901 = vmatprep.subr.bf16.mxu1 %v10912_v9  ;;  %v12650_v9 = vsub.s32 3, %v12517_v26 }
 0x2e6   :  { %9971 = vmatpush3.bf16.msra.mxu0 %v10953_v31  ;;  %v10987_v31 = vld [vmem:[#allocation13 + $0x50] ss:$8 sps:$4 sm:$0xff]  }
 0x2e7   :  { %3902 = vmatpush1.bf16.msra.mxu1 %v10910_v10  ;;  %9972 = vmatprep.subr.bf16.mxu0 %v10954_v32  ;;  %v732_v10 = vrot.slane %v719_v52, %v12647_v8  ;;  %v10992_v32 = vld [vmem:[#allocation13 + $0x64] ss:$8 sps:$4 sm:$0xff]  }
 0x2e8   :  { %3903 = vmatprep.subr.bf16.mxu1 %v10915_v11 }
 0x2ea   :  { %9973 = vmatpush3.bf16.msra.mxu0 %v10955_v33  ;;  %v10990_v33 = vld [vmem:[#allocation13 + $0x60] ss:$8 sps:$4 sm:$0xff]  }
 0x2eb   :  { %3904 = vmatpush1.bf16.msra.mxu1 %v10913_v12 }
 0x2ec   :  { %3914 = vmatprep.subr.bf16.mxu1 %v10918_v13 }
 0x2ee   :  { %3906 = vmatmul.mubr.bf16.vlgmr.msra.gmra.mrb[4].mxu1 %v12531_v46  ;;  %v10934_v46 = vld [vmem:[#allocation7 + $0xec8] ss:$16 sps:$4 sm:$0xff]  }
 0x2ef   :  { %3915 = vmatpush1.bf16.msra.mxu1 %v10916_v14  ;;  %3946 = vmatprep.mubr.bf16.mxu1 %v12238_v0 }
 0x2f0   :  { %3916 = vmatprep.subr.bf16.mxu1 %v10921_v16 }
 0x2f3   :  { %3917 = vmatpush1.bf16.msra.mxu1 %v10919_v17 }
 0x2f4   :  { %3918 = vmatprep.subr.bf16.mxu1 %v10924_v58 }
 0x2f7   :  { %3919 = vmatpush1.bf16.msra.mxu1 %v10922_v18 }
 0x2f8   :  { %3920 = vmatprep.subr.bf16.mxu1 %v10927_v19 }
 0x2fb   :  { %3921 = vmatpush1.bf16.msra.mxu1 %v10925_v20  ;;  %v10972_v20 = vld [vmem:[#allocation13] ss:$8 sps:$4 sm:$0xff]  }
 0x2fc   :  { %3922 = vmatprep.subr.bf16.mxu1 %v10930_v21  ;;  %v10974_v21 = vld [vmem:[#allocation13 + $0x4] ss:$8 sps:$4 sm:$0xff]  }
 0x2fd   :  { %4416 = vmatprep.subr.bf16.mxu0 %v10974_v21 }
 0x2ff   :  { %3923 = vmatpush1.bf16.msra.mxu1 %v10928_v22  ;;  %v10977_v22 = vld [vmem:[#allocation13 + $0x14] ss:$8 sps:$4 sm:$0xff]  }
 0x300   :  { %3924 = vmatprep.subr.bf16.mxu1 %v10933_v23  ;;  %v10975_v23 = vld [vmem:[#allocation13 + $0x10] ss:$8 sps:$4 sm:$0xff]  }
 0x303   :  { %3925 = vmatpush1.bf16.msra.mxu1 %v10931_v24  ;;  %v10980_v24 = vld [vmem:[#allocation13 + $0x24] ss:$8 sps:$4 sm:$0xff]  }
 0x304   :  { %3926 = vmatprep.subr.bf16.mxu1 %v10936_v27  ;;  %v10978_v27 = vld [vmem:[#allocation13 + $0x20] ss:$8 sps:$4 sm:$0xff]  }
 0x307   :  { %3927 = vmatpush1.bf16.msra.mxu1 %v10934_v46  ;;  %v10983_v46 = vld [vmem:[#allocation13 + $0x34] ss:$8 sps:$4 sm:$0xff]  }
 0x308   :  { %3928 = vmatprep.subr.bf16.mxu1 %v10939_v29  ;;  %v10981_v29 = vld [vmem:[#allocation13 + $0x30] ss:$8 sps:$4 sm:$0xff]  }
 0x30b   :  { %3929 = vmatpush1.bf16.msra.mxu1 %v10937_v30  ;;  %v10986_v30 = vld [vmem:[#allocation13 + $0x44] ss:$8 sps:$4 sm:$0xff]  }
 0x30c   :  { %9980 = vmatprep.subr.bf16.mxu1 %v10956_v35  ;;  %v10995_v35 = vld [vmem:[#allocation13 + $0x74] ss:$8 sps:$4 sm:$0xff]  }
 0x30e   :  { %3947 = vmatmul.mubr.bf16.vlgmr.msra.gmra.mrb[4].mxu1 %v12535_v48  ;;  %v10961_v48 = vld [vmem:[#allocation10 + $0x90] sm:$0xff]  }
 0x30f   :  { %9981 = vmatpush3.bf16.msra.mxu1 %v10957_v36  ;;  %v10993_v36 = vld [vmem:[#allocation13 + $0x70] ss:$8 sps:$4 sm:$0xff]  }
 0x310   :  { %9982 = vmatprep.subr.bf16.mxu1 %v10958_v37  ;;  %v10996_v37 = vld [vmem:[#allocation16] sm:$0xff]  }
 0x313   :  { %9983 = vmatpush3.bf16.msra.mxu1 %v10959_v38  ;;  %v12240_v38 = vmov 0.0  }
 0x314   :  { %9984 = vmatprep.subr.bf16.mxu1 %v10960_v15  ;;  %v10997_v15 = vld [vmem:[#allocation16 + $0x8] sm:$0xff]  }
 0x317   :  { %9985 = vmatpush3.bf16.msra.mxu1 %v10961_v48 }
 0x318   :  { %9986 = vmatprep.subr.bf16.mxu1 %v10962_v41 }
 0x31b   :  { %9987 = vmatpush3.bf16.msra.mxu1 %v10963_v42 }
 0x31c   :  { %9988 = vmatprep.subr.bf16.mxu1 %v10964_v43 }
 0x31f   :  { %9989 = vmatpush3.bf16.msra.mxu1 %v10965_v44 }
 0x320   :  { %9990 = vmatprep.subr.bf16.mxu1 %v10966_v45  ;;  %v9366_v45 = vld [vmem:[#allocation11] ss:$0 sm:$0xff] }
 0x323   :  { %9991 = vmatpush3.bf16.msra.mxu1 %v10967_v47 }
 0x324   :  { %9992 = vmatprep.subr.bf16.mxu1 %v10968_v39 }
 0x327   :  { %9993 = vmatpush3.bf16.msra.mxu1 %v10969_v40 }
 0x328   :  { %9994 = vmatprep.subr.bf16.mxu1 %v10970_v28 }
 0x32b   :  { %9995 = vmatpush3.bf16.msra.mxu1 %v10971_v49 }
 0x32c   :  { %10055 = vmatprep.subr.bf16.mxu1 %v12240_v38 }
 0x3a0   :  { %v3579_v56 = vpop.f32.mrb[0].mxu0 }
 0x3a1   :  { %v10075_v60 = vadd.f32 %v3579_v56, %v724_v54  ;;  %v3581_v61 = vpop.f32.mrb[1].mxu0 }
 0x3a2   :  { %v10077_v51 = vadd.f32 %v3581_v61, %v728_v55  ;;  %v3583_v62 = vpop.f32.mrb[2].mxu0  ;;  %v10999_v61 = vld [vmem:[#allocation16 + $0x18] sm:$0xff]  }
 0x3a3   :  { %v10076_v63 = vadd.f32 %v10075_v60, %v12582_v59  ;;  %v3584_v1 = vpop.f32.mrb[3].mxu0  ;;  %v736_v59 = vrot.slane %v719_v52, %v12650_v9  ;;  %v10998_v60 = vld [vmem:[#allocation16 + $0x10] sm:$0xff]   ;;  %v11001_v62 = vld [vmem:[#allocation16 + $0x28] sm:$0xff]  }
 0x3a4   :  { %v10078_v2 = vadd.f32 %v10077_v51, %v12584_v50  ;;  %v11000_v51 = vld [vmem:[#allocation16 + $0x20] sm:$0xff]   ;;  %v11003_v1 = vld [vmem:[#allocation16 + $0x38] sm:$0xff]  }
 0x3a5   :  { %v3955_v3 = vmax.f32 %v10076_v63, 0.0  ;;  %v11002_v63 = vld [vmem:[#allocation16 + $0x30] sm:$0xff]  }
 0x3a6   :  { %v3956_v5 = vmax.f32 %v10078_v2, 0.0  ;;  %v11004_v2 = vld [vmem:[#allocation19] ss:$16 sps:$4 sm:$0xff]  }
 0x3a7   :  { %v3959_v7 = vpack.c.bf16 %v3955_v3, %v3955_v3  ;;  %v11006_v3 = vld [vmem:[#allocation19 + $0x4] ss:$16 sps:$4 sm:$0xff]  }
 0x3a8   :  { %v3960_v6 = vpack.c.bf16 %v3956_v5, %v3956_v5  ;;  %v11009_v5 = vld [vmem:[#allocation19 + $0xc] ss:$16 sps:$4 sm:$0xff]  }
 0x3aa   :  { %4258 = vmatprep.mubr.bf16.mxu0 %v3960_v6  ;;  %v11012_v6 = vld [vmem:[#allocation19 + $0x24] ss:$16 sps:$4 sm:$0xff]  }
 0x3ab   :  { %4259 = vmatmul.mubr.bf16.vlgmr.msra.gmra.mrb[4].mxu0 %v3959_v7  ;;  %v11010_v7 = vld [vmem:[#allocation19 + $0x20] ss:$16 sps:$4 sm:$0xff]  }
 0x3ac   :  { %4448 = vmatprep.mubr.bf16.mxu0 %v12238_v0  ;;  %4417 = vmatpush1.bf16.msra.mxu0 %v10972_v20 }
 0x3ad   :  { %4418 = vmatprep.subr.bf16.mxu0 %v10977_v22 }
 0x3b0   :  { %4419 = vmatpush1.bf16.msra.mxu0 %v10975_v23 }
 0x3b1   :  { %4420 = vmatprep.subr.bf16.mxu0 %v10980_v24 }
 0x3b4   :  { %4421 = vmatpush1.bf16.msra.mxu0 %v10978_v27 }
 0x3b5   :  { %4422 = vmatprep.subr.bf16.mxu0 %v10983_v46 }
 0x3b8   :  { %4423 = vmatpush1.bf16.msra.mxu0 %v10981_v29 }
 0x3b9   :  { %4424 = vmatprep.subr.bf16.mxu0 %v10986_v30 }
 0x3bc   :  { %4425 = vmatpush1.bf16.msra.mxu0 %v10984_v4  ;;  %v4459_v4 = vld [vmem:[#allocation5] sm:$0xff] }
 0x3bd   :  { %4426 = vmatprep.subr.bf16.mxu0 %v10989_v57 }
 0x3c0   :  { %4427 = vmatpush1.bf16.msra.mxu0 %v10987_v31 }
 0x3c1   :  { %4428 = vmatprep.subr.bf16.mxu0 %v10992_v32 }
 0x3c4   :  { %4429 = vmatpush1.bf16.msra.mxu0 %v10990_v33  ;;  %v11007_v33 = vld [vmem:[#allocation19 + $0x8] ss:$16 sps:$4 sm:$0xff]  }
 0x3c5   :  { %4430 = vmatprep.subr.bf16.mxu0 %v10995_v35 }
 0x3c8   :  { %4431 = vmatpush1.bf16.msra.mxu0 %v10993_v36  ;;  %v11015_v36 = vld [vmem:[#allocation19 + $0x2c] ss:$16 sps:$4 sm:$0xff]  }
 0x3c9   :  { %4793 = vmatprep.subr.bf16.mxu0 %v11006_v3 }
 0x3e1   :  { %v3948_v11 = vpop.f32.mrb[4].mxu1 }
 0x3e2   :  { %v10079_v50 = vadd.f32 %v3948_v11, %v732_v10  ;;  %v3950_v12 = vpop.f32.mrb[5].mxu1  ;;  %v11018_v10 = vld [vmem:[#allocation19 + $0x44] ss:$16 sps:$4 sm:$0xff]  }
 0x3e3   :  { %v10080_v13 = vadd.f32 %v3950_v12, %v736_v59  ;;  %v3952_v14 = vpop.f32.mrb[6].mxu1  ;;  %v11016_v59 = vld [vmem:[#allocation19 + $0x40] ss:$16 sps:$4 sm:$0xff]   ;;  %v11024_v11 = vld [vmem:[#allocation19 + $0x64] ss:$16 sps:$4 sm:$0xff]  }
 0x3e4   :  { %v3957_v16 = vmax.f32 %v10079_v50, 0.0  ;;  %v3953_v17 = vpop.f32.mrb[7].mxu1  ;;  %v11022_v50 = vld [vmem:[#allocation19 + $0x60] ss:$16 sps:$4 sm:$0xff]   ;;  %v11030_v12 = vld [vmem:[#allocation19 + $0x84] ss:$16 sps:$4 sm:$0xff]  }
 0x3e5   :  { %v3958_v58 = vmax.f32 %v10080_v13, 0.0  ;;  %v11028_v13 = vld [vmem:[#allocation19 + $0x80] ss:$16 sps:$4 sm:$0xff]   ;;  %v11036_v14 = vld [vmem:[#allocation19 + $0xa4] ss:$16 sps:$4 sm:$0xff]  }
 0x3e6   :  { %v3961_v19 = vpack.c.bf16 %v3957_v16, %v3957_v16  ;;  %v11034_v16 = vld [vmem:[#allocation19 + $0xa0] ss:$16 sps:$4 sm:$0xff]   ;;  %v11042_v17 = vld [vmem:[#allocation19 + $0xc4] ss:$16 sps:$4 sm:$0xff]  }
 0x3e7   :  { %v3962_v18 = vpack.c.bf16 %v3958_v58, %v3958_v58  ;;  %v11040_v58 = vld [vmem:[#allocation19 + $0xc0] ss:$16 sps:$4 sm:$0xff]  }
 0x3e9   :  { %4298 = vmatprep.mubr.bf16.mxu1 %v3962_v18  ;;  %v4324_v18 = vld [vmem:[#allocation14] sm:$0x3] }
 0x3ea   :  { %4299 = vmatmul.mubr.bf16.vlgmr.msra.gmra.mrb[8].mxu1 %v3961_v19  ;;  %v4329_v19 = vrot.slane %v4324_v18, %v12636_v25  ;;  %v4333_v20 = vrot.slane %v4324_v18, %v12639_v53  ;;  %v11081_v18 = vld [vmem:[#allocation22 + $0x1ec] ss:$60 sps:$4 sm:$0xff]  }
 0x3eb   :  { %10056 = vmatpush3.bf16.msra.mxu1 %v10996_v37  ;;  %10071 = vmatprep.mubr.msk.bf16.mxu1 %vm12241_vm0, %v12240_v38  ;;  %v11013_v37 = vld [vmem:[#allocation19 + $0x28] ss:$16 sps:$4 sm:$0xff]  }
 0x3ec   :  { %10057 = vmatprep.subr.bf16.mxu1 %v12240_v38 }
 0x3ef   :  { %10058 = vmatpush3.bf16.msra.mxu1 %v10997_v15  ;;  %v11019_v15 = vld [vmem:[#allocation19 + $0x48] ss:$16 sps:$4 sm:$0xff]  }
 0x3f0   :  { %10059 = vmatprep.subr.bf16.mxu1 %v12240_v38 }
 0x3f3   :  { %10060 = vmatpush3.bf16.msra.mxu1 %v10998_v60 }
 0x3f4   :  { %10061 = vmatprep.subr.bf16.mxu1 %v12240_v38 }
 0x3f7   :  { %10062 = vmatpush3.bf16.msra.mxu1 %v10999_v61 }
 0x3f8   :  { %10063 = vmatprep.subr.bf16.mxu1 %v12240_v38 }
 0x3fb   :  { %10064 = vmatpush3.bf16.msra.mxu1 %v11000_v51 }
 0x3fc   :  { %10065 = vmatprep.subr.bf16.mxu1 %v12240_v38 }
 0x3ff   :  { %10066 = vmatpush3.bf16.msra.mxu1 %v11001_v62 }
 0x400   :  { %10067 = vmatprep.subr.bf16.mxu1 %v12240_v38 }
 0x403   :  { %10068 = vmatpush3.bf16.msra.mxu1 %v11002_v63 }
 0x404   :  { %10069 = vmatprep.subr.bf16.mxu1 %v12240_v38  ;;  %v11021_v38 = vld [vmem:[#allocation19 + $0x4c] ss:$16 sps:$4 sm:$0xff]  }
 0x407   :  { %10070 = vmatpush3.bf16.msra.mxu1 %v11003_v1  ;;  %v11052_v1 = vld [vmem:[#allocation22] ss:$60 sps:$4 sm:$0xff]  }
 0x408   :  { %4834 = vmatprep.subr.bf16.mxu1 %v11009_v5  ;;  %v11060_v5 = vld [vmem:[#allocation22 + $0x7c] ss:$60 sps:$4 sm:$0xff]  }
 0x47e   :  { %v9974_v48 = vpop.f32.mrb[4].mxu0 }
 0x47f   :  { %v9975_v41 = vpop.f32.mrb[5].mxu0 }
 0x480   :  { %v9976_v42 = vadd.f32 %v9975_v41, %v9974_v48  ;;  %v9977_v43 = vpop.f32.mrb[6].mxu0  ;;  %v11027_v48 = vld [vmem:[#allocation19 + $0x6c] ss:$16 sps:$4 sm:$0xff]   ;;  %v11025_v41 = vld [vmem:[#allocation19 + $0x68] ss:$16 sps:$4 sm:$0xff]  }
 0x481   :  { %v9978_v44 = vpop.f32.mrb[7].mxu0  ;;  %v11031_v43 = vld [vmem:[#allocation19 + $0x88] ss:$16 sps:$4 sm:$0xff]  }
 0x482   :  { %v4261_v40 = vadd.f32 %v9976_v42, %v9366_v45  ;;  %v11033_v42 = vld [vmem:[#allocation19 + $0x8c] ss:$16 sps:$4 sm:$0xff]   ;;  %v11037_v45 = vld [vmem:[#allocation19 + $0xa8] ss:$16 sps:$4 sm:$0xff]  }
 0x483   :  { %v11039_v44 = vld [vmem:[#allocation19 + $0xac] ss:$16 sps:$4 sm:$0xff]  }
 0x4bd   :  { %v9996_v47 = vpop.f32.mrb[8].mxu1 }
 0x4be   :  { %v9997_v39 = vpop.f32.mrb[9].mxu1 }
 0x4bf   :  { %v9998_v28 = vadd.f32 %v9997_v39, %v9996_v47  ;;  %v9999_v49 = vpop.f32.mrb[10].mxu1  ;;  %v11045_v47 = vld [vmem:[#allocation19 + $0xcc] ss:$16 sps:$4 sm:$0xff]   ;;  %v11048_v39 = vld [vmem:[#allocation19 + $0xe4] ss:$16 sps:$4 sm:$0xff]  }
 0x4c0   :  { %v10000_v52 = vpop.f32.mrb[11].mxu1  ;;  %v11049_v49 = vld [vmem:[#allocation19 + $0xe8] ss:$16 sps:$4 sm:$0xff]  }
 0x4c1   :  { %v4301_v54 = vadd.f32 %v9998_v28, %v4261_v40  ;;  %v11051_v40 = vld [vmem:[#allocation19 + $0xec] ss:$16 sps:$4 sm:$0xff]   ;;  %v11046_v28 = vld [vmem:[#allocation19 + $0xe0] ss:$16 sps:$4 sm:$0xff]   ;;  %v11054_v52 = vld [vmem:[#allocation22 + $0x4] ss:$60 sps:$4 sm:$0xff]  }
 0x4c3   :  { %v4306_v55 = vmax.f32 %v4301_v54, 0.0  ;;  %v11057_v54 = vld [vmem:[#allocation22 + $0xc] ss:$60 sps:$4 sm:$0xff]  }
 0x4c5   :  { %v4307_v56 = vpack.c.bf16 %v4306_v55, %v4306_v55  ;;  %v9415_v55 = vld [vmem:[#allocation17] ss:$0 sm:$0xff] }
 0x4c7   :  { %4449 = vmatmul.mubr.bf16.vlgmr.msra.gmra.mrb[8].mxu0 %v4307_v56 }
 0x4c8   :  { %4825 = vmatprep.mubr.bf16.mxu0 %v12238_v0  ;;  %4794 = vmatpush1.bf16.msra.mxu0 %v11004_v2  ;;  %v11055_v2 = vld [vmem:[#allocation22 + $0x8] ss:$60 sps:$4 sm:$0xff]  }
 0x4c9   :  { %4795 = vmatprep.subr.bf16.mxu0 %v11012_v6  ;;  %v11063_v6 = vld [vmem:[#allocation22 + $0x84] ss:$60 sps:$4 sm:$0xff]  }
 0x4cc   :  { %4796 = vmatpush1.bf16.msra.mxu0 %v11010_v7  ;;  %v11058_v7 = vld [vmem:[#allocation22 + $0x78] ss:$60 sps:$4 sm:$0xff]  }
 0x4cd   :  { %4797 = vmatprep.subr.bf16.mxu0 %v11018_v10  ;;  %v11061_v10 = vld [vmem:[#allocation22 + $0x80] ss:$60 sps:$4 sm:$0xff]  }
 0x4d0   :  { %4798 = vmatpush1.bf16.msra.mxu0 %v11016_v59  ;;  %v11066_v59 = vld [vmem:[#allocation22 + $0xf4] ss:$60 sps:$4 sm:$0xff]  }
 0x4d1   :  { %4799 = vmatprep.subr.bf16.mxu0 %v11024_v11  ;;  %v11069_v11 = vld [vmem:[#allocation22 + $0xfc] ss:$60 sps:$4 sm:$0xff]  }
 0x4d4   :  { %4800 = vmatpush1.bf16.msra.mxu0 %v11022_v50  ;;  %v11064_v50 = vld [vmem:[#allocation22 + $0xf0] ss:$60 sps:$4 sm:$0xff]  }
 0x4d5   :  { %4801 = vmatprep.subr.bf16.mxu0 %v11030_v12  ;;  %v11067_v12 = vld [vmem:[#allocation22 + $0xf8] ss:$60 sps:$4 sm:$0xff]  }
 0x4d8   :  { %4802 = vmatpush1.bf16.msra.mxu0 %v11028_v13  ;;  %v11072_v13 = vld [vmem:[#allocation22 + $0x16c] ss:$60 sps:$4 sm:$0xff]  }
 0x4d9   :  { %4803 = vmatprep.subr.bf16.mxu0 %v11036_v14  ;;  %v11075_v14 = vld [vmem:[#allocation22 + $0x174] ss:$60 sps:$4 sm:$0xff]  }
 0x4dc   :  { %4804 = vmatpush1.bf16.msra.mxu0 %v11034_v16  ;;  %v11070_v16 = vld [vmem:[#allocation22 + $0x168] ss:$60 sps:$4 sm:$0xff]  }
 0x4dd   :  { %4805 = vmatprep.subr.bf16.mxu0 %v11042_v17  ;;  %v11073_v17 = vld [vmem:[#allocation22 + $0x170] ss:$60 sps:$4 sm:$0xff]  }
 0x4e0   :  { %4806 = vmatpush1.bf16.msra.mxu0 %v11040_v58  ;;  %v11078_v58 = vld [vmem:[#allocation22 + $0x1e4] ss:$60 sps:$4 sm:$0xff]  }
 0x4e1   :  { %4807 = vmatprep.subr.bf16.mxu0 %v11048_v39  ;;  %v11118_v39 = vld [vmem:[#allocation22 + $0x528] ss:$60 sps:$4 sm:$0xff]  }
 0x4e4   :  { %4808 = vmatpush1.bf16.msra.mxu0 %v11046_v28  ;;  %v11126_v28 = vld [vmem:[#allocation22 + $0x5a4] ss:$60 sps:$4 sm:$0xff]  }
 0x4e5   :  { %7906 = vmatprep.subr.bf16.mxu0 %v11054_v52  ;;  %v11124_v52 = vld [vmem:[#allocation22 + $0x5a0] ss:$60 sps:$4 sm:$0xff]  }
 0x59a   :  { %v4450_v21 = vpop.f32.mrb[8].mxu0 }
 0x59b   :  { %v4451_v22 = vadd.f32 %v4450_v21, %v4329_v19  ;;  %v4452_v23 = vpop.f32.mrb[9].mxu0  ;;  %v11076_v19 = vld [vmem:[#allocation22 + $0x1e0] ss:$60 sps:$4 sm:$0xff]  }
 0x59c   :  { %v4453_v24 = vadd.f32 %v4452_v23, %v4333_v20  ;;  %v4454_v27 = vpop.f32.mrb[10].mxu0  ;;  %v11079_v20 = vld [vmem:[#allocation22 + $0x1e8] ss:$60 sps:$4 sm:$0xff]   ;;  %v11084_v21 = vld [vmem:[#allocation22 + $0x25c] ss:$60 sps:$4 sm:$0xff]  }
 0x59d   :  { %4457 = vst [vmem:[#allocation26] sm:$0xff] %v4451_v22  ;;  %v4455_v46 = vpop.f32.mrb[11].mxu0  ;;  %v11082_v23 = vld [vmem:[#allocation22 + $0x258] ss:$60 sps:$4 sm:$0xff]  }
 0x59e   :  { %4458 = vst [vmem:[#allocation28] sm:$0xff] %v4453_v24  ;;  %v4460_v29 = vmul.f32 0.5, %v4453_v24  ;;  %v11085_v24 = vld [vmem:[#allocation22 + $0x260] ss:$60 sps:$4 sm:$0xff]   ;;  %v11090_v27 = vld [vmem:[#allocation22 + $0x2d4] ss:$60 sps:$4 sm:$0xff]  }
 0x59f   :  { %v11093_v46 = vld [vmem:[#allocation22 + $0x2dc] ss:$60 sps:$4 sm:$0xff]  }
 0x5a0   :  { %v4461_v30 = vmul.f32 1.442695, %v4460_v29  ;;  %v11088_v29 = vld [vmem:[#allocation22 + $0x2d0] ss:$60 sps:$4 sm:$0xff]  }
 0x5a2   :  { %11756 = vpow2.f32 %v4461_v30  ;;  %v11091_v30 = vld [vmem:[#allocation22 + $0x2d8] ss:$60 sps:$4 sm:$0xff]  }
 0x5ac   :  { %v11757_v57 = vpop.eup %11756 }
 0x5ad   :  { %v4463_v31 = vmul.f32 %v11757_v57, %v4459_v4  ;;  %v11096_v4 = vld [vmem:[#allocation22 + $0x34c] ss:$60 sps:$4 sm:$0xff]   ;;  %v11099_v57 = vld [vmem:[#allocation22 + $0x354] ss:$60 sps:$4 sm:$0xff]  }
 0x5af   :  { %v4464_v32 = vadd.f32 %v4463_v31, %v4451_v22  ;;  %v11087_v22 = vld [vmem:[#allocation22 + $0x264] ss:$60 sps:$4 sm:$0xff]  }
 0x5b0   :  { %v11094_v31 = vld [vmem:[#allocation22 + $0x348] ss:$60 sps:$4 sm:$0xff]  }
 0x5b1   :  { %v4465_v35 = vpack.c.bf16 %v4464_v32, %v4464_v32  ;;  %v11097_v32 = vld [vmem:[#allocation22 + $0x350] ss:$60 sps:$4 sm:$0xff]  }
 0x5b3   :  { %10072 = vmatmul.mubr.bf16.vlgmr.msra.gmra.mrb[12].mxu1 %v4465_v35  ;;  %v11105_v35 = vld [vmem:[#allocation22 + $0x3cc] ss:$60 sps:$4 sm:$0xff]  }
 0x5b4   :  { %4835 = vmatpush1.bf16.msra.mxu1 %v11007_v33  ;;  %4866 = vmatprep.mubr.bf16.mxu1 %v12238_v0  ;;  %v11043_v0 = vld [vmem:[#allocation19 + $0xc8] ss:$16 sps:$4 sm:$0xff]  }
 0x5b5   :  { %4836 = vmatprep.subr.bf16.mxu1 %v11015_v36  ;;  %v11102_v33 = vld [vmem:[#allocation22 + $0x3c4] ss:$60 sps:$4 sm:$0xff]  }
 0x5b6   :  { %v11100_v36 = vld [vmem:[#allocation22 + $0x3c0] ss:$60 sps:$4 sm:$0xff]  }
 0x5b8   :  { %4837 = vmatpush1.bf16.msra.mxu1 %v11013_v37  ;;  %v11103_v37 = vld [vmem:[#allocation22 + $0x3c8] ss:$60 sps:$4 sm:$0xff]  }
 0x5b9   :  { %4838 = vmatprep.subr.bf16.mxu1 %v11021_v38  ;;  %v11108_v38 = vld [vmem:[#allocation22 + $0x43c] ss:$60 sps:$4 sm:$0xff]  }
 0x5bc   :  { %4839 = vmatpush1.bf16.msra.mxu1 %v11019_v15  ;;  %v11111_v15 = vld [vmem:[#allocation22 + $0x444] ss:$60 sps:$4 sm:$0xff]  }
 0x5bd   :  { %4840 = vmatprep.subr.bf16.mxu1 %v11027_v48  ;;  %v11106_v48 = vld [vmem:[#allocation22 + $0x438] ss:$60 sps:$4 sm:$0xff]  }
 0x5c0   :  { %4841 = vmatpush1.bf16.msra.mxu1 %v11025_v41  ;;  %v11109_v41 = vld [vmem:[#allocation22 + $0x440] ss:$60 sps:$4 sm:$0xff]  }
 0x5c1   :  { %4842 = vmatprep.subr.bf16.mxu1 %v11033_v42  ;;  %v11114_v42 = vld [vmem:[#allocation22 + $0x4b4] ss:$60 sps:$4 sm:$0xff]  }
 0x5c4   :  { %4843 = vmatpush1.bf16.msra.mxu1 %v11031_v43  ;;  %v11117_v43 = vld [vmem:[#allocation22 + $0x4bc] ss:$60 sps:$4 sm:$0xff]  }
 0x5c5   :  { %4844 = vmatprep.subr.bf16.mxu1 %v11039_v44  ;;  %v11112_v44 = vld [vmem:[#allocation22 + $0x4b0] ss:$60 sps:$4 sm:$0xff]  }
 0x5c8   :  { %4845 = vmatpush1.bf16.msra.mxu1 %v11037_v45  ;;  %v11115_v45 = vld [vmem:[#allocation22 + $0x4b8] ss:$60 sps:$4 sm:$0xff]  }
 0x5c9   :  { %4846 = vmatprep.subr.bf16.mxu1 %v11045_v47  ;;  %v11120_v47 = vld [vmem:[#allocation22 + $0x52c] ss:$60 sps:$4 sm:$0xff]  }
 0x5cc   :  { %4847 = vmatpush1.bf16.msra.mxu1 %v11043_v0  ;;  %v11123_v0 = vld [vmem:[#allocation22 + $0x534] ss:$60 sps:$4 sm:$0xff]  }
 0x5cd   :  { %4848 = vmatprep.subr.bf16.mxu1 %v11051_v40  ;;  %v11121_v40 = vld [vmem:[#allocation22 + $0x530] ss:$60 sps:$4 sm:$0xff]  }
 0x5d0   :  { %4849 = vmatpush1.bf16.msra.mxu1 %v11049_v49  ;;  %v11129_v49 = vld [vmem:[#allocation22 + $0x5ac] ss:$60 sps:$4 sm:$0xff]  }
 0x5d1   :  { %7988 = vmatprep.subr.bf16.mxu1 %v11057_v54  ;;  %v11127_v54 = vld [vmem:[#allocation22 + $0x5a8] ss:$60 sps:$4 sm:$0xff]  }
 0x686   :  { %v4571_v56 = vpop.f32.mrb[12].mxu1 }
 0x687   :  { %v4572_v60 = vadd.f32 %v9415_v55, %v4571_v56  ;;  %v10073_v61 = vpop.f32.mrb[13].mxu1  ;;  %v11132_v55 = vld [vmem:[#allocation22 + $0x61c] ss:$60 sps:$4 sm:$0xff]   ;;  %v11135_v56 = vld [vmem:[#allocation22 + $0x624] ss:$60 sps:$4 sm:$0xff]  }
 0x688   :  { %v4574_v51 = vpop.f32.mrb[14].mxu1  ;;  %v11133_v61 = vld [vmem:[#allocation22 + $0x620] ss:$60 sps:$4 sm:$0xff]  }
 0x689   :  { %v4577_v62 = vmax.f32 %v4572_v60, 0.0  ;;  %v10074_v63 = vpop.f32.mrb[15].mxu1  ;;  %v11130_v60 = vld [vmem:[#allocation22 + $0x618] ss:$60 sps:$4 sm:$0xff]  }
 0x68a   :  { %v11138_v51 = vld [vmem:[#allocation22 + $0x694] ss:$60 sps:$4 sm:$0xff]  }
 0x68b   :  { %v4578_v3 = vpack.c.bf16 %v4577_v62, %v4577_v62  ;;  %v11141_v62 = vld [vmem:[#allocation22 + $0x69c] ss:$60 sps:$4 sm:$0xff]   ;;  %v11136_v63 = vld [vmem:[#allocation22 + $0x690] ss:$60 sps:$4 sm:$0xff]  }
 0x68d   :  { %4826 = vmatmul.mubr.bf16.vlgmr.msra.gmra.mrb[12].mxu0 %v4578_v3  ;;  %4867 = vmatmul.mubr.bf16.vlgmr.msra.gmra.mrb[16].mxu1 %v4578_v3  ;;  %v11147_v3 = vld [vmem:[#allocation22 + $0x714] ss:$60 sps:$4 sm:$0xff]  }
 0x68e   :  { %7907 = vmatpush1.bf16.msra.mxu0 %v11052_v1  ;;  %7989 = vmatpush1.bf16.msra.mxu1 %v11055_v2  ;;  %v11139_v1 = vld [vmem:[#allocation22 + $0x698] ss:$60 sps:$4 sm:$0xff]   ;;  %v11144_v2 = vld [vmem:[#allocation22 + $0x70c] ss:$60 sps:$4 sm:$0xff]  }
 0x68f   :  { %7908 = vmatprep.subr.bf16.mxu0 %v11060_v5  ;;  %7990 = vmatprep.subr.bf16.mxu1 %v11063_v6  ;;  %v11142_v5 = vld [vmem:[#allocation22 + $0x708] ss:$60 sps:$4 sm:$0xff]   ;;  %v11145_v6 = vld [vmem:[#allocation22 + $0x710] ss:$60 sps:$4 sm:$0xff]  }
 0x692   :  { %7909 = vmatpush1.bf16.msra.mxu0 %v11058_v7  ;;  %7991 = vmatpush1.bf16.msra.mxu1 %v11061_v10  ;;  %v11150_v7 = vld [vmem:[#allocation22 + $0x784] ss:$60 sps:$4 sm:$0xff]   ;;  %v11153_v10 = vld [vmem:[#allocation22 + $0x78c] ss:$60 sps:$4 sm:$0xff]  }
 0x693   :  { %7910 = vmatprep.subr.bf16.mxu0 %v11066_v59  ;;  %7992 = vmatprep.subr.bf16.mxu1 %v11069_v11  ;;  %v12658_v59 = vld [vmem:[#allocation20] sm:$0xf] }
 0x694   :  { %v4616_v11 = vrot.slane %v12658_v59, %v12636_v25 }
 0x696   :  { %7911 = vmatpush1.bf16.msra.mxu0 %v11064_v50  ;;  %7993 = vmatpush1.bf16.msra.mxu1 %v11067_v12  ;;  %v4620_v50 = vrot.slane %v12658_v59, %v12639_v53  ;;  %v4628_v12 = vrot.slane %v12658_v59, %v12650_v9 }
 0x697   :  { %7912 = vmatprep.subr.bf16.mxu0 %v11072_v13  ;;  %7994 = vmatprep.subr.bf16.mxu1 %v11075_v14 }
 0x69a   :  { %7913 = vmatpush1.bf16.msra.mxu0 %v11070_v16  ;;  %7995 = vmatpush1.bf16.msra.mxu1 %v11073_v17 }
 0x69b   :  { %7914 = vmatprep.subr.bf16.mxu0 %v11078_v58  ;;  %7996 = vmatprep.subr.bf16.mxu1 %v11081_v18 }
 0x69e   :  { %7915 = vmatpush1.bf16.msra.mxu0 %v11076_v19  ;;  %7997 = vmatpush1.bf16.msra.mxu1 %v11079_v20 }
 0x69f   :  { %7916 = vmatprep.subr.bf16.mxu0 %v11084_v21  ;;  %7998 = vmatprep.subr.bf16.mxu1 %v11087_v22 }
 0x6a2   :  { %7917 = vmatpush1.bf16.msra.mxu0 %v11082_v23  ;;  %7999 = vmatpush1.bf16.msra.mxu1 %v11085_v24 }
 0x6a3   :  { %7918 = vmatprep.subr.bf16.mxu0 %v11090_v27  ;;  %8000 = vmatprep.subr.bf16.mxu1 %v11093_v46 }
 0x6a6   :  { %7919 = vmatpush1.bf16.msra.mxu0 %v11088_v29  ;;  %8001 = vmatpush1.bf16.msra.mxu1 %v11091_v30  ;;  %v11148_v30 = vld [vmem:[#allocation22 + $0x780] ss:$60 sps:$4 sm:$0xff]  }
 0x6a7   :  { %7920 = vmatprep.subr.bf16.mxu0 %v11096_v4  ;;  %8002 = vmatprep.subr.bf16.mxu1 %v11099_v57  ;;  %v11151_v4 = vld [vmem:[#allocation22 + $0x788] ss:$60 sps:$4 sm:$0xff]  }
 0x6aa   :  { %7921 = vmatpush1.bf16.msra.mxu0 %v11094_v31  ;;  %8003 = vmatpush1.bf16.msra.mxu1 %v11097_v32  ;;  %v11156_v31 = vld [vmem:[#allocation22 + $0x7fc] ss:$60 sps:$4 sm:$0xff]   ;;  %v11159_v32 = vld [vmem:[#allocation22 + $0x804] ss:$60 sps:$4 sm:$0xff]  }
 0x6ab   :  { %7922 = vmatprep.subr.bf16.mxu0 %v11102_v33  ;;  %8004 = vmatprep.subr.bf16.mxu1 %v11105_v35  ;;  %v11154_v35 = vld [vmem:[#allocation22 + $0x7f8] ss:$60 sps:$4 sm:$0xff]  }
 0x6ae   :  { %7923 = vmatpush1.bf16.msra.mxu0 %v11100_v36  ;;  %8005 = vmatpush1.bf16.msra.mxu1 %v11103_v37  ;;  %v11157_v36 = vld [vmem:[#allocation22 + $0x800] ss:$60 sps:$4 sm:$0xff]   ;;  %v11162_v37 = vld [vmem:[#allocation22 + $0x874] ss:$60 sps:$4 sm:$0xff]  }
 0x6af   :  { %7924 = vmatprep.subr.bf16.mxu0 %v11108_v38  ;;  %8006 = vmatprep.subr.bf16.mxu1 %v11111_v15  ;;  %v11165_v38 = vld [vmem:[#allocation22 + $0x87c] ss:$60 sps:$4 sm:$0xff]   ;;  %v11160_v15 = vld [vmem:[#allocation22 + $0x870] ss:$60 sps:$4 sm:$0xff]  }
 0x6b2   :  { %7925 = vmatpush1.bf16.msra.mxu0 %v11106_v48  ;;  %8007 = vmatpush1.bf16.msra.mxu1 %v11109_v41  ;;  %v11163_v48 = vld [vmem:[#allocation22 + $0x878] ss:$60 sps:$4 sm:$0xff]   ;;  %v11168_v41 = vld [vmem:[#allocation22 + $0x8ec] ss:$60 sps:$4 sm:$0xff]  }
 0x6b3   :  { %7926 = vmatprep.subr.bf16.mxu0 %v11114_v42  ;;  %8008 = vmatprep.subr.bf16.mxu1 %v11117_v43  ;;  %v11171_v42 = vld [vmem:[#allocation22 + $0x8f4] ss:$60 sps:$4 sm:$0xff]   ;;  %v11166_v43 = vld [vmem:[#allocation22 + $0x8e8] ss:$60 sps:$4 sm:$0xff]  }
 0x6b6   :  { %7927 = vmatpush1.bf16.msra.mxu0 %v11112_v44  ;;  %8009 = vmatpush1.bf16.msra.mxu1 %v11115_v45  ;;  %v11169_v44 = vld [vmem:[#allocation22 + $0x8f0] ss:$60 sps:$4 sm:$0xff]   ;;  %v11174_v45 = vld [vmem:[#allocation22 + $0x964] ss:$60 sps:$4 sm:$0xff]  }
 0x6b7   :  { %7928 = vmatprep.subr.bf16.mxu0 %v11120_v47  ;;  %8010 = vmatprep.subr.bf16.mxu1 %v11123_v0  ;;  %v11177_v47 = vld [vmem:[#allocation22 + $0x96c] ss:$60 sps:$4 sm:$0xff]   ;;  %v11172_v0 = vld [vmem:[#allocation22 + $0x960] ss:$60 sps:$4 sm:$0xff]  }
 0x6ba   :  { %7929 = vmatpush1.bf16.msra.mxu0 %v11118_v39  ;;  %8011 = vmatpush1.bf16.msra.mxu1 %v11121_v40  ;;  %v11175_v39 = vld [vmem:[#allocation22 + $0x968] ss:$60 sps:$4 sm:$0xff]   ;;  %v11180_v40 = vld [vmem:[#allocation22 + $0x9dc] ss:$60 sps:$4 sm:$0xff]  }
 0x6bb   :  { %7930 = vmatprep.subr.bf16.mxu0 %v11126_v28  ;;  %8012 = vmatprep.subr.bf16.mxu1 %v11129_v49  ;;  %v11183_v28 = vld [vmem:[#allocation22 + $0x9e4] ss:$60 sps:$4 sm:$0xff]   ;;  %v11178_v49 = vld [vmem:[#allocation22 + $0x9d8] ss:$60 sps:$4 sm:$0xff]  }
 0x6be   :  { %7931 = vmatpush1.bf16.msra.mxu0 %v11124_v52  ;;  %8013 = vmatpush1.bf16.msra.mxu1 %v11127_v54  ;;  %v11181_v52 = vld [vmem:[#allocation22 + $0x9e0] ss:$60 sps:$4 sm:$0xff]   ;;  %v11186_v54 = vld [vmem:[#allocation22 + $0xa54] ss:$60 sps:$4 sm:$0xff]  }
 0x6bf   :  { %7932 = vmatprep.subr.bf16.mxu0 %v11132_v55  ;;  %8014 = vmatprep.subr.bf16.mxu1 %v11135_v56  ;;  %v11189_v55 = vld [vmem:[#allocation22 + $0xa5c] ss:$60 sps:$4 sm:$0xff]   ;;  %v11184_v56 = vld [vmem:[#allocation22 + $0xa50] ss:$60 sps:$4 sm:$0xff]  }
 0x6c2   :  { %7933 = vmatpush1.bf16.msra.mxu0 %v11130_v60  ;;  %8015 = vmatpush1.bf16.msra.mxu1 %v11133_v61  ;;  %v11187_v60 = vld [vmem:[#allocation22 + $0xa58] ss:$60 sps:$4 sm:$0xff]   ;;  %v11192_v61 = vld [vmem:[#allocation22 + $0xacc] ss:$60 sps:$4 sm:$0xff]  }
 0x6c3   :  { %7934 = vmatprep.subr.bf16.mxu0 %v11138_v51  ;;  %8016 = vmatprep.subr.bf16.mxu1 %v11141_v62  ;;  %v11195_v51 = vld [vmem:[#allocation22 + $0xad4] ss:$60 sps:$4 sm:$0xff]   ;;  %v11190_v62 = vld [vmem:[#allocation22 + $0xac8] ss:$60 sps:$4 sm:$0xff]  }
 0x6c6   :  { %7935 = vmatpush1.bf16.msra.mxu0 %v11136_v63  ;;  %8017 = vmatpush1.bf16.msra.mxu1 %v11139_v1  ;;  %v11193_v63 = vld [vmem:[#allocation22 + $0xad0] ss:$60 sps:$4 sm:$0xff]   ;;  %v11198_v1 = vld [vmem:[#allocation22 + $0xb44] ss:$60 sps:$4 sm:$0xff]  }
 0x6c7   :  { %7936 = vmatprep.subr.bf16.mxu0 %v11144_v2  ;;  %8018 = vmatprep.subr.bf16.mxu1 %v11147_v3  ;;  %v11201_v2 = vld [vmem:[#allocation22 + $0xb4c] ss:$60 sps:$4 sm:$0xff]   ;;  %v11196_v3 = vld [vmem:[#allocation22 + $0xb40] ss:$60 sps:$4 sm:$0xff]  }
 0x6ca   :  { %7937 = vmatpush1.bf16.msra.mxu0 %v11142_v5  ;;  %8019 = vmatpush1.bf16.msra.mxu1 %v11145_v6  ;;  %v11199_v5 = vld [vmem:[#allocation22 + $0xb48] ss:$60 sps:$4 sm:$0xff]   ;;  %v11204_v6 = vld [vmem:[#allocation22 + $0xbbc] ss:$60 sps:$4 sm:$0xff]  }
 0x6cb   :  { %7947 = vmatprep.subr.bf16.mxu0 %v11150_v7  ;;  %8029 = vmatprep.subr.bf16.mxu1 %v11153_v10  ;;  %v11207_v7 = vld [vmem:[#allocation22 + $0xbc4] ss:$60 sps:$4 sm:$0xff]   ;;  %v11202_v10 = vld [vmem:[#allocation22 + $0xbb8] ss:$60 sps:$4 sm:$0xff]  }
 0x760   :  { %v4827_v13 = vpop.f32.mrb[12].mxu0  ;;  %v12666_v14 = vpop.f32.mrb[16].mxu1 }
 0x761   :  { %v4828_v16 = vadd.f32 %v4827_v13, %v4616_v11  ;;  %v4829_v17 = vpop.f32.mrb[13].mxu0  ;;  %v4870_v58 = vpop.f32.mrb[17].mxu1  ;;  %v11205_v11 = vld [vmem:[#allocation22 + $0xbc0] ss:$60 sps:$4 sm:$0xff]   ;;  %v11208_v13 = vld [vmem:[#allocation22 + $0xc30] ss:$60 sps:$4 sm:$0xff]  }
 0x762   :  { %v4830_v18 = vadd.f32 %v4829_v17, %v4620_v50  ;;  %v4871_v19 = vadd.f32 %v4870_v58, %v4628_v12  ;;  %v4831_v20 = vpop.f32.mrb[14].mxu0  ;;  %v4872_v21 = vpop.f32.mrb[18].mxu1  ;;  %v11210_v50 = vld [vmem:[#allocation22 + $0xc34] ss:$60 sps:$4 sm:$0xff]   ;;  %v11213_v12 = vld [vmem:[#allocation22 + $0xc3c] ss:$60 sps:$4 sm:$0xff]  }
 0x763   :  { %v4875_v22 = vmax.f32 %v4828_v16, 0.0  ;;  %v4832_v23 = vpop.f32.mrb[15].mxu0  ;;  %v4873_v24 = vpop.f32.mrb[19].mxu1  ;;  %v11211_v16 = vld [vmem:[#allocation22 + $0xc38] ss:$60 sps:$4 sm:$0xff]  }
 0x764   :  { %v4876_v27 = vmax.f32 %v4830_v18, 0.0  ;;  %v4878_v46 = vmax.f32 %v4871_v19, 0.0  ;;  %v11216_v17 = vld [vmem:[#allocation22 + $0xcac] ss:$60 sps:$4 sm:$0xff]   ;;  %v11219_v58 = vld [vmem:[#allocation22 + $0xcb4] ss:$60 sps:$4 sm:$0xff]  }
 0x765   :  { %v12670_v57 = vpack.c.bf16 %v4875_v22, %v4875_v22  ;;  %v11214_v18 = vld [vmem:[#allocation22 + $0xca8] ss:$60 sps:$4 sm:$0xff]   ;;  %v11217_v19 = vld [vmem:[#allocation22 + $0xcb0] ss:$60 sps:$4 sm:$0xff]   ;;  %v11220_v22 = vld [vmem:[#allocation22 + $0xd20] ss:$60 sps:$4 sm:$0xff]  }
 0x766   :  { %v12668_v29 = vpack.c.bf16 %v4876_v27, %v4876_v27  ;;  %v12674_v33 = vpack.c.bf16 %v4878_v46, %v4878_v46  ;;  %v11222_v20 = vld [vmem:[#allocation22 + $0xd24] ss:$60 sps:$4 sm:$0xff]   ;;  %v11225_v21 = vld [vmem:[#allocation22 + $0xd2c] ss:$60 sps:$4 sm:$0xff]   ;;  %v11228_v24 = vld [vmem:[#allocation22 + $0xd9c] ss:$60 sps:$4 sm:$0xff]  }
 0x767   :  { %v11223_v23 = vld [vmem:[#allocation22 + $0xd28] ss:$60 sps:$4 sm:$0xff]   ;;  %v11226_v46 = vld [vmem:[#allocation22 + $0xd98] ss:$60 sps:$4 sm:$0xff]  }
 0x768   :  { %7938 = vmatprep.mubr.bf16.mxu0 %v12668_v29  ;;  %8020 = vmatprep.mubr.bf16.mxu1 %v12668_v29  ;;  %v11231_v27 = vld [vmem:[#allocation22 + $0xda4] ss:$60 sps:$4 sm:$0xff]  }
 0x769   :  { %7939 = vmatmul.mubr.bf16.vlgmr.msra.gmra.mrb[16].mxu0 %v12670_v57  ;;  %8021 = vmatmul.mubr.bf16.vlgmr.msra.gmra.mrb[20].mxu1 %v12670_v57 }
 0x76a   :  { %7948 = vmatpush1.bf16.msra.mxu0 %v11148_v30  ;;  %8030 = vmatpush1.bf16.msra.mxu1 %v11151_v4  ;;  %v11229_v30 = vld [vmem:[#allocation22 + $0xda0] ss:$60 sps:$4 sm:$0xff]   ;;  %v4624_v4 = vrot.slane %v12658_v59, %v12647_v8  ;;  %v11246_v59 = vld [vmem:[#allocation22 + $0x14] ss:$60 sps:$4 sm:$0xff]  }
 0x76b   :  { %7979 = vmatprep.mubr.bf16.mxu0 %v12674_v33  ;;  %8061 = vmatprep.mubr.bf16.mxu1 %v12674_v33 }
 0x76c   :  { %7949 = vmatprep.subr.bf16.mxu0 %v11156_v31  ;;  %8031 = vmatprep.subr.bf16.mxu1 %v11159_v32  ;;  %v11234_v31 = vld [vmem:[#allocation22 + $0xe14] ss:$60 sps:$4 sm:$0xff]   ;;  %v11237_v32 = vld [vmem:[#allocation22 + $0xe1c] ss:$60 sps:$4 sm:$0xff]  }
 0x76e   :  { %7950 = vmatpush1.bf16.msra.mxu0 %v11154_v35  ;;  %8032 = vmatpush1.bf16.msra.mxu1 %v11157_v36  ;;  %v11232_v35 = vld [vmem:[#allocation22 + $0xe10] ss:$60 sps:$4 sm:$0xff]   ;;  %v11235_v36 = vld [vmem:[#allocation22 + $0xe18] ss:$60 sps:$4 sm:$0xff]  }
 0x76f   :  { %7951 = vmatprep.subr.bf16.mxu0 %v11162_v37  ;;  %8033 = vmatprep.subr.bf16.mxu1 %v11165_v38  ;;  %v4869_v37 = vadd.f32 %v12666_v14, %v4624_v4  ;;  %v11240_v38 = vld [vmem:[#allocation22 + $0xe8c] ss:$60 sps:$4 sm:$0xff]   ;;  %v11247_v14 = vld [vmem:[#allocation22 + $0x18] ss:$60 sps:$4 sm:$0xff]  }
 0x770   :  { %v11307_v4 = vld [vmem:[#allocation22 + $0x4c8] ss:$60 sps:$4 sm:$0xff]  }
 0x772   :  { %7952 = vmatpush1.bf16.msra.mxu0 %v11160_v15  ;;  %8034 = vmatpush1.bf16.msra.mxu1 %v11163_v48  ;;  %v11243_v15 = vld [vmem:[#allocation22 + $0xe94] ss:$60 sps:$4 sm:$0xff]   ;;  %v11238_v48 = vld [vmem:[#allocation22 + $0xe88] ss:$60 sps:$4 sm:$0xff]  }
 0x773   :  { %7953 = vmatprep.subr.bf16.mxu0 %v11168_v41  ;;  %8035 = vmatprep.subr.bf16.mxu1 %v11171_v42  ;;  %v11241_v41 = vld [vmem:[#allocation22 + $0xe90] ss:$60 sps:$4 sm:$0xff]   ;;  %v4877_v42 = vmax.f32 %v4869_v37, 0.0 }
 0x774   :  { %v11318_v37 = vld [vmem:[#allocation22 + $0x5b4] ss:$60 sps:$4 sm:$0xff]  }
 0x776   :  { %7954 = vmatpush1.bf16.msra.mxu0 %v11166_v43  ;;  %8036 = vmatpush1.bf16.msra.mxu1 %v11169_v44  ;;  %v11249_v43 = vld [vmem:[#allocation22 + $0x1c] ss:$60 sps:$4 sm:$0xff]   ;;  %v11244_v44 = vld [vmem:[#allocation22 + $0x10] ss:$60 sps:$4 sm:$0xff]  }
 0x777   :  { %7955 = vmatprep.subr.bf16.mxu0 %v11174_v45  ;;  %8037 = vmatprep.subr.bf16.mxu1 %v11177_v47  ;;  %v12683_v45 = vpack.c.bf16 %v4877_v42, %v4877_v42  ;;  %v11252_v47 = vld [vmem:[#allocation22 + $0x8c] ss:$60 sps:$4 sm:$0xff]   ;;  %v11327_v42 = vld [vmem:[#allocation22 + $0x634] ss:$60 sps:$4 sm:$0xff]  }
 0x77a   :  { %7956 = vmatpush1.bf16.msra.mxu0 %v11172_v0  ;;  %8038 = vmatpush1.bf16.msra.mxu1 %v11175_v39  ;;  %v11255_v0 = vld [vmem:[#allocation22 + $0x94] ss:$60 sps:$4 sm:$0xff]   ;;  %v11250_v39 = vld [vmem:[#allocation22 + $0x88] ss:$60 sps:$4 sm:$0xff]  }
 0x77b   :  { %7957 = vmatprep.subr.bf16.mxu0 %v11180_v40  ;;  %8039 = vmatprep.subr.bf16.mxu1 %v11183_v28  ;;  %v11253_v40 = vld [vmem:[#allocation22 + $0x90] ss:$60 sps:$4 sm:$0xff]   ;;  %v11258_v28 = vld [vmem:[#allocation22 + $0x104] ss:$60 sps:$4 sm:$0xff]  }
 0x77e   :  { %7958 = vmatpush1.bf16.msra.mxu0 %v11178_v49  ;;  %8040 = vmatpush1.bf16.msra.mxu1 %v11181_v52  ;;  %v11261_v49 = vld [vmem:[#allocation22 + $0x10c] ss:$60 sps:$4 sm:$0xff]   ;;  %v11256_v52 = vld [vmem:[#allocation22 + $0x100] ss:$60 sps:$4 sm:$0xff]  }
 0x77f   :  { %7959 = vmatprep.subr.bf16.mxu0 %v11186_v54  ;;  %8041 = vmatprep.subr.bf16.mxu1 %v11189_v55  ;;  %v11259_v54 = vld [vmem:[#allocation22 + $0x108] ss:$60 sps:$4 sm:$0xff]   ;;  %v11264_v55 = vld [vmem:[#allocation22 + $0x17c] ss:$60 sps:$4 sm:$0xff]  }
 0x782   :  { %7960 = vmatpush1.bf16.msra.mxu0 %v11184_v56  ;;  %8042 = vmatpush1.bf16.msra.mxu1 %v11187_v60  ;;  %v11267_v56 = vld [vmem:[#allocation22 + $0x184] ss:$60 sps:$4 sm:$0xff]   ;;  %v11262_v60 = vld [vmem:[#allocation22 + $0x178] ss:$60 sps:$4 sm:$0xff]  }
 0x783   :  { %7961 = vmatprep.subr.bf16.mxu0 %v11192_v61  ;;  %8043 = vmatprep.subr.bf16.mxu1 %v11195_v51  ;;  %v11265_v61 = vld [vmem:[#allocation22 + $0x180] ss:$60 sps:$4 sm:$0xff]   ;;  %v11270_v51 = vld [vmem:[#allocation22 + $0x1f4] ss:$60 sps:$4 sm:$0xff]  }
 0x786   :  { %7962 = vmatpush1.bf16.msra.mxu0 %v11190_v62  ;;  %8044 = vmatpush1.bf16.msra.mxu1 %v11193_v63  ;;  %v11273_v62 = vld [vmem:[#allocation22 + $0x1fc] ss:$60 sps:$4 sm:$0xff]   ;;  %v11268_v63 = vld [vmem:[#allocation22 + $0x1f0] ss:$60 sps:$4 sm:$0xff]  }
 0x787   :  { %7963 = vmatprep.subr.bf16.mxu0 %v11198_v1  ;;  %8045 = vmatprep.subr.bf16.mxu1 %v11201_v2  ;;  %v11271_v1 = vld [vmem:[#allocation22 + $0x1f8] ss:$60 sps:$4 sm:$0xff]   ;;  %v11276_v2 = vld [vmem:[#allocation22 + $0x26c] ss:$60 sps:$4 sm:$0xff]  }
 0x78a   :  { %7964 = vmatpush1.bf16.msra.mxu0 %v11196_v3  ;;  %8046 = vmatpush1.bf16.msra.mxu1 %v11199_v5  ;;  %v11279_v3 = vld [vmem:[#allocation22 + $0x274] ss:$60 sps:$4 sm:$0xff]   ;;  %v11274_v5 = vld [vmem:[#allocation22 + $0x268] ss:$60 sps:$4 sm:$0xff]  }
 0x78b   :  { %7965 = vmatprep.subr.bf16.mxu0 %v11204_v6  ;;  %8047 = vmatprep.subr.bf16.mxu1 %v11207_v7  ;;  %v11277_v6 = vld [vmem:[#allocation22 + $0x270] ss:$60 sps:$4 sm:$0xff]   ;;  %v11282_v7 = vld [vmem:[#allocation22 + $0x2e4] ss:$60 sps:$4 sm:$0xff]  }
 0x78e   :  { %7966 = vmatpush1.bf16.msra.mxu0 %v11202_v10  ;;  %8048 = vmatpush1.bf16.msra.mxu1 %v11205_v11  ;;  %v11285_v10 = vld [vmem:[#allocation22 + $0x2ec] ss:$60 sps:$4 sm:$0xff]   ;;  %v11280_v11 = vld [vmem:[#allocation22 + $0x2e0] ss:$60 sps:$4 sm:$0xff]  }
 0x78f   :  { %7967 = vmatprep.subr.bf16.mxu0 %v11210_v50  ;;  %8049 = vmatprep.subr.bf16.mxu1 %v11213_v12  ;;  %v11283_v50 = vld [vmem:[#allocation22 + $0x2e8] ss:$60 sps:$4 sm:$0xff]   ;;  %v11288_v12 = vld [vmem:[#allocation22 + $0x35c] ss:$60 sps:$4 sm:$0xff]  }
 0x792   :  { %7968 = vmatpush1.bf16.msra.mxu0 %v11208_v13  ;;  %8050 = vmatpush1.bf16.msra.mxu1 %v11211_v16  ;;  %v11291_v13 = vld [vmem:[#allocation22 + $0x364] ss:$60 sps:$4 sm:$0xff]   ;;  %v11286_v16 = vld [vmem:[#allocation22 + $0x358] ss:$60 sps:$4 sm:$0xff]  }
 0x793   :  { %7969 = vmatprep.subr.bf16.mxu0 %v11216_v17  ;;  %8051 = vmatprep.subr.bf16.mxu1 %v11219_v58  ;;  %v11289_v17 = vld [vmem:[#allocation22 + $0x360] ss:$60 sps:$4 sm:$0xff]   ;;  %v11294_v58 = vld [vmem:[#allocation22 + $0x3d4] ss:$60 sps:$4 sm:$0xff]  }
 0x796   :  { %7970 = vmatpush1.bf16.msra.mxu0 %v11214_v18  ;;  %8052 = vmatpush1.bf16.msra.mxu1 %v11217_v19  ;;  %v11297_v18 = vld [vmem:[#allocation22 + $0x3dc] ss:$60 sps:$4 sm:$0xff]   ;;  %v11292_v19 = vld [vmem:[#allocation22 + $0x3d0] ss:$60 sps:$4 sm:$0xff]  }
 0x797   :  { %7971 = vmatprep.subr.bf16.mxu0 %v11222_v20  ;;  %8053 = vmatprep.subr.bf16.mxu1 %v11225_v21  ;;  %v11295_v20 = vld [vmem:[#allocation22 + $0x3d8] ss:$60 sps:$4 sm:$0xff]   ;;  %v11300_v21 = vld [vmem:[#allocation22 + $0x44c] ss:$60 sps:$4 sm:$0xff]  }
 0x79a   :  { %7972 = vmatpush1.bf16.msra.mxu0 %v11220_v22  ;;  %8054 = vmatpush1.bf16.msra.mxu1 %v11223_v23  ;;  %v11303_v22 = vld [vmem:[#allocation22 + $0x454] ss:$60 sps:$4 sm:$0xff]   ;;  %v11298_v23 = vld [vmem:[#allocation22 + $0x448] ss:$60 sps:$4 sm:$0xff]  }
 0x79b   :  { %7973 = vmatprep.subr.bf16.mxu0 %v11228_v24  ;;  %8055 = vmatprep.subr.bf16.mxu1 %v11231_v27  ;;  %v11301_v24 = vld [vmem:[#allocation22 + $0x450] ss:$60 sps:$4 sm:$0xff]   ;;  %v11306_v27 = vld [vmem:[#allocation22 + $0x4c4] ss:$60 sps:$4 sm:$0xff]  }
 0x79e   :  { %7974 = vmatpush1.bf16.msra.mxu0 %v11226_v46  ;;  %8056 = vmatpush1.bf16.msra.mxu1 %v11229_v30  ;;  %v11309_v46 = vld [vmem:[#allocation22 + $0x4cc] ss:$60 sps:$4 sm:$0xff]   ;;  %v11304_v30 = vld [vmem:[#allocation22 + $0x4c0] ss:$60 sps:$4 sm:$0xff]  }
 0x79f   :  { %7975 = vmatprep.subr.bf16.mxu0 %v11234_v31  ;;  %8057 = vmatprep.subr.bf16.mxu1 %v11237_v32  ;;  %v11312_v31 = vld [vmem:[#allocation22 + $0x53c] ss:$60 sps:$4 sm:$0xff]   ;;  %v11315_v32 = vld [vmem:[#allocation22 + $0x544] ss:$60 sps:$4 sm:$0xff]  }
 0x7a2   :  { %7976 = vmatpush1.bf16.msra.mxu0 %v11232_v35  ;;  %8058 = vmatpush1.bf16.msra.mxu1 %v11235_v36  ;;  %v11310_v35 = vld [vmem:[#allocation22 + $0x538] ss:$60 sps:$4 sm:$0xff]   ;;  %v11313_v36 = vld [vmem:[#allocation22 + $0x540] ss:$60 sps:$4 sm:$0xff]  }
 0x7a3   :  { %7977 = vmatprep.subr.bf16.mxu0 %v11240_v38  ;;  %8059 = vmatprep.subr.bf16.mxu1 %v11243_v15  ;;  %v11321_v38 = vld [vmem:[#allocation22 + $0x5bc] ss:$60 sps:$4 sm:$0xff]   ;;  %v11316_v15 = vld [vmem:[#allocation22 + $0x5b0] ss:$60 sps:$4 sm:$0xff]  }
 0x7a6   :  { %7978 = vmatpush1.bf16.msra.mxu0 %v11238_v48  ;;  %8060 = vmatpush1.bf16.msra.mxu1 %v11241_v41  ;;  %v11319_v48 = vld [vmem:[#allocation22 + $0x5b8] ss:$60 sps:$4 sm:$0xff]   ;;  %v11324_v41 = vld [vmem:[#allocation22 + $0x62c] ss:$60 sps:$4 sm:$0xff]  }
 0x7a7   :  { %8070 = vmatprep.subr.bf16.mxu0 %v11246_v59  ;;  %8152 = vmatprep.subr.bf16.mxu1 %v11249_v43  ;;  %v11322_v59 = vld [vmem:[#allocation22 + $0x628] ss:$60 sps:$4 sm:$0xff]   ;;  %v11325_v43 = vld [vmem:[#allocation22 + $0x630] ss:$60 sps:$4 sm:$0xff]  }
 0x7a9   :  { %7980 = vmatmul.mubr.bf16.vlgmr.msra.gmra.mrb[16].mxu0 %v12683_v45  ;;  %8062 = vmatmul.mubr.bf16.vlgmr.msra.gmra.mrb[20].mxu1 %v12683_v45 }
 0x7aa   :  { %8071 = vmatpush1.bf16.msra.mxu0 %v11244_v44  ;;  %8102 = vmatprep.mubr.bf16.mxu0 %v12668_v29  ;;  %v11330_v44 = vld [vmem:[#allocation22 + $0x6a4] ss:$60 sps:$4 sm:$0xff]  }
 0x7ab   :  { %8153 = vmatpush1.bf16.msra.mxu1 %v11247_v14  ;;  %8184 = vmatprep.mubr.bf16.mxu1 %v12668_v29  ;;  %v11333_v14 = vld [vmem:[#allocation22 + $0x6ac] ss:$60 sps:$4 sm:$0xff]  }
 0x7ac   :  { %8072 = vmatprep.subr.bf16.mxu0 %v11252_v47  ;;  %8154 = vmatprep.subr.bf16.mxu1 %v11255_v0  ;;  %v11328_v47 = vld [vmem:[#allocation22 + $0x6a0] ss:$60 sps:$4 sm:$0xff]   ;;  %v11331_v0 = vld [vmem:[#allocation22 + $0x6a8] ss:$60 sps:$4 sm:$0xff]  }
 0x7ae   :  { %8073 = vmatpush1.bf16.msra.mxu0 %v11250_v39  ;;  %v11336_v39 = vld [vmem:[#allocation22 + $0x71c] ss:$60 sps:$4 sm:$0xff]  }
 0x7af   :  { %8155 = vmatpush1.bf16.msra.mxu1 %v11253_v40  ;;  %8074 = vmatprep.subr.bf16.mxu0 %v11258_v28  ;;  %v11339_v40 = vld [vmem:[#allocation22 + $0x724] ss:$60 sps:$4 sm:$0xff]   ;;  %v11334_v28 = vld [vmem:[#allocation22 + $0x718] ss:$60 sps:$4 sm:$0xff]  }
 0x7b0   :  { %8156 = vmatprep.subr.bf16.mxu1 %v11261_v49  ;;  %v11337_v49 = vld [vmem:[#allocation22 + $0x720] ss:$60 sps:$4 sm:$0xff]  }
 0x7b2   :  { %8075 = vmatpush1.bf16.msra.mxu0 %v11256_v52  ;;  %v11342_v52 = vld [vmem:[#allocation22 + $0x794] ss:$60 sps:$4 sm:$0xff]  }
 0x7b3   :  { %8157 = vmatpush1.bf16.msra.mxu1 %v11259_v54  ;;  %8076 = vmatprep.subr.bf16.mxu0 %v11264_v55  ;;  %v11345_v54 = vld [vmem:[#allocation22 + $0x79c] ss:$60 sps:$4 sm:$0xff]   ;;  %v11340_v55 = vld [vmem:[#allocation22 + $0x790] ss:$60 sps:$4 sm:$0xff]  }
 0x7b4   :  { %8158 = vmatprep.subr.bf16.mxu1 %v11267_v56  ;;  %v11343_v56 = vld [vmem:[#allocation22 + $0x798] ss:$60 sps:$4 sm:$0xff]  }
 0x7b6   :  { %8077 = vmatpush1.bf16.msra.mxu0 %v11262_v60  ;;  %v11348_v60 = vld [vmem:[#allocation22 + $0x80c] ss:$60 sps:$4 sm:$0xff]  }
 0x7b7   :  { %8159 = vmatpush1.bf16.msra.mxu1 %v11265_v61  ;;  %8078 = vmatprep.subr.bf16.mxu0 %v11270_v51  ;;  %v11351_v61 = vld [vmem:[#allocation22 + $0x814] ss:$60 sps:$4 sm:$0xff]   ;;  %v11346_v51 = vld [vmem:[#allocation22 + $0x808] ss:$60 sps:$4 sm:$0xff]  }
 0x7b8   :  { %8160 = vmatprep.subr.bf16.mxu1 %v11273_v62  ;;  %v11349_v62 = vld [vmem:[#allocation22 + $0x810] ss:$60 sps:$4 sm:$0xff]  }
 0x7ba   :  { %8079 = vmatpush1.bf16.msra.mxu0 %v11268_v63  ;;  %v11354_v63 = vld [vmem:[#allocation22 + $0x884] ss:$60 sps:$4 sm:$0xff]  }
 0x7bb   :  { %8161 = vmatpush1.bf16.msra.mxu1 %v11271_v1  ;;  %8080 = vmatprep.subr.bf16.mxu0 %v11276_v2  ;;  %v11357_v1 = vld [vmem:[#allocation22 + $0x88c] ss:$60 sps:$4 sm:$0xff]   ;;  %v11352_v2 = vld [vmem:[#allocation22 + $0x880] ss:$60 sps:$4 sm:$0xff]  }
 0x7bc   :  { %8162 = vmatprep.subr.bf16.mxu1 %v11279_v3  ;;  %v11355_v3 = vld [vmem:[#allocation22 + $0x888] ss:$60 sps:$4 sm:$0xff]  }
 0x7be   :  { %8081 = vmatpush1.bf16.msra.mxu0 %v11274_v5  ;;  %v11360_v5 = vld [vmem:[#allocation22 + $0x8fc] ss:$60 sps:$4 sm:$0xff]  }
 0x7bf   :  { %8163 = vmatpush1.bf16.msra.mxu1 %v11277_v6  ;;  %8082 = vmatprep.subr.bf16.mxu0 %v11282_v7  ;;  %v11363_v6 = vld [vmem:[#allocation22 + $0x904] ss:$60 sps:$4 sm:$0xff]   ;;  %v11358_v7 = vld [vmem:[#allocation22 + $0x8f8] ss:$60 sps:$4 sm:$0xff]  }
 0x7c0   :  { %8164 = vmatprep.subr.bf16.mxu1 %v11285_v10  ;;  %v11361_v10 = vld [vmem:[#allocation22 + $0x900] ss:$60 sps:$4 sm:$0xff]  }
 0x7c2   :  { %8083 = vmatpush1.bf16.msra.mxu0 %v11280_v11  ;;  %v11366_v11 = vld [vmem:[#allocation22 + $0x974] ss:$60 sps:$4 sm:$0xff]  }
 0x7c3   :  { %8165 = vmatpush1.bf16.msra.mxu1 %v11283_v50  ;;  %8084 = vmatprep.subr.bf16.mxu0 %v11288_v12  ;;  %v11369_v50 = vld [vmem:[#allocation22 + $0x97c] ss:$60 sps:$4 sm:$0xff]   ;;  %v11364_v12 = vld [vmem:[#allocation22 + $0x970] ss:$60 sps:$4 sm:$0xff]  }
 0x7c4   :  { %8166 = vmatprep.subr.bf16.mxu1 %v11291_v13  ;;  %v11367_v13 = vld [vmem:[#allocation22 + $0x978] ss:$60 sps:$4 sm:$0xff]  }
 0x7c6   :  { %8085 = vmatpush1.bf16.msra.mxu0 %v11286_v16  ;;  %v11372_v16 = vld [vmem:[#allocation22 + $0x9ec] ss:$60 sps:$4 sm:$0xff]  }
 0x7c7   :  { %8167 = vmatpush1.bf16.msra.mxu1 %v11289_v17  ;;  %8086 = vmatprep.subr.bf16.mxu0 %v11294_v58  ;;  %v11375_v17 = vld [vmem:[#allocation22 + $0x9f4] ss:$60 sps:$4 sm:$0xff]   ;;  %v11370_v58 = vld [vmem:[#allocation22 + $0x9e8] ss:$60 sps:$4 sm:$0xff]  }
 0x7c8   :  { %8168 = vmatprep.subr.bf16.mxu1 %v11297_v18  ;;  %v11373_v18 = vld [vmem:[#allocation22 + $0x9f0] ss:$60 sps:$4 sm:$0xff]  }
 0x7ca   :  { %8087 = vmatpush1.bf16.msra.mxu0 %v11292_v19  ;;  %v11378_v19 = vld [vmem:[#allocation22 + $0xa64] ss:$60 sps:$4 sm:$0xff]  }
 0x7cb   :  { %8169 = vmatpush1.bf16.msra.mxu1 %v11295_v20  ;;  %8088 = vmatprep.subr.bf16.mxu0 %v11300_v21  ;;  %v11381_v20 = vld [vmem:[#allocation22 + $0xa6c] ss:$60 sps:$4 sm:$0xff]   ;;  %v11376_v21 = vld [vmem:[#allocation22 + $0xa60] ss:$60 sps:$4 sm:$0xff]  }
 0x7cc   :  { %8170 = vmatprep.subr.bf16.mxu1 %v11303_v22  ;;  %v11379_v22 = vld [vmem:[#allocation22 + $0xa68] ss:$60 sps:$4 sm:$0xff]  }
 0x7ce   :  { %8089 = vmatpush1.bf16.msra.mxu0 %v11298_v23  ;;  %v11384_v23 = vld [vmem:[#allocation22 + $0xadc] ss:$60 sps:$4 sm:$0xff]  }
 0x7cf   :  { %8171 = vmatpush1.bf16.msra.mxu1 %v11301_v24  ;;  %8090 = vmatprep.subr.bf16.mxu0 %v11306_v27  ;;  %v11387_v24 = vld [vmem:[#allocation22 + $0xae4] ss:$60 sps:$4 sm:$0xff]   ;;  %v11382_v27 = vld [vmem:[#allocation22 + $0xad8] ss:$60 sps:$4 sm:$0xff]  }
 0x7d0   :  { %8172 = vmatprep.subr.bf16.mxu1 %v11309_v46  ;;  %v11385_v46 = vld [vmem:[#allocation22 + $0xae0] ss:$60 sps:$4 sm:$0xff]  }
 0x7d2   :  { %8091 = vmatpush1.bf16.msra.mxu0 %v11304_v30  ;;  %v11390_v30 = vld [vmem:[#allocation22 + $0xb54] ss:$60 sps:$4 sm:$0xff]  }
 0x7d3   :  { %8173 = vmatpush1.bf16.msra.mxu1 %v11307_v4  ;;  %8092 = vmatprep.subr.bf16.mxu0 %v11312_v31  ;;  %v11393_v4 = vld [vmem:[#allocation22 + $0xb5c] ss:$60 sps:$4 sm:$0xff]   ;;  %v11388_v31 = vld [vmem:[#allocation22 + $0xb50] ss:$60 sps:$4 sm:$0xff]  }
 0x7d4   :  { %8174 = vmatprep.subr.bf16.mxu1 %v11315_v32  ;;  %v11391_v32 = vld [vmem:[#allocation22 + $0xb58] ss:$60 sps:$4 sm:$0xff]  }
 0x7d6   :  { %8093 = vmatpush1.bf16.msra.mxu0 %v11310_v35  ;;  %v11396_v35 = vld [vmem:[#allocation22 + $0xbcc] ss:$60 sps:$4 sm:$0xff]  }
 0x7d7   :  { %8175 = vmatpush1.bf16.msra.mxu1 %v11313_v36  ;;  %8094 = vmatprep.subr.bf16.mxu0 %v11318_v37  ;;  %v11399_v36 = vld [vmem:[#allocation22 + $0xbd4] ss:$60 sps:$4 sm:$0xff]   ;;  %v11394_v37 = vld [vmem:[#allocation22 + $0xbc8] ss:$60 sps:$4 sm:$0xff]  }
 0x7d8   :  { %8176 = vmatprep.subr.bf16.mxu1 %v11321_v38  ;;  %v11397_v38 = vld [vmem:[#allocation22 + $0xbd0] ss:$60 sps:$4 sm:$0xff]  }
 0x7da   :  { %8095 = vmatpush1.bf16.msra.mxu0 %v11316_v15  ;;  %v11402_v15 = vld [vmem:[#allocation22 + $0xc44] ss:$60 sps:$4 sm:$0xff]  }
 0x7db   :  { %8177 = vmatpush1.bf16.msra.mxu1 %v11319_v48  ;;  %8096 = vmatprep.subr.bf16.mxu0 %v11324_v41  ;;  %v11405_v48 = vld [vmem:[#allocation22 + $0xc4c] ss:$60 sps:$4 sm:$0xff]   ;;  %v11400_v41 = vld [vmem:[#allocation22 + $0xc40] ss:$60 sps:$4 sm:$0xff]  }
 0x7dc   :  { %8178 = vmatprep.subr.bf16.mxu1 %v11327_v42  ;;  %v11403_v42 = vld [vmem:[#allocation22 + $0xc48] ss:$60 sps:$4 sm:$0xff]  }
 0x7de   :  { %8097 = vmatpush1.bf16.msra.mxu0 %v11322_v59  ;;  %v11408_v59 = vld [vmem:[#allocation22 + $0xcbc] ss:$60 sps:$4 sm:$0xff]  }
 0x7df   :  { %8179 = vmatpush1.bf16.msra.mxu1 %v11325_v43  ;;  %8098 = vmatprep.subr.bf16.mxu0 %v11330_v44  ;;  %v11411_v43 = vld [vmem:[#allocation22 + $0xcc4] ss:$60 sps:$4 sm:$0xff]   ;;  %v11406_v44 = vld [vmem:[#allocation22 + $0xcb8] ss:$60 sps:$4 sm:$0xff]  }
 0x7e0   :  { %8180 = vmatprep.subr.bf16.mxu1 %v11333_v14  ;;  %v11409_v14 = vld [vmem:[#allocation22 + $0xcc0] ss:$60 sps:$4 sm:$0xff]  }
 0x7e2   :  { %8099 = vmatpush1.bf16.msra.mxu0 %v11328_v47  ;;  %v11414_v47 = vld [vmem:[#allocation22 + $0xd34] ss:$60 sps:$4 sm:$0xff]  }
 0x7e3   :  { %8181 = vmatpush1.bf16.msra.mxu1 %v11331_v0  ;;  %8100 = vmatprep.subr.bf16.mxu0 %v11336_v39  ;;  %v11417_v0 = vld [vmem:[#allocation22 + $0xd3c] ss:$60 sps:$4 sm:$0xff]   ;;  %v11412_v39 = vld [vmem:[#allocation22 + $0xd30] ss:$60 sps:$4 sm:$0xff]  }
 0x7e4   :  { %8182 = vmatprep.subr.bf16.mxu1 %v11339_v40  ;;  %v11415_v40 = vld [vmem:[#allocation22 + $0xd38] ss:$60 sps:$4 sm:$0xff]  }
 0x7e6   :  { %8101 = vmatpush1.bf16.msra.mxu0 %v11334_v28  ;;  %v11420_v28 = vld [vmem:[#allocation22 + $0xdac] ss:$60 sps:$4 sm:$0xff]  }
 0x7e7   :  { %8183 = vmatpush1.bf16.msra.mxu1 %v11337_v49  ;;  %8111 = vmatprep.subr.bf16.mxu0 %v11342_v52  ;;  %v11423_v49 = vld [vmem:[#allocation22 + $0xdb4] ss:$60 sps:$4 sm:$0xff]   ;;  %v11418_v52 = vld [vmem:[#allocation22 + $0xda8] ss:$60 sps:$4 sm:$0xff]  }
 0x7e8   :  { %8193 = vmatprep.subr.bf16.mxu1 %v11345_v54  ;;  %v11421_v54 = vld [vmem:[#allocation22 + $0xdb0] ss:$60 sps:$4 sm:$0xff]  }
 0x7e9   :  { %8103 = vmatmul.mubr.bf16.vlgmr.msra.gmra.mrb[20].mxu0 %v12670_v57 }
 0x7ea   :  { %8185 = vmatmul.mubr.bf16.vlgmr.msra.gmra.mrb[24].mxu1 %v12670_v57  ;;  %8112 = vmatpush1.bf16.msra.mxu0 %v11340_v55  ;;  %v11426_v55 = vld [vmem:[#allocation22 + $0xe24] ss:$60 sps:$4 sm:$0xff]  }
 0x7eb   :  { %8143 = vmatprep.mubr.bf16.mxu0 %v12674_v33  ;;  %8194 = vmatpush1.bf16.msra.mxu1 %v11343_v56  ;;  %v11429_v56 = vld [vmem:[#allocation22 + $0xe2c] ss:$60 sps:$4 sm:$0xff]  }
 0x7ec   :  { %8225 = vmatprep.mubr.bf16.mxu1 %v12674_v33  ;;  %8113 = vmatprep.subr.bf16.mxu0 %v11348_v60  ;;  %v11424_v60 = vld [vmem:[#allocation22 + $0xe20] ss:$60 sps:$4 sm:$0xff]  }
 0x7ed   :  { %8195 = vmatprep.subr.bf16.mxu1 %v11351_v61  ;;  %v11427_v61 = vld [vmem:[#allocation22 + $0xe28] ss:$60 sps:$4 sm:$0xff]  }
 0x7ee   :  { %8114 = vmatpush1.bf16.msra.mxu0 %v11346_v51  ;;  %v11432_v51 = vld [vmem:[#allocation22 + $0xe9c] ss:$60 sps:$4 sm:$0xff]  }
 0x7ef   :  { %8196 = vmatpush1.bf16.msra.mxu1 %v11349_v62  ;;  %8115 = vmatprep.subr.bf16.mxu0 %v11354_v63  ;;  %v11435_v62 = vld [vmem:[#allocation22 + $0xea4] ss:$60 sps:$4 sm:$0xff]   ;;  %v11430_v63 = vld [vmem:[#allocation22 + $0xe98] ss:$60 sps:$4 sm:$0xff]  }
 0x7f0   :  { %8197 = vmatprep.subr.bf16.mxu1 %v11357_v1  ;;  %v11433_v1 = vld [vmem:[#allocation22 + $0xea0] ss:$60 sps:$4 sm:$0xff]  }
 0x7f2   :  { %8116 = vmatpush1.bf16.msra.mxu0 %v11352_v2  ;;  %v11438_v2 = vld [vmem:[#allocation22 + $0x24] ss:$60 sps:$4 sm:$0xff]  }
 0x7f3   :  { %8198 = vmatpush1.bf16.msra.mxu1 %v11355_v3  ;;  %8117 = vmatprep.subr.bf16.mxu0 %v11360_v5  ;;  %v11441_v3 = vld [vmem:[#allocation22 + $0x2c] ss:$60 sps:$4 sm:$0xff]   ;;  %v11436_v5 = vld [vmem:[#allocation22 + $0x20] ss:$60 sps:$4 sm:$0xff]  }
 0x7f4   :  { %8199 = vmatprep.subr.bf16.mxu1 %v11363_v6  ;;  %v11439_v6 = vld [vmem:[#allocation22 + $0x28] ss:$60 sps:$4 sm:$0xff]  }
 0x7f6   :  { %8118 = vmatpush1.bf16.msra.mxu0 %v11358_v7  ;;  %v11444_v7 = vld [vmem:[#allocation22 + $0x9c] ss:$60 sps:$4 sm:$0xff]  }
 0x7f7   :  { %8200 = vmatpush1.bf16.msra.mxu1 %v11361_v10  ;;  %8119 = vmatprep.subr.bf16.mxu0 %v11366_v11  ;;  %v11447_v10 = vld [vmem:[#allocation22 + $0xa4] ss:$60 sps:$4 sm:$0xff]   ;;  %v11442_v11 = vld [vmem:[#allocation22 + $0x98] ss:$60 sps:$4 sm:$0xff]  }
 0x7f8   :  { %8201 = vmatprep.subr.bf16.mxu1 %v11369_v50  ;;  %v11445_v50 = vld [vmem:[#allocation22 + $0xa0] ss:$60 sps:$4 sm:$0xff]  }
 0x7fa   :  { %8120 = vmatpush1.bf16.msra.mxu0 %v11364_v12  ;;  %v11450_v12 = vld [vmem:[#allocation22 + $0x114] ss:$60 sps:$4 sm:$0xff]  }
 0x7fb   :  { %8202 = vmatpush1.bf16.msra.mxu1 %v11367_v13  ;;  %8121 = vmatprep.subr.bf16.mxu0 %v11372_v16  ;;  %v11453_v13 = vld [vmem:[#allocation22 + $0x11c] ss:$60 sps:$4 sm:$0xff]   ;;  %v11448_v16 = vld [vmem:[#allocation22 + $0x110] ss:$60 sps:$4 sm:$0xff]  }
 0x7fc   :  { %8203 = vmatprep.subr.bf16.mxu1 %v11375_v17  ;;  %v11451_v17 = vld [vmem:[#allocation22 + $0x118] ss:$60 sps:$4 sm:$0xff]  }
 0x7fe   :  { %8122 = vmatpush1.bf16.msra.mxu0 %v11370_v58  ;;  %v11456_v58 = vld [vmem:[#allocation22 + $0x18c] ss:$60 sps:$4 sm:$0xff]  }
 0x7ff   :  { %8204 = vmatpush1.bf16.msra.mxu1 %v11373_v18  ;;  %8123 = vmatprep.subr.bf16.mxu0 %v11378_v19  ;;  %v11459_v18 = vld [vmem:[#allocation22 + $0x194] ss:$60 sps:$4 sm:$0xff]   ;;  %v11454_v19 = vld [vmem:[#allocation22 + $0x188] ss:$60 sps:$4 sm:$0xff]  }
 0x800   :  { %8205 = vmatprep.subr.bf16.mxu1 %v11381_v20  ;;  %v11457_v20 = vld [vmem:[#allocation22 + $0x190] ss:$60 sps:$4 sm:$0xff]  }
 0x802   :  { %8124 = vmatpush1.bf16.msra.mxu0 %v11376_v21  ;;  %v11462_v21 = vld [vmem:[#allocation22 + $0x204] ss:$60 sps:$4 sm:$0xff]  }
 0x803   :  { %8206 = vmatpush1.bf16.msra.mxu1 %v11379_v22  ;;  %8125 = vmatprep.subr.bf16.mxu0 %v11384_v23  ;;  %v11465_v22 = vld [vmem:[#allocation22 + $0x20c] ss:$60 sps:$4 sm:$0xff]   ;;  %v11460_v23 = vld [vmem:[#allocation22 + $0x200] ss:$60 sps:$4 sm:$0xff]  }
 0x804   :  { %8207 = vmatprep.subr.bf16.mxu1 %v11387_v24  ;;  %v11463_v24 = vld [vmem:[#allocation22 + $0x208] ss:$60 sps:$4 sm:$0xff]  }
 0x806   :  { %8126 = vmatpush1.bf16.msra.mxu0 %v11382_v27  ;;  %v11468_v27 = vld [vmem:[#allocation22 + $0x27c] ss:$60 sps:$4 sm:$0xff]  }
 0x807   :  { %8208 = vmatpush1.bf16.msra.mxu1 %v11385_v46  ;;  %8127 = vmatprep.subr.bf16.mxu0 %v11390_v30  ;;  %v11471_v46 = vld [vmem:[#allocation22 + $0x284] ss:$60 sps:$4 sm:$0xff]   ;;  %v11466_v30 = vld [vmem:[#allocation22 + $0x278] ss:$60 sps:$4 sm:$0xff]  }
 0x808   :  { %8209 = vmatprep.subr.bf16.mxu1 %v11393_v4  ;;  %v11469_v4 = vld [vmem:[#allocation22 + $0x280] ss:$60 sps:$4 sm:$0xff]  }
 0x80a   :  { %8128 = vmatpush1.bf16.msra.mxu0 %v11388_v31  ;;  %v11474_v31 = vld [vmem:[#allocation22 + $0x2f4] ss:$60 sps:$4 sm:$0xff]  }
 0x80b   :  { %8210 = vmatpush1.bf16.msra.mxu1 %v11391_v32  ;;  %8129 = vmatprep.subr.bf16.mxu0 %v11396_v35  ;;  %v11477_v32 = vld [vmem:[#allocation22 + $0x2fc] ss:$60 sps:$4 sm:$0xff]   ;;  %v11472_v35 = vld [vmem:[#allocation22 + $0x2f0] ss:$60 sps:$4 sm:$0xff]  }
 0x80c   :  { %8211 = vmatprep.subr.bf16.mxu1 %v11399_v36  ;;  %v11475_v36 = vld [vmem:[#allocation22 + $0x2f8] ss:$60 sps:$4 sm:$0xff]  }
 0x80e   :  { %8130 = vmatpush1.bf16.msra.mxu0 %v11394_v37  ;;  %v11480_v37 = vld [vmem:[#allocation22 + $0x36c] ss:$60 sps:$4 sm:$0xff]  }
 0x80f   :  { %8212 = vmatpush1.bf16.msra.mxu1 %v11397_v38  ;;  %8131 = vmatprep.subr.bf16.mxu0 %v11402_v15  ;;  %v11483_v38 = vld [vmem:[#allocation22 + $0x374] ss:$60 sps:$4 sm:$0xff]   ;;  %v11478_v15 = vld [vmem:[#allocation22 + $0x368] ss:$60 sps:$4 sm:$0xff]  }
 0x810   :  { %8213 = vmatprep.subr.bf16.mxu1 %v11405_v48  ;;  %v11481_v48 = vld [vmem:[#allocation22 + $0x370] ss:$60 sps:$4 sm:$0xff]  }
 0x812   :  { %8132 = vmatpush1.bf16.msra.mxu0 %v11400_v41  ;;  %v11486_v41 = vld [vmem:[#allocation22 + $0x3e4] ss:$60 sps:$4 sm:$0xff]  }
 0x813   :  { %8214 = vmatpush1.bf16.msra.mxu1 %v11403_v42  ;;  %8133 = vmatprep.subr.bf16.mxu0 %v11408_v59  ;;  %v11489_v42 = vld [vmem:[#allocation22 + $0x3ec] ss:$60 sps:$4 sm:$0xff]   ;;  %v11484_v59 = vld [vmem:[#allocation22 + $0x3e0] ss:$60 sps:$4 sm:$0xff]  }
 0x814   :  { %8215 = vmatprep.subr.bf16.mxu1 %v11411_v43  ;;  %v11487_v43 = vld [vmem:[#allocation22 + $0x3e8] ss:$60 sps:$4 sm:$0xff]  }
 0x816   :  { %8134 = vmatpush1.bf16.msra.mxu0 %v11406_v44  ;;  %v11492_v44 = vld [vmem:[#allocation22 + $0x45c] ss:$60 sps:$4 sm:$0xff]  }
 0x817   :  { %8216 = vmatpush1.bf16.msra.mxu1 %v11409_v14  ;;  %8135 = vmatprep.subr.bf16.mxu0 %v11414_v47  ;;  %v11495_v14 = vld [vmem:[#allocation22 + $0x464] ss:$60 sps:$4 sm:$0xff]   ;;  %v11490_v47 = vld [vmem:[#allocation22 + $0x458] ss:$60 sps:$4 sm:$0xff]  }
 0x818   :  { %8217 = vmatprep.subr.bf16.mxu1 %v11417_v0  ;;  %v11493_v0 = vld [vmem:[#allocation22 + $0x460] ss:$60 sps:$4 sm:$0xff]  }
 0x81a   :  { %8136 = vmatpush1.bf16.msra.mxu0 %v11412_v39  ;;  %v11498_v39 = vld [vmem:[#allocation22 + $0x4d4] ss:$60 sps:$4 sm:$0xff]  }
 0x81b   :  { %8218 = vmatpush1.bf16.msra.mxu1 %v11415_v40  ;;  %8137 = vmatprep.subr.bf16.mxu0 %v11420_v28  ;;  %v11501_v40 = vld [vmem:[#allocation22 + $0x4dc] ss:$60 sps:$4 sm:$0xff]   ;;  %v11496_v28 = vld [vmem:[#allocation22 + $0x4d0] ss:$60 sps:$4 sm:$0xff]  }
 0x81c   :  { %8219 = vmatprep.subr.bf16.mxu1 %v11423_v49  ;;  %v11499_v49 = vld [vmem:[#allocation22 + $0x4d8] ss:$60 sps:$4 sm:$0xff]  }
 0x81e   :  { %8138 = vmatpush1.bf16.msra.mxu0 %v11418_v52  ;;  %v11504_v52 = vld [vmem:[#allocation22 + $0x54c] ss:$60 sps:$4 sm:$0xff]  }
 0x81f   :  { %8220 = vmatpush1.bf16.msra.mxu1 %v11421_v54  ;;  %8139 = vmatprep.subr.bf16.mxu0 %v11426_v55  ;;  %v11507_v54 = vld [vmem:[#allocation22 + $0x554] ss:$60 sps:$4 sm:$0xff]   ;;  %v11502_v55 = vld [vmem:[#allocation22 + $0x548] ss:$60 sps:$4 sm:$0xff]  }
 0x820   :  { %8221 = vmatprep.subr.bf16.mxu1 %v11429_v56  ;;  %v11505_v56 = vld [vmem:[#allocation22 + $0x550] ss:$60 sps:$4 sm:$0xff]  }
 0x822   :  { %8140 = vmatpush1.bf16.msra.mxu0 %v11424_v60  ;;  %v11510_v60 = vld [vmem:[#allocation22 + $0x5c4] ss:$60 sps:$4 sm:$0xff]  }
 0x823   :  { %8222 = vmatpush1.bf16.msra.mxu1 %v11427_v61  ;;  %8141 = vmatprep.subr.bf16.mxu0 %v11432_v51  ;;  %v11513_v61 = vld [vmem:[#allocation22 + $0x5cc] ss:$60 sps:$4 sm:$0xff]   ;;  %v11508_v51 = vld [vmem:[#allocation22 + $0x5c0] ss:$60 sps:$4 sm:$0xff]  }
 0x824   :  { %8223 = vmatprep.subr.bf16.mxu1 %v11435_v62  ;;  %v11511_v62 = vld [vmem:[#allocation22 + $0x5c8] ss:$60 sps:$4 sm:$0xff]  }
 0x826   :  { %8142 = vmatpush1.bf16.msra.mxu0 %v11430_v63  ;;  %v11516_v63 = vld [vmem:[#allocation22 + $0x63c] ss:$60 sps:$4 sm:$0xff]  }
 0x827   :  { %8224 = vmatpush1.bf16.msra.mxu1 %v11433_v1  ;;  %8234 = vmatprep.subr.bf16.mxu0 %v11438_v2  ;;  %v11519_v1 = vld [vmem:[#allocation22 + $0x644] ss:$60 sps:$4 sm:$0xff]   ;;  %v11514_v2 = vld [vmem:[#allocation22 + $0x638] ss:$60 sps:$4 sm:$0xff]  }
 0x828   :  { %8316 = vmatprep.subr.bf16.mxu1 %v11441_v3  ;;  %v11517_v3 = vld [vmem:[#allocation22 + $0x640] ss:$60 sps:$4 sm:$0xff]  }
 0x829   :  { %8144 = vmatmul.mubr.bf16.vlgmr.msra.gmra.mrb[20].mxu0 %v12683_v45 }
 0x82a   :  { %8226 = vmatmul.mubr.bf16.vlgmr.msra.gmra.mrb[24].mxu1 %v12683_v45  ;;  %8235 = vmatpush1.bf16.msra.mxu0 %v11436_v5  ;;  %v11522_v5 = vld [vmem:[#allocation22 + $0x6b4] ss:$60 sps:$4 sm:$0xff]  }
 0x82b   :  { %8266 = vmatprep.mubr.bf16.mxu0 %v12668_v29  ;;  %8317 = vmatpush1.bf16.msra.mxu1 %v11439_v6  ;;  %v11525_v6 = vld [vmem:[#allocation22 + $0x6bc] ss:$60 sps:$4 sm:$0xff]  }
 0x82c   :  { %8348 = vmatprep.mubr.bf16.mxu1 %v12668_v29  ;;  %8236 = vmatprep.subr.bf16.mxu0 %v11444_v7  ;;  %v11520_v7 = vld [vmem:[#allocation22 + $0x6b0] ss:$60 sps:$4 sm:$0xff]  }
 0x82d   :  { %8318 = vmatprep.subr.bf16.mxu1 %v11447_v10  ;;  %v11523_v10 = vld [vmem:[#allocation22 + $0x6b8] ss:$60 sps:$4 sm:$0xff]  }
 0x82e   :  { %8237 = vmatpush1.bf16.msra.mxu0 %v11442_v11  ;;  %v11528_v11 = vld [vmem:[#allocation22 + $0x72c] ss:$60 sps:$4 sm:$0xff]  }
 0x82f   :  { %8319 = vmatpush1.bf16.msra.mxu1 %v11445_v50  ;;  %8238 = vmatprep.subr.bf16.mxu0 %v11450_v12  ;;  %v11531_v50 = vld [vmem:[#allocation22 + $0x734] ss:$60 sps:$4 sm:$0xff]   ;;  %v11526_v12 = vld [vmem:[#allocation22 + $0x728] ss:$60 sps:$4 sm:$0xff]  }
 0x830   :  { %8320 = vmatprep.subr.bf16.mxu1 %v11453_v13  ;;  %v11529_v13 = vld [vmem:[#allocation22 + $0x730] ss:$60 sps:$4 sm:$0xff]  }
 0x832   :  { %8239 = vmatpush1.bf16.msra.mxu0 %v11448_v16  ;;  %v11534_v16 = vld [vmem:[#allocation22 + $0x7a4] ss:$60 sps:$4 sm:$0xff]  }
 0x833   :  { %8321 = vmatpush1.bf16.msra.mxu1 %v11451_v17  ;;  %8240 = vmatprep.subr.bf16.mxu0 %v11456_v58  ;;  %v11537_v17 = vld [vmem:[#allocation22 + $0x7ac] ss:$60 sps:$4 sm:$0xff]   ;;  %v11532_v58 = vld [vmem:[#allocation22 + $0x7a0] ss:$60 sps:$4 sm:$0xff]  }
 0x834   :  { %8322 = vmatprep.subr.bf16.mxu1 %v11459_v18  ;;  %v11535_v18 = vld [vmem:[#allocation22 + $0x7a8] ss:$60 sps:$4 sm:$0xff]  }
 0x836   :  { %8241 = vmatpush1.bf16.msra.mxu0 %v11454_v19  ;;  %v11540_v19 = vld [vmem:[#allocation22 + $0x81c] ss:$60 sps:$4 sm:$0xff]  }
 0x837   :  { %8323 = vmatpush1.bf16.msra.mxu1 %v11457_v20  ;;  %8242 = vmatprep.subr.bf16.mxu0 %v11462_v21  ;;  %v11543_v20 = vld [vmem:[#allocation22 + $0x824] ss:$60 sps:$4 sm:$0xff]   ;;  %v11538_v21 = vld [vmem:[#allocation22 + $0x818] ss:$60 sps:$4 sm:$0xff]  }
 0x838   :  { %8324 = vmatprep.subr.bf16.mxu1 %v11465_v22  ;;  %v11541_v22 = vld [vmem:[#allocation22 + $0x820] ss:$60 sps:$4 sm:$0xff]  }
 0x83a   :  { %8243 = vmatpush1.bf16.msra.mxu0 %v11460_v23  ;;  %v11546_v23 = vld [vmem:[#allocation22 + $0x894] ss:$60 sps:$4 sm:$0xff]  }
 0x83b   :  { %8325 = vmatpush1.bf16.msra.mxu1 %v11463_v24  ;;  %8244 = vmatprep.subr.bf16.mxu0 %v11468_v27  ;;  %v11549_v24 = vld [vmem:[#allocation22 + $0x89c] ss:$60 sps:$4 sm:$0xff]   ;;  %v11544_v27 = vld [vmem:[#allocation22 + $0x890] ss:$60 sps:$4 sm:$0xff]  }
 0x83c   :  { %8326 = vmatprep.subr.bf16.mxu1 %v11471_v46  ;;  %v11547_v46 = vld [vmem:[#allocation22 + $0x898] ss:$60 sps:$4 sm:$0xff]  }
 0x83e   :  { %8245 = vmatpush1.bf16.msra.mxu0 %v11466_v30  ;;  %v11552_v30 = vld [vmem:[#allocation22 + $0x90c] ss:$60 sps:$4 sm:$0xff]  }
 0x83f   :  { %8327 = vmatpush1.bf16.msra.mxu1 %v11469_v4  ;;  %8246 = vmatprep.subr.bf16.mxu0 %v11474_v31  ;;  %v11555_v4 = vld [vmem:[#allocation22 + $0x914] ss:$60 sps:$4 sm:$0xff]   ;;  %v11550_v31 = vld [vmem:[#allocation22 + $0x908] ss:$60 sps:$4 sm:$0xff]  }
 0x840   :  { %8328 = vmatprep.subr.bf16.mxu1 %v11477_v32  ;;  %v11553_v32 = vld [vmem:[#allocation22 + $0x910] ss:$60 sps:$4 sm:$0xff]  }
 0x842   :  { %8247 = vmatpush1.bf16.msra.mxu0 %v11472_v35  ;;  %v11558_v35 = vld [vmem:[#allocation22 + $0x984] ss:$60 sps:$4 sm:$0xff]  }
 0x843   :  { %8329 = vmatpush1.bf16.msra.mxu1 %v11475_v36  ;;  %8248 = vmatprep.subr.bf16.mxu0 %v11480_v37  ;;  %v11561_v36 = vld [vmem:[#allocation22 + $0x98c] ss:$60 sps:$4 sm:$0xff]   ;;  %v11556_v37 = vld [vmem:[#allocation22 + $0x980] ss:$60 sps:$4 sm:$0xff]  }
 0x844   :  { %8330 = vmatprep.subr.bf16.mxu1 %v11483_v38  ;;  %v12701_v38 = vld [vmem:[#allocation23] sm:$0xff] }
 0x846   :  { %8249 = vmatpush1.bf16.msra.mxu0 %v11478_v15  ;;  %v11559_v15 = vld [vmem:[#allocation22 + $0x988] ss:$60 sps:$4 sm:$0xff]  }
 0x847   :  { %8331 = vmatpush1.bf16.msra.mxu1 %v11481_v48  ;;  %8250 = vmatprep.subr.bf16.mxu0 %v11486_v41  ;;  %v11564_v48 = vld [vmem:[#allocation22 + $0x9fc] ss:$60 sps:$4 sm:$0xff]   ;;  %v11567_v41 = vld [vmem:[#allocation22 + $0xa04] ss:$60 sps:$4 sm:$0xff]  }
 0x848   :  { %8332 = vmatprep.subr.bf16.mxu1 %v11489_v42  ;;  %v5402_v42 = vrot.slane %v12701_v38, %v12636_v25 }
 0x84a   :  { %8251 = vmatpush1.bf16.msra.mxu0 %v11484_v59  ;;  %v5410_v59 = vrot.slane %v12701_v38, %v12647_v8 }
 0x84b   :  { %8333 = vmatpush1.bf16.msra.mxu1 %v11487_v43  ;;  %8252 = vmatprep.subr.bf16.mxu0 %v11492_v44  ;;  %v5406_v43 = vrot.slane %v12701_v38, %v12639_v53  ;;  %v5414_v44 = vrot.slane %v12701_v38, %v12650_v9 }
 0x84c   :  { %8334 = vmatprep.subr.bf16.mxu1 %v11495_v14  ;;  %v11562_v14 = vld [vmem:[#allocation22 + $0x9f8] ss:$60 sps:$4 sm:$0xff]  }
 0x84e   :  { %8253 = vmatpush1.bf16.msra.mxu0 %v11490_v47  ;;  %v11565_v47 = vld [vmem:[#allocation22 + $0xa00] ss:$60 sps:$4 sm:$0xff]  }
 0x84f   :  { %8335 = vmatpush1.bf16.msra.mxu1 %v11493_v0  ;;  %8254 = vmatprep.subr.bf16.mxu0 %v11498_v39  ;;  %v11570_v0 = vld [vmem:[#allocation22 + $0xa74] ss:$60 sps:$4 sm:$0xff]  }
 0x850   :  { %8336 = vmatprep.subr.bf16.mxu1 %v11501_v40 }
 0x852   :  { %8255 = vmatpush1.bf16.msra.mxu0 %v11496_v28  ;;  %v11573_v28 = vld [vmem:[#allocation22 + $0xa7c] ss:$60 sps:$4 sm:$0xff]  }
 0x853   :  { %8337 = vmatpush1.bf16.msra.mxu1 %v11499_v49  ;;  %8256 = vmatprep.subr.bf16.mxu0 %v11504_v52 }
 0x854   :  { %8338 = vmatprep.subr.bf16.mxu1 %v11507_v54 }
 0x856   :  { %8257 = vmatpush1.bf16.msra.mxu0 %v11502_v55 }
 0x857   :  { %8339 = vmatpush1.bf16.msra.mxu1 %v11505_v56  ;;  %8258 = vmatprep.subr.bf16.mxu0 %v11510_v60  ;;  %v11568_v56 = vld [vmem:[#allocation22 + $0xa70] ss:$60 sps:$4 sm:$0xff]  }
 0x858   :  { %8340 = vmatprep.subr.bf16.mxu1 %v11513_v61 }
 0x85a   :  { %8259 = vmatpush1.bf16.msra.mxu0 %v11508_v51 }
 0x85b   :  { %8341 = vmatpush1.bf16.msra.mxu1 %v11511_v62  ;;  %8260 = vmatprep.subr.bf16.mxu0 %v11516_v63  ;;  %v11571_v63 = vld [vmem:[#allocation22 + $0xa78] ss:$60 sps:$4 sm:$0xff]  }
 0x85c   :  { %8342 = vmatprep.subr.bf16.mxu1 %v11519_v1  ;;  %v11576_v1 = vld [vmem:[#allocation22 + $0xaec] ss:$60 sps:$4 sm:$0xff]  }
 0x85e   :  { %8261 = vmatpush1.bf16.msra.mxu0 %v11514_v2 }
 0x85f   :  { %8343 = vmatpush1.bf16.msra.mxu1 %v11517_v3  ;;  %8262 = vmatprep.subr.bf16.mxu0 %v11522_v5 }
 0x860   :  { %8344 = vmatprep.subr.bf16.mxu1 %v11525_v6 }
 0x862   :  { %8263 = vmatpush1.bf16.msra.mxu0 %v11520_v7 }
 0x863   :  { %8345 = vmatpush1.bf16.msra.mxu1 %v11523_v10  ;;  %8264 = vmatprep.subr.bf16.mxu0 %v11528_v11  ;;  %v11579_v11 = vld [vmem:[#allocation22 + $0xaf4] ss:$60 sps:$4 sm:$0xff]  }
 0x864   :  { %8346 = vmatprep.subr.bf16.mxu1 %v11531_v50  ;;  %v11574_v50 = vld [vmem:[#allocation22 + $0xae8] ss:$60 sps:$4 sm:$0xff]  }
 0x866   :  { %8265 = vmatpush1.bf16.msra.mxu0 %v11526_v12  ;;  %v11577_v12 = vld [vmem:[#allocation22 + $0xaf0] ss:$60 sps:$4 sm:$0xff]  }
 0x867   :  { %8347 = vmatpush1.bf16.msra.mxu1 %v11529_v13  ;;  %8275 = vmatprep.subr.bf16.mxu0 %v11534_v16  ;;  %v11582_v13 = vld [vmem:[#allocation22 + $0xb64] ss:$60 sps:$4 sm:$0xff]   ;;  %v11585_v16 = vld [vmem:[#allocation22 + $0xb6c] ss:$60 sps:$4 sm:$0xff]  }
 0x868   :  { %8357 = vmatprep.subr.bf16.mxu1 %v11537_v17  ;;  %v11580_v17 = vld [vmem:[#allocation22 + $0xb60] ss:$60 sps:$4 sm:$0xff]  }
 0x869   :  { %8267 = vmatmul.mubr.bf16.vlgmr.msra.gmra.mrb[24].mxu0 %v12670_v57 }
 0x86a   :  { %8349 = vmatmul.mubr.bf16.vlgmr.msra.gmra.mrb[28].mxu1 %v12670_v57  ;;  %8276 = vmatpush1.bf16.msra.mxu0 %v11532_v58  ;;  %v11583_v58 = vld [vmem:[#allocation22 + $0xb68] ss:$60 sps:$4 sm:$0xff]  }
 0x86b   :  { %8307 = vmatprep.mubr.bf16.mxu0 %v12674_v33  ;;  %8358 = vmatpush1.bf16.msra.mxu1 %v11535_v18  ;;  %v11588_v18 = vld [vmem:[#allocation22 + $0xbdc] ss:$60 sps:$4 sm:$0xff]  }
 0x86c   :  { %8389 = vmatprep.mubr.bf16.mxu1 %v12674_v33  ;;  %8277 = vmatprep.subr.bf16.mxu0 %v11540_v19  ;;  %v11591_v19 = vld [vmem:[#allocation22 + $0xbe4] ss:$60 sps:$4 sm:$0xff]  }
 0x86d   :  { %8359 = vmatprep.subr.bf16.mxu1 %v11543_v20  ;;  %v11586_v20 = vld [vmem:[#allocation22 + $0xbd8] ss:$60 sps:$4 sm:$0xff]  }
 0x86e   :  { %8278 = vmatpush1.bf16.msra.mxu0 %v11538_v21 }
 0x86f   :  { %8360 = vmatpush1.bf16.msra.mxu1 %v11541_v22  ;;  %8279 = vmatprep.subr.bf16.mxu0 %v11546_v23  ;;  %v11589_v22 = vld [vmem:[#allocation22 + $0xbe0] ss:$60 sps:$4 sm:$0xff]   ;;  %v11594_v23 = vld [vmem:[#allocation22 + $0xc54] ss:$60 sps:$4 sm:$0xff]  }
 0x870   :  { %8361 = vmatprep.subr.bf16.mxu1 %v11549_v24 }
 0x872   :  { %8280 = vmatpush1.bf16.msra.mxu0 %v11544_v27 }
 0x873   :  { %8362 = vmatpush1.bf16.msra.mxu1 %v11547_v46  ;;  %8281 = vmatprep.subr.bf16.mxu0 %v11552_v30  ;;  %v11597_v46 = vld [vmem:[#allocation22 + $0xc5c] ss:$60 sps:$4 sm:$0xff]  }
 0x874   :  { %8363 = vmatprep.subr.bf16.mxu1 %v11555_v4 }
 0x876   :  { %8282 = vmatpush1.bf16.msra.mxu0 %v11550_v31 }
 0x877   :  { %8364 = vmatpush1.bf16.msra.mxu1 %v11553_v32  ;;  %8283 = vmatprep.subr.bf16.mxu0 %v11558_v35  ;;  %v11592_v35 = vld [vmem:[#allocation22 + $0xc50] ss:$60 sps:$4 sm:$0xff]  }
 0x878   :  { %8365 = vmatprep.subr.bf16.mxu1 %v11561_v36 }
 0x87a   :  { %8284 = vmatpush1.bf16.msra.mxu0 %v11556_v37  ;;  %v11595_v37 = vld [vmem:[#allocation22 + $0xc58] ss:$60 sps:$4 sm:$0xff]  }
 0x87b   :  { %8366 = vmatpush1.bf16.msra.mxu1 %v11559_v15  ;;  %8285 = vmatprep.subr.bf16.mxu0 %v11564_v48  ;;  %v11600_v15 = vld [vmem:[#allocation22 + $0xccc] ss:$60 sps:$4 sm:$0xff]   ;;  %v11603_v48 = vld [vmem:[#allocation22 + $0xcd4] ss:$60 sps:$4 sm:$0xff]  }
 0x87c   :  { %v7981_v39 = vpop.f32.mrb[16].mxu0  ;;  %v8063_v40 = vpop.f32.mrb[20].mxu1  ;;  %8367 = vmatprep.subr.bf16.mxu1 %v11567_v41  ;;  %v11598_v41 = vld [vmem:[#allocation22 + $0xcc8] ss:$60 sps:$4 sm:$0xff]  }
 0x87d   :  { %v10081_v49 = vadd.f32 %v7981_v39, %v5402_v42  ;;  %v10083_v52 = vadd.f32 %v8063_v40, %v5410_v59  ;;  %v7983_v54 = vpop.f32.mrb[17].mxu0  ;;  %v8065_v55 = vpop.f32.mrb[21].mxu1  ;;  %v11601_v42 = vld [vmem:[#allocation22 + $0xcd0] ss:$60 sps:$4 sm:$0xff]   ;;  %v11606_v59 = vld [vmem:[#allocation22 + $0xd44] ss:$60 sps:$4 sm:$0xff]  }
 0x87e   :  { %v10082_v60 = vadd.f32 %v7983_v54, %v5406_v43  ;;  %v10084_v61 = vadd.f32 %v8065_v55, %v5414_v44  ;;  %v7985_v51 = vpop.f32.mrb[18].mxu0  ;;  %v8067_v62 = vpop.f32.mrb[22].mxu1  ;;  %8286 = vmatpush1.bf16.msra.mxu0 %v11562_v14  ;;  %v11609_v43 = vld [vmem:[#allocation22 + $0xd4c] ss:$60 sps:$4 sm:$0xff]   ;;  %v11604_v44 = vld [vmem:[#allocation22 + $0xd40] ss:$60 sps:$4 sm:$0xff]  }
 0x87f   :  { %v9936_v2 = vmul.f32 -1.442695, %v10081_v49  ;;  %v9938_v3 = vmul.f32 -1.442695, %v10083_v52  ;;  %8368 = vmatpush1.bf16.msra.mxu1 %v11565_v47  ;;  %v7986_v5 = vpop.f32.mrb[19].mxu0  ;;  %v8068_v6 = vpop.f32.mrb[23].mxu1  ;;  %8287 = vmatprep.subr.bf16.mxu0 %v11570_v0 }
 0x880   :  { %v9937_v7 = vmul.f32 -1.442695, %v10082_v60  ;;  %v9939_v10 = vmul.f32 -1.442695, %v10084_v61  ;;  %8369 = vmatprep.subr.bf16.mxu1 %v11573_v28  ;;  %v11607_v14 = vld [vmem:[#allocation22 + $0xd48] ss:$60 sps:$4 sm:$0xff]  }
 0x881   :  { %11758 = vpow2.f32 %v9936_v2  ;;  %v11612_v47 = vld [vmem:[#allocation22 + $0xdbc] ss:$60 sps:$4 sm:$0xff]   ;;  %v11615_v39 = vld [vmem:[#allocation22 + $0xdc4] ss:$60 sps:$4 sm:$0xff]   ;;  %v11624_v2 = vld [vmem:[#allocation22 + $0xeac] ss:$60 sps:$4 sm:$0xff]  }
 0x882   :  { %11760 = vpow2.f32 %v9938_v3  ;;  %8288 = vmatpush1.bf16.msra.mxu0 %v11568_v56  ;;  %v11610_v49 = vld [vmem:[#allocation22 + $0xdb8] ss:$60 sps:$4 sm:$0xff]   ;;  %v11613_v55 = vld [vmem:[#allocation22 + $0xdc0] ss:$60 sps:$4 sm:$0xff]  }
 0x883   :  { %11762 = vpow2.f32 %v9937_v7  ;;  %8370 = vmatpush1.bf16.msra.mxu1 %v11571_v63  ;;  %8289 = vmatprep.subr.bf16.mxu0 %v11576_v1  ;;  %v11618_v56 = vld [vmem:[#allocation22 + $0xe34] ss:$60 sps:$4 sm:$0xff]   ;;  %v11621_v61 = vld [vmem:[#allocation22 + $0xe3c] ss:$60 sps:$4 sm:$0xff]   ;;  %v11622_v7 = vld [vmem:[#allocation22 + $0xea8] ss:$60 sps:$4 sm:$0xff]  }
 0x884   :  { %11764 = vpow2.f32 %v9939_v10  ;;  %8371 = vmatprep.subr.bf16.mxu1 %v11579_v11  ;;  %v11616_v63 = vld [vmem:[#allocation22 + $0xe30] ss:$60 sps:$4 sm:$0xff]   ;;  %v11619_v1 = vld [vmem:[#allocation22 + $0xe38] ss:$60 sps:$4 sm:$0xff]  }
 0x885   :  { %v11627_v6 = vld [vmem:[#allocation22 + $0xeb4] ss:$60 sps:$4 sm:$0xff]  }
 0x886   :  { %8290 = vmatpush1.bf16.msra.mxu0 %v11574_v50  ;;  %v11625_v10 = vld [vmem:[#allocation22 + $0xeb0] ss:$60 sps:$4 sm:$0xff]   ;;  %v11631_v50 = vld [vmem:[#allocation22 + $0x3f8] ss:$60 sps:$4 sm:$0xff]  }
 0x887   :  { %8372 = vmatpush1.bf16.msra.mxu1 %v11577_v12  ;;  %8291 = vmatprep.subr.bf16.mxu0 %v11582_v13  ;;  %v11630_v11 = vld [vmem:[#allocation22 + $0x34] ss:$60 sps:$4 sm:$0xff]  }
 0x888   :  { %8373 = vmatprep.subr.bf16.mxu1 %v11585_v16  ;;  %v11628_v12 = vld [vmem:[#allocation22 + $0x30] ss:$60 sps:$4 sm:$0xff]   ;;  %v11632_v13 = vld [vmem:[#allocation22 + $0x38] ss:$60 sps:$4 sm:$0xff]  }
 0x889   :  { %v11635_v16 = vld [vmem:[#allocation22 + $0xac] ss:$60 sps:$4 sm:$0xff]  }
 0x88a   :  { %8292 = vmatpush1.bf16.msra.mxu0 %v11580_v17  ;;  %v11636_v17 = vld [vmem:[#allocation22 + $0x470] ss:$60 sps:$4 sm:$0xff]  }
 0x88b   :  { %v11759_v21 = vpop.eup %11758  ;;  %8374 = vmatpush1.bf16.msra.mxu1 %v11583_v58  ;;  %8293 = vmatprep.subr.bf16.mxu0 %v11588_v18  ;;  %v11633_v58 = vld [vmem:[#allocation22 + $0xa8] ss:$60 sps:$4 sm:$0xff]   ;;  %v11637_v18 = vld [vmem:[#allocation22 + $0xb0] ss:$60 sps:$4 sm:$0xff]  }
 0x88c   :  { %v11761_v24 = vpop.eup %11760  ;;  %v8605_v27 = vadd.f32 1.0, %v11759_v21  ;;  %8375 = vmatprep.subr.bf16.mxu1 %v11591_v19  ;;  %v11640_v19 = vld [vmem:[#allocation22 + $0x124] ss:$60 sps:$4 sm:$0xff]  }
 0x88d   :  { %v11763_v30 = vpop.eup %11762  ;;  %v8607_v4 = vadd.f32 1.0, %v11761_v24  ;;  %v11638_v21 = vld [vmem:[#allocation22 + $0x120] ss:$60 sps:$4 sm:$0xff]  }
 0x88e   :  { %v11765_v31 = vpop.eup %11764  ;;  %11766 = vrcp.f32 %v8605_v27  ;;  %v8606_v32 = vadd.f32 1.0, %v11763_v30  ;;  %8294 = vmatpush1.bf16.msra.mxu0 %v11586_v20  ;;  %v11641_v20 = vld [vmem:[#allocation22 + $0x4e8] ss:$60 sps:$4 sm:$0xff]   ;;  %v11646_v24 = vld [vmem:[#allocation22 + $0x560] ss:$60 sps:$4 sm:$0xff]  }
 0x88f   :  { %11768 = vrcp.f32 %v8607_v4  ;;  %v8608_v36 = vadd.f32 1.0, %v11765_v31  ;;  %8376 = vmatpush1.bf16.msra.mxu1 %v11589_v22  ;;  %8295 = vmatprep.subr.bf16.mxu0 %v11594_v23  ;;  %v11642_v22 = vld [vmem:[#allocation22 + $0x128] ss:$60 sps:$4 sm:$0xff]   ;;  %v11645_v23 = vld [vmem:[#allocation22 + $0x19c] ss:$60 sps:$4 sm:$0xff]  }
 0x890   :  { %11770 = vrcp.f32 %v8606_v32  ;;  %8377 = vmatprep.subr.bf16.mxu1 %v11597_v46  ;;  %v11643_v27 = vld [vmem:[#allocation22 + $0x198] ss:$60 sps:$4 sm:$0xff]   ;;  %v11647_v46 = vld [vmem:[#allocation22 + $0x1a0] ss:$60 sps:$4 sm:$0xff]   ;;  %v11655_v32 = vld [vmem:[#allocation22 + $0x28c] ss:$60 sps:$4 sm:$0xff]  }
 0x891   :  { %11772 = vrcp.f32 %v8608_v36  ;;  %v11650_v30 = vld [vmem:[#allocation22 + $0x214] ss:$60 sps:$4 sm:$0xff]   ;;  %v11653_v36 = vld [vmem:[#allocation22 + $0x288] ss:$60 sps:$4 sm:$0xff]  }
 0x892   :  { %8296 = vmatpush1.bf16.msra.mxu0 %v11592_v35  ;;  %v11651_v4 = vld [vmem:[#allocation22 + $0x5d8] ss:$60 sps:$4 sm:$0xff]   ;;  %v11656_v35 = vld [vmem:[#allocation22 + $0x650] ss:$60 sps:$4 sm:$0xff]  }
 0x893   :  { %8378 = vmatpush1.bf16.msra.mxu1 %v11595_v37  ;;  %8297 = vmatprep.subr.bf16.mxu0 %v11600_v15  ;;  %v11652_v31 = vld [vmem:[#allocation22 + $0x218] ss:$60 sps:$4 sm:$0xff]   ;;  %v11657_v37 = vld [vmem:[#allocation22 + $0x290] ss:$60 sps:$4 sm:$0xff]   ;;  %v11660_v15 = vld [vmem:[#allocation22 + $0x304] ss:$60 sps:$4 sm:$0xff]  }
 0x894   :  { %8379 = vmatprep.subr.bf16.mxu1 %v11603_v48  ;;  %v11661_v48 = vld [vmem:[#allocation22 + $0x6c8] ss:$60 sps:$4 sm:$0xff]  }
 0x896   :  { %8298 = vmatpush1.bf16.msra.mxu0 %v11598_v41  ;;  %v11658_v41 = vld [vmem:[#allocation22 + $0x300] ss:$60 sps:$4 sm:$0xff]  }
 0x897   :  { %8380 = vmatpush1.bf16.msra.mxu1 %v11601_v42  ;;  %8299 = vmatprep.subr.bf16.mxu0 %v11606_v59  ;;  %v11662_v42 = vld [vmem:[#allocation22 + $0x308] ss:$60 sps:$4 sm:$0xff]   ;;  %v11665_v59 = vld [vmem:[#allocation22 + $0x37c] ss:$60 sps:$4 sm:$0xff]  }
 0x898   :  { %v11767_v0 = vpop.eup %11766  ;;  %8381 = vmatprep.subr.bf16.mxu1 %v11609_v43  ;;  %v11666_v43 = vld [vmem:[#allocation22 + $0x740] ss:$60 sps:$4 sm:$0xff]  }
 0x899   :  { %v11769_v40 = vpop.eup %11768 }
 0x89a   :  { %v11771_v28 = vpop.eup %11770  ;;  %8300 = vmatpush1.bf16.msra.mxu0 %v11604_v44  ;;  %v11663_v44 = vld [vmem:[#allocation22 + $0x378] ss:$60 sps:$4 sm:$0xff]  }
 0x89b   :  { %v11773_v52 = vpop.eup %11772  ;;  %v9951_v54 = vpack.c.bf16 %v11771_v28, %v11767_v0  ;;  %8382 = vmatpush1.bf16.msra.mxu1 %v11607_v14  ;;  %8301 = vmatprep.subr.bf16.mxu0 %v11612_v47  ;;  %v11667_v14 = vld [vmem:[#allocation22 + $0x380] ss:$60 sps:$4 sm:$0xff]   ;;  %v11670_v47 = vld [vmem:[#allocation22 + $0x3f4] ss:$60 sps:$4 sm:$0xff]   ;;  %v11675_v28 = vld [vmem:[#allocation22 + $0x46c] ss:$60 sps:$4 sm:$0xff]  }
 0x89c   :  { %v9952_v60 = vpack.c.bf16 %v11773_v52, %v11769_v40  ;;  %8383 = vmatprep.subr.bf16.mxu1 %v11615_v39  ;;  %v11671_v0 = vld [vmem:[#allocation22 + $0xb78] ss:$60 sps:$4 sm:$0xff]   ;;  %v11668_v39 = vld [vmem:[#allocation22 + $0x3f0] ss:$60 sps:$4 sm:$0xff]   ;;  %v11673_v52 = vld [vmem:[#allocation22 + $0x468] ss:$60 sps:$4 sm:$0xff]  }
 0x89d   :  { %v12712_v51 = vrot.slane %v9951_v54, %v12520_v34  ;;  %v11672_v40 = vld [vmem:[#allocation22 + $0x7b8] ss:$60 sps:$4 sm:$0xff]   ;;  %v11677_v54 = vld [vmem:[#allocation22 + $0x830] ss:$60 sps:$4 sm:$0xff]  }
 0x89e   :  { %v12715_v62 = vrot.slane %v9952_v60, %v12520_v34  ;;  %8302 = vmatpush1.bf16.msra.mxu0 %v11610_v49  ;;  %v11676_v49 = vld [vmem:[#allocation22 + $0xbf0] ss:$60 sps:$4 sm:$0xff]   ;;  %v11678_v60 = vld [vmem:[#allocation22 + $0x4e0] ss:$60 sps:$4 sm:$0xff]  }
 0x89f   :  { %8384 = vmatpush1.bf16.msra.mxu1 %v11613_v55  ;;  %8303 = vmatprep.subr.bf16.mxu0 %v11618_v56  ;;  %v11680_v55 = vld [vmem:[#allocation22 + $0x4e4] ss:$60 sps:$4 sm:$0xff]  }
 0x8a0   :  { %v8712_v3 = vcombine.low %v12712_v51, %v12715_v62  ;;  %v8713_v5 = vcombine.high %v12712_v51, %v12715_v62  ;;  %8385 = vmatprep.subr.bf16.mxu1 %v11621_v61  ;;  %v11681_v56 = vld [vmem:[#allocation22 + $0xc68] ss:$60 sps:$4 sm:$0xff]  }
 0x8a1   :  { %v11682_v61 = vld [vmem:[#allocation22 + $0x8a8] ss:$60 sps:$4 sm:$0xff]  }
 0x8a2   :  { %8304 = vmatpush1.bf16.msra.mxu0 %v11616_v63  ;;  %v11685_v63 = vld [vmem:[#allocation22 + $0x55c] ss:$60 sps:$4 sm:$0xff]   ;;  %v12757_v51 = vld [vmem:[#allocation23 + $0x8] sm:$0xff] }
 0x8a3   :  { %8386 = vmatpush1.bf16.msra.mxu1 %v11619_v1  ;;  %8305 = vmatprep.subr.bf16.mxu0 %v11624_v2  ;;  %v11686_v1 = vld [vmem:[#allocation22 + $0xce0] ss:$60 sps:$4 sm:$0xff]   ;;  %v11683_v2 = vld [vmem:[#allocation22 + $0x558] ss:$60 sps:$4 sm:$0xff]   ;;  %v5434_v62 = vrot.slane %v12757_v51, %v12636_v25 }
 0x8a4   :  { %8387 = vmatprep.subr.bf16.mxu1 %v11627_v6  ;;  %v11687_v6 = vld [vmem:[#allocation22 + $0x920] ss:$60 sps:$4 sm:$0xff]  }
 0x8a6   :  { %8306 = vmatpush1.bf16.msra.mxu0 %v11622_v7  ;;  %v11690_v7 = vld [vmem:[#allocation22 + $0x5d4] ss:$60 sps:$4 sm:$0xff]  }
 0x8a7   :  { %8388 = vmatpush1.bf16.msra.mxu1 %v11625_v10  ;;  %8398 = vmatprep.subr.bf16.mxu0 %v11630_v11  ;;  %v11691_v10 = vld [vmem:[#allocation22 + $0xd58] ss:$60 sps:$4 sm:$0xff]   ;;  %v11688_v11 = vld [vmem:[#allocation22 + $0x5d0] ss:$60 sps:$4 sm:$0xff]  }
 0x8a8   :  { %10011 = vmatprep.subr.bf16.mxu1 %v11631_v50  ;;  %v11692_v50 = vld [vmem:[#allocation22 + $0x998] ss:$60 sps:$4 sm:$0xff]  }
 0x8a9   :  { %8308 = vmatmul.mubr.bf16.vlgmr.msra.gmra.mrb[24].mxu0 %v12683_v45 }
 0x8aa   :  { %8390 = vmatmul.mubr.bf16.vlgmr.msra.gmra.mrb[28].mxu1 %v12683_v45  ;;  %8399 = vmatpush1.bf16.msra.mxu0 %v11628_v12  ;;  %v11695_v12 = vld [vmem:[#allocation22 + $0x64c] ss:$60 sps:$4 sm:$0xff]  }
 0x8ab   :  { %8430 = vmatprep.mubr.bf16.mxu0 %v12668_v29  ;;  %10012 = vmatpush3.bf16.msra.mxu1 %v11632_v13  ;;  %v11696_v13 = vld [vmem:[#allocation22 + $0xdd0] ss:$60 sps:$4 sm:$0xff]  }
 0x8ac   :  { %8512 = vmatprep.mubr.bf16.mxu1 %v12668_v29  ;;  %8400 = vmatprep.subr.bf16.mxu0 %v11635_v16  ;;  %v11648_v29 = vld [vmem:[#allocation22 + $0x210] ss:$60 sps:$4 sm:$0xff]   ;;  %v11693_v16 = vld [vmem:[#allocation22 + $0x648] ss:$60 sps:$4 sm:$0xff]  }
 0x8ad   :  { %10013 = vmatprep.subr.bf16.mxu1 %v11636_v17  ;;  %v11697_v17 = vld [vmem:[#allocation22 + $0xa10] ss:$60 sps:$4 sm:$0xff]  }
 0x8ae   :  { %8401 = vmatpush1.bf16.msra.mxu0 %v11633_v58  ;;  %v11700_v58 = vld [vmem:[#allocation22 + $0x6c4] ss:$60 sps:$4 sm:$0xff]  }
 0x8af   :  { %10014 = vmatpush3.bf16.msra.mxu1 %v11637_v18  ;;  %8402 = vmatprep.subr.bf16.mxu0 %v11640_v19  ;;  %v11701_v18 = vld [vmem:[#allocation22 + $0xe48] ss:$60 sps:$4 sm:$0xff]   ;;  %v11698_v19 = vld [vmem:[#allocation22 + $0x6c0] ss:$60 sps:$4 sm:$0xff]  }
 0x8b0   :  { %10015 = vmatprep.subr.bf16.mxu1 %v11641_v20  ;;  %v11702_v20 = vld [vmem:[#allocation22 + $0xa88] ss:$60 sps:$4 sm:$0xff]  }
 0x8b2   :  { %8403 = vmatpush1.bf16.msra.mxu0 %v11638_v21  ;;  %v11705_v21 = vld [vmem:[#allocation22 + $0x73c] ss:$60 sps:$4 sm:$0xff]  }
 0x8b3   :  { %10016 = vmatpush3.bf16.msra.mxu1 %v11642_v22  ;;  %8404 = vmatprep.subr.bf16.mxu0 %v11645_v23  ;;  %v11706_v22 = vld [vmem:[#allocation22 + $0xec0] ss:$60 sps:$4 sm:$0xff]   ;;  %v11703_v23 = vld [vmem:[#allocation22 + $0x738] ss:$60 sps:$4 sm:$0xff]  }
 0x8b4   :  { %10017 = vmatprep.subr.bf16.mxu1 %v11646_v24  ;;  %v11707_v24 = vld [vmem:[#allocation22 + $0xb00] ss:$60 sps:$4 sm:$0xff]  }
 0x8b6   :  { %8405 = vmatpush1.bf16.msra.mxu0 %v11643_v27  ;;  %v11710_v27 = vld [vmem:[#allocation22 + $0x7b4] ss:$60 sps:$4 sm:$0xff]  }
 0x8b7   :  { %10018 = vmatpush3.bf16.msra.mxu1 %v11647_v46  ;;  %8406 = vmatprep.subr.bf16.mxu0 %v11650_v30  ;;  %v11708_v46 = vld [vmem:[#allocation22 + $0x7b0] ss:$60 sps:$4 sm:$0xff]  }
 0x8b8   :  { %10019 = vmatprep.subr.bf16.mxu1 %v11651_v4  ;;  %v11713_v30 = vld [vmem:[#allocation22 + $0x82c] ss:$60 sps:$4 sm:$0xff]  }
 0x8b9   :  { %v11711_v4 = vld [vmem:[#allocation22 + $0x828] ss:$60 sps:$4 sm:$0xff]  }
 0x8ba   :  { %8407 = vmatpush1.bf16.msra.mxu0 %v11648_v29  ;;  %v11716_v29 = vld [vmem:[#allocation22 + $0x8a4] ss:$60 sps:$4 sm:$0xff]  }
 0x8bb   :  { %10020 = vmatpush3.bf16.msra.mxu1 %v11652_v31  ;;  %8408 = vmatprep.subr.bf16.mxu0 %v11655_v32  ;;  %v11714_v31 = vld [vmem:[#allocation22 + $0x8a0] ss:$60 sps:$4 sm:$0xff]  }
 0x8bc   :  { %10021 = vmatprep.subr.bf16.mxu1 %v11656_v35  ;;  %v11719_v32 = vld [vmem:[#allocation22 + $0x91c] ss:$60 sps:$4 sm:$0xff]  }
 0x8bd   :  { %v11717_v35 = vld [vmem:[#allocation22 + $0x918] ss:$60 sps:$4 sm:$0xff]  }
 0x8be   :  { %8409 = vmatpush1.bf16.msra.mxu0 %v11653_v36  ;;  %v11722_v36 = vld [vmem:[#allocation22 + $0x994] ss:$60 sps:$4 sm:$0xff]  }
 0x8bf   :  { %10022 = vmatpush3.bf16.msra.mxu1 %v11657_v37  ;;  %8410 = vmatprep.subr.bf16.mxu0 %v11660_v15  ;;  %v5417_v37 = vsub.s32 4, %v12517_v26  ;;  %v5425_v15 = vsub.s32 6, %v12517_v26 }
 0x8c0   :  { %10023 = vmatprep.subr.bf16.mxu1 %v11661_v48  ;;  %v5421_v48 = vsub.s32 5, %v12517_v26 }
 0x8c2   :  { %8411 = vmatpush1.bf16.msra.mxu0 %v11658_v41  ;;  %v11725_v41 = vld [vmem:[#allocation22 + $0xa0c] ss:$60 sps:$4 sm:$0xff]  }
 0x8c3   :  { %10024 = vmatpush3.bf16.msra.mxu1 %v11662_v42  ;;  %8412 = vmatprep.subr.bf16.mxu0 %v11665_v59  ;;  %v5418_v42 = vrot.slane %v12701_v38, %v5417_v37  ;;  %v5426_v59 = vrot.slane %v12701_v38, %v5425_v15 }
 0x8c4   :  { %10025 = vmatprep.subr.bf16.mxu1 %v11666_v43  ;;  %v5422_v43 = vrot.slane %v12701_v38, %v5421_v48 }
 0x8c6   :  { %8413 = vmatpush1.bf16.msra.mxu0 %v11663_v44  ;;  %v11723_v44 = vld [vmem:[#allocation22 + $0xa08] ss:$60 sps:$4 sm:$0xff]  }
 0x8c7   :  { %10026 = vmatpush3.bf16.msra.mxu1 %v11667_v14  ;;  %8414 = vmatprep.subr.bf16.mxu0 %v11670_v47  ;;  %v11728_v47 = vld [vmem:[#allocation22 + $0xa84] ss:$60 sps:$4 sm:$0xff]  }
 0x8c8   :  { %10033 = vmatprep.subr.bf16.mxu1 %v11671_v0 }
 0x8ca   :  { %8513 = vmatmul.mubr.bf16.vlgmr.msra.gmra.mrb[32].mxu1 %v12670_v57  ;;  %8415 = vmatpush1.bf16.msra.mxu0 %v11668_v39 }
 0x8cb   :  { %10034 = vmatpush3.bf16.msra.mxu1 %v11672_v40  ;;  %8552 = vmatprep.mubr.bf16.mxu1 %v12674_v33 }
 0x8cc   :  { %8416 = vmatprep.subr.bf16.mxu0 %v11675_v28  ;;  %10035 = vmatprep.subr.bf16.mxu1 %v11676_v49 }
 0x8ce   :  { %8417 = vmatpush1.bf16.msra.mxu0 %v11673_v52 }
 0x8cf   :  { %10036 = vmatpush3.bf16.msra.mxu1 %v11677_v54  ;;  %8418 = vmatprep.subr.bf16.mxu0 %v11680_v55 }
 0x8d0   :  { %10037 = vmatprep.subr.bf16.mxu1 %v11681_v56  ;;  %v11726_v56 = vld [vmem:[#allocation22 + $0xa80] ss:$60 sps:$4 sm:$0xff]  }
 0x8d2   :  { %8419 = vmatpush1.bf16.msra.mxu0 %v11678_v60 }
 0x8d3   :  { %10038 = vmatpush3.bf16.msra.mxu1 %v11682_v61  ;;  %8420 = vmatprep.subr.bf16.mxu0 %v11685_v63 }
 0x8d4   :  { %10039 = vmatprep.subr.bf16.mxu1 %v11686_v1 }
 0x8d6   :  { %8421 = vmatpush1.bf16.msra.mxu0 %v11683_v2  ;;  %v11731_v2 = vld [vmem:[#allocation22 + $0xafc] ss:$60 sps:$4 sm:$0xff]  }
 0x8d7   :  { %10040 = vmatpush3.bf16.msra.mxu1 %v11687_v6  ;;  %8422 = vmatprep.subr.bf16.mxu0 %v11690_v7 }
 0x8d8   :  { %10041 = vmatprep.subr.bf16.mxu1 %v11691_v10 }
 0x8da   :  { %8423 = vmatpush1.bf16.msra.mxu0 %v11688_v11  ;;  %v11729_v11 = vld [vmem:[#allocation22 + $0xaf8] ss:$60 sps:$4 sm:$0xff]  }
 0x8db   :  { %10042 = vmatpush3.bf16.msra.mxu1 %v11692_v50  ;;  %8424 = vmatprep.subr.bf16.mxu0 %v11695_v12  ;;  %v11734_v50 = vld [vmem:[#allocation22 + $0xb74] ss:$60 sps:$4 sm:$0xff]  }
 0x8dc   :  { %10043 = vmatprep.subr.bf16.mxu1 %v11696_v13  ;;  %v11732_v12 = vld [vmem:[#allocation22 + $0xb70] ss:$60 sps:$4 sm:$0xff]  }
 0x8dd   :  { %v11737_v13 = vld [vmem:[#allocation22 + $0xbec] ss:$60 sps:$4 sm:$0xff]  }
 0x8de   :  { %8425 = vmatpush1.bf16.msra.mxu0 %v11693_v16  ;;  %v11735_v16 = vld [vmem:[#allocation22 + $0xbe8] ss:$60 sps:$4 sm:$0xff]  }
 0x8df   :  { %10044 = vmatpush3.bf16.msra.mxu1 %v11697_v17  ;;  %8426 = vmatprep.subr.bf16.mxu0 %v11700_v58  ;;  %v11740_v58 = vld [vmem:[#allocation22 + $0xc64] ss:$60 sps:$4 sm:$0xff]  }
 0x8e0   :  { %10045 = vmatprep.subr.bf16.mxu1 %v11701_v18 }
 0x8e2   :  { %8427 = vmatpush1.bf16.msra.mxu0 %v11698_v19 }
 0x8e3   :  { %10046 = vmatpush3.bf16.msra.mxu1 %v11702_v20  ;;  %8428 = vmatprep.subr.bf16.mxu0 %v11705_v21 }
 0x8e4   :  { %10047 = vmatprep.subr.bf16.mxu1 %v11706_v22 }
 0x8e6   :  { %8429 = vmatpush1.bf16.msra.mxu0 %v11703_v23 }
 0x8e7   :  { %10048 = vmatpush3.bf16.msra.mxu1 %v11707_v24  ;;  %8439 = vmatprep.subr.bf16.mxu0 %v11710_v27  ;;  %v11738_v24 = vld [vmem:[#allocation22 + $0xc60] ss:$60 sps:$4 sm:$0xff]  }
 0x8e9   :  { %8431 = vmatmul.mubr.bf16.vlgmr.msra.gmra.mrb[28].mxu0 %v12670_v57  ;;  %v11720_v57 = vld [vmem:[#allocation22 + $0x990] ss:$60 sps:$4 sm:$0xff]  }
 0x8ea   :  { %8553 = vmatmul.mubr.bf16.vlgmr.msra.gmra.mrb[36].mxu1 %v12683_v45  ;;  %8440 = vmatpush1.bf16.msra.mxu0 %v11708_v46  ;;  %v11743_v46 = vld [vmem:[#allocation22 + $0xcdc] ss:$60 sps:$4 sm:$0xff]  }
 0x8eb   :  { %8471 = vmatprep.mubr.bf16.mxu0 %v12674_v33  ;;  %8441 = vmatprep.subr.bf16.mxu0 %v11713_v30  ;;  %v5429_v33 = vsub.s32 7, %v12517_v26  ;;  %v11741_v30 = vld [vmem:[#allocation22 + $0xcd8] ss:$60 sps:$4 sm:$0xff]  }
 0x8ed   :  { %v5430_v14 = vrot.slane %v12701_v38, %v5429_v33 }
 0x8ee   :  { %8442 = vmatpush1.bf16.msra.mxu0 %v11711_v4  ;;  %v11746_v4 = vld [vmem:[#allocation22 + $0xd54] ss:$60 sps:$4 sm:$0xff]  }
 0x8ef   :  { %8443 = vmatprep.subr.bf16.mxu0 %v11716_v29  ;;  %v11744_v29 = vld [vmem:[#allocation22 + $0xd50] ss:$60 sps:$4 sm:$0xff]  }
 0x8f2   :  { %8444 = vmatpush1.bf16.msra.mxu0 %v11714_v31  ;;  %v11749_v31 = vld [vmem:[#allocation22 + $0xdcc] ss:$60 sps:$4 sm:$0xff]  }
 0x8f3   :  { %8445 = vmatprep.subr.bf16.mxu0 %v11719_v32 }
 0x8f6   :  { %8446 = vmatpush1.bf16.msra.mxu0 %v11717_v35 }
 0x8f7   :  { %8447 = vmatprep.subr.bf16.mxu0 %v11722_v36 }
 0x8fa   :  { %8448 = vmatpush1.bf16.msra.mxu0 %v11720_v57  ;;  %v11747_v57 = vld [vmem:[#allocation22 + $0xdc8] ss:$60 sps:$4 sm:$0xff]  }
 0x8fb   :  { %8449 = vmatprep.subr.bf16.mxu0 %v11725_v41 }
 0x8fc   :  { %v8145_v0 = vpop.f32.mrb[20].mxu0 }
 0x8fd   :  { %v10085_v39 = vadd.f32 %v8145_v0, %v5418_v42  ;;  %v8227_v40 = vpop.f32.mrb[24].mxu1  ;;  %v8147_v28 = vpop.f32.mrb[21].mxu0  ;;  %v11752_v42 = vld [vmem:[#allocation22 + $0xe44] ss:$60 sps:$4 sm:$0xff]  }
 0x8fe   :  { %v10087_v49 = vadd.f32 %v8227_v40, %v5426_v59  ;;  %v10086_v52 = vadd.f32 %v8147_v28, %v5422_v43  ;;  %v8229_v54 = vpop.f32.mrb[25].mxu1  ;;  %v8149_v55 = vpop.f32.mrb[22].mxu0  ;;  %8450 = vmatpush1.bf16.msra.mxu0 %v11723_v44  ;;  %v8722_v40 = vrot.slane %v8712_v3, %v12520_v34  ;;  %v8729_v28 = vrot.slane %v8713_v5, %v12520_v34 }
 0x8ff   :  { %v9940_v60 = vmul.f32 -1.442695, %v10085_v39  ;;  %v10088_v61 = vadd.f32 %v8229_v54, %v5430_v14  ;;  %v8231_v63 = vpop.f32.mrb[26].mxu1  ;;  %v8150_v1 = vpop.f32.mrb[23].mxu0  ;;  %8451 = vmatprep.subr.bf16.mxu0 %v11728_v47  ;;  %v11750_v14 = vld [vmem:[#allocation22 + $0xe40] ss:$60 sps:$4 sm:$0xff]   ;;  %v5442_v3 = vrot.slane %v12757_v51, %v12647_v8  ;;  %v5438_v5 = vrot.slane %v12757_v51, %v12639_v53 }
 0x900   :  { %v9942_v6 = vmul.f32 -1.442695, %v10087_v49  ;;  %v9941_v38 = vmul.f32 -1.442695, %v10086_v52  ;;  %v8232_v7 = vpop.f32.mrb[27].mxu1  ;;  %v5446_v63 = vrot.slane %v12757_v51, %v12650_v9 }
 0x901   :  { %11774 = vpow2.f32 %v9940_v60  ;;  %v9943_v10 = vmul.f32 -1.442695, %v10088_v61  ;;  %v11755_v47 = vld [vmem:[#allocation22 + $0xebc] ss:$60 sps:$4 sm:$0xff]  }
 0x902   :  { %11776 = vpow2.f32 %v9942_v6  ;;  %8452 = vmatpush1.bf16.msra.mxu0 %v11726_v56  ;;  %v11753_v54 = vld [vmem:[#allocation22 + $0xeb8] ss:$60 sps:$4 sm:$0xff]  }
 0x903   :  { %11778 = vpow2.f32 %v9941_v38  ;;  %8453 = vmatprep.subr.bf16.mxu0 %v11731_v2 }
 0x904   :  { %11780 = vpow2.f32 %v9943_v10 }
 0x906   :  { %8454 = vmatpush1.bf16.msra.mxu0 %v11729_v11 }
 0x907   :  { %8455 = vmatprep.subr.bf16.mxu0 %v11734_v50 }
 0x90a   :  { %8456 = vmatpush1.bf16.msra.mxu0 %v11732_v12 }
 0x90b   :  { %v11775_v17 = vpop.eup %11774  ;;  %8457 = vmatprep.subr.bf16.mxu0 %v11737_v13 }
 0x90c   :  { %v11777_v18 = vpop.eup %11776  ;;  %v8609_v19 = vadd.f32 1.0, %v11775_v17 }
 0x90d   :  { %v11779_v20 = vpop.eup %11778  ;;  %v8611_v21 = vadd.f32 1.0, %v11777_v18 }
 0x90e   :  { %v11781_v22 = vpop.eup %11780  ;;  %11782 = vrcp.f32 %v8609_v19  ;;  %v8610_v23 = vadd.f32 1.0, %v11779_v20  ;;  %8458 = vmatpush1.bf16.msra.mxu0 %v11735_v16 }
 0x90f   :  { %11784 = vrcp.f32 %v8611_v21  ;;  %v8612_v27 = vadd.f32 1.0, %v11781_v22  ;;  %8459 = vmatprep.subr.bf16.mxu0 %v11740_v58 }
 0x910   :  { %11786 = vrcp.f32 %v8610_v23 }
 0x911   :  { %11788 = vrcp.f32 %v8612_v27 }
 0x912   :  { %8460 = vmatpush1.bf16.msra.mxu0 %v11738_v24 }
 0x913   :  { %8461 = vmatprep.subr.bf16.mxu0 %v11743_v46 }
 0x916   :  { %8462 = vmatpush1.bf16.msra.mxu0 %v11741_v30 }
 0x917   :  { %8463 = vmatprep.subr.bf16.mxu0 %v11746_v4 }
 0x918   :  { %v11783_v32 = vpop.eup %11782 }
 0x919   :  { %v11785_v35 = vpop.eup %11784 }
 0x91a   :  { %v11787_v36 = vpop.eup %11786  ;;  %8464 = vmatpush1.bf16.msra.mxu0 %v11744_v29 }
 0x91b   :  { %v11789_v33 = vpop.eup %11788  ;;  %v9953_v41 = vpack.c.bf16 %v11787_v36, %v11783_v32  ;;  %8465 = vmatprep.subr.bf16.mxu0 %v11749_v31 }
 0x91c   :  { %v9954_v59 = vpack.c.bf16 %v11789_v33, %v11785_v35 }
 0x91d   :  { %v8704_v43 = vrot.slane %v9953_v41, %v12520_v34 }
 0x91e   :  { %v8711_v44 = vrot.slane %v9954_v59, %v12520_v34  ;;  %8466 = vmatpush1.bf16.msra.mxu0 %v11747_v57 }
 0x91f   :  { %8467 = vmatprep.subr.bf16.mxu0 %v11752_v42 }
 0x920   :  { %v8714_v0 = vcombine.low %v8704_v43, %v8711_v44  ;;  %v8715_v39 = vcombine.high %v8704_v43, %v8711_v44  ;;  %v5458_v43 = vrot.slane %v12757_v51, %v5425_v15 }
 0x922   :  { %v8736_v49 = vrot.slane %v8714_v0, %v12520_v34  ;;  %v8743_v52 = vrot.slane %v8715_v39, %v12520_v34  ;;  %8468 = vmatpush1.bf16.msra.mxu0 %v11750_v14 }
 0x923   :  { %8469 = vmatprep.subr.bf16.mxu0 %v11755_v47 }
 0x924   :  { %v8744_v55 = vcombine.low %v8722_v40, %v8736_v49  ;;  %v8745_v56 = vcombine.high %v8722_v40, %v8736_v49  ;;  %v8746_v60 = vcombine.low %v8729_v28, %v8743_v52  ;;  %v8747_v61 = vcombine.high %v8729_v28, %v8743_v52 }
 0x925   :  { %v5450_v52 = vrot.slane %v12757_v51, %v5417_v37 }
 0x926   :  { %8823 = vst [vmem:[#allocation25] sm:$0xff] %v8744_v55  ;;  %8825 = vst [vmem:[#allocation25 + $0xf] sm:$0xff] %v8746_v60  ;;  %8470 = vmatpush1.bf16.msra.mxu0 %v11753_v54  ;;  %v5454_v54 = vrot.slane %v12757_v51, %v5421_v48 }
 0x927   :  { %8827 = vst [vmem:[#allocation25 + $0x1e] sm:$0xff] %v8745_v56  ;;  %8829 = vst [vmem:[#allocation25 + $0x2d] sm:$0xff] %v8747_v61 }
 0x929   :  { %8472 = vmatmul.mubr.bf16.vlgmr.msra.gmra.mrb[28].mxu0 %v12683_v45 }
 0x97c   :  { %v8309_v1 = vpop.f32.mrb[24].mxu0 }
 0x97d   :  { %v10089_v2 = vadd.f32 %v8309_v1, %v5434_v62  ;;  %v8391_v6 = vpop.f32.mrb[28].mxu1  ;;  %v8311_v38 = vpop.f32.mrb[25].mxu0 }
 0x97e   :  { %v10091_v7 = vadd.f32 %v8391_v6, %v5442_v3  ;;  %v10090_v45 = vadd.f32 %v8311_v38, %v5438_v5  ;;  %v8393_v10 = vpop.f32.mrb[29].mxu1  ;;  %v8313_v11 = vpop.f32.mrb[26].mxu0 }
 0x97f   :  { %v9944_v50 = vmul.f32 -1.442695, %v10089_v2  ;;  %v10092_v12 = vadd.f32 %v8393_v10, %v5446_v63  ;;  %v8395_v25 = vpop.f32.mrb[30].mxu1  ;;  %v8314_v13 = vpop.f32.mrb[27].mxu0 }
 0x980   :  { %v9946_v16 = vmul.f32 -1.442695, %v10091_v7  ;;  %v9945_v8 = vmul.f32 -1.442695, %v10090_v45  ;;  %v8396_v17 = vpop.f32.mrb[31].mxu1 }
 0x981   :  { %11790 = vpow2.f32 %v9944_v50  ;;  %v9947_v53 = vmul.f32 -1.442695, %v10092_v12 }
 0x982   :  { %11792 = vpow2.f32 %v9946_v16 }
 0x983   :  { %11794 = vpow2.f32 %v9945_v8 }
 0x984   :  { %11796 = vpow2.f32 %v9947_v53 }
 0x98b   :  { %v11791_v9 = vpop.eup %11790 }
 0x98c   :  { %v11793_v58 = vpop.eup %11792  ;;  %v8613_v18 = vadd.f32 1.0, %v11791_v9 }
 0x98d   :  { %v11795_v19 = vpop.eup %11794  ;;  %v8615_v20 = vadd.f32 1.0, %v11793_v58 }
 0x98e   :  { %v11797_v21 = vpop.eup %11796  ;;  %11798 = vrcp.f32 %v8613_v18  ;;  %v8614_v22 = vadd.f32 1.0, %v11795_v19 }
 0x98f   :  { %11800 = vrcp.f32 %v8615_v20  ;;  %v8616_v23 = vadd.f32 1.0, %v11797_v21 }
 0x990   :  { %11802 = vrcp.f32 %v8614_v22 }
 0x991   :  { %11804 = vrcp.f32 %v8616_v23 }
 0x998   :  { %v11799_v24 = vpop.eup %11798 }
 0x999   :  { %v11801_v27 = vpop.eup %11800 }
 0x99a   :  { %v11803_v46 = vpop.eup %11802 }
 0x99b   :  { %v11805_v30 = vpop.eup %11804  ;;  %v9955_v4 = vpack.c.bf16 %v11803_v46, %v11799_v24 }
 0x99c   :  { %v9956_v29 = vpack.c.bf16 %v11805_v30, %v11801_v27 }
 0x99d   :  { %v8757_v31 = vrot.slane %v9955_v4, %v12520_v34  ;;  %v10027_v32 = vpop.f32.mrb[32].mxu1 }
 0x99e   :  { %v8764_v35 = vrot.slane %v9956_v29, %v12520_v34  ;;  %v10028_v36 = vpop.f32.mrb[33].mxu1 }
 0x99f   :  { %v10029_v57 = vadd.f32 %v10028_v36, %v10027_v32  ;;  %v10030_v33 = vpop.f32.mrb[34].mxu1 }
 0x9a0   :  { %v8779_v41 = vcombine.low %v8757_v31, %v8764_v35  ;;  %v8780_v42 = vcombine.high %v8757_v31, %v8764_v35  ;;  %v10031_v59 = vpop.f32.mrb[35].mxu1 }
 0x9a1   :  { %v8515_v47 = vadd.f32 %v10029_v57, %v5458_v43 }
 0x9a2   :  { %v8789_v25 = vrot.slane %v8779_v41, %v12520_v34  ;;  %v8796_v13 = vrot.slane %v8780_v42, %v12520_v34 }
 0x9bd   :  { %v10049_v44 = vpop.f32.mrb[36].mxu1 }
 0x9be   :  { %v10050_v14 = vpop.f32.mrb[37].mxu1 }
 0x9bf   :  { %v10051_v0 = vadd.f32 %v10050_v14, %v10049_v44  ;;  %v10052_v39 = vpop.f32.mrb[38].mxu1 }
 0x9c0   :  { %v10053_v40 = vpop.f32.mrb[39].mxu1 }
 0x9c1   :  { %v8555_v28 = vadd.f32 %v10051_v0, %v8515_v47 }
 0x9c3   :  { %v9950_v49 = vmul.f32 -1.442695, %v8555_v28 }
 0x9c5   :  { %11806 = vpow2.f32 %v9950_v49 }
 0x9cf   :  { %v11807_v63 = vpop.eup %11806 }
 0x9d0   :  { %v8619_v1 = vadd.f32 1.0, %v11807_v63 }
 0x9fc   :  { %v8473_v55 = vpop.f32.mrb[28].mxu0 }
 0x9fd   :  { %v10093_v56 = vadd.f32 %v8473_v55, %v5450_v52  ;;  %v8475_v15 = vpop.f32.mrb[29].mxu0 }
 0x9fe   :  { %v10094_v60 = vadd.f32 %v8475_v15, %v5454_v54  ;;  %v8477_v61 = vpop.f32.mrb[30].mxu0 }
 0x9ff   :  { %v9948_v62 = vmul.f32 -1.442695, %v10093_v56  ;;  %v8478_v3 = vpop.f32.mrb[31].mxu0 }
 0xa00   :  { %v9949_v5 = vmul.f32 -1.442695, %v10094_v60 }
 0xa01   :  { %11808 = vpow2.f32 %v9948_v62 }
 0xa02   :  { %11810 = vpow2.f32 %v9949_v5 }
 0xa03   :  { %11812 = vrcp.f32 %v8619_v1 }
 0xa0b   :  { %v11809_v2 = vpop.eup %11808 }
 0xa0c   :  { %v11811_v37 = vpop.eup %11810  ;;  %v8617_v6 = vadd.f32 1.0, %v11809_v2 }
 0xa0d   :  { %v8618_v38 = vadd.f32 1.0, %v11811_v37  ;;  %v11813_v26 = vpop.eup %11812 }
 0xa0e   :  { %11814 = vrcp.f32 %v8617_v6  ;;  %v8664_v51 = vpack.c.bf16 %v11813_v26, %v11813_v26 }
 0xa0f   :  { %11816 = vrcp.f32 %v8618_v38 }
 0xa10   :  { %v8778_v10 = vrot.slane %v8664_v51, %v12520_v34 }
 0xa18   :  { %v11815_v48 = vpop.eup %11814 }
 0xa19   :  { %v11817_v7 = vpop.eup %11816 }
 0xa1a   :  { %v9957_v45 = vpack.c.bf16 %v11817_v7, %v11815_v48 }
 0xa1c   :  { %v8771_v11 = vrot.slane %v9957_v45, %v12520_v34 }
 0xa1e   :  { %v8781_v50 = vcombine.low %v8771_v11, %v8778_v10  ;;  %v8782_v12 = vcombine.high %v8771_v11, %v8778_v10 }
 0xa20   :  { %v8803_v16 = vrot.slane %v8781_v50, %v12520_v34  ;;  %v8810_v8 = vrot.slane %v8782_v12, %v12520_v34 }
 0xa22   :  { %v8811_v17 = vcombine.low %v8789_v25, %v8803_v16  ;;  %v8812_v53 = vcombine.high %v8789_v25, %v8803_v16  ;;  %v8813_v9 = vcombine.low %v8796_v13, %v8810_v8  ;;  %v8814_v58 = vcombine.high %v8796_v13, %v8810_v8 }
 0xa24   :  { %8824 = vst [vmem:[#allocation25 + $0x8] sm:$0x7f] %v8811_v17  ;;  %8826 = vst [vmem:[#allocation25 + $0x17] sm:$0x7f] %v8813_v9 }
 0xa25   :  { %8828 = vst [vmem:[#allocation25 + $0x26] sm:$0x7f] %v8812_v53  ;;  %8830 = vst [vmem:[#allocation25 + $0x35] sm:$0x7f] %v8814_v58 }
 0xa26   :  { %8835 = vsyncadd [#allocation4], 720  ;;  %s12242_s13 = smov [#allocation25]  }
 0xa27   :  { %s8836_s16 = sshll.u32 %s12242_s13, 4  ;;  %s8837_s16 = int_to_ptr.vmem [resolvable:$true] %s8836_s16 }
 0xa28   :  { %s12126_s30 = scalar_lea.vmem %s8837_s16, 240  ;;  %s12130_s17 = scalar_lea.vmem %s8837_s16, 960 }
 0xa29   :  { %p12127_p0 = scmp.ne.s32.totalorder %s8837_s16, %s12126_s30  ;;  %p12131_p1 = scmp.lt.s32.totalorder %s8837_s16, %s8837_s16 }
 0xa2a   :  { %p12132_p2 = scmp.lt.s32.totalorder %s12130_s17, %s12126_s30 }
 0xa2c   :  { %p12133_p3 = por %p12132_p2, %p12131_p1 }
 0xa2e   :  { %p12134_p4 = pnand %p12133_p3, %p12127_p0 }
 0xa30   :  { %12137 = shalt.err (!%p12134_p4)
}
 0xa31   :  { %s12138_s22 = scalar_lea.hbm %s12843_s14, 240 }
 0xa32   :  { %p12139_p5 = scmp.ne.s32.totalorder %s12843_s14, %s12138_s22  ;;  %p12142_p6 = scmp.lt.u32.totalorder %s12138_s22, %s12843_s14 }
 0xa34   :  { %p12144_p7 = pnand %p12142_p6, %p12139_p5 }
 0xa36   :  { %12147 = shalt.err (!%p12144_p7)
}
 0xa37   :  { %s12853_s11 = smov 15   ;;  %s12854_s29 = smov 240  }
 0xa38   :  { %8842 = dma.vmem_to_hbm [thread:$0]  %s8837_s16, 240, %s12843_s14, [#allocation4], %s12854_s29, %s12854_s29, %s12853_s11  }
 0xa39   :  { %8847 = vsyncadd [#allocation27], 96  ;;  %s12243_s23 = smov [#allocation26]  }
 0xa3a   :  { %s8848_s4 = sshll.u32 %s12243_s23, 4  ;;  %s8849_s4 = int_to_ptr.vmem [resolvable:$true] %s8848_s4 }
 0xa3b   :  { %s12148_s28 = scalar_lea.vmem %s8849_s4, 32  ;;  %s12152_s18 = scalar_lea.vmem %s8849_s4, 128 }
 0xa3c   :  { %p12149_p8 = scmp.ne.s32.totalorder %s8849_s4, %s12148_s28  ;;  %p12153_p9 = scmp.lt.s32.totalorder %s8849_s4, %s8849_s4 }
 0xa3d   :  { %p12154_p10 = scmp.lt.s32.totalorder %s12152_s18, %s12148_s28 }
 0xa3f   :  { %p12155_p11 = por %p12154_p10, %p12153_p9 }
 0xa41   :  { %p12156_p12 = pnand %p12155_p11, %p12149_p8 }
 0xa43   :  { %12159 = shalt.err (!%p12156_p12)
}
 0xa44   :  { %s12160_s7 = scalar_lea.hbm %s12844_s15, 32 }
 0xa45   :  { %p12161_p13 = scmp.ne.s32.totalorder %s12844_s15, %s12160_s7  ;;  %p12164_p0 = scmp.lt.u32.totalorder %s12160_s7, %s12844_s15 }
 0xa47   :  { %p12166_p1 = pnand %p12164_p0, %p12161_p13 }
 0xa49   :  { %12169 = shalt.err (!%p12166_p1)
}
 0xa4a   :  { %8854 = dma.vmem_to_hbm [thread:$0]  %s8849_s4, 32, %s12844_s15, [#allocation27], %s12216_s25, %s12216_s25, %s12217_s21  }
 0xa4b   :  { %8859 = vsyncadd [#allocation27], 96  ;;  %s12244_s13 = smov [#allocation28]  }
 0xa4c   :  { %s8860_s16 = sshll.u32 %s12244_s13, 4  ;;  %s8861_s16 = int_to_ptr.vmem [resolvable:$true] %s8860_s16 }
 0xa4d   :  { %s12170_s30 = scalar_lea.vmem %s8861_s16, 32  ;;  %s12174_s17 = scalar_lea.vmem %s8861_s16, 128 }
 0xa4e   :  { %p12171_p2 = scmp.ne.s32.totalorder %s8861_s16, %s12170_s30  ;;  %p12175_p3 = scmp.lt.s32.totalorder %s8861_s16, %s8861_s16 }
 0xa4f   :  { %p12176_p4 = scmp.lt.s32.totalorder %s12174_s17, %s12170_s30 }
 0xa51   :  { %p12177_p5 = por %p12176_p4, %p12175_p3 }
 0xa53   :  { %p12178_p6 = pnand %p12177_p5, %p12171_p2 }
 0xa55   :  { %12181 = shalt.err (!%p12178_p6)
}
 0xa56   :  { %s12855_s22 = sld [smem:[#allocation40_spill]] }
 0xa5c   :  { %s12182_s24 = scalar_lea.hbm %s12855_s22, 32 }
 0xa5d   :  { %p12183_p7 = scmp.ne.s32.totalorder %s12855_s22, %s12182_s24  ;;  %p12186_p8 = scmp.lt.u32.totalorder %s12182_s24, %s12855_s22 }
 0xa5f   :  { %p12188_p9 = pnand %p12186_p8, %p12183_p7 }
 0xa61   :  { %12191 = shalt.err (!%p12188_p9)
}
 0xa62   :  { %8866 = dma.vmem_to_hbm [thread:$0]  %s8861_s16, 32, %s12855_s22, [#allocation27], %s12216_s25, %s12216_s25, %s12217_s21  }
 0xa63   :  { %12208 = dma.done.wait [#allocation4], 960  }
 0xa64   :  { %12209 = vsyncadd [#allocation4], 4294966336 }
 0xa65   :  { %12210 = dma.done.wait [#allocation27], 256  }
 0xa66   :  { %12211 = vsyncadd [#allocation27], 4294967040 }
 0xa67   :  { %8876 = vsyncpa [#allocation3], 1 }
 0xa68   :  { %8877 = vsyncpa [#allocation6], 1 }
 0xa69   :  { %8878 = vsyncpa [#allocation9], 1 }
 0xa6a   :  { %8879 = vsyncpa [#allocation12], 1 }
 0xa6b   :  { %8880 = vsyncpa [#allocation15], 1 }
 0xa6c   :  { %8881 = vsyncpa [#allocation18], 1 }
 0xa6d   :  { %8882 = vsyncpa [#allocation21], 1 }
 0xa6e   :  { %8883 = vsyncpa [#allocation24], 1 }
 0xa6f   :  { %8884 = vsyncpa [#allocation4], 1 }
 0xa70   :  { %8885 = vsyncpa [#allocation27], 1 }

</bundles_post_ra>
